<compile_context>
chip_gen: v6e
topology: v6e:2x2x1
jax: 0.10.0
libtpu: 0.0.40
codegen_flags: <defaults>
</compile_context>

<pallas_src>
import numpy as np
import jax
import jax.numpy as jnp
from jax.experimental import pallas as pl
from jax.experimental.pallas import tpu as pltpu


# ---------------------------------------------------------------------------
# Kernel 1: fused 3x3 conv (stride=1, padding=1) + bias + ReLU + 2x2 max-pool.
#
# Wrapper-side layout prep (cheap XLA fusions on tiny tensors):
#   * zero-pad spatially,
#   * split padded columns into even/odd phases (the stride-2 column
#     sub-sampling of the max-pool becomes an elementwise max of two conv
#     accumulators),
#   * concatenate the three column taps (dw = 0,1,2) along channels so each
#     kernel-row tap is one K = 3*cin matmul.
# maxpool(relu(conv + b)) == relu(maxpool(conv) + b) because relu is monotone
# and the bias is a per-channel constant.
# ---------------------------------------------------------------------------
def conv3x3_relu_pool(x, w, b):
    n, hh, ww, cin = x.shape
    cout = w.shape[-1]
    assert hh % 2 == 0 and ww % 2 == 0
    h2, w2 = hh // 2, ww // 2
    hp = hh + 2
    k3 = 3 * cin

    xp = jnp.pad(x, ((0, 0), (1, 1), (1, 1), (0, 0)))   # (n, hh+2, ww+2, cin)
    xe = xp[:, :, 0::2, :]                               # even padded columns
    xo = xp[:, :, 1::2, :]                               # odd  padded columns
    # Even output column 2c'  uses padded cols (2c', 2c'+1, 2c'+2).
    # Odd  output column 2c'+1 uses padded cols (2c'+1, 2c'+2, 2c'+3).
    x_ephase = jnp.concatenate(
        [xe[:, :, :w2], xo[:, :, :w2], xe[:, :, 1:w2 + 1]], axis=-1)     # (n,hp,w2,3cin)
    x_ophase = jnp.concatenate(
        [xo[:, :, :w2], xe[:, :, 1:w2 + 1], xo[:, :, 1:w2 + 1]], axis=-1)
    w3 = w.reshape(3, k3, cout)     # row dh holds taps (dh,0),(dh,1),(dh,2)
    b2 = b.reshape(1, cout)

    def kernel(xe_ref, xo_ref, w_ref, b_ref, o_ref):
        acc_e = jnp.zeros((hh * w2, cout), jnp.float32)   # conv out, even cols
        acc_o = jnp.zeros((hh * w2, cout), jnp.float32)   # conv out, odd  cols
        for dh in range(3):                               # unrolled at trace time
            pe = xe_ref[0, dh:dh + hh].reshape(hh * w2, k3)
            po = xo_ref[0, dh:dh + hh].reshape(hh * w2, k3)
            wk = w_ref[dh]
            acc_e = acc_e + jnp.dot(pe, wk, preferred_element_type=jnp.float32)
            acc_o = acc_o + jnp.dot(po, wk, preferred_element_type=jnp.float32)
        col_pooled = jnp.maximum(acc_e, acc_o)            # pool over W
        rows = col_pooled.reshape(h2, 2, w2, cout)
        pooled = jnp.maximum(rows[:, 0], rows[:, 1])      # pool over H
        o_ref[0] = jnp.maximum(pooled + b_ref[...], 0.0).astype(o_ref.dtype)

    return pl.pallas_call(
        kernel,
        out_shape=jax.ShapeDtypeStruct((n, h2, w2, cout), jnp.float32),
        grid=(n,),
        in_specs=[
            pl.BlockSpec((1, hp, w2, k3), lambda i: (i, 0, 0, 0)),
            pl.BlockSpec((1, hp, w2, k3), lambda i: (i, 0, 0, 0)),
            pl.BlockSpec((3, k3, cout), lambda i: (0, 0, 0)),
            pl.BlockSpec((1, cout), lambda i: (0, 0)),
        ],
        out_specs=pl.BlockSpec((1, h2, w2, cout), lambda i: (i, 0, 0, 0)),
        compiler_params=pltpu.CompilerParams(
            dimension_semantics=("parallel",)),
    )(x_ephase, x_ophase, w3, b2)


# ---------------------------------------------------------------------------
# Kernel 2: fused 1x1 "label" conv + bilinear upsample to (144, 144)
# (align_corners=False, exactly nn.Upsample(mode='bilinear')).
#
# Bilinear upsampling is linear and acts per channel, so it commutes with the
# 1x1 conv: label(upsample(x)) == upsample(x @ wl) + bl.  The channel
# contraction (c -> co) is folded together with the width interpolation into
# one (w*c, out_w*co) matrix built in the wrapper; the height interpolation is
# a second matmul.  One grid step per image, lane-dense output (last dim 432).
# ---------------------------------------------------------------------------
def _bilinear_matrix(in_size, out_size):
    # PyTorch area_pixel_compute_source_index, align_corners=False.
    scale = in_size / out_size
    u = np.zeros((out_size, in_size), dtype=np.float32)
    for o in range(out_size):
        src = (o + 0.5) * scale - 0.5
        src = max(src, 0.0)
        i0 = min(int(np.floor(src)), in_size - 1)
        i1 = min(i0 + 1, in_size - 1)
        frac = src - i0
        u[o, i0] += 1.0 - frac
        u[o, i1] += frac
    return u


def label_conv_upsample(x, wl, bl, out_hw):
    n, h, w, c = x.shape
    co = wl.shape[-1]
    out_h, out_w = out_hw
    uy = jnp.asarray(_bilinear_matrix(h, out_h))             # (out_h, h)
    ux = jnp.asarray(_bilinear_matrix(w, out_w))             # (out_w, w)
    # wbig[x*c + ci, ox*co + cd] = ux[ox, x] * wl[ci, cd]
    wbig = jnp.einsum('Ox,cd->xcOd', ux, wl).reshape(w * c, out_w * co)
    bl_row = jnp.tile(bl, (out_w,)).reshape(1, out_w * co)
    x2 = x.reshape(n, h, w * c)                               # contiguous reshape

    def kernel(uy_ref, wbig_ref, bl_ref, x_ref, o_ref):
        # width interpolation + channel contraction: (h, w*c) @ (w*c, out_w*co)
        t = jnp.dot(x_ref[0], wbig_ref[...], preferred_element_type=jnp.float32)
        # height interpolation: (out_h, h) @ (h, out_w*co), then bias
        out = jnp.dot(uy_ref[...], t, preferred_element_type=jnp.float32) + bl_ref[...]
        o_ref[0] = out.astype(o_ref.dtype)

    y = pl.pallas_call(
        kernel,
        out_shape=jax.ShapeDtypeStruct((n, out_h, out_w * co), jnp.float32),
        grid=(n,),
        in_specs=[
            pl.BlockSpec((out_h, h), lambda i: (0, 0)),
            pl.BlockSpec((w * c, out_w * co), lambda i: (0, 0)),
            pl.BlockSpec((1, out_w * co), lambda i: (0, 0)),
            pl.BlockSpec((1, h, w * c), lambda i: (i, 0, 0)),
        ],
        out_specs=pl.BlockSpec((1, out_h, out_w * co), lambda i: (i, 0, 0)),
        compiler_params=pltpu.CompilerParams(
            dimension_semantics=("parallel",)),
    )(uy, wbig, bl_row, x2)
    return y.reshape(n, out_h, out_w, co)


# ---------------------------------------------------------------------------
# firstmodel.forward:
#   pool(relu(conv1)) -> pool(relu(conv2)) -> Upsample((144,144), bilinear) -> 1x1 conv
# TODO(synk): nn.Dropout / nn.BatchNorm2d are constructed in __init__ but never
# applied in forward, so they are intentionally not implemented.
# ---------------------------------------------------------------------------
@jax.jit
def firstmodel_forward(x, params):
    w1, b1, w2, b2, wl, bl = params
    h1 = conv3x3_relu_pool(x, w1, b1)            # conv1 + ReLU + MaxPool2d(2,2)
    h2 = conv3x3_relu_pool(h1, w2, b2)           # conv2 + ReLU + MaxPool2d(2,2)
    return label_conv_upsample(h2, wl, bl, (144, 144))   # upsample + label (fused)


if __name__ == "__main__":
    key = jax.random.PRNGKey(0)
    kx, k1, kb1, k2, kb2, k3, kb3 = jax.random.split(key, 7)
    n, hh, ww, cin = 2, 32, 32, 3
    nf, cout = 64, 3
    x = jax.random.normal(kx, (n, hh, ww, cin), jnp.float32)
    params = (
        jax.random.normal(k1, (3, 3, cin, nf), jnp.float32) * 0.1,   # conv1 weight (kh,kw,cin,cout)
        jax.random.normal(kb1, (nf,), jnp.float32) * 0.1,            # conv1 bias
        jax.random.normal(k2, (3, 3, nf, nf), jnp.float32) * 0.05,   # conv2 weight
        jax.random.normal(kb2, (nf,), jnp.float32) * 0.1,            # conv2 bias
        jax.random.normal(k3, (nf, cout), jnp.float32) * 0.1,        # label (1x1) weight (cin,cout)
        jax.random.normal(kb3, (cout,), jnp.float32) * 0.1,          # label bias
    )

    y = firstmodel_forward(x, params)
    jax.block_until_ready(y)
    assert y.shape == (n, 144, 144, cout), y.shape
    assert bool(jnp.isfinite(y).all())
    print("KERNEL_OK")
</pallas_src>

<mosaic_0001>
module attributes {stable_mosaic.version = 11 : i64} {
  func.func @kernel(%arg0: i32, %arg1: memref<1x34x16x9xf32, #tpu.memory_space<vmem>>, %arg2: memref<1x34x16x9xf32, #tpu.memory_space<vmem>>, %arg3: memref<3x9x64xf32, #tpu.memory_space<vmem>>, %arg4: memref<1x64xf32, #tpu.memory_space<vmem>>, %arg5: memref<1x16x16x64xf32, #tpu.memory_space<vmem>>) attributes {dimension_semantics = [#tpu.dimension_semantics<parallel>], iteration_bounds = array<i64: 2>, scalar_prefetch = 0 : i64, scratch_operands = 0 : i64, tpu.core_type = #tpu.core_type<tc>, window_params = [{transform_indices = @transform_0, window_bounds = array<i64: 1, 34, 16, 9>}, {transform_indices = @transform_1, window_bounds = array<i64: 1, 34, 16, 9>}, {pipeline_mode = #tpu.pipeline_mode<synchronous>, transform_indices = @transform_2, window_bounds = array<i64: 3, 9, 64>}, {pipeline_mode = #tpu.pipeline_mode<synchronous>, transform_indices = @transform_3, window_bounds = array<i64: 1, 64>}, {transform_indices = @transform_4, window_bounds = array<i64: 1, 16, 16, 64>}]} {
    %cst = arith.constant 0.000000e+00 : f32
    %0 = vector.broadcast %cst : f32 to vector<512x64xf32>
    %cst_0 = arith.constant 0.000000e+00 : f32
    %1 = vector.broadcast %cst_0 : f32 to vector<512x64xf32>
    %c0 = arith.constant 0 : index
    %c0_1 = arith.constant 0 : index
    %c0_2 = arith.constant 0 : index
    %c0_3 = arith.constant 0 : index
    %2 = vector.load %arg1[%c0, %c0_1, %c0_2, %c0_3] : memref<1x34x16x9xf32, #tpu.memory_space<vmem>>, vector<1x32x16x9xf32>
    %3 = vector.shape_cast %2 : vector<1x32x16x9xf32> to vector<32x16x9xf32>
    %4 = vector.shape_cast %3 : vector<32x16x9xf32> to vector<512x9xf32>
    %c0_4 = arith.constant 0 : index
    %c0_5 = arith.constant 0 : index
    %c0_6 = arith.constant 0 : index
    %c0_7 = arith.constant 0 : index
    %5 = vector.load %arg2[%c0_4, %c0_5, %c0_6, %c0_7] : memref<1x34x16x9xf32, #tpu.memory_space<vmem>>, vector<1x32x16x9xf32>
    %6 = vector.shape_cast %5 : vector<1x32x16x9xf32> to vector<32x16x9xf32>
    %7 = vector.shape_cast %6 : vector<32x16x9xf32> to vector<512x9xf32>
    %c0_8 = arith.constant 0 : index
    %c0_9 = arith.constant 0 : index
    %c0_10 = arith.constant 0 : index
    %8 = vector.load %arg3[%c0_8, %c0_9, %c0_10] : memref<3x9x64xf32, #tpu.memory_space<vmem>>, vector<1x9x64xf32>
    %9 = vector.shape_cast %8 : vector<1x9x64xf32> to vector<9x64xf32>
    %cst_11 = arith.constant dense<0.000000e+00> : vector<512x64xf32>
    %10 = tpu.matmul %4, %9, %cst_11 {dimension_numbers = #tpu.dot_dimension_numbers<[1], [0], [0], [1], [0, 0, 1, 1], [], []>} : vector<512x9xf32>, vector<9x64xf32>, vector<512x64xf32> -> vector<512x64xf32>
    %11 = arith.addf %0, %10 : vector<512x64xf32>
    %cst_12 = arith.constant dense<0.000000e+00> : vector<512x64xf32>
    %12 = tpu.matmul %7, %9, %cst_12 {dimension_numbers = #tpu.dot_dimension_numbers<[1], [0], [0], [1], [0, 0, 1, 1], [], []>} : vector<512x9xf32>, vector<9x64xf32>, vector<512x64xf32> -> vector<512x64xf32>
    %13 = arith.addf %1, %12 : vector<512x64xf32>
    %c0_13 = arith.constant 0 : index
    %c1 = arith.constant 1 : index
    %c0_14 = arith.constant 0 : index
    %c0_15 = arith.constant 0 : index
    %14 = vector.load %arg1[%c0_13, %c1, %c0_14, %c0_15] : memref<1x34x16x9xf32, #tpu.memory_space<vmem>>, vector<1x32x16x9xf32>
    %15 = vector.shape_cast %14 : vector<1x32x16x9xf32> to vector<32x16x9xf32>
    %16 = vector.shape_cast %15 : vector<32x16x9xf32> to vector<512x9xf32>
    %c0_16 = arith.constant 0 : index
    %c1_17 = arith.constant 1 : index
    %c0_18 = arith.constant 0 : index
    %c0_19 = arith.constant 0 : index
    %17 = vector.load %arg2[%c0_16, %c1_17, %c0_18, %c0_19] : memref<1x34x16x9xf32, #tpu.memory_space<vmem>>, vector<1x32x16x9xf32>
    %18 = vector.shape_cast %17 : vector<1x32x16x9xf32> to vector<32x16x9xf32>
    %19 = vector.shape_cast %18 : vector<32x16x9xf32> to vector<512x9xf32>
    %c1_20 = arith.constant 1 : index
    %c0_21 = arith.constant 0 : index
    %c0_22 = arith.constant 0 : index
    %20 = vector.load %arg3[%c1_20, %c0_21, %c0_22] : memref<3x9x64xf32, #tpu.memory_space<vmem>>, vector<1x9x64xf32>
    %21 = vector.shape_cast %20 : vector<1x9x64xf32> to vector<9x64xf32>
    %cst_23 = arith.constant dense<0.000000e+00> : vector<512x64xf32>
    %22 = tpu.matmul %16, %21, %cst_23 {dimension_numbers = #tpu.dot_dimension_numbers<[1], [0], [0], [1], [0, 0, 1, 1], [], []>} : vector<512x9xf32>, vector<9x64xf32>, vector<512x64xf32> -> vector<512x64xf32>
    %23 = arith.addf %11, %22 : vector<512x64xf32>
    %cst_24 = arith.constant dense<0.000000e+00> : vector<512x64xf32>
    %24 = tpu.matmul %19, %21, %cst_24 {dimension_numbers = #tpu.dot_dimension_numbers<[1], [0], [0], [1], [0, 0, 1, 1], [], []>} : vector<512x9xf32>, vector<9x64xf32>, vector<512x64xf32> -> vector<512x64xf32>
    %25 = arith.addf %13, %24 : vector<512x64xf32>
    %c0_25 = arith.constant 0 : index
    %c2 = arith.constant 2 : index
    %c0_26 = arith.constant 0 : index
    %c0_27 = arith.constant 0 : index
    %26 = vector.load %arg1[%c0_25, %c2, %c0_26, %c0_27] : memref<1x34x16x9xf32, #tpu.memory_space<vmem>>, vector<1x32x16x9xf32>
    %27 = vector.shape_cast %26 : vector<1x32x16x9xf32> to vector<32x16x9xf32>
    %28 = vector.shape_cast %27 : vector<32x16x9xf32> to vector<512x9xf32>
    %c0_28 = arith.constant 0 : index
    %c2_29 = arith.constant 2 : index
    %c0_30 = arith.constant 0 : index
    %c0_31 = arith.constant 0 : index
    %29 = vector.load %arg2[%c0_28, %c2_29, %c0_30, %c0_31] : memref<1x34x16x9xf32, #tpu.memory_space<vmem>>, vector<1x32x16x9xf32>
    %30 = vector.shape_cast %29 : vector<1x32x16x9xf32> to vector<32x16x9xf32>
    %31 = vector.shape_cast %30 : vector<32x16x9xf32> to vector<512x9xf32>
    %c2_32 = arith.constant 2 : index
    %c0_33 = arith.constant 0 : index
    %c0_34 = arith.constant 0 : index
    %32 = vector.load %arg3[%c2_32, %c0_33, %c0_34] : memref<3x9x64xf32, #tpu.memory_space<vmem>>, vector<1x9x64xf32>
    %33 = vector.shape_cast %32 : vector<1x9x64xf32> to vector<9x64xf32>
    %cst_35 = arith.constant dense<0.000000e+00> : vector<512x64xf32>
    %34 = tpu.matmul %28, %33, %cst_35 {dimension_numbers = #tpu.dot_dimension_numbers<[1], [0], [0], [1], [0, 0, 1, 1], [], []>} : vector<512x9xf32>, vector<9x64xf32>, vector<512x64xf32> -> vector<512x64xf32>
    %35 = arith.addf %23, %34 : vector<512x64xf32>
    %cst_36 = arith.constant dense<0.000000e+00> : vector<512x64xf32>
    %36 = tpu.matmul %31, %33, %cst_36 {dimension_numbers = #tpu.dot_dimension_numbers<[1], [0], [0], [1], [0, 0, 1, 1], [], []>} : vector<512x9xf32>, vector<9x64xf32>, vector<512x64xf32> -> vector<512x64xf32>
    %37 = arith.addf %25, %36 : vector<512x64xf32>
    %38 = arith.maximumf %35, %37 : vector<512x64xf32>
    %39 = vector.shape_cast %38 : vector<512x64xf32> to vector<16x2x16x64xf32>
    %40 = vector.extract_strided_slice %39 {offsets = [0, 0, 0, 0], sizes = [16, 1, 16, 64], strides = [1, 1, 1, 1]} : vector<16x2x16x64xf32> to vector<16x1x16x64xf32>
    %41 = vector.shape_cast %40 : vector<16x1x16x64xf32> to vector<16x16x64xf32>
    %42 = vector.extract_strided_slice %39 {offsets = [0, 1, 0, 0], sizes = [16, 1, 16, 64], strides = [1, 1, 1, 1]} : vector<16x2x16x64xf32> to vector<16x1x16x64xf32>
    %43 = vector.shape_cast %42 : vector<16x1x16x64xf32> to vector<16x16x64xf32>
    %44 = arith.maximumf %41, %43 : vector<16x16x64xf32>
    %c0_37 = arith.constant 0 : index
    %c0_38 = arith.constant 0 : index
    %45 = vector.load %arg4[%c0_37, %c0_38] : memref<1x64xf32, #tpu.memory_space<vmem>>, vector<1x64xf32>
    %46 = vector.shape_cast %45 : vector<1x64xf32> to vector<1x1x64xf32>
    %47 = vector.broadcast %46 : vector<1x1x64xf32> to vector<16x16x64xf32>
    %48 = arith.addf %44, %47 : vector<16x16x64xf32>
    %cst_39 = arith.constant 0.000000e+00 : f32
    %49 = vector.broadcast %cst_39 : f32 to vector<16x16x64xf32>
    %50 = arith.maximumf %48, %49 : vector<16x16x64xf32>
    %c0_40 = arith.constant 0 : index
    %c0_41 = arith.constant 0 : index
    %c0_42 = arith.constant 0 : index
    %c0_43 = arith.constant 0 : index
    %51 = vector.load %arg5[%c0_40, %c0_41, %c0_42, %c0_43] : memref<1x16x16x64xf32, #tpu.memory_space<vmem>>, vector<1x16x16x64xf32>
    %52 = vector.shape_cast %51 : vector<1x16x16x64xf32> to vector<16x16x64xf32>
    %53 = vector.shape_cast %50 : vector<16x16x64xf32> to vector<1x16x16x64xf32>
    tpu.vector_store %arg5[%c0_40, %c0_41, %c0_42, %c0_43], %53 {strides = array<i32>} : memref<1x16x16x64xf32, #tpu.memory_space<vmem>>, vector<1x16x16x64xf32>,
    return
  }
  func.func @transform_0(%arg0: i32) -> (i32, i32, i32, i32) {
    %c0_i32 = arith.constant 0 : i32
    %c0_i32_0 = arith.constant 0 : i32
    %c0_i32_1 = arith.constant 0 : i32
    %c0_i32_2 = arith.constant 0 : i32
    return %arg0, %c0_i32, %c0_i32_0, %c0_i32_1 : i32, i32, i32, i32
  }
  func.func @transform_1(%arg0: i32) -> (i32, i32, i32, i32) {
    %c0_i32 = arith.constant 0 : i32
    %c0_i32_0 = arith.constant 0 : i32
    %c0_i32_1 = arith.constant 0 : i32
    %c0_i32_2 = arith.constant 0 : i32
    return %arg0, %c0_i32, %c0_i32_0, %c0_i32_1 : i32, i32, i32, i32
  }
  func.func @transform_2(%arg0: i32) -> (i32, i32, i32) {
    %c0_i32 = arith.constant 0 : i32
    %c0_i32_0 = arith.constant 0 : i32
    %c0_i32_1 = arith.constant 0 : i32
    %c0_i32_2 = arith.constant 0 : i32
    return %c0_i32, %c0_i32_0, %c0_i32_1 : i32, i32, i32
  }
  func.func @transform_3(%arg0: i32) -> (i32, i32) {
    %c0_i32 = arith.constant 0 : i32
    %c0_i32_0 = arith.constant 0 : i32
    %c0_i32_1 = arith.constant 0 : i32
    return %c0_i32, %c0_i32_0 : i32, i32
  }
  func.func @transform_4(%arg0: i32) -> (i32, i32, i32, i32) {
    %c0_i32 = arith.constant 0 : i32
    %c0_i32_0 = arith.constant 0 : i32
    %c0_i32_1 = arith.constant 0 : i32
    %c0_i32_2 = arith.constant 0 : i32
    return %arg0, %c0_i32, %c0_i32_0, %c0_i32_1 : i32, i32, i32, i32
  }
}

module attributes {stable_mosaic.version = 11 : i64} {
  func.func @kernel(%arg0: i32, %arg1: memref<1x18x8x192xf32, #tpu.memory_space<vmem>>, %arg2: memref<1x18x8x192xf32, #tpu.memory_space<vmem>>, %arg3: memref<3x192x64xf32, #tpu.memory_space<vmem>>, %arg4: memref<1x64xf32, #tpu.memory_space<vmem>>, %arg5: memref<1x8x8x64xf32, #tpu.memory_space<vmem>>) attributes {dimension_semantics = [#tpu.dimension_semantics<parallel>], iteration_bounds = array<i64: 2>, scalar_prefetch = 0 : i64, scratch_operands = 0 : i64, tpu.core_type = #tpu.core_type<tc>, window_params = [{transform_indices = @transform_0, window_bounds = array<i64: 1, 18, 8, 192>}, {transform_indices = @transform_1, window_bounds = array<i64: 1, 18, 8, 192>}, {pipeline_mode = #tpu.pipeline_mode<synchronous>, transform_indices = @transform_2, window_bounds = array<i64: 3, 192, 64>}, {pipeline_mode = #tpu.pipeline_mode<synchronous>, transform_indices = @transform_3, window_bounds = array<i64: 1, 64>}, {transform_indices = @transform_4, window_bounds = array<i64: 1, 8, 8, 64>}]} {
    %cst = arith.constant 0.000000e+00 : f32
    %0 = vector.broadcast %cst : f32 to vector<128x64xf32>
    %cst_0 = arith.constant 0.000000e+00 : f32
    %1 = vector.broadcast %cst_0 : f32 to vector<128x64xf32>
    %c0 = arith.constant 0 : index
    %c0_1 = arith.constant 0 : index
    %c0_2 = arith.constant 0 : index
    %c0_3 = arith.constant 0 : index
    %2 = vector.load %arg1[%c0, %c0_1, %c0_2, %c0_3] : memref<1x18x8x192xf32, #tpu.memory_space<vmem>>, vector<1x16x8x192xf32>
    %3 = vector.shape_cast %2 : vector<1x16x8x192xf32> to vector<16x8x192xf32>
    %4 = vector.shape_cast %3 : vector<16x8x192xf32> to vector<128x192xf32>
    %c0_4 = arith.constant 0 : index
    %c0_5 = arith.constant 0 : index
    %c0_6 = arith.constant 0 : index
    %c0_7 = arith.constant 0 : index
    %5 = vector.load %arg2[%c0_4, %c0_5, %c0_6, %c0_7] : memref<1x18x8x192xf32, #tpu.memory_space<vmem>>, vector<1x16x8x192xf32>
    %6 = vector.shape_cast %5 : vector<1x16x8x192xf32> to vector<16x8x192xf32>
    %7 = vector.shape_cast %6 : vector<16x8x192xf32> to vector<128x192xf32>
    %c0_8 = arith.constant 0 : index
    %c0_9 = arith.constant 0 : index
    %c0_10 = arith.constant 0 : index
    %8 = vector.load %arg3[%c0_8, %c0_9, %c0_10] : memref<3x192x64xf32, #tpu.memory_space<vmem>>, vector<1x192x64xf32>
    %9 = vector.shape_cast %8 : vector<1x192x64xf32> to vector<192x64xf32>
    %cst_11 = arith.constant dense<0.000000e+00> : vector<128x64xf32>
    %10 = tpu.matmul %4, %9, %cst_11 {dimension_numbers = #tpu.dot_dimension_numbers<[1], [0], [0], [1], [0, 0, 1, 1], [], []>} : vector<128x192xf32>, vector<192x64xf32>, vector<128x64xf32> -> vector<128x64xf32>
    %11 = arith.addf %0, %10 : vector<128x64xf32>
    %cst_12 = arith.constant dense<0.000000e+00> : vector<128x64xf32>
    %12 = tpu.matmul %7, %9, %cst_12 {dimension_numbers = #tpu.dot_dimension_numbers<[1], [0], [0], [1], [0, 0, 1, 1], [], []>} : vector<128x192xf32>, vector<192x64xf32>, vector<128x64xf32> -> vector<128x64xf32>
    %13 = arith.addf %1, %12 : vector<128x64xf32>
    %c0_13 = arith.constant 0 : index
    %c1 = arith.constant 1 : index
    %c0_14 = arith.constant 0 : index
    %c0_15 = arith.constant 0 : index
    %14 = vector.load %arg1[%c0_13, %c1, %c0_14, %c0_15] : memref<1x18x8x192xf32, #tpu.memory_space<vmem>>, vector<1x16x8x192xf32>
    %15 = vector.shape_cast %14 : vector<1x16x8x192xf32> to vector<16x8x192xf32>
    %16 = vector.shape_cast %15 : vector<16x8x192xf32> to vector<128x192xf32>
    %c0_16 = arith.constant 0 : index
    %c1_17 = arith.constant 1 : index
    %c0_18 = arith.constant 0 : index
    %c0_19 = arith.constant 0 : index
    %17 = vector.load %arg2[%c0_16, %c1_17, %c0_18, %c0_19] : memref<1x18x8x192xf32, #tpu.memory_space<vmem>>, vector<1x16x8x192xf32>
    %18 = vector.shape_cast %17 : vector<1x16x8x192xf32> to vector<16x8x192xf32>
    %19 = vector.shape_cast %18 : vector<16x8x192xf32> to vector<128x192xf32>
    %c1_20 = arith.constant 1 : index
    %c0_21 = arith.constant 0 : index
    %c0_22 = arith.constant 0 : index
    %20 = vector.load %arg3[%c1_20, %c0_21, %c0_22] : memref<3x192x64xf32, #tpu.memory_space<vmem>>, vector<1x192x64xf32>
    %21 = vector.shape_cast %20 : vector<1x192x64xf32> to vector<192x64xf32>
    %cst_23 = arith.constant dense<0.000000e+00> : vector<128x64xf32>
    %22 = tpu.matmul %16, %21, %cst_23 {dimension_numbers = #tpu.dot_dimension_numbers<[1], [0], [0], [1], [0, 0, 1, 1], [], []>} : vector<128x192xf32>, vector<192x64xf32>, vector<128x64xf32> -> vector<128x64xf32>
    %23 = arith.addf %11, %22 : vector<128x64xf32>
    %cst_24 = arith.constant dense<0.000000e+00> : vector<128x64xf32>
    %24 = tpu.matmul %19, %21, %cst_24 {dimension_numbers = #tpu.dot_dimension_numbers<[1], [0], [0], [1], [0, 0, 1, 1], [], []>} : vector<128x192xf32>, vector<192x64xf32>, vector<128x64xf32> -> vector<128x64xf32>
    %25 = arith.addf %13, %24 : vector<128x64xf32>
    %c0_25 = arith.constant 0 : index
    %c2 = arith.constant 2 : index
    %c0_26 = arith.constant 0 : index
    %c0_27 = arith.constant 0 : index
    %26 = vector.load %arg1[%c0_25, %c2, %c0_26, %c0_27] : memref<1x18x8x192xf32, #tpu.memory_space<vmem>>, vector<1x16x8x192xf32>
    %27 = vector.shape_cast %26 : vector<1x16x8x192xf32> to vector<16x8x192xf32>
    %28 = vector.shape_cast %27 : vector<16x8x192xf32> to vector<128x192xf32>
    %c0_28 = arith.constant 0 : index
    %c2_29 = arith.constant 2 : index
    %c0_30 = arith.constant 0 : index
    %c0_31 = arith.constant 0 : index
    %29 = vector.load %arg2[%c0_28, %c2_29, %c0_30, %c0_31] : memref<1x18x8x192xf32, #tpu.memory_space<vmem>>, vector<1x16x8x192xf32>
    %30 = vector.shape_cast %29 : vector<1x16x8x192xf32> to vector<16x8x192xf32>
    %31 = vector.shape_cast %30 : vector<16x8x192xf32> to vector<128x192xf32>
    %c2_32 = arith.constant 2 : index
    %c0_33 = arith.constant 0 : index
    %c0_34 = arith.constant 0 : index
    %32 = vector.load %arg3[%c2_32, %c0_33, %c0_34] : memref<3x192x64xf32, #tpu.memory_space<vmem>>, vector<1x192x64xf32>
    %33 = vector.shape_cast %32 : vector<1x192x64xf32> to vector<192x64xf32>
    %cst_35 = arith.constant dense<0.000000e+00> : vector<128x64xf32>
    %34 = tpu.matmul %28, %33, %cst_35 {dimension_numbers = #tpu.dot_dimension_numbers<[1], [0], [0], [1], [0, 0, 1, 1], [], []>} : vector<128x192xf32>, vector<192x64xf32>, vector<128x64xf32> -> vector<128x64xf32>
    %35 = arith.addf %23, %34 : vector<128x64xf32>
    %cst_36 = arith.constant dense<0.000000e+00> : vector<128x64xf32>
    %36 = tpu.matmul %31, %33, %cst_36 {dimension_numbers = #tpu.dot_dimension_numbers<[1], [0], [0], [1], [0, 0, 1, 1], [], []>} : vector<128x192xf32>, vector<192x64xf32>, vector<128x64xf32> -> vector<128x64xf32>
    %37 = arith.addf %25, %36 : vector<128x64xf32>
    %38 = arith.maximumf %35, %37 : vector<128x64xf32>
    %39 = vector.shape_cast %38 : vector<128x64xf32> to vector<8x2x8x64xf32>
    %40 = vector.extract_strided_slice %39 {offsets = [0, 0, 0, 0], sizes = [8, 1, 8, 64], strides = [1, 1, 1, 1]} : vector<8x2x8x64xf32> to vector<8x1x8x64xf32>
    %41 = vector.shape_cast %40 : vector<8x1x8x64xf32> to vector<8x8x64xf32>
    %42 = vector.extract_strided_slice %39 {offsets = [0, 1, 0, 0], sizes = [8, 1, 8, 64], strides = [1, 1, 1, 1]} : vector<8x2x8x64xf32> to vector<8x1x8x64xf32>
    %43 = vector.shape_cast %42 : vector<8x1x8x64xf32> to vector<8x8x64xf32>
    %44 = arith.maximumf %41, %43 : vector<8x8x64xf32>
    %c0_37 = arith.constant 0 : index
    %c0_38 = arith.constant 0 : index
    %45 = vector.load %arg4[%c0_37, %c0_38] : memref<1x64xf32, #tpu.memory_space<vmem>>, vector<1x64xf32>
    %46 = vector.shape_cast %45 : vector<1x64xf32> to vector<1x1x64xf32>
    %47 = vector.broadcast %46 : vector<1x1x64xf32> to vector<8x8x64xf32>
    %48 = arith.addf %44, %47 : vector<8x8x64xf32>
    %cst_39 = arith.constant 0.000000e+00 : f32
    %49 = vector.broadcast %cst_39 : f32 to vector<8x8x64xf32>
    %50 = arith.maximumf %48, %49 : vector<8x8x64xf32>
    %c0_40 = arith.constant 0 : index
    %c0_41 = arith.constant 0 : index
    %c0_42 = arith.constant 0 : index
    %c0_43 = arith.constant 0 : index
    %51 = vector.load %arg5[%c0_40, %c0_41, %c0_42, %c0_43] : memref<1x8x8x64xf32, #tpu.memory_space<vmem>>, vector<1x8x8x64xf32>
    %52 = vector.shape_cast %51 : vector<1x8x8x64xf32> to vector<8x8x64xf32>
    %53 = vector.shape_cast %50 : vector<8x8x64xf32> to vector<1x8x8x64xf32>
    tpu.vector_store %arg5[%c0_40, %c0_41, %c0_42, %c0_43], %53 {strides = array<i32>} : memref<1x8x8x64xf32, #tpu.memory_space<vmem>>, vector<1x8x8x64xf32>,
    return
  }
  func.func @transform_0(%arg0: i32) -> (i32, i32, i32, i32) {
    %c0_i32 = arith.constant 0 : i32
    %c0_i32_0 = arith.constant 0 : i32
    %c0_i32_1 = arith.constant 0 : i32
    %c0_i32_2 = arith.constant 0 : i32
    return %arg0, %c0_i32, %c0_i32_0, %c0_i32_1 : i32, i32, i32, i32
  }
  func.func @transform_1(%arg0: i32) -> (i32, i32, i32, i32) {
    %c0_i32 = arith.constant 0 : i32
    %c0_i32_0 = arith.constant 0 : i32
    %c0_i32_1 = arith.constant 0 : i32
    %c0_i32_2 = arith.constant 0 : i32
    return %arg0, %c0_i32, %c0_i32_0, %c0_i32_1 : i32, i32, i32, i32
  }
  func.func @transform_2(%arg0: i32) -> (i32, i32, i32) {
    %c0_i32 = arith.constant 0 : i32
    %c0_i32_0 = arith.constant 0 : i32
    %c0_i32_1 = arith.constant 0 : i32
    %c0_i32_2 = arith.constant 0 : i32
    return %c0_i32, %c0_i32_0, %c0_i32_1 : i32, i32, i32
  }
  func.func @transform_3(%arg0: i32) -> (i32, i32) {
    %c0_i32 = arith.constant 0 : i32
    %c0_i32_0 = arith.constant 0 : i32
    %c0_i32_1 = arith.constant 0 : i32
    return %c0_i32, %c0_i32_0 : i32, i32
  }
  func.func @transform_4(%arg0: i32) -> (i32, i32, i32, i32) {
    %c0_i32 = arith.constant 0 : i32
    %c0_i32_0 = arith.constant 0 : i32
    %c0_i32_1 = arith.constant 0 : i32
    %c0_i32_2 = arith.constant 0 : i32
    return %arg0, %c0_i32, %c0_i32_0, %c0_i32_1 : i32, i32, i32, i32
  }
}

module attributes {stable_mosaic.version = 11 : i64} {
  func.func @kernel(%arg0: i32, %arg1: memref<144x8xf32, #tpu.memory_space<vmem>>, %arg2: memref<512x432xf32, #tpu.memory_space<vmem>>, %arg3: memref<1x432xf32, #tpu.memory_space<vmem>>, %arg4: memref<1x8x512xf32, #tpu.memory_space<vmem>>, %arg5: memref<1x144x432xf32, #tpu.memory_space<vmem>>) attributes {dimension_semantics = [#tpu.dimension_semantics<parallel>], iteration_bounds = array<i64: 2>, scalar_prefetch = 0 : i64, scratch_operands = 0 : i64, tpu.core_type = #tpu.core_type<tc>, window_params = [{pipeline_mode = #tpu.pipeline_mode<synchronous>, transform_indices = @transform_0, window_bounds = array<i64: 144, 8>}, {pipeline_mode = #tpu.pipeline_mode<synchronous>, transform_indices = @transform_1, window_bounds = array<i64: 512, 432>}, {pipeline_mode = #tpu.pipeline_mode<synchronous>, transform_indices = @transform_2, window_bounds = array<i64: 1, 432>}, {transform_indices = @transform_3, window_bounds = array<i64: 1, 8, 512>}, {transform_indices = @transform_4, window_bounds = array<i64: 1, 144, 432>}]} {
    %c0 = arith.constant 0 : index
    %c0_0 = arith.constant 0 : index
    %c0_1 = arith.constant 0 : index
    %0 = vector.load %arg4[%c0, %c0_0, %c0_1] : memref<1x8x512xf32, #tpu.memory_space<vmem>>, vector<1x8x512xf32>
    %1 = vector.shape_cast %0 : vector<1x8x512xf32> to vector<8x512xf32>
    %c0_2 = arith.constant 0 : index
    %c0_3 = arith.constant 0 : index
    %2 = vector.load %arg2[%c0_2, %c0_3] : memref<512x432xf32, #tpu.memory_space<vmem>>, vector<512x432xf32>
    %cst = arith.constant dense<0.000000e+00> : vector<8x432xf32>
    %3 = tpu.matmul %1, %2, %cst {dimension_numbers = #tpu.dot_dimension_numbers<[1], [0], [0], [1], [0, 0, 1, 1], [], []>} : vector<8x512xf32>, vector<512x432xf32>, vector<8x432xf32> -> vector<8x432xf32>
    %c0_4 = arith.constant 0 : index
    %c0_5 = arith.constant 0 : index
    %4 = vector.load %arg1[%c0_4, %c0_5] : memref<144x8xf32, #tpu.memory_space<vmem>>, vector<144x8xf32>
    %cst_6 = arith.constant dense<0.000000e+00> : vector<144x432xf32>
    %5 = tpu.matmul %4, %3, %cst_6 {dimension_numbers = #tpu.dot_dimension_numbers<[1], [0], [0], [1], [0, 0, 1, 1], [], []>} : vector<144x8xf32>, vector<8x432xf32>, vector<144x432xf32> -> vector<144x432xf32>
    %c0_7 = arith.constant 0 : index
    %c0_8 = arith.constant 0 : index
    %6 = vector.load %arg3[%c0_7, %c0_8] : memref<1x432xf32, #tpu.memory_space<vmem>>, vector<1x432xf32>
    %7 = vector.broadcast %6 : vector<1x432xf32> to vector<144x432xf32>
    %8 = arith.addf %5, %7 : vector<144x432xf32>
    %c0_9 = arith.constant 0 : index
    %c0_10 = arith.constant 0 : index
    %c0_11 = arith.constant 0 : index
    %9 = vector.load %arg5[%c0_9, %c0_10, %c0_11] : memref<1x144x432xf32, #tpu.memory_space<vmem>>, vector<1x144x432xf32>
    %10 = vector.shape_cast %9 : vector<1x144x432xf32> to vector<144x432xf32>
    %11 = vector.shape_cast %8 : vector<144x432xf32> to vector<1x144x432xf32>
    tpu.vector_store %arg5[%c0_9, %c0_10, %c0_11], %11 {strides = array<i32>} : memref<1x144x432xf32, #tpu.memory_space<vmem>>, vector<1x144x432xf32>,
    return
  }
  func.func @transform_0(%arg0: i32) -> (i32, i32) {
    %c0_i32 = arith.constant 0 : i32
    %c0_i32_0 = arith.constant 0 : i32
    %c0_i32_1 = arith.constant 0 : i32
    return %c0_i32, %c0_i32_0 : i32, i32
  }
  func.func @transform_1(%arg0: i32) -> (i32, i32) {
    %c0_i32 = arith.constant 0 : i32
    %c0_i32_0 = arith.constant 0 : i32
    %c0_i32_1 = arith.constant 0 : i32
    return %c0_i32, %c0_i32_0 : i32, i32
  }
  func.func @transform_2(%arg0: i32) -> (i32, i32) {
    %c0_i32 = arith.constant 0 : i32
    %c0_i32_0 = arith.constant 0 : i32
    %c0_i32_1 = arith.constant 0 : i32
    return %c0_i32, %c0_i32_0 : i32, i32
  }
  func.func @transform_3(%arg0: i32) -> (i32, i32, i32) {
    %c0_i32 = arith.constant 0 : i32
    %c0_i32_0 = arith.constant 0 : i32
    %c0_i32_1 = arith.constant 0 : i32
    return %arg0, %c0_i32, %c0_i32_0 : i32, i32, i32
  }
  func.func @transform_4(%arg0: i32) -> (i32, i32, i32) {
    %c0_i32 = arith.constant 0 : i32
    %c0_i32_0 = arith.constant 0 : i32
    %c0_i32_1 = arith.constant 0 : i32
    return %arg0, %c0_i32, %c0_i32_0 : i32, i32, i32
  }
}

</mosaic_0001>

<bundles_post_ra>
// kernel: tile.8
= control target key start
LH: loop header
LB: loop body
LE: loop exit
PB: predicated region body
PF: predicated region fallthrough
CT: control target
= control target key end

     0   :  { %s124_s0 = inlined_call_operand.vmem [shape: f32[3], index: 0, kind: input, shape index: {}]   ;;  %s125_s1 = inlined_call_operand.vmem [shape: f32[144,3], index: 1, kind: output, shape index: {}]  }
   0x1   :  { %v4_v0 = vld [vmem:[%s124_s0] ss:$0 sm:$0xff] }
   0x2   :  { %5 = vst [vmem:[%s125_s1] sm:$0xff] %v4_v0  ;;  %40 = vst [vmem:[%s125_s1 + $0x8] sm:$0xff] %v4_v0 }
   0x3   :  { %41 = vst [vmem:[%s125_s1 + $0x10] sm:$0xff] %v4_v0  ;;  %42 = vst [vmem:[%s125_s1 + $0x18] sm:$0xff] %v4_v0 }
   0x4   :  { %43 = vst [vmem:[%s125_s1 + $0x20] sm:$0xff] %v4_v0  ;;  %44 = vst [vmem:[%s125_s1 + $0x28] sm:$0xff] %v4_v0 }
   0x5   :  { %45 = vst [vmem:[%s125_s1 + $0x30] sm:$0xff] %v4_v0  ;;  %46 = vst [vmem:[%s125_s1 + $0x38] sm:$0xff] %v4_v0 }
   0x6   :  { %47 = vst [vmem:[%s125_s1 + $0x40] sm:$0xff] %v4_v0  ;;  %48 = vst [vmem:[%s125_s1 + $0x48] sm:$0xff] %v4_v0 }
   0x7   :  { %49 = vst [vmem:[%s125_s1 + $0x50] sm:$0xff] %v4_v0  ;;  %50 = vst [vmem:[%s125_s1 + $0x58] sm:$0xff] %v4_v0 }
   0x8   :  { %51 = vst [vmem:[%s125_s1 + $0x60] sm:$0xff] %v4_v0  ;;  %52 = vst [vmem:[%s125_s1 + $0x68] sm:$0xff] %v4_v0 }
   0x9   :  { %53 = vst [vmem:[%s125_s1 + $0x70] sm:$0xff] %v4_v0  ;;  %54 = vst [vmem:[%s125_s1 + $0x78] sm:$0xff] %v4_v0 }
   0xa   :  { %55 = vst [vmem:[%s125_s1 + $0x80] sm:$0xff] %v4_v0  ;;  %56 = vst [vmem:[%s125_s1 + $0x88] sm:$0xff] %v4_v0 }

// kernel: tile.9
= control target key start
LH: loop header
LB: loop body
LE: loop exit
PB: predicated region body
PF: predicated region fallthrough
CT: control target
= control target key end

     0   :  { %vm13_vm0 = vcmask 7168   ;;  %vm17_vm1 = vcmask 15360   ;;  %s1235_s14 = smov 127   ;;  %s1236_s15 = smov 125   ;;  %vm5_vm2 = vcmask 1041409   ;;  %vm7_vm3 = vcmask 23552   ;;  %s1842_s0 = inlined_call_operand.vmem [shape: f32[144,3], index: 0, kind: input, shape index: {}]   ;;  %s1843_s1 = inlined_call_operand.vmem [shape: f32[1,432], index: 1, kind: output, shape index: {}]  }
   0x1   :  { %v961_v0 = vld [vmem:[%s1842_s0 + $0x55] sm:$0x1]   ;;  %v965_v3 = vld [vmem:[%s1842_s0 + $0x7f] sm:$0x1]   ;;  %v963_v4 = vld [vmem:[%s1842_s0 + $0x2a] sm:$0x1]  }
   0x2   :  { %v962_v1 = vld [vmem:[%s1842_s0 + $0x55] sm:$0x1]   ;;  %38 = vrot.lane.b32.xlu1 %v965_v3, %s1236_s15  ;;  %v964_v5 = vld [vmem:[%s1842_s0 + $0x2a] sm:$0x1]   ;;  %v966_v7 = vld [vmem:[%s1842_s0 + $0x54] sm:$0x1]  }
   0x3   :  { %v14_v2 = vsel %vm13_vm0, %v962_v1, %v961_v0  ;;  %v28_v6 = vsel %vm17_vm1, %v964_v5, %v963_v4  ;;  %s1237_s20 = smov 126   ;;  %s1238_s21 = smov 124   ;;  %v967_v8 = vld [vmem:[%s1842_s0 + $0x29] sm:$0x1]   ;;  %v968_v9 = vld [vmem:[%s1842_s0 + $0x7e] sm:$0x1]  }
   0x4   :  { %15 = vrot.lane.b32.xlu0 %v14_v2, %s1235_s14  ;;  %s1239_s26 = smov 123   ;;  %s1240_s27 = smov 122   ;;  %v969_v10 = vld [vmem:[%s1842_s0 + $0x53] sm:$0x1]   ;;  %v970_v11 = vld [vmem:[%s1842_s0 + $0x28] sm:$0x1]  }
   0x5   :  { %s1241_s3 = smov 121   ;;  %s1242_s4 = smov 120   ;;  %v971_v12 = vld [vmem:[%s1842_s0 + $0x7d] sm:$0x1]   ;;  %v972_v13 = vld [vmem:[%s1842_s0 + $0x52] sm:$0x1]  }
   0x6   :  { %45 = vrot.lane.b32.xlu1 %v966_v7, %s1238_s21  ;;  %s1243_s9 = smov 119   ;;  %s1244_s10 = smov 118   ;;  %v973_v14 = vld [vmem:[%s1842_s0 + $0x27] sm:$0x1]   ;;  %v974_v15 = vld [vmem:[%s1842_s0 + $0x7c] sm:$0x1]  }
   0x7   :  { %s1245_s15 = smov 117   ;;  %s1246_s16 = smov 116   ;;  %v975_v16 = vld [vmem:[%s1842_s0 + $0x51] sm:$0x1]   ;;  %v976_v17 = vld [vmem:[%s1842_s0 + $0x26] sm:$0x1]  }
   0x8   :  { %29 = vrot.lane.b32.xlu0 %v28_v6, %s1237_s20  ;;  %s1247_s21 = smov 115   ;;  %s1248_s22 = smov 114   ;;  %v977_v18 = vld [vmem:[%s1842_s0 + $0x7b] sm:$0x1]   ;;  %v978_v19 = vld [vmem:[%s1842_s0 + $0x50] sm:$0x1]  }
   0x9   :  { %s1250_s28 = smov 112   ;;  %v979_v20 = vld [vmem:[%s1842_s0 + $0x25] sm:$0x1]   ;;  %v980_v21 = vld [vmem:[%s1842_s0 + $0x7a] sm:$0x1]   ;;  %s1251_s8 = smov 111  }
   0xa   :  { %58 = vrot.lane.b32.xlu1 %v968_v9, %s1240_s27  ;;  %s1249_s27 = smov 113   ;;  %v2_v22 = vld [vmem:[%s1842_s0] sm:$0x1]   ;;  %v981_v25 = vld [vmem:[%s1842_s0 + $0x4f] sm:$0x1]   ;;  %s1253_s14 = smov 109  }
   0xb   :  { %v960_v23 = vld [vmem:[%s1842_s0 + $0x7f] sm:$0x2]   ;;  %v982_v26 = vld [vmem:[%s1842_s0 + $0x24] sm:$0x1]   ;;  %v983_v27 = vld [vmem:[%s1842_s0 + $0x79] sm:$0x1]  }
   0xc   :  { %52 = vrot.lane.b32.xlu0 %v967_v8, %s1239_s26  ;;  %v6_v24 = vsel %vm5_vm2, %v960_v23, %v2_v22  ;;  %v984_v28 = vld [vmem:[%s1842_s0 + $0x4e] sm:$0x1]   ;;  %s1255_s20 = smov 107   ;;  %v985_v29 = vld [vmem:[%s1842_s0 + $0x23] sm:$0x1]   ;;  %s1257_s26 = smov 105  }
   0xd   :  { %8 = vst.msk [vmem:[#allocation0] ss:$24 sm:$0x3] %vm7_vm3, %v6_v24   ;;  %v986_v30 = vld [vmem:[%s1842_s0 + $0x78] sm:$0x1]   ;;  %s1270_s5 = smov 92  }
   0xe   :  { %72 = vrot.lane.b32.xlu1 %v970_v11, %s1242_s4  ;;  %v987_v31 = vld [vmem:[%s1842_s0 + $0x4d] sm:$0x1]   ;;  %v988_v32 = vld [vmem:[%s1842_s0 + $0x22] sm:$0x1]   ;;  %s1260_s4 = smov 102   ;;  %s1272_s11 = smov 90  }
   0xf   :  { %v989_v33 = vld [vmem:[%s1842_s0 + $0x77] sm:$0x1]   ;;  %v990_v34 = vld [vmem:[%s1842_s0 + $0x4c] sm:$0x1]   ;;  %v991_v35 = vld [vmem:[%s1842_s0 + $0x21] sm:$0x1]  }
  0x10   :  { %65 = vrot.lane.b32.xlu0 %v969_v10, %s1241_s3  ;;  %s1259_s3 = smov 103   ;;  %v992_v36 = vld [vmem:[%s1842_s0 + $0x76] sm:$0x1]   ;;  %v993_v37 = vld [vmem:[%s1842_s0 + $0x4b] sm:$0x1]   ;;  %s1274_s17 = smov 88  }
  0x11   :  { %v994_v38 = vld [vmem:[%s1842_s0 + $0x20] sm:$0x1]   ;;  %v995_v39 = vld [vmem:[%s1842_s0 + $0x75] sm:$0x1]   ;;  %v996_v40 = vld [vmem:[%s1842_s0 + $0x4a] sm:$0x1]  }
  0x12   :  { %85 = vrot.lane.b32.xlu1 %v972_v13, %s1244_s10  ;;  %s1262_s10 = smov 100   ;;  %v997_v41 = vld [vmem:[%s1842_s0 + $0x1f] sm:$0x1]   ;;  %v998_v42 = vld [vmem:[%s1842_s0 + $0x74] sm:$0x1]   ;;  %s1276_s23 = smov 86  }
  0x13   :  { %v999_v43 = vld [vmem:[%s1842_s0 + $0x49] sm:$0x1]   ;;  %v1000_v44 = vld [vmem:[%s1842_s0 + $0x1e] sm:$0x1]   ;;  %v1001_v45 = vld [vmem:[%s1842_s0 + $0x73] sm:$0x1]  }
  0x14   :  { %78 = vrot.lane.b32.xlu0 %v971_v12, %s1243_s9  ;;  %s1252_s9 = smov 110   ;;  %v1002_v46 = vld [vmem:[%s1842_s0 + $0x48] sm:$0x1]   ;;  %v1003_v47 = vld [vmem:[%s1842_s0 + $0x1d] sm:$0x1]   ;;  %s1278_s29 = smov 84  }
  0x15   :  { %v1004_v48 = vld [vmem:[%s1842_s0 + $0x72] sm:$0x1]   ;;  %v1005_v49 = vld [vmem:[%s1842_s0 + $0x47] sm:$0x1]   ;;  %v1006_v50 = vld [vmem:[%s1842_s0 + $0x1c] sm:$0x1]  }
  0x16   :  { %98 = vrot.lane.b32.xlu1 %v974_v15, %s1246_s16  ;;  %s1264_s16 = smov 98   ;;  %v1007_v51 = vld [vmem:[%s1842_s0 + $0x71] sm:$0x1]   ;;  %v1008_v52 = vld [vmem:[%s1842_s0 + $0x46] sm:$0x1]   ;;  %s1280_s6 = smov 82  }
  0x17   :  { %v1009_v53 = vld [vmem:[%s1842_s0 + $0x1b] sm:$0x1]   ;;  %v1010_v54 = vld [vmem:[%s1842_s0 + $0x70] sm:$0x1]   ;;  %s1282_s12 = smov 80   ;;  %s1284_s18 = smov 78  }
  0x18   :  { %92 = vrot.lane.b32.xlu0 %v973_v14, %s1245_s15  ;;  %s1254_s15 = smov 108   ;;  %v1011_v55 = vld [vmem:[%s1842_s0 + $0x45] sm:$0x1]   ;;  %v1012_v56 = vld [vmem:[%s1842_s0 + $0x1a] sm:$0x1]   ;;  %s1286_s24 = smov 76  }
  0x19   :  { %v1013_v57 = vld [vmem:[%s1842_s0 + $0x6f] sm:$0x1]   ;;  %v1014_v58 = vld [vmem:[%s1842_s0 + $0x44] sm:$0x1]   ;;  %v1015_v59 = vld [vmem:[%s1842_s0 + $0x19] sm:$0x1]  }
  0x1a   :  { %112 = vrot.lane.b32.xlu1 %v976_v17, %s1248_s22  ;;  %s1266_s22 = smov 96   ;;  %v1016_v60 = vld [vmem:[%s1842_s0 + $0x6e] sm:$0x1]   ;;  %s1288_s30 = smov 74   ;;  %v1017_v61 = vld [vmem:[%s1842_s0 + $0x43] sm:$0x1]  }
  0x1b   :  { %v1018_v62 = vld [vmem:[%s1842_s0 + $0x18] sm:$0x1]   ;;  %s1290_s7 = smov 72   ;;  %v1019_v63 = vld [vmem:[%s1842_s0 + $0x6d] sm:$0x1]   ;;  %vm20_vm4 = vcmask 1048568  }
  0x1c   :  { %105 = vrot.lane.b32.xlu0 %v975_v16, %s1247_s21  ;;  %s1256_s21 = smov 106   ;;  %v1020_v0 = vld [vmem:[%s1842_s0 + $0x42] sm:$0x1]   ;;  %s1292_s13 = smov 70   ;;  %v1021_v1 = vld [vmem:[%s1842_s0 + $0x17] sm:$0x1]  }
  0x1d   :  { %vm40_vm5 = vcmask 1048552   ;;  %v1022_v2 = vld [vmem:[%s1842_s0 + $0x6c] sm:$0x1]   ;;  %vm34_vm6 = vcmask 1048560   ;;  %s1294_s19 = smov 68   ;;  %vm47_vm7 = vcmask 1040352  }
  0x1e   :  { %125 = vrot.lane.b32.xlu1 %v978_v19, %s1250_s28  ;;  %s1268_s28 = smov 94   ;;  %v1023_v5 = vld [vmem:[%s1842_s0 + $0x41] sm:$0x1]   ;;  %v1024_v6 = vld [vmem:[%s1842_s0 + $0x16] sm:$0x1]   ;;  %vm54_vm8 = vcmask 1032152  }
  0x1f   :  { %s1296_s25 = smov 66   ;;  %vm60_vm9 = vcmask 1023952   ;;  %v1025_v9 = vld [vmem:[%s1842_s0 + $0x6b] sm:$0x1]   ;;  %v1026_v10 = vld [vmem:[%s1842_s0 + $0x40] sm:$0x1]  }
  0x20   :  { %118 = vrot.lane.b32.xlu0 %v977_v18, %s1249_s27  ;;  %s1258_s27 = smov 104   ;;  %vm67_vm10 = vcmask 1015752   ;;  %s1298_s2 = smov 64   ;;  %vm74_vm11 = vcmask 1007552   ;;  %v1027_v13 = vld [vmem:[%s1842_s0 + $0x15] sm:$0x1]  }
  0x21   :  { %v1028_v14 = vld [vmem:[%s1842_s0 + $0x6a] sm:$0x1]   ;;  %vm80_vm12 = vcmask 999352   ;;  %vm87_vm13 = vcmask 991152   ;;  %v1029_v17 = vld [vmem:[%s1842_s0 + $0x3f] sm:$0x1]  }
  0x22   :  { %138 = vrot.lane.b32.xlu1 %v980_v21, %s1252_s9  ;;  %s1261_s9 = smov 101   ;;  %v1030_v18 = vld [vmem:[%s1842_s0 + $0x14] sm:$0x1]   ;;  %vm94_vm14 = vcmask 982952   ;;  %vm100_vm15 = vcmask 974752   ;;  %vm120_vm3 = vcmask 950152  }
  0x23   :  { %v1031_v21 = vld [vmem:[%s1842_s0 + $0x69] sm:$0x1]   ;;  %v1032_v22 = vld [vmem:[%s1842_s0 + $0x3e] sm:$0x1]  }
  0x24   :  { %132 = vrot.lane.b32.xlu0 %v979_v20, %s1251_s8  ;;  %s1300_s8 = smov 62  }
  0x26   :  { %152 = vrot.lane.b32.xlu1 %v982_v26, %s1254_s15  ;;  %s1263_s15 = smov 99   ;;  %v1034_v26 = vld [vmem:[%s1842_s0 + $0x68] sm:$0x1]  }
  0x28   :  { %145 = vrot.lane.b32.xlu0 %v981_v25, %s1253_s14  ;;  %s1302_s14 = smov 60   ;;  %v1033_v25 = vld [vmem:[%s1842_s0 + $0x13] sm:$0x1]  }
  0x2a   :  { %165 = vrot.lane.b32.xlu1 %v984_v28, %s1256_s21  ;;  %s1265_s21 = smov 97  }
  0x2c   :  { %158 = vrot.lane.b32.xlu0 %v983_v27, %s1255_s20  ;;  %s1304_s20 = smov 58  }
  0x2e   :  { %178 = vrot.lane.b32.xlu1 %v986_v30, %s1258_s27  ;;  %s1267_s27 = smov 95   ;;  %v1036_v30 = vld [vmem:[%s1842_s0 + $0x12] sm:$0x1]  }
  0x30   :  { %172 = vrot.lane.b32.xlu0 %v985_v29, %s1257_s26  ;;  %s1306_s26 = smov 56   ;;  %v1035_v29 = vld [vmem:[%s1842_s0 + $0x3d] sm:$0x1]  }
  0x32   :  { %192 = vrot.lane.b32.xlu1 %v988_v32, %s1260_s4  ;;  %s1269_s4 = smov 93  }
  0x34   :  { %185 = vrot.lane.b32.xlu0 %v987_v31, %s1259_s3  ;;  %s1308_s3 = smov 54  }
  0x36   :  { %205 = vrot.lane.b32.xlu1 %v990_v34, %s1262_s10  ;;  %s1271_s10 = smov 91   ;;  %v1038_v34 = vld [vmem:[%s1842_s0 + $0x3c] sm:$0x1]  }
  0x38   :  { %198 = vrot.lane.b32.xlu0 %v989_v33, %s1261_s9  ;;  %v1037_v33 = vld [vmem:[%s1842_s0 + $0x67] sm:$0x1]   ;;  %s1310_s9 = smov 52  }
  0x3a   :  { %218 = vrot.lane.b32.xlu1 %v992_v36, %s1264_s16  ;;  %s1273_s16 = smov 89  }
  0x3c   :  { %212 = vrot.lane.b32.xlu0 %v991_v35, %s1263_s15  ;;  %s1312_s15 = smov 50  }
  0x3e   :  { %232 = vrot.lane.b32.xlu1 %v994_v38, %s1266_s22  ;;  %s1275_s22 = smov 87   ;;  %v1040_v38 = vld [vmem:[%s1842_s0 + $0x66] sm:$0x1]  }
  0x40   :  { %225 = vrot.lane.b32.xlu0 %v993_v37, %s1265_s21  ;;  %v1039_v37 = vld [vmem:[%s1842_s0 + $0x11] sm:$0x1]   ;;  %s1314_s21 = smov 48  }
  0x42   :  { %245 = vrot.lane.b32.xlu1 %v996_v40, %s1268_s28  ;;  %s1277_s28 = smov 85  }
  0x44   :  { %238 = vrot.lane.b32.xlu0 %v995_v39, %s1267_s27 }
  0x46   :  { %258 = vrot.lane.b32.xlu1 %v998_v42, %s1270_s5  ;;  %s1279_s5 = smov 83   ;;  %v1042_v42 = vld [vmem:[%s1842_s0 + $0x10] sm:$0x1]  }
  0x48   :  { %252 = vrot.lane.b32.xlu0 %v997_v41, %s1269_s4  ;;  %v1041_v41 = vld [vmem:[%s1842_s0 + $0x3b] sm:$0x1]   ;;  %s1348_s4 = smov 14  }
  0x4a   :  { %272 = vrot.lane.b32.xlu1 %v1000_v44, %s1272_s11  ;;  %s1281_s11 = smov 81  }
  0x4c   :  { %265 = vrot.lane.b32.xlu0 %v999_v43, %s1271_s10  ;;  %s1318_s10 = smov 44  }
  0x4e   :  { %285 = vrot.lane.b32.xlu1 %v1002_v46, %s1274_s17  ;;  %s1283_s17 = smov 79   ;;  %v1044_v46 = vld [vmem:[%s1842_s0 + $0x3a] sm:$0x1]  }
  0x50   :  { %278 = vrot.lane.b32.xlu0 %v1001_v45, %s1273_s16  ;;  %v1043_v45 = vld [vmem:[%s1842_s0 + $0x65] sm:$0x1]   ;;  %s1327_s16 = smov 35  }
  0x52   :  { %298 = vrot.lane.b32.xlu1 %v1004_v48, %s1276_s23  ;;  %s1285_s23 = smov 77  }
  0x54   :  { %292 = vrot.lane.b32.xlu0 %v1003_v47, %s1275_s22  ;;  %s1338_s22 = smov 24  }
  0x56   :  { %312 = vrot.lane.b32.xlu1 %v1006_v50, %s1278_s29  ;;  %s1287_s29 = smov 75   ;;  %v1046_v50 = vld [vmem:[%s1842_s0 + $0x8e] sm:$0x2]  }
  0x58   :  { %305 = vrot.lane.b32.xlu0 %v1005_v49, %s1277_s28  ;;  %v1045_v49 = vld [vmem:[%s1842_s0 + $0xf] sm:$0x1]   ;;  %s1331_s28 = smov 31  }
  0x5a   :  { %325 = vrot.lane.b32.xlu1 %v1008_v52, %s1280_s6  ;;  %s1289_s6 = smov 73   ;;  %v1047_v52 = vld [vmem:[%s1842_s0 + $0x64] sm:$0x1]  }
  0x5c   :  { %318 = vrot.lane.b32.xlu0 %v1007_v51, %s1279_s5  ;;  %v575_v51 = vsel %vm5_vm2, %v1046_v50, %v1045_v49  ;;  %v1077_v49 = vld [vmem:[%s1842_s0 + $0x7] sm:$0x1]  }
  0x5d   :  { %v1078_v50 = vld [vmem:[%s1842_s0 + $0x86] sm:$0x2]  }
  0x5e   :  { %338 = vrot.lane.b32.xlu1 %v1010_v54, %s1282_s12  ;;  %s1291_s12 = smov 71  }
  0x60   :  { %332 = vrot.lane.b32.xlu0 %v1009_v53, %s1281_s11  ;;  %s1342_s11 = smov 20  }
  0x62   :  { %352 = vrot.lane.b32.xlu1 %v1012_v56, %s1284_s18  ;;  %s1293_s18 = smov 69   ;;  %v1050_v56 = vld [vmem:[%s1842_s0 + $0x8d] sm:$0x2]  }
  0x64   :  { %345 = vrot.lane.b32.xlu0 %v1011_v55, %s1283_s17  ;;  %v1049_v55 = vld [vmem:[%s1842_s0 + $0xe] sm:$0x1]   ;;  %s1328_s17 = smov 34  }
  0x66   :  { %365 = vrot.lane.b32.xlu1 %v1014_v58, %s1286_s24  ;;  %s1295_s24 = smov 67   ;;  %v599_v58 = vsel %vm5_vm2, %v1050_v56, %v1049_v55  ;;  %v1081_v55 = vld [vmem:[%s1842_s0 + $0x6] sm:$0x1]  }
  0x67   :  { %v1082_v56 = vld [vmem:[%s1842_s0 + $0x85] sm:$0x2]  }
  0x68   :  { %358 = vrot.lane.b32.xlu0 %v1013_v57, %s1285_s23  ;;  %v1048_v57 = vld [vmem:[%s1842_s0 + $0x39] sm:$0x1]   ;;  %s1321_s23 = smov 41  }
  0x6a   :  { %378 = vrot.lane.b32.xlu1 %v1016_v60, %s1288_s30  ;;  %s1297_s30 = smov 65  }
  0x6c   :  { %372 = vrot.lane.b32.xlu0 %v1015_v59, %s1287_s29  ;;  %s1332_s29 = smov 30  }
  0x6e   :  { %392 = vrot.lane.b32.xlu1 %v1018_v62, %s1290_s7  ;;  %s1299_s7 = smov 63   ;;  %v1052_v62 = vld [vmem:[%s1842_s0 + $0x38] sm:$0x1]  }
  0x70   :  { %385 = vrot.lane.b32.xlu0 %v1017_v61, %s1289_s6  ;;  %v1051_v61 = vld [vmem:[%s1842_s0 + $0x63] sm:$0x1]   ;;  %s1325_s6 = smov 37  }
  0x72   :  { %405 = vrot.lane.b32.xlu1 %v1020_v0, %s1292_s13  ;;  %s1301_s13 = smov 61  }
  0x74   :  { %398 = vrot.lane.b32.xlu0 %v1019_v63, %s1291_s12  ;;  %v39_v4 = vpop.permute.xlu1 %38  }
  0x76   :  { %v16_v3 = vpop.permute.xlu0 %15   ;;  %418 = vrot.lane.b32.xlu1 %v1022_v2, %s1294_s19  ;;  %s1303_s19 = smov 59   ;;  %v1054_v2 = vld [vmem:[%s1842_s0 + $0x8c] sm:$0x2]  }
  0x77   :  { %19 = vst.msk [vmem:[#allocation0 + $0x10] sm:$0x1] %vm17_vm1, %v16_v3   ;;  %vm114_vm1 = vcmask 958352  }
  0x78   :  { %22 = vst.msk [vmem:[#allocation0 + $0x8] sm:$0x1] %vm20_vm4, %v16_v3   ;;  %412 = vrot.lane.b32.xlu0 %v1021_v1, %s1293_s18  ;;  %v46_v8 = vpop.permute.xlu1 %45   ;;  %vm127_vm4 = vcmask 941952   ;;  %v1053_v1 = vld [vmem:[%s1842_s0 + $0xd] sm:$0x1]   ;;  %s1336_s18 = smov 26  }
  0x79   :  { %42 = vst.msk [vmem:[#allocation0 + $0x10] sm:$0x1] %vm40_vm5, %v39_v4   ;;  %vm134_vm5 = vcmask 933752   ;;  %v623_v3 = vsel %vm5_vm2, %v1054_v2, %v1053_v1  ;;  %v1055_v4 = vld [vmem:[%s1842_s0 + $0x62] sm:$0x1]  }
  0x7a   :  { %v30_v7 = vpop.permute.xlu0 %29   ;;  %432 = vrot.lane.b32.xlu1 %v1024_v6, %s1296_s25  ;;  %s1305_s25 = smov 57   ;;  %v1085_v1 = vld [vmem:[%s1842_s0 + $0x5] sm:$0x1]  }
  0x7b   :  { %33 = vst.msk [vmem:[#allocation0 + $0x8] sm:$0x1] %vm13_vm0, %v30_v7   ;;  %vm107_vm0 = vcmask 966552   ;;  %v1086_v2 = vld [vmem:[%s1842_s0 + $0x84] sm:$0x2]  }
  0x7c   :  { %35 = vst.msk [vmem:[#allocation0] sm:$0x1] %vm34_vm6, %v30_v7   ;;  %425 = vrot.lane.b32.xlu0 %v1023_v5, %s1295_s24  ;;  %v59_v12 = vpop.permute.xlu1 %58   ;;  %vm140_vm6 = vcmask 925552   ;;  %s1322_s24 = smov 40   ;;  %v1057_v7 = vld [vmem:[%s1842_s0 + $0xc] sm:$0x1]  }
  0x7d   :  { %49 = vst.msk [vmem:[#allocation0 + $0x8] sm:$0x1] %vm47_vm7, %v46_v8   ;;  %vm147_vm7 = vcmask 917352   ;;  %v1058_v8 = vld [vmem:[%s1842_s0 + $0x8b] sm:$0x2]  }
  0x7e   :  { %v53_v11 = vpop.permute.xlu0 %52   ;;  %62 = vst.msk [vmem:[#allocation0 + $0x10] sm:$0x1] %vm60_vm9, %v59_v12   ;;  %445 = vrot.lane.b32.xlu1 %v1026_v10, %s1298_s2  ;;  %s1307_s2 = smov 55   ;;  %vm160_vm9 = vcmask 900952   ;;  %v647_v10 = vsel %vm5_vm2, %v1058_v8, %v1057_v7  ;;  %v1089_v7 = vld [vmem:[%s1842_s0 + $0x4] sm:$0x1]  }
  0x7f   :  { %55 = vst.msk [vmem:[#allocation0] sm:$0x1] %vm54_vm8, %v53_v11   ;;  %vm154_vm8 = vcmask 909152   ;;  %v1090_v8 = vld [vmem:[%s1842_s0 + $0x83] sm:$0x2]  }
  0x80   :  { %438 = vrot.lane.b32.xlu0 %v1025_v9, %s1297_s30  ;;  %v73_v16 = vpop.permute.xlu1 %72   ;;  %s1315_s30 = smov 47   ;;  %v1056_v9 = vld [vmem:[%s1842_s0 + $0x37] sm:$0x1]  }
  0x81   :  { %75 = vst.msk [vmem:[#allocation0] sm:$0x1] %vm74_vm11, %v73_v16   ;;  %vm174_vm11 = vcmask 884552  }
  0x82   :  { %v66_v15 = vpop.permute.xlu0 %65   ;;  %458 = vrot.lane.b32.xlu1 %v1028_v14, %s1300_s8  ;;  %s1309_s8 = smov 53   ;;  %v1060_v14 = vld [vmem:[%s1842_s0 + $0x36] sm:$0x1]  }
  0x83   :  { %69 = vst.msk [vmem:[#allocation0 + $0x8] sm:$0x1] %vm67_vm10, %v66_v15   ;;  %vm167_vm10 = vcmask 892752  }
  0x84   :  { %452 = vrot.lane.b32.xlu0 %v1027_v13, %s1299_s7  ;;  %v86_v20 = vpop.permute.xlu1 %85   ;;  %s1326_s7 = smov 36   ;;  %v1059_v13 = vld [vmem:[%s1842_s0 + $0x61] sm:$0x1]  }
  0x85   :  { %89 = vst.msk [vmem:[#allocation0 + $0x8] sm:$0x1] %vm87_vm13, %v86_v20   ;;  %vm187_vm13 = vcmask 868152   ;;  %v1063_v20 = vld [vmem:[%s1842_s0 + $0x60] sm:$0x1]  }
  0x86   :  { %v79_v19 = vpop.permute.xlu0 %78   ;;  %472 = vrot.lane.b32.xlu1 %v1030_v18, %s1302_s14  ;;  %s1311_s14 = smov 51   ;;  %v1062_v18 = vld [vmem:[%s1842_s0 + $0x8a] sm:$0x2]  }
  0x87   :  { %82 = vst.msk [vmem:[#allocation0 + $0x10] sm:$0x1] %vm80_vm12, %v79_v19   ;;  %vm180_vm12 = vcmask 876352  }
  0x88   :  { %465 = vrot.lane.b32.xlu0 %v1029_v17, %s1301_s13  ;;  %v99_v24 = vpop.permute.xlu1 %98   ;;  %s1319_s13 = smov 43   ;;  %v1061_v17 = vld [vmem:[%s1842_s0 + $0xb] sm:$0x1]  }
  0x89   :  { %102 = vst.msk [vmem:[#allocation0 + $0x10] sm:$0x1] %vm100_vm15, %v99_v24   ;;  %vm200_vm15 = vcmask 851752   ;;  %v671_v19 = vsel %vm5_vm2, %v1062_v18, %v1061_v17  ;;  %v1066_v24 = vld [vmem:[%s1842_s0 + $0x89] sm:$0x2]  }
  0x8a   :  { %v93_v23 = vpop.permute.xlu0 %92   ;;  %485 = vrot.lane.b32.xlu1 %v1032_v22, %s1304_s20  ;;  %s1313_s20 = smov 49   ;;  %v1093_v17 = vld [vmem:[%s1842_s0 + $0x3] sm:$0x1]  }
  0x8b   :  { %95 = vst.msk [vmem:[#allocation0] sm:$0x1] %vm94_vm14, %v93_v23   ;;  %vm194_vm14 = vcmask 859952   ;;  %v1065_v23 = vld [vmem:[%s1842_s0 + $0xa] sm:$0x1]  }
  0x8c   :  { %478 = vrot.lane.b32.xlu0 %v1031_v21, %s1303_s19  ;;  %v113_v28 = vpop.permute.xlu1 %112   ;;  %v1094_v18 = vld [vmem:[%s1842_s0 + $0x82] sm:$0x2]  }
  0x8d   :  { %115 = vst.msk [vmem:[#allocation0] sm:$0x1] %vm114_vm1, %v113_v28   ;;  %vm214_vm1 = vcmask 835352  }
  0x8e   :  { %v106_v27 = vpop.permute.xlu0 %105   ;;  %498 = vrot.lane.b32.xlu1 %v1034_v26, %s1306_s26  ;;  %v695_v26 = vsel %vm5_vm2, %v1066_v24, %v1065_v23  ;;  %v1097_v23 = vld [vmem:[%s1842_s0 + $0x2] sm:$0x1]   ;;  %s1354_s26 = smov 8  }
  0x8f   :  { %109 = vst.msk [vmem:[#allocation0 + $0x8] sm:$0x1] %vm107_vm0, %v106_v27   ;;  %vm207_vm0 = vcmask 843552   ;;  %v1098_v24 = vld [vmem:[%s1842_s0 + $0x81] sm:$0x2]  }
  0x90   :  { %492 = vrot.lane.b32.xlu0 %v1033_v25, %s1305_s25  ;;  %v126_v32 = vpop.permute.xlu1 %125   ;;  %s1330_s25 = smov 32   ;;  %v1064_v25 = vld [vmem:[%s1842_s0 + $0x35] sm:$0x1]  }
  0x91   :  { %129 = vst.msk [vmem:[#allocation0 + $0x8] sm:$0x1] %vm127_vm4, %v126_v32   ;;  %vm227_vm4 = vcmask 818952  }
  0x92   :  { %v119_v31 = vpop.permute.xlu0 %118   ;;  %512 = vrot.lane.b32.xlu1 %v1036_v30, %s1308_s3  ;;  %s1324_s3 = smov 38   ;;  %v1068_v30 = vld [vmem:[%s1842_s0 + $0x34] sm:$0x1]  }
  0x93   :  { %122 = vst.msk [vmem:[#allocation0 + $0x10] sm:$0x1] %vm120_vm3, %v119_v31   ;;  %vm220_vm3 = vcmask 827152  }
  0x94   :  { %505 = vrot.lane.b32.xlu0 %v1035_v29, %s1307_s2  ;;  %v139_v36 = vpop.permute.xlu1 %138   ;;  %s1316_s2 = smov 46   ;;  %v1067_v29 = vld [vmem:[%s1842_s0 + $0x5f] sm:$0x1]  }
  0x95   :  { %142 = vst.msk [vmem:[#allocation0 + $0x10] sm:$0x1] %vm140_vm6, %v139_v36   ;;  %vm240_vm6 = vcmask 802552   ;;  %v1071_v36 = vld [vmem:[%s1842_s0 + $0x5e] sm:$0x1]  }
  0x96   :  { %v133_v35 = vpop.permute.xlu0 %132   ;;  %525 = vrot.lane.b32.xlu1 %v1038_v34, %s1310_s9  ;;  %s1317_s9 = smov 45   ;;  %v1070_v34 = vld [vmem:[%s1842_s0 + $0x88] sm:$0x2]  }
  0x97   :  { %135 = vst.msk [vmem:[#allocation0] sm:$0x1] %vm134_vm5, %v133_v35   ;;  %vm234_vm5 = vcmask 810752  }
  0x98   :  { %518 = vrot.lane.b32.xlu0 %v1037_v33, %s1309_s8  ;;  %v153_v40 = vpop.permute.xlu1 %152   ;;  %v1069_v33 = vld [vmem:[%s1842_s0 + $0x9] sm:$0x1]   ;;  %s1350_s8 = smov 12  }
  0x99   :  { %155 = vst.msk [vmem:[#allocation0] sm:$0x1] %vm154_vm8, %v153_v40   ;;  %vm254_vm8 = vcmask 786152   ;;  %v719_v35 = vsel %vm5_vm2, %v1070_v34, %v1069_v33  ;;  %v1074_v40 = vld [vmem:[%s1842_s0 + $0x87] sm:$0x2]  }
  0x9a   :  { %v146_v39 = vpop.permute.xlu0 %145   ;;  %538 = vrot.lane.b32.xlu1 %v1040_v38, %s1312_s15  ;;  %s1344_s15 = smov 18   ;;  %v1101_v33 = vld [vmem:[%s1842_s0 + $0x1] sm:$0x1]  }
  0x9b   :  { %149 = vst.msk [vmem:[#allocation0 + $0x8] sm:$0x1] %vm147_vm7, %v146_v39   ;;  %vm247_vm7 = vcmask 794352   ;;  %v1073_v39 = vld [vmem:[%s1842_s0 + $0x8] sm:$0x1]  }
  0x9c   :  { %532 = vrot.lane.b32.xlu0 %v1039_v37, %s1311_s14  ;;  %v166_v44 = vpop.permute.xlu1 %165   ;;  %s1320_s14 = smov 42   ;;  %v1102_v34 = vld [vmem:[%s1842_s0 + $0x80] sm:$0x2]  }
  0x9d   :  { %169 = vst.msk [vmem:[#allocation0 + $0x8] sm:$0x1] %vm167_vm10, %v166_v44   ;;  %vm267_vm10 = vcmask 769752  }
  0x9e   :  { %v159_v43 = vpop.permute.xlu0 %158   ;;  %552 = vrot.lane.b32.xlu1 %v1042_v42, %s1314_s21  ;;  %v743_v42 = vsel %vm5_vm2, %v1074_v40, %v1073_v39  ;;  %s1337_s21 = smov 25   ;;  %v1104_v39 = vld [vmem:[%s1842_s0 + $0x2b] sm:$0x1]  }
  0x9f   :  { %162 = vst.msk [vmem:[#allocation0 + $0x10] sm:$0x1] %vm160_vm9, %v159_v43   ;;  %vm260_vm9 = vcmask 777952  }
  0xa0   :  { %545 = vrot.lane.b32.xlu0 %v1041_v41, %s1313_s20  ;;  %v179_v48 = vpop.permute.xlu1 %178   ;;  %v1072_v41 = vld [vmem:[%s1842_s0 + $0x33] sm:$0x1]  }
  0xa1   :  { %182 = vst.msk [vmem:[#allocation0 + $0x10] sm:$0x1] %vm180_vm12, %v179_v48   ;;  %vm280_vm12 = vcmask 753352  }
  0xa2   :  { %v173_v47 = vpop.permute.xlu0 %172   ;;  %565 = vrot.lane.b32.xlu1 %v1044_v46, %s1316_s2  ;;  %s1323_s2 = smov 39   ;;  %v1076_v46 = vld [vmem:[%s1842_s0 + $0x32] sm:$0x1]  }
  0xa3   :  { %175 = vst.msk [vmem:[#allocation0] sm:$0x1] %vm174_vm11, %v173_v47   ;;  %vm274_vm11 = vcmask 761552  }
  0xa4   :  { %558 = vrot.lane.b32.xlu0 %v1043_v45, %s1315_s30  ;;  %v193_v54 = vpop.permute.xlu1 %192   ;;  %v1075_v45 = vld [vmem:[%s1842_s0 + $0x5d] sm:$0x1]   ;;  %s1356_s30 = smov 6  }
  0xa5   :  { %195 = vst.msk [vmem:[#allocation0] sm:$0x1] %vm194_vm14, %v193_v54   ;;  %vm294_vm14 = vcmask 736952  }
  0xa6   :  { %v186_v53 = vpop.permute.xlu0 %185   ;;  %582 = vrot.lane.b32.xlu1 %v1047_v52, %s1318_s10  ;;  %s1334_s10 = smov 28   ;;  %v1079_v52 = vld [vmem:[%s1842_s0 + $0x5c] sm:$0x1]  }
  0xa7   :  { %189 = vst.msk [vmem:[#allocation0 + $0x8] sm:$0x1] %vm187_vm13, %v186_v53   ;;  %vm287_vm13 = vcmask 745152  }
  0xa8   :  { %576 = vrot.lane.b32.xlu0 %v575_v51, %s1317_s9  ;;  %v206_v60 = vpop.permute.xlu1 %205   ;;  %s1333_s9 = smov 29   ;;  %v767_v51 = vsel %vm5_vm2, %v1078_v50, %v1077_v49 }
  0xa9   :  { %209 = vst.msk [vmem:[#allocation0 + $0x8] sm:$0x1] %vm207_vm0, %v206_v60   ;;  %vm307_vm0 = vcmask 720552  }
  0xaa   :  { %v199_v59 = vpop.permute.xlu0 %198   ;;  %600 = vrot.lane.b32.xlu1 %v599_v58, %s1320_s14  ;;  %v791_v58 = vsel %vm5_vm2, %v1082_v56, %v1081_v55  ;;  %s1343_s14 = smov 19  }
  0xab   :  { %202 = vst.msk [vmem:[#allocation0 + $0x10] sm:$0x1] %vm200_vm15, %v199_v59   ;;  %vm300_vm15 = vcmask 728752  }
  0xac   :  { %589 = vrot.lane.b32.xlu0 %v1048_v57, %s1319_s13  ;;  %v219_v0 = vpop.permute.xlu1 %218   ;;  %v1080_v57 = vld [vmem:[%s1842_s0 + $0x31] sm:$0x1]  }
  0xad   :  { %222 = vst.msk [vmem:[#allocation0 + $0x10] sm:$0x1] %vm220_vm3, %v219_v0   ;;  %vm320_vm3 = vcmask 704152  }
  0xae   :  { %v213_v63 = vpop.permute.xlu0 %212   ;;  %613 = vrot.lane.b32.xlu1 %v1052_v62, %s1322_s24  ;;  %s1329_s24 = smov 33   ;;  %v1084_v62 = vld [vmem:[%s1842_s0 + $0x30] sm:$0x1]  }
  0xaf   :  { %215 = vst.msk [vmem:[#allocation0] sm:$0x1] %vm214_vm1, %v213_v63   ;;  %vm314_vm1 = vcmask 712352  }
  0xb0   :  { %606 = vrot.lane.b32.xlu0 %v1051_v61, %s1321_s23  ;;  %v233_v6 = vpop.permute.xlu1 %232   ;;  %v1083_v61 = vld [vmem:[%s1842_s0 + $0x5b] sm:$0x1]  }
  0xb1   :  { %235 = vst.msk [vmem:[#allocation0] sm:$0x1] %vm234_vm5, %v233_v6   ;;  %vm334_vm5 = vcmask 687752  }
  0xb2   :  { %v226_v5 = vpop.permute.xlu0 %225   ;;  %630 = vrot.lane.b32.xlu1 %v1055_v4, %s1324_s3  ;;  %s1340_s3 = smov 22   ;;  %v1087_v4 = vld [vmem:[%s1842_s0 + $0x5a] sm:$0x1]  }
  0xb3   :  { %229 = vst.msk [vmem:[#allocation0 + $0x8] sm:$0x1] %vm227_vm4, %v226_v5   ;;  %vm327_vm4 = vcmask 695952  }
  0xb4   :  { %624 = vrot.lane.b32.xlu0 %v623_v3, %s1323_s2  ;;  %v246_v12 = vpop.permute.xlu1 %245   ;;  %s1339_s2 = smov 23   ;;  %v815_v3 = vsel %vm5_vm2, %v1086_v2, %v1085_v1 }
  0xb5   :  { %249 = vst.msk [vmem:[#allocation0 + $0x8] sm:$0x1] %vm247_vm7, %v246_v12   ;;  %vm347_vm7 = vcmask 671352  }
  0xb6   :  { %v239_v11 = vpop.permute.xlu0 %238   ;;  %648 = vrot.lane.b32.xlu1 %v647_v10, %s1326_s7  ;;  %v839_v10 = vsel %vm5_vm2, %v1090_v8, %v1089_v7  ;;  %s1349_s7 = smov 13  }
  0xb7   :  { %242 = vst.msk [vmem:[#allocation0 + $0x10] sm:$0x1] %vm240_vm6, %v239_v11   ;;  %vm340_vm6 = vcmask 679552  }
  0xb8   :  { %637 = vrot.lane.b32.xlu0 %v1056_v9, %s1325_s6  ;;  %v259_v16 = vpop.permute.xlu1 %258   ;;  %v1088_v9 = vld [vmem:[%s1842_s0 + $0x2f] sm:$0x1]  }
  0xb9   :  { %262 = vst.msk [vmem:[#allocation0 + $0x10] sm:$0x1] %vm260_vm9, %v259_v16   ;;  %vm360_vm9 = vcmask 654952  }
  0xba   :  { %v253_v15 = vpop.permute.xlu0 %252   ;;  %661 = vrot.lane.b32.xlu1 %v1060_v14, %s1328_s17  ;;  %s1335_s17 = smov 27   ;;  %v1092_v14 = vld [vmem:[%s1842_s0 + $0x2e] sm:$0x1]  }
  0xbb   :  { %255 = vst.msk [vmem:[#allocation0] sm:$0x1] %vm254_vm8, %v253_v15   ;;  %vm354_vm8 = vcmask 663152  }
  0xbc   :  { %654 = vrot.lane.b32.xlu0 %v1059_v13, %s1327_s16  ;;  %v273_v22 = vpop.permute.xlu1 %272   ;;  %v1091_v13 = vld [vmem:[%s1842_s0 + $0x59] sm:$0x1]  }
  0xbd   :  { %275 = vst.msk [vmem:[#allocation0] sm:$0x1] %vm274_vm11, %v273_v22   ;;  %vm374_vm11 = vcmask 638552  }
  0xbe   :  { %v266_v21 = vpop.permute.xlu0 %265   ;;  %678 = vrot.lane.b32.xlu1 %v1063_v20, %s1330_s25  ;;  %s1346_s25 = smov 16   ;;  %v1095_v20 = vld [vmem:[%s1842_s0 + $0x58] sm:$0x1]  }
  0xbf   :  { %269 = vst.msk [vmem:[#allocation0 + $0x8] sm:$0x1] %vm267_vm10, %v266_v21   ;;  %vm367_vm10 = vcmask 646752  }
  0xc0   :  { %672 = vrot.lane.b32.xlu0 %v671_v19, %s1329_s24  ;;  %v286_v28 = vpop.permute.xlu1 %285   ;;  %s1345_s24 = smov 17   ;;  %v863_v19 = vsel %vm5_vm2, %v1094_v18, %v1093_v17 }
  0xc1   :  { %289 = vst.msk [vmem:[#allocation0 + $0x8] sm:$0x1] %vm287_vm13, %v286_v28   ;;  %vm387_vm13 = vcmask 622152  }
  0xc2   :  { %v279_v27 = vpop.permute.xlu0 %278   ;;  %696 = vrot.lane.b32.xlu1 %v695_v26, %s1332_s29  ;;  %v887_v26 = vsel %vm5_vm2, %v1098_v24, %v1097_v23  ;;  %s1355_s29 = smov 7  }
  0xc3   :  { %282 = vst.msk [vmem:[#allocation0 + $0x10] sm:$0x1] %vm280_vm12, %v279_v27   ;;  %vm380_vm12 = vcmask 630352  }
  0xc4   :  { %685 = vrot.lane.b32.xlu0 %v1064_v25, %s1331_s28  ;;  %v299_v32 = vpop.permute.xlu1 %298   ;;  %v1096_v25 = vld [vmem:[%s1842_s0 + $0x2d] sm:$0x1]  }
  0xc5   :  { %302 = vst.msk [vmem:[#allocation0 + $0x10] sm:$0x1] %vm300_vm15, %v299_v32   ;;  %vm400_vm15 = vcmask 605752  }
  0xc6   :  { %v293_v31 = vpop.permute.xlu0 %292   ;;  %709 = vrot.lane.b32.xlu1 %v1068_v30, %s1334_s10  ;;  %s1341_s10 = smov 21   ;;  %v1100_v30 = vld [vmem:[%s1842_s0 + $0x2c] sm:$0x1]  }
  0xc7   :  { %295 = vst.msk [vmem:[#allocation0] sm:$0x1] %vm294_vm14, %v293_v31   ;;  %vm394_vm14 = vcmask 613952  }
  0xc8   :  { %702 = vrot.lane.b32.xlu0 %v1067_v29, %s1333_s9  ;;  %v313_v38 = vpop.permute.xlu1 %312   ;;  %v1099_v29 = vld [vmem:[%s1842_s0 + $0x57] sm:$0x1]  }
  0xc9   :  { %315 = vst.msk [vmem:[#allocation0] sm:$0x1] %vm314_vm1, %v313_v38   ;;  %vm414_vm1 = vcmask 589352  }
  0xca   :  { %v306_v37 = vpop.permute.xlu0 %305   ;;  %726 = vrot.lane.b32.xlu1 %v1071_v36, %s1336_s18  ;;  %s1352_s18 = smov 10   ;;  %v1103_v36 = vld [vmem:[%s1842_s0 + $0x56] sm:$0x1]   ;;  %s1361_s0 = smov 1  }
  0xcb   :  { %309 = vst.msk [vmem:[#allocation0 + $0x8] sm:$0x1] %vm307_vm0, %v306_v37   ;;  %vm407_vm0 = vcmask 597552  }
  0xcc   :  { %720 = vrot.lane.b32.xlu0 %v719_v35, %s1335_s17  ;;  %v326_v44 = vpop.permute.xlu1 %325   ;;  %s1351_s17 = smov 11   ;;  %v911_v35 = vsel %vm5_vm2, %v1102_v34, %v1101_v33  ;;  %vm480_vm2 = vcmask 507352  }
  0xcd   :  { %329 = vst.msk [vmem:[#allocation0 + $0x8] sm:$0x1] %vm327_vm4, %v326_v44   ;;  %vm427_vm4 = vcmask 572952  }
  0xce   :  { %v319_v43 = vpop.permute.xlu0 %318   ;;  %744 = vrot.lane.b32.xlu1 %v743_v42, %s1338_s22 }
  0xcf   :  { %322 = vst.msk [vmem:[#allocation0 + $0x10] sm:$0x1] %vm320_vm3, %v319_v43   ;;  %vm420_vm3 = vcmask 581152  }
  0xd0   :  { %733 = vrot.lane.b32.xlu0 %v1072_v41, %s1337_s21  ;;  %v339_v48 = vpop.permute.xlu1 %338  }
  0xd1   :  { %342 = vst.msk [vmem:[#allocation0 + $0x10] sm:$0x1] %vm340_vm6, %v339_v48   ;;  %vm440_vm6 = vcmask 556552  }
  0xd2   :  { %v333_v47 = vpop.permute.xlu0 %332   ;;  %757 = vrot.lane.b32.xlu1 %v1076_v46, %s1340_s3  ;;  %s1347_s3 = smov 15  }
  0xd3   :  { %335 = vst.msk [vmem:[#allocation0] sm:$0x1] %vm334_vm5, %v333_v47   ;;  %vm434_vm5 = vcmask 564752  }
  0xd4   :  { %750 = vrot.lane.b32.xlu0 %v1075_v45, %s1339_s2  ;;  %v353_v54 = vpop.permute.xlu1 %352  }
  0xd5   :  { %355 = vst.msk [vmem:[#allocation0] sm:$0x1] %vm354_vm8, %v353_v54   ;;  %vm454_vm8 = vcmask 540152  }
  0xd6   :  { %v346_v53 = vpop.permute.xlu0 %345   ;;  %774 = vrot.lane.b32.xlu1 %v1079_v52, %s1342_s11  ;;  %s1358_s11 = smov 4  }
  0xd7   :  { %349 = vst.msk [vmem:[#allocation0 + $0x8] sm:$0x1] %vm347_vm7, %v346_v53   ;;  %vm447_vm7 = vcmask 548352  }
  0xd8   :  { %768 = vrot.lane.b32.xlu0 %v767_v51, %s1341_s10  ;;  %v366_v60 = vpop.permute.xlu1 %365   ;;  %s1357_s10 = smov 5  }
  0xd9   :  { %369 = vst.msk [vmem:[#allocation0 + $0x8] sm:$0x1] %vm367_vm10, %v366_v60   ;;  %vm467_vm10 = vcmask 523752  }
  0xda   :  { %v359_v59 = vpop.permute.xlu0 %358   ;;  %792 = vrot.lane.b32.xlu1 %v791_v58, %s1344_s15  ;;  %s1360_s15 = smov 2  }
  0xdb   :  { %362 = vst.msk [vmem:[#allocation0 + $0x10] sm:$0x1] %vm360_vm9, %v359_v59   ;;  %vm460_vm9 = vcmask 531952  }
  0xdc   :  { %781 = vrot.lane.b32.xlu0 %v1080_v57, %s1343_s14  ;;  %v379_v0 = vpop.permute.xlu1 %378   ;;  %s1359_s14 = smov 3  }
  0xdd   :  { %382 = vst.msk [vmem:[#allocation0 + $0x10] sm:$0x1] %vm380_vm12, %v379_v0   ;;  %vm487_vm12 = vcmask 499152  }
  0xde   :  { %v373_v63 = vpop.permute.xlu0 %372   ;;  %805 = vrot.lane.b32.xlu1 %v1084_v62, %s1346_s25  ;;  %s1353_s25 = smov 9  }
  0xdf   :  { %375 = vst.msk [vmem:[#allocation0] sm:$0x1] %vm374_vm11, %v373_v63   ;;  %vm474_vm11 = vcmask 515552  }
  0xe0   :  { %798 = vrot.lane.b32.xlu0 %v1083_v61, %s1345_s24  ;;  %v393_v6 = vpop.permute.xlu1 %392  }
  0xe1   :  { %395 = vst.msk [vmem:[#allocation0] sm:$0x1] %vm394_vm14, %v393_v6   ;;  %vm500_vm14 = vcmask 482752  }
  0xe2   :  { %v386_v5 = vpop.permute.xlu0 %385   ;;  %822 = vrot.lane.b32.xlu1 %v1087_v4, %s1348_s4 }
  0xe3   :  { %389 = vst.msk [vmem:[#allocation0 + $0x8] sm:$0x1] %vm387_vm13, %v386_v5   ;;  %vm494_vm13 = vcmask 490952  }
  0xe4   :  { %816 = vrot.lane.b32.xlu0 %v815_v3, %s1347_s3  ;;  %v406_v12 = vpop.permute.xlu1 %405  }
  0xe5   :  { %409 = vst.msk [vmem:[#allocation0 + $0x8] sm:$0x1] %vm407_vm0, %v406_v12   ;;  %vm514_vm0 = vcmask 466352  }
  0xe6   :  { %v399_v11 = vpop.permute.xlu0 %398   ;;  %840 = vrot.lane.b32.xlu1 %v839_v10, %s1350_s8 }
  0xe7   :  { %402 = vst.msk [vmem:[#allocation0 + $0x10] sm:$0x1] %vm400_vm15, %v399_v11   ;;  %vm507_vm15 = vcmask 474552  }
  0xe8   :  { %829 = vrot.lane.b32.xlu0 %v1088_v9, %s1349_s7  ;;  %v419_v16 = vpop.permute.xlu1 %418  }
  0xe9   :  { %422 = vst.msk [vmem:[#allocation0 + $0x10] sm:$0x1] %vm420_vm3, %v419_v16   ;;  %vm527_vm3 = vcmask 449952  }
  0xea   :  { %v413_v15 = vpop.permute.xlu0 %412   ;;  %853 = vrot.lane.b32.xlu1 %v1092_v14, %s1352_s18 }
  0xeb   :  { %415 = vst.msk [vmem:[#allocation0] sm:$0x1] %vm414_vm1, %v413_v15   ;;  %vm520_vm1 = vcmask 458152  }
  0xec   :  { %846 = vrot.lane.b32.xlu0 %v1091_v13, %s1351_s17  ;;  %v433_v22 = vpop.permute.xlu1 %432  }
  0xed   :  { %435 = vst.msk [vmem:[#allocation0] sm:$0x1] %vm434_vm5, %v433_v22   ;;  %vm540_vm5 = vcmask 433552  }
  0xee   :  { %v426_v21 = vpop.permute.xlu0 %425   ;;  %870 = vrot.lane.b32.xlu1 %v1095_v20, %s1354_s26 }
  0xef   :  { %429 = vst.msk [vmem:[#allocation0 + $0x8] sm:$0x1] %vm427_vm4, %v426_v21   ;;  %vm534_vm4 = vcmask 441752  }
  0xf0   :  { %864 = vrot.lane.b32.xlu0 %v863_v19, %s1353_s25  ;;  %v446_v28 = vpop.permute.xlu1 %445  }
  0xf1   :  { %449 = vst.msk [vmem:[#allocation0 + $0x8] sm:$0x1] %vm447_vm7, %v446_v28   ;;  %vm554_vm7 = vcmask 417152  }
  0xf2   :  { %v439_v27 = vpop.permute.xlu0 %438   ;;  %888 = vrot.lane.b32.xlu1 %v887_v26, %s1356_s30 }
  0xf3   :  { %442 = vst.msk [vmem:[#allocation0 + $0x10] sm:$0x1] %vm440_vm6, %v439_v27   ;;  %vm547_vm6 = vcmask 425352  }
  0xf4   :  { %877 = vrot.lane.b32.xlu0 %v1096_v25, %s1355_s29  ;;  %v459_v32 = vpop.permute.xlu1 %458  }
  0xf5   :  { %462 = vst.msk [vmem:[#allocation0 + $0x10] sm:$0x1] %vm460_vm9, %v459_v32   ;;  %vm567_vm9 = vcmask 400752  }
  0xf6   :  { %v453_v31 = vpop.permute.xlu0 %452   ;;  %901 = vrot.lane.b32.xlu1 %v1100_v30, %s1358_s11 }
  0xf7   :  { %455 = vst.msk [vmem:[#allocation0] sm:$0x1] %vm454_vm8, %v453_v31   ;;  %vm560_vm8 = vcmask 408952  }
  0xf8   :  { %894 = vrot.lane.b32.xlu0 %v1099_v29, %s1357_s10  ;;  %v473_v38 = vpop.permute.xlu1 %472  }
  0xf9   :  { %475 = vst.msk [vmem:[#allocation0] sm:$0x1] %vm474_vm11, %v473_v38   ;;  %vm584_vm11 = vcmask 384352  }
  0xfa   :  { %v466_v37 = vpop.permute.xlu0 %465   ;;  %918 = vrot.lane.b32.xlu1 %v1103_v36, %s1360_s15 }
  0xfb   :  { %469 = vst.msk [vmem:[#allocation0 + $0x8] sm:$0x1] %vm467_vm10, %v466_v37   ;;  %vm578_vm10 = vcmask 392552  }
  0xfc   :  { %912 = vrot.lane.b32.xlu0 %v911_v35, %s1359_s14  ;;  %v486_v41 = vpop.permute.xlu1 %485  }
  0xfd   :  { %489 = vst.msk [vmem:[#allocation0 + $0x8] sm:$0x1] %vm487_vm12, %v486_v41   ;;  %vm602_vm12 = vcmask 367952  }
  0xfe   :  { %v479_v40 = vpop.permute.xlu0 %478  }
  0xff   :  { %482 = vst.msk [vmem:[#allocation0 + $0x10] sm:$0x1] %vm480_vm2, %v479_v40   ;;  %vm591_vm2 = vcmask 376152  }
 0x100   :  { %925 = vrot.lane.b32.xlu0 %v1104_v39, %s1361_s0  ;;  %v499_v43 = vpop.permute.xlu1 %498  }
 0x101   :  { %502 = vst.msk [vmem:[#allocation0 + $0x10] sm:$0x1] %vm500_vm14, %v499_v43   ;;  %vm615_vm14 = vcmask 351552  }
 0x102   :  { %v493_v42 = vpop.permute.xlu0 %492  }
 0x103   :  { %495 = vst.msk [vmem:[#allocation0] sm:$0x1] %vm494_vm13, %v493_v42   ;;  %vm608_vm13 = vcmask 359752  }
 0x104   :  { %v513_v45 = vpop.permute.xlu1 %512  }
 0x105   :  { %515 = vst.msk [vmem:[#allocation0] sm:$0x1] %vm514_vm0, %v513_v45   ;;  %vm632_vm0 = vcmask 335152  }
 0x106   :  { %v506_v44 = vpop.permute.xlu0 %505  }
 0x107   :  { %509 = vst.msk [vmem:[#allocation0 + $0x8] sm:$0x1] %vm507_vm15, %v506_v44   ;;  %vm626_vm15 = vcmask 343352  }
 0x108   :  { %v526_v47 = vpop.permute.xlu1 %525  }
 0x109   :  { %529 = vst.msk [vmem:[#allocation0 + $0x8] sm:$0x1] %vm527_vm3, %v526_v47   ;;  %vm650_vm3 = vcmask 318752  }
 0x10a   :  { %v519_v46 = vpop.permute.xlu0 %518  }
 0x10b   :  { %522 = vst.msk [vmem:[#allocation0 + $0x10] sm:$0x1] %vm520_vm1, %v519_v46   ;;  %vm639_vm1 = vcmask 326952  }
 0x10c   :  { %v539_v49 = vpop.permute.xlu1 %538  }
 0x10d   :  { %542 = vst.msk [vmem:[#allocation0 + $0x10] sm:$0x1] %vm540_vm5, %v539_v49   ;;  %vm663_vm5 = vcmask 302352  }
 0x10e   :  { %v533_v48 = vpop.permute.xlu0 %532  }
 0x10f   :  { %535 = vst.msk [vmem:[#allocation0] sm:$0x1] %vm534_vm4, %v533_v48   ;;  %vm656_vm4 = vcmask 310552  }
 0x110   :  { %v553_v51 = vpop.permute.xlu1 %552  }
 0x111   :  { %555 = vst.msk [vmem:[#allocation0] sm:$0x1] %vm554_vm7, %v553_v51   ;;  %vm680_vm7 = vcmask 285952  }
 0x112   :  { %v546_v50 = vpop.permute.xlu0 %545  }
 0x113   :  { %549 = vst.msk [vmem:[#allocation0 + $0x8] sm:$0x1] %vm547_vm6, %v546_v50   ;;  %vm674_vm6 = vcmask 294152  }
 0x114   :  { %v566_v53 = vpop.permute.xlu1 %565  }
 0x115   :  { %569 = vst.msk [vmem:[#allocation0 + $0x8] sm:$0x1] %vm567_vm9, %v566_v53   ;;  %vm698_vm9 = vcmask 269552  }
 0x116   :  { %v559_v52 = vpop.permute.xlu0 %558  }
 0x117   :  { %562 = vst.msk [vmem:[#allocation0 + $0x10] sm:$0x1] %vm560_vm8, %v559_v52   ;;  %vm687_vm8 = vcmask 277752  }
 0x118   :  { %v583_v55 = vpop.permute.xlu1 %582  }
 0x119   :  { %586 = vst.msk [vmem:[#allocation0 + $0x10] sm:$0x1] %vm584_vm11, %v583_v55   ;;  %vm711_vm11 = vcmask 253152  }
 0x11a   :  { %v577_v54 = vpop.permute.xlu0 %576  }
 0x11b   :  { %579 = vst.msk [vmem:[#allocation0] ss:$24 sm:$0x3] %vm578_vm10, %v577_v54   ;;  %vm704_vm10 = vcmask 261352  }
 0x11c   :  { %v601_v57 = vpop.permute.xlu1 %600  }
 0x11d   :  { %603 = vst.msk [vmem:[#allocation0] ss:$24 sm:$0x3] %vm602_vm12, %v601_v57   ;;  %vm728_vm12 = vcmask 236752  }
 0x11e   :  { %v590_v56 = vpop.permute.xlu0 %589  }
 0x11f   :  { %593 = vst.msk [vmem:[#allocation0 + $0x8] sm:$0x1] %vm591_vm2, %v590_v56   ;;  %vm722_vm2 = vcmask 244952  }
 0x120   :  { %v614_v59 = vpop.permute.xlu1 %613  }
 0x121   :  { %617 = vst.msk [vmem:[#allocation0 + $0x8] sm:$0x1] %vm615_vm14, %v614_v59   ;;  %vm746_vm14 = vcmask 220352  }
 0x122   :  { %v607_v58 = vpop.permute.xlu0 %606  }
 0x123   :  { %610 = vst.msk [vmem:[#allocation0 + $0x10] sm:$0x1] %vm608_vm13, %v607_v58   ;;  %vm735_vm13 = vcmask 228552  }
 0x124   :  { %v631_v61 = vpop.permute.xlu1 %630  }
 0x125   :  { %634 = vst.msk [vmem:[#allocation0 + $0x10] sm:$0x1] %vm632_vm0, %v631_v61   ;;  %vm759_vm0 = vcmask 203952  }
 0x126   :  { %v625_v60 = vpop.permute.xlu0 %624  }
 0x127   :  { %627 = vst.msk [vmem:[#allocation0] ss:$24 sm:$0x3] %vm626_vm15, %v625_v60   ;;  %vm752_vm15 = vcmask 212152  }
 0x128   :  { %v649_v63 = vpop.permute.xlu1 %648  }
 0x129   :  { %651 = vst.msk [vmem:[#allocation0] ss:$24 sm:$0x3] %vm650_vm3, %v649_v63   ;;  %vm776_vm3 = vcmask 187552  }
 0x12a   :  { %v638_v62 = vpop.permute.xlu0 %637  }
 0x12b   :  { %641 = vst.msk [vmem:[#allocation0 + $0x8] sm:$0x1] %vm639_vm1, %v638_v62   ;;  %vm770_vm1 = vcmask 195752  }
 0x12c   :  { %v662_v1 = vpop.permute.xlu1 %661  }
 0x12d   :  { %665 = vst.msk [vmem:[#allocation0 + $0x8] sm:$0x1] %vm663_vm5, %v662_v1   ;;  %vm794_vm5 = vcmask 171152  }
 0x12e   :  { %v655_v0 = vpop.permute.xlu0 %654  }
 0x12f   :  { %658 = vst.msk [vmem:[#allocation0 + $0x10] sm:$0x1] %vm656_vm4, %v655_v0   ;;  %vm783_vm4 = vcmask 179352  }
 0x130   :  { %v679_v3 = vpop.permute.xlu1 %678  }
 0x131   :  { %682 = vst.msk [vmem:[#allocation0 + $0x10] sm:$0x1] %vm680_vm7, %v679_v3   ;;  %vm807_vm7 = vcmask 154752  }
 0x132   :  { %v673_v2 = vpop.permute.xlu0 %672  }
 0x133   :  { %675 = vst.msk [vmem:[#allocation0] ss:$24 sm:$0x3] %vm674_vm6, %v673_v2   ;;  %vm800_vm6 = vcmask 162952  }
 0x134   :  { %v697_v5 = vpop.permute.xlu1 %696  }
 0x135   :  { %699 = vst.msk [vmem:[#allocation0] ss:$24 sm:$0x3] %vm698_vm9, %v697_v5   ;;  %vm824_vm9 = vcmask 138352  }
 0x136   :  { %v686_v4 = vpop.permute.xlu0 %685  }
 0x137   :  { %689 = vst.msk [vmem:[#allocation0 + $0x8] sm:$0x1] %vm687_vm8, %v686_v4   ;;  %vm818_vm8 = vcmask 146552  }
 0x138   :  { %v710_v7 = vpop.permute.xlu1 %709  }
 0x139   :  { %713 = vst.msk [vmem:[#allocation0 + $0x8] sm:$0x1] %vm711_vm11, %v710_v7   ;;  %vm842_vm11 = vcmask 121952  }
 0x13a   :  { %v703_v6 = vpop.permute.xlu0 %702  }
 0x13b   :  { %706 = vst.msk [vmem:[#allocation0 + $0x10] sm:$0x1] %vm704_vm10, %v703_v6   ;;  %vm831_vm10 = vcmask 130152  }
 0x13c   :  { %v727_v9 = vpop.permute.xlu1 %726  }
 0x13d   :  { %730 = vst.msk [vmem:[#allocation0 + $0x10] sm:$0x1] %vm728_vm12, %v727_v9   ;;  %vm855_vm12 = vcmask 105552  }
 0x13e   :  { %v721_v8 = vpop.permute.xlu0 %720  }
 0x13f   :  { %723 = vst.msk [vmem:[#allocation0] ss:$24 sm:$0x3] %vm722_vm2, %v721_v8   ;;  %vm848_vm2 = vcmask 113752  }
 0x140   :  { %v745_v11 = vpop.permute.xlu1 %744  }
 0x141   :  { %747 = vst.msk [vmem:[#allocation0] ss:$24 sm:$0x3] %vm746_vm14, %v745_v11   ;;  %vm872_vm14 = vcmask 89152  }
 0x142   :  { %v734_v10 = vpop.permute.xlu0 %733  }
 0x143   :  { %737 = vst.msk [vmem:[#allocation0 + $0x8] sm:$0x1] %vm735_vm13, %v734_v10   ;;  %vm866_vm13 = vcmask 97352  }
 0x144   :  { %v758_v13 = vpop.permute.xlu1 %757  }
 0x145   :  { %761 = vst.msk [vmem:[#allocation0 + $0x8] sm:$0x1] %vm759_vm0, %v758_v13   ;;  %vm890_vm0 = vcmask 72752  }
 0x146   :  { %v751_v12 = vpop.permute.xlu0 %750  }
 0x147   :  { %754 = vst.msk [vmem:[#allocation0 + $0x10] sm:$0x1] %vm752_vm15, %v751_v12   ;;  %vm879_vm15 = vcmask 80952  }
 0x148   :  { %v775_v15 = vpop.permute.xlu1 %774  }
 0x149   :  { %778 = vst.msk [vmem:[#allocation0 + $0x10] sm:$0x1] %vm776_vm3, %v775_v15   ;;  %vm903_vm3 = vcmask 56352  }
 0x14a   :  { %v769_v14 = vpop.permute.xlu0 %768  }
 0x14b   :  { %771 = vst.msk [vmem:[#allocation0] ss:$24 sm:$0x3] %vm770_vm1, %v769_v14   ;;  %vm896_vm1 = vcmask 64552  }
 0x14c   :  { %v793_v17 = vpop.permute.xlu1 %792  }
 0x14d   :  { %795 = vst.msk [vmem:[#allocation0] ss:$24 sm:$0x3] %vm794_vm5, %v793_v17   ;;  %vm920_vm5 = vcmask 39952  }
 0x14e   :  { %v782_v16 = vpop.permute.xlu0 %781  }
 0x14f   :  { %785 = vst.msk [vmem:[#allocation0 + $0x8] sm:$0x1] %vm783_vm4, %v782_v16   ;;  %vm914_vm4 = vcmask 48152  }
 0x150   :  { %v806_v19 = vpop.permute.xlu1 %805  }
 0x151   :  { %809 = vst.msk [vmem:[#allocation0 + $0x8] sm:$0x1] %vm807_vm7, %v806_v19  }
 0x152   :  { %v799_v18 = vpop.permute.xlu0 %798  }
 0x153   :  { %802 = vst.msk [vmem:[#allocation0 + $0x10] sm:$0x1] %vm800_vm6, %v799_v18   ;;  %vm927_vm6 = vcmask 31752  }
 0x154   :  { %v823_v21 = vpop.permute.xlu1 %822  }
 0x155   :  { %826 = vst.msk [vmem:[#allocation0 + $0x10] sm:$0x1] %vm824_vm9, %v823_v21  }
 0x156   :  { %v817_v20 = vpop.permute.xlu0 %816  }
 0x157   :  { %819 = vst.msk [vmem:[#allocation0] ss:$24 sm:$0x3] %vm818_vm8, %v817_v20  }
 0x158   :  { %v841_v23 = vpop.permute.xlu1 %840  }
 0x159   :  { %843 = vst.msk [vmem:[#allocation0] ss:$24 sm:$0x3] %vm842_vm11, %v841_v23  }
 0x15a   :  { %v830_v22 = vpop.permute.xlu0 %829  }
 0x15b   :  { %833 = vst.msk [vmem:[#allocation0 + $0x8] sm:$0x1] %vm831_vm10, %v830_v22  }
 0x15c   :  { %v854_v25 = vpop.permute.xlu1 %853  }
 0x15d   :  { %857 = vst.msk [vmem:[#allocation0 + $0x8] sm:$0x1] %vm855_vm12, %v854_v25  }
 0x15e   :  { %v847_v24 = vpop.permute.xlu0 %846  }
 0x15f   :  { %850 = vst.msk [vmem:[#allocation0 + $0x10] sm:$0x1] %vm848_vm2, %v847_v24  }
 0x160   :  { %v871_v27 = vpop.permute.xlu1 %870  }
 0x161   :  { %874 = vst.msk [vmem:[#allocation0 + $0x10] sm:$0x1] %vm872_vm14, %v871_v27  }
 0x162   :  { %v865_v26 = vpop.permute.xlu0 %864  }
 0x163   :  { %867 = vst.msk [vmem:[#allocation0] ss:$24 sm:$0x3] %vm866_vm13, %v865_v26  }
 0x164   :  { %v889_v29 = vpop.permute.xlu1 %888  }
 0x165   :  { %891 = vst.msk [vmem:[#allocation0] ss:$24 sm:$0x3] %vm890_vm0, %v889_v29  }
 0x166   :  { %v878_v28 = vpop.permute.xlu0 %877  }
 0x167   :  { %881 = vst.msk [vmem:[#allocation0 + $0x8] sm:$0x1] %vm879_vm15, %v878_v28  }
 0x168   :  { %v902_v31 = vpop.permute.xlu1 %901  }
 0x169   :  { %905 = vst.msk [vmem:[#allocation0 + $0x8] sm:$0x1] %vm903_vm3, %v902_v31  }
 0x16a   :  { %v895_v30 = vpop.permute.xlu0 %894  }
 0x16b   :  { %898 = vst.msk [vmem:[#allocation0 + $0x10] sm:$0x1] %vm896_vm1, %v895_v30  }
 0x16c   :  { %v919_v33 = vpop.permute.xlu1 %918  }
 0x16d   :  { %922 = vst.msk [vmem:[#allocation0 + $0x10] sm:$0x1] %vm920_vm5, %v919_v33  }
 0x16e   :  { %v913_v32 = vpop.permute.xlu0 %912  }
 0x16f   :  { %915 = vst.msk [vmem:[#allocation0] ss:$24 sm:$0x3] %vm914_vm4, %v913_v32  }
 0x172   :  { %v926_v34 = vpop.permute.xlu0 %925  }
 0x173   :  { %929 = vst.msk [vmem:[#allocation0 + $0x8] sm:$0x1] %vm927_vm6, %v926_v34  }
 0x174   :  { %v945_v37 = vld [vmem:[#allocation0 + $0x10] sm:$0x1] }
 0x175   :  { %1106 = vst [vmem:[%s1843_s1 + $0x2] sm:$0x1] %v945_v37 }
 0x176   :  { %v934_v35 = vld [vmem:[#allocation0] sm:$0x1]  ;;  %v952_v36 = vld [vmem:[#allocation0 + $0x18] sm:$0x1] }
 0x177   :  { %937 = vst [vmem:[%s1843_s1] sm:$0x1] %v934_v35  ;;  %1107 = vst [vmem:[%s1843_s1 + $0x3] sm:$0x1] %v952_v36 }
 0x17a   :  { %v939_v38 = vld [vmem:[#allocation0 + $0x8] sm:$0x1] }
 0x17b   :  { %1105 = vst [vmem:[%s1843_s1 + $0x1] sm:$0x1] %v939_v38 }

// kernel: firstmodel_forward.3
= control target key start
LH: loop header
LB: loop body
LE: loop exit
PB: predicated region body
PF: predicated region fallthrough
CT: control target
= control target key end

     0   :  { %s6183_s15 = smov 0   ;;  %s7628_s0 = inlined_call_operand.vmem [shape: f32[2,34,16,9], index: 0, kind: input, shape index: {}]   ;;  %s7629_s1 = inlined_call_operand.vmem [shape: f32[2,34,16,9], index: 1, kind: input, shape index: {}]   ;;  %s7630_s2 = inlined_call_operand.vmem [shape: f32[3,9,64], index: 2, kind: input, shape index: {}]   ;;  %s7631_s3 = inlined_call_operand.vmem [shape: f32[1,64], index: 3, kind: input, shape index: {}]   ;;  %s7632_s4 = inlined_call_operand.vmem [shape: f32[2,16,16,64], index: 4, kind: output, shape index: {}]  }
   0x1 LB: > { %s4482_s16 = sadd.s32 4294967295, %s6156_s15   ;;  %p4486_p0 = scmp.ge.s32.totalorder %s6156_s15, 1  ;;  %s6156_s15 = sphi %s6183_s15, %s14_s15  }
   0x2   : > { %p172_p1 = scmp.lt.s32.totalorder %s6156_s15, 3 }
   0x4   : > { %p173_p2 = pnand %p4486_p0, %p172_p1 }
   0x6   : > { %176 = sbr.rel (%p173_p2) target bundleno = 606 (0x25e), region = 36 }
   0xb   : > { %v4620_v0 = vld [vmem:[%s7630_s2 + $0x18] sm:$0x1]  ;;  %vm674_vm0 = vcmask 1040384   ;;  %v347_v1 = vld [vmem:[%s7630_s2 + $0x8] sm:$0x1]  ;;  %v4619_v2 = vld [vmem:[%s7630_s2 + $0x10] sm:$0xff] }
   0xc   : > { %5541 = vmatprep.subr.msk.mxu0 %vm674_vm0, %v4620_v0  ;;  %5641 = vmatprep.subr.msk.mxu1 %vm674_vm0, %v347_v1  ;;  %v346_v3 = vld [vmem:[%s7630_s2] sm:$0xff]  ;;  %p203_p3 = scmp.lt.s32.totalorder %s4482_s16, 1  ;;  %vm481_vm1 = vcmask 72704   ;;  %v6239_v11 = vld [vmem:[%s7630_s2 + $0x28] sm:$0x1]  ;;  %vm4382_vm2 = vcmask 523264  }
   0xd   : > { %5542 = vmatpush3.msk.msra.mxu0 %vm674_vm0, %v4620_v0  ;;  %5642 = vmatpush3.msk.msra.mxu1 %vm674_vm0, %v347_v1 }
   0xe   : > { %5543 = vmatprep.subr.mxu0 %v4619_v2  ;;  %5643 = vmatprep.subr.mxu1 %v346_v3  ;;  %s7827_s16 = smov (!%p203_p3, %s4482_s16), 1 }
   0xf   : > { %5544 = vmatpush3.msra.mxu0 %v4619_v2  ;;  %5644 = vmatpush3.msra.mxu1 %v346_v3  ;;  %s6141_s25 = smul.u32 544, %s7827_s16  ;;  %s5144_s12 = sshll.u32 %s7827_s16, 8 }
  0x10   : > { %5741 = vmatprep.subr.msk.mxu0 %vm674_vm0, %v4620_v0  ;;  %5841 = vmatprep.subr.msk.mxu1 %vm674_vm0, %v347_v1  ;;  %s7411_s17 = scalar_lea.vmem %s7632_s4, %s5144_s12 }
  0x11   : > { %s6217_s28 = scalar_lea.vmem %s7628_s0, %s6141_s25  ;;  %s6422_s7 = scalar_lea.vmem %s7629_s1, %s6141_s25 }
  0x12   : > { %v4491_v4 = vld [vmem:[%s6217_s28 + $0x10] sm:$0xff]  ;;  %v218_v5 = vld [vmem:[%s6217_s28] sm:$0xff]  ;;  %v4492_v6 = vld [vmem:[%s6217_s28 + $0x18] sm:$0xff] }
  0x13   : > { %5545 = vmatprep.mubr.msk.f32.mxu0 %vm481_vm1, %v4491_v4  ;;  %5645 = vmatprep.mubr.msk.f32.mxu1 %vm481_vm1, %v218_v5  ;;  %v219_v7 = vld [vmem:[%s6217_s28 + $0x8] sm:$0xff]  ;;  %v4493_v8 = vld [vmem:[%s6217_s28 + $0x20] sm:$0xff]  ;;  %v4495_v10 = vld [vmem:[%s6217_s28 + $0x30] sm:$0xff] }
  0x14   : > { %5546 = vmatmul.mubr.msk.f32.vlgmr.msra.gmra.mxu0 %vm481_vm1, %v4492_v6  ;;  %5646 = vmatmul.mubr.msk.f32.vlgmr.msra.gmra.mxu1 %vm481_vm1, %v219_v7  ;;  %v4494_v9 = vld [vmem:[%s6217_s28 + $0x28] sm:$0xff]  ;;  %v4496_v12 = vld [vmem:[%s6217_s28 + $0x38] sm:$0xff]  ;;  %v4497_v13 = vld [vmem:[%s6217_s28 + $0x40] sm:$0xff] }
  0x15   : > { %5742 = vmatpush3.msk.msra.mxu0 %vm674_vm0, %v4620_v0  ;;  %5842 = vmatpush3.msk.msra.mxu1 %vm674_vm0, %v347_v1  ;;  %v4498_v14 = vld [vmem:[%s6217_s28 + $0x48] sm:$0xff]  ;;  %v4499_v15 = vld [vmem:[%s6217_s28 + $0x50] sm:$0xff]  ;;  %v4500_v16 = vld [vmem:[%s6217_s28 + $0x58] sm:$0xff] }
  0x16   : > { %5548 = vmatprep.mubr.msk.f32.mxu0 %vm481_vm1, %v4493_v8  ;;  %5648 = vmatprep.mubr.msk.f32.mxu1 %vm481_vm1, %v4491_v4  ;;  %v4501_v17 = vld [vmem:[%s6217_s28 + $0x60] sm:$0xff]  ;;  %v4502_v18 = vld [vmem:[%s6217_s28 + $0x68] sm:$0xff]  ;;  %v4503_v19 = vld [vmem:[%s6217_s28 + $0x70] sm:$0xff] }
  0x17   : > { %5743 = vmatprep.subr.mxu0 %v4619_v2  ;;  %5843 = vmatprep.subr.mxu1 %v346_v3  ;;  %v4504_v20 = vld [vmem:[%s6217_s28 + $0x78] sm:$0xff]  ;;  %v4505_v21 = vld [vmem:[%s6217_s28 + $0x80] sm:$0xff]  ;;  %v4506_v22 = vld [vmem:[%s6217_s28 + $0x88] sm:$0xff] }
  0x18   : > { %5549 = vmatmul.mubr.msk.f32.gmra.mxu0 %vm481_vm1, %v4494_v9  ;;  %5649 = vmatmul.mubr.msk.f32.gmra.mxu1 %vm481_vm1, %v4492_v6  ;;  %v4507_v23 = vld [vmem:[%s6217_s28 + $0x90] sm:$0xff]  ;;  %v4508_v24 = vld [vmem:[%s6217_s28 + $0x98] sm:$0xff]  ;;  %v4509_v25 = vld [vmem:[%s6217_s28 + $0xa0] sm:$0xff] }
  0x19   : > { %5551 = vmatprep.mubr.msk.f32.mxu0 %vm481_vm1, %v4495_v10  ;;  %5651 = vmatprep.mubr.msk.f32.mxu1 %vm481_vm1, %v4493_v8  ;;  %v4510_v26 = vld [vmem:[%s6217_s28 + $0xa8] sm:$0xff]  ;;  %v4511_v27 = vld [vmem:[%s6217_s28 + $0xb0] sm:$0xff]  ;;  %v4512_v28 = vld [vmem:[%s6217_s28 + $0xb8] sm:$0xff] }
  0x1a   : > { %5744 = vmatpush3.msra.mxu0 %v4619_v2  ;;  %5844 = vmatpush3.msra.mxu1 %v346_v3  ;;  %v4513_v29 = vld [vmem:[%s6217_s28 + $0xc0] sm:$0xff]  ;;  %v4514_v30 = vld [vmem:[%s6217_s28 + $0xc8] sm:$0xff]  ;;  %v4515_v31 = vld [vmem:[%s6217_s28 + $0xd0] sm:$0xff] }
  0x1b   : > { %5941 = vmatprep.subr.msk.mxu0 %vm674_vm0, %v6239_v11  ;;  %6041 = vmatprep.subr.msk.mxu1 %vm674_vm0, %v6239_v11  ;;  %v4516_v32 = vld [vmem:[%s6217_s28 + $0xd8] sm:$0xff]  ;;  %v4517_v33 = vld [vmem:[%s6217_s28 + $0xe0] sm:$0xff]  ;;  %v4518_v34 = vld [vmem:[%s6217_s28 + $0xe8] sm:$0xff] }
  0x1c   : > { %5552 = vmatmul.mubr.msk.f32.gmra.mxu0 %vm481_vm1, %v4496_v12  ;;  %5652 = vmatmul.mubr.msk.f32.gmra.mxu1 %vm481_vm1, %v4494_v9  ;;  %v4519_v35 = vld [vmem:[%s6217_s28 + $0xf0] sm:$0xff]  ;;  %v4520_v36 = vld [vmem:[%s6217_s28 + $0xf8] sm:$0xff]  ;;  %v4521_v37 = vld [vmem:[%s6217_s28 + $0x100] sm:$0xff] }
  0x1d   : > { %5554 = vmatprep.mubr.msk.f32.mxu0 %vm481_vm1, %v4497_v13  ;;  %5654 = vmatprep.mubr.msk.f32.mxu1 %vm481_vm1, %v4495_v10  ;;  %v4522_v38 = vld [vmem:[%s6217_s28 + $0x108] sm:$0xff]  ;;  %v4523_v39 = vld [vmem:[%s6217_s28 + $0x110] sm:$0xff]  ;;  %v4524_v40 = vld [vmem:[%s6217_s28 + $0x118] sm:$0xff] }
  0x1e   : > { %v4525_v41 = vld [vmem:[%s6217_s28 + $0x120] sm:$0xff]  ;;  %v4526_v42 = vld [vmem:[%s6217_s28 + $0x128] sm:$0xff]  ;;  %v4527_v43 = vld [vmem:[%s6217_s28 + $0x130] sm:$0xff] }
  0x1f   : > { %v4528_v44 = vld [vmem:[%s6217_s28 + $0x138] sm:$0xff]  ;;  %v4529_v45 = vld [vmem:[%s6217_s28 + $0x140] sm:$0xff]  ;;  %v4530_v46 = vld [vmem:[%s6217_s28 + $0x148] sm:$0xff] }
  0x20   : > { %5555 = vmatmul.mubr.msk.f32.gmra.mxu0 %vm481_vm1, %v4498_v14  ;;  %5655 = vmatmul.mubr.msk.f32.gmra.mxu1 %vm481_vm1, %v4496_v12  ;;  %v4531_v47 = vld [vmem:[%s6217_s28 + $0x150] sm:$0xff]  ;;  %v4532_v48 = vld [vmem:[%s6217_s28 + $0x158] sm:$0xff]  ;;  %v4533_v49 = vld [vmem:[%s6217_s28 + $0x160] sm:$0xff] }
  0x21   : > { %5557 = vmatprep.mubr.msk.f32.mxu0 %vm481_vm1, %v4499_v15  ;;  %5657 = vmatprep.mubr.msk.f32.mxu1 %vm481_vm1, %v4497_v13  ;;  %v4534_v50 = vld [vmem:[%s6217_s28 + $0x168] sm:$0xff]  ;;  %v4535_v51 = vld [vmem:[%s6217_s28 + $0x170] sm:$0xff]  ;;  %v4536_v52 = vld [vmem:[%s6217_s28 + $0x178] sm:$0xff] }
  0x22   : > { %v4537_v53 = vld [vmem:[%s6217_s28 + $0x180] sm:$0xff]  ;;  %v4538_v54 = vld [vmem:[%s6217_s28 + $0x188] sm:$0xff]  ;;  %v4539_v55 = vld [vmem:[%s6217_s28 + $0x190] sm:$0xff] }
  0x23   : > { %v4540_v56 = vld [vmem:[%s6217_s28 + $0x198] sm:$0xff]  ;;  %v4541_v57 = vld [vmem:[%s6217_s28 + $0x1a0] sm:$0xff]  ;;  %v4542_v58 = vld [vmem:[%s6217_s28 + $0x1a8] sm:$0xff] }
  0x24   : > { %5558 = vmatmul.mubr.msk.f32.gmra.mxu0 %vm481_vm1, %v4500_v16  ;;  %5658 = vmatmul.mubr.msk.f32.gmra.mxu1 %vm481_vm1, %v4498_v14  ;;  %v4543_v59 = vld [vmem:[%s6217_s28 + $0x1b0] sm:$0xff]  ;;  %v4544_v60 = vld [vmem:[%s6217_s28 + $0x1b8] sm:$0xff]  ;;  %v4545_v61 = vld [vmem:[%s6217_s28 + $0x1c0] sm:$0xff] }
  0x25   : > { %5560 = vmatprep.mubr.msk.f32.mxu0 %vm481_vm1, %v4501_v17  ;;  %5660 = vmatprep.mubr.msk.f32.mxu1 %vm481_vm1, %v4499_v15  ;;  %v4546_v62 = vld [vmem:[%s6217_s28 + $0x1c8] sm:$0xff]  ;;  %v4547_v63 = vld [vmem:[%s6217_s28 + $0x1d0] sm:$0xff]  ;;  %v4548_v0 = vld [vmem:[%s6217_s28 + $0x1d8] sm:$0xff] }
  0x26   : > { %v4549_v1 = vld [vmem:[%s6217_s28 + $0x1e0] sm:$0xff]  ;;  %v4550_v2 = vld [vmem:[%s6217_s28 + $0x1e8] sm:$0xff]  ;;  %v4551_v3 = vld [vmem:[%s6217_s28 + $0x1f0] sm:$0xff] }
  0x27   : > { %v4552_v4 = vld [vmem:[%s6217_s28 + $0x1f8] sm:$0xff]  ;;  %v4553_v5 = vld [vmem:[%s6217_s28 + $0x200] sm:$0xff]  ;;  %v4554_v6 = vld [vmem:[%s6217_s28 + $0x208] sm:$0xff] }
  0x28   : > { %5561 = vmatmul.mubr.msk.f32.gmra.mxu0 %vm481_vm1, %v4502_v18  ;;  %5661 = vmatmul.mubr.msk.f32.gmra.mxu1 %vm481_vm1, %v4500_v16  ;;  %v4555_v7 = vld [vmem:[%s6422_s7 + $0x10] sm:$0xff]  ;;  %v282_v8 = vld [vmem:[%s6422_s7] sm:$0xff]  ;;  %v4556_v9 = vld [vmem:[%s6422_s7 + $0x18] sm:$0xff] }
  0x29   : > { %5563 = vmatprep.mubr.msk.f32.mxu0 %vm481_vm1, %v4503_v19  ;;  %5663 = vmatprep.mubr.msk.f32.mxu1 %vm481_vm1, %v4501_v17  ;;  %v283_v10 = vld [vmem:[%s6422_s7 + $0x8] sm:$0xff]  ;;  %v6438_v12 = vld [vmem:[%s6422_s7 + $0x20] sm:$0xff]  ;;  %v6456_v15 = vld [vmem:[%s6422_s7 + $0x30] sm:$0xff] }
  0x2a   : > { %v5009_v13 = vld [vmem:[%s7630_s2 + $0x20] sm:$0xff]  ;;  %v6450_v14 = vld [vmem:[%s6422_s7 + $0x28] sm:$0xff] }
  0x2b   : > { %v6469_v16 = vld [vmem:[%s6422_s7 + $0x40] sm:$0xff]  ;;  %v6480_v17 = vld [vmem:[%s6422_s7 + $0x48] sm:$0xff] }
  0x2c   : > { %5564 = vmatmul.mubr.msk.f32.gmra.mxu0 %vm481_vm1, %v4504_v20  ;;  %5664 = vmatmul.mubr.msk.f32.gmra.mxu1 %vm481_vm1, %v4502_v18  ;;  %v6483_v18 = vld [vmem:[%s6422_s7 + $0x50] sm:$0xff] }
  0x2d   : > { %5566 = vmatprep.mubr.msk.f32.mxu0 %vm481_vm1, %v4505_v21  ;;  %5666 = vmatprep.mubr.msk.f32.mxu1 %vm481_vm1, %v4503_v19  ;;  %v6494_v19 = vld [vmem:[%s6422_s7 + $0x58] sm:$0xff] }
  0x30   : > { %5567 = vmatmul.mubr.msk.f32.gmra.mxu0 %vm481_vm1, %v4506_v22  ;;  %5667 = vmatmul.mubr.msk.f32.gmra.mxu1 %vm481_vm1, %v4504_v20  ;;  %v6497_v20 = vld [vmem:[%s6422_s7 + $0x60] sm:$0xff] }
  0x31   : > { %5569 = vmatprep.mubr.msk.f32.mxu0 %vm481_vm1, %v4507_v23  ;;  %5669 = vmatprep.mubr.msk.f32.mxu1 %vm481_vm1, %v4505_v21  ;;  %v6508_v21 = vld [vmem:[%s6422_s7 + $0x68] sm:$0xff] }
  0x34   : > { %5570 = vmatmul.mubr.msk.f32.gmra.mxu0 %vm481_vm1, %v4508_v24  ;;  %5670 = vmatmul.mubr.msk.f32.gmra.mxu1 %vm481_vm1, %v4506_v22  ;;  %v6511_v22 = vld [vmem:[%s6422_s7 + $0x70] sm:$0xff] }
  0x35   : > { %5572 = vmatprep.mubr.msk.f32.mxu0 %vm481_vm1, %v4509_v25  ;;  %5672 = vmatprep.mubr.msk.f32.mxu1 %vm481_vm1, %v4507_v23  ;;  %v6522_v23 = vld [vmem:[%s6422_s7 + $0x78] sm:$0xff] }
  0x38   : > { %5573 = vmatmul.mubr.msk.f32.gmra.mxu0 %vm481_vm1, %v4510_v26  ;;  %5673 = vmatmul.mubr.msk.f32.gmra.mxu1 %vm481_vm1, %v4508_v24  ;;  %v6525_v24 = vld [vmem:[%s6422_s7 + $0x80] sm:$0xff] }
  0x39   : > { %5575 = vmatprep.mubr.msk.f32.mxu0 %vm481_vm1, %v4511_v27  ;;  %5675 = vmatprep.mubr.msk.f32.mxu1 %vm481_vm1, %v4509_v25  ;;  %v6536_v25 = vld [vmem:[%s6422_s7 + $0x88] sm:$0xff] }
  0x3c   : > { %5576 = vmatmul.mubr.msk.f32.gmra.mxu0 %vm481_vm1, %v4512_v28  ;;  %5676 = vmatmul.mubr.msk.f32.gmra.mxu1 %vm481_vm1, %v4510_v26  ;;  %v6539_v26 = vld [vmem:[%s6422_s7 + $0x90] sm:$0xff] }
  0x3d   : > { %5578 = vmatprep.mubr.msk.f32.mxu0 %vm481_vm1, %v4513_v29  ;;  %5678 = vmatprep.mubr.msk.f32.mxu1 %vm481_vm1, %v4511_v27  ;;  %v6550_v27 = vld [vmem:[%s6422_s7 + $0x98] sm:$0xff] }
  0x40   : > { %5579 = vmatmul.mubr.msk.f32.gmra.mxu0 %vm481_vm1, %v4514_v30  ;;  %5679 = vmatmul.mubr.msk.f32.gmra.mxu1 %vm481_vm1, %v4512_v28  ;;  %v6553_v28 = vld [vmem:[%s6422_s7 + $0xa0] sm:$0xff] }
  0x41   : > { %5581 = vmatprep.mubr.msk.f32.mxu0 %vm481_vm1, %v4515_v31  ;;  %5681 = vmatprep.mubr.msk.f32.mxu1 %vm481_vm1, %v4513_v29  ;;  %v6564_v29 = vld [vmem:[%s6422_s7 + $0xa8] sm:$0xff] }
  0x44   : > { %5582 = vmatmul.mubr.msk.f32.gmra.mxu0 %vm481_vm1, %v4516_v32  ;;  %5682 = vmatmul.mubr.msk.f32.gmra.mxu1 %vm481_vm1, %v4514_v30  ;;  %v6567_v30 = vld [vmem:[%s6422_s7 + $0xb0] sm:$0xff] }
  0x45   : > { %5584 = vmatprep.mubr.msk.f32.mxu0 %vm481_vm1, %v4517_v33  ;;  %5684 = vmatprep.mubr.msk.f32.mxu1 %vm481_vm1, %v4515_v31  ;;  %v6578_v31 = vld [vmem:[%s6422_s7 + $0xb8] sm:$0xff] }
  0x48   : > { %5585 = vmatmul.mubr.msk.f32.gmra.mxu0 %vm481_vm1, %v4518_v34  ;;  %5685 = vmatmul.mubr.msk.f32.gmra.mxu1 %vm481_vm1, %v4516_v32  ;;  %v6581_v32 = vld [vmem:[%s6422_s7 + $0xc0] sm:$0xff] }
  0x49   : > { %5587 = vmatprep.mubr.msk.f32.mxu0 %vm481_vm1, %v4519_v35  ;;  %5687 = vmatprep.mubr.msk.f32.mxu1 %vm481_vm1, %v4517_v33  ;;  %v6592_v33 = vld [vmem:[%s6422_s7 + $0xc8] sm:$0xff] }
  0x4c   : > { %5588 = vmatmul.mubr.msk.f32.gmra.mxu0 %vm481_vm1, %v4520_v36  ;;  %5688 = vmatmul.mubr.msk.f32.gmra.mxu1 %vm481_vm1, %v4518_v34  ;;  %v6595_v34 = vld [vmem:[%s6422_s7 + $0xd0] sm:$0xff] }
  0x4d   : > { %5590 = vmatprep.mubr.msk.f32.mxu0 %vm481_vm1, %v4521_v37  ;;  %5690 = vmatprep.mubr.msk.f32.mxu1 %vm481_vm1, %v4519_v35  ;;  %v6606_v35 = vld [vmem:[%s6422_s7 + $0xd8] sm:$0xff] }
  0x50   : > { %5591 = vmatmul.mubr.msk.f32.gmra.mxu0 %vm481_vm1, %v4522_v38  ;;  %5691 = vmatmul.mubr.msk.f32.gmra.mxu1 %vm481_vm1, %v4520_v36  ;;  %v6609_v36 = vld [vmem:[%s6422_s7 + $0xe0] sm:$0xff] }
  0x51   : > { %5593 = vmatprep.mubr.msk.f32.mxu0 %vm481_vm1, %v4523_v39  ;;  %5693 = vmatprep.mubr.msk.f32.mxu1 %vm481_vm1, %v4521_v37  ;;  %v6620_v37 = vld [vmem:[%s6422_s7 + $0xe8] sm:$0xff] }
  0x54   : > { %5594 = vmatmul.mubr.msk.f32.gmra.mxu0 %vm481_vm1, %v4524_v40  ;;  %5694 = vmatmul.mubr.msk.f32.gmra.mxu1 %vm481_vm1, %v4522_v38  ;;  %v6623_v38 = vld [vmem:[%s6422_s7 + $0xf0] sm:$0xff] }
  0x55   : > { %5596 = vmatprep.mubr.msk.f32.mxu0 %vm481_vm1, %v4525_v41  ;;  %5696 = vmatprep.mubr.msk.f32.mxu1 %vm481_vm1, %v4523_v39  ;;  %v6634_v39 = vld [vmem:[%s6422_s7 + $0xf8] sm:$0xff] }
  0x58   : > { %5597 = vmatmul.mubr.msk.f32.gmra.mxu0 %vm481_vm1, %v4526_v42  ;;  %5697 = vmatmul.mubr.msk.f32.gmra.mxu1 %vm481_vm1, %v4524_v40  ;;  %v6637_v40 = vld [vmem:[%s6422_s7 + $0x100] sm:$0xff] }
  0x59   : > { %5599 = vmatprep.mubr.msk.f32.mxu0 %vm481_vm1, %v4527_v43  ;;  %5699 = vmatprep.mubr.msk.f32.mxu1 %vm481_vm1, %v4525_v41  ;;  %v6648_v41 = vld [vmem:[%s6422_s7 + $0x108] sm:$0xff] }
  0x5c   : > { %5600 = vmatmul.mubr.msk.f32.gmra.mxu0 %vm481_vm1, %v4528_v44  ;;  %5700 = vmatmul.mubr.msk.f32.gmra.mxu1 %vm481_vm1, %v4526_v42  ;;  %v6651_v42 = vld [vmem:[%s6422_s7 + $0x110] sm:$0xff] }
  0x5d   : > { %5602 = vmatprep.mubr.msk.f32.mxu0 %vm481_vm1, %v4529_v45  ;;  %5702 = vmatprep.mubr.msk.f32.mxu1 %vm481_vm1, %v4527_v43  ;;  %v6662_v43 = vld [vmem:[%s6422_s7 + $0x118] sm:$0xff] }
  0x60   : > { %5603 = vmatmul.mubr.msk.f32.gmra.mxu0 %vm481_vm1, %v4530_v46  ;;  %5703 = vmatmul.mubr.msk.f32.gmra.mxu1 %vm481_vm1, %v4528_v44  ;;  %v6665_v44 = vld [vmem:[%s6422_s7 + $0x120] sm:$0xff] }
  0x61   : > { %5605 = vmatprep.mubr.msk.f32.mxu0 %vm481_vm1, %v4531_v47  ;;  %5705 = vmatprep.mubr.msk.f32.mxu1 %vm481_vm1, %v4529_v45 }
  0x64   : > { %5606 = vmatmul.mubr.msk.f32.gmra.mxu0 %vm481_vm1, %v4532_v48  ;;  %5706 = vmatmul.mubr.msk.f32.gmra.mxu1 %vm481_vm1, %v4530_v46 }
  0x65   : > { %5608 = vmatprep.mubr.msk.f32.mxu0 %vm481_vm1, %v4533_v49  ;;  %5708 = vmatprep.mubr.msk.f32.mxu1 %vm481_vm1, %v4531_v47 }
  0x68   : > { %5609 = vmatmul.mubr.msk.f32.gmra.mxu0 %vm481_vm1, %v4534_v50  ;;  %5709 = vmatmul.mubr.msk.f32.gmra.mxu1 %vm481_vm1, %v4532_v48  ;;  %v6678_v48 = vld [vmem:[%s6422_s7 + $0x128] sm:$0xff] }
  0x69   : > { %5611 = vmatprep.mubr.msk.f32.mxu0 %vm481_vm1, %v4535_v51  ;;  %5711 = vmatprep.mubr.msk.f32.mxu1 %vm481_vm1, %v4533_v49 }
  0x6c   : > { %5612 = vmatmul.mubr.msk.f32.gmra.mxu0 %vm481_vm1, %v4536_v52  ;;  %5712 = vmatmul.mubr.msk.f32.gmra.mxu1 %vm481_vm1, %v4534_v50 }
  0x6d   : > { %5614 = vmatprep.mubr.msk.f32.mxu0 %vm481_vm1, %v4537_v53  ;;  %5714 = vmatprep.mubr.msk.f32.mxu1 %vm481_vm1, %v4535_v51  ;;  %v6681_v51 = vld [vmem:[%s6422_s7 + $0x130] sm:$0xff] }
  0x70   : > { %5615 = vmatmul.mubr.msk.f32.gmra.mxu0 %vm481_vm1, %v4538_v54  ;;  %5715 = vmatmul.mubr.msk.f32.gmra.mxu1 %vm481_vm1, %v4536_v52 }
  0x71   : > { %5617 = vmatprep.mubr.msk.f32.mxu0 %vm481_vm1, %v4539_v55  ;;  %5717 = vmatprep.mubr.msk.f32.mxu1 %vm481_vm1, %v4537_v53 }
  0x74   : > { %5618 = vmatmul.mubr.msk.f32.gmra.mxu0 %vm481_vm1, %v4540_v56  ;;  %5718 = vmatmul.mubr.msk.f32.gmra.mxu1 %vm481_vm1, %v4538_v54 }
  0x75   : > { %5620 = vmatprep.mubr.msk.f32.mxu0 %vm481_vm1, %v4541_v57  ;;  %5720 = vmatprep.mubr.msk.f32.mxu1 %vm481_vm1, %v4539_v55 }
  0x78   : > { %5621 = vmatmul.mubr.msk.f32.gmra.mxu0 %vm481_vm1, %v4542_v58  ;;  %5721 = vmatmul.mubr.msk.f32.gmra.mxu1 %vm481_vm1, %v4540_v56  ;;  %v6696_v56 = vld [vmem:[%s6422_s7 + $0x138] sm:$0xff] }
  0x79   : > { %5623 = vmatprep.mubr.msk.f32.mxu0 %vm481_vm1, %v4543_v59  ;;  %5723 = vmatprep.mubr.msk.f32.mxu1 %vm481_vm1, %v4541_v57 }
  0x7c   : > { %5624 = vmatmul.mubr.msk.f32.gmra.mxu0 %vm481_vm1, %v4544_v60  ;;  %5724 = vmatmul.mubr.msk.f32.gmra.mxu1 %vm481_vm1, %v4542_v58 }
  0x7d   : > { %5626 = vmatprep.mubr.msk.f32.mxu0 %vm481_vm1, %v4545_v61  ;;  %5726 = vmatprep.mubr.msk.f32.mxu1 %vm481_vm1, %v4543_v59  ;;  %v6699_v59 = vld [vmem:[%s6422_s7 + $0x140] sm:$0xff] }
  0x80   : > { %5627 = vmatmul.mubr.msk.f32.gmra.mxu0 %vm481_vm1, %v4546_v62  ;;  %5727 = vmatmul.mubr.msk.f32.gmra.mxu1 %vm481_vm1, %v4544_v60 }
  0x81   : > { %5629 = vmatprep.mubr.msk.f32.mxu0 %vm481_vm1, %v4547_v63  ;;  %5729 = vmatprep.mubr.msk.f32.mxu1 %vm481_vm1, %v4545_v61 }
  0x84   : > { %5630 = vmatmul.mubr.msk.f32.gmra.mxu0 %vm481_vm1, %v4548_v0  ;;  %5730 = vmatmul.mubr.msk.f32.gmra.mxu1 %vm481_vm1, %v4546_v62 }
  0x85   : > { %5632 = vmatprep.mubr.msk.f32.mxu0 %vm481_vm1, %v4549_v1  ;;  %5732 = vmatprep.mubr.msk.f32.mxu1 %vm481_vm1, %v4547_v63 }
  0x88   : > { %5633 = vmatmul.mubr.msk.f32.gmra.mxu0 %vm481_vm1, %v4550_v2  ;;  %5733 = vmatmul.mubr.msk.f32.gmra.mxu1 %vm481_vm1, %v4548_v0  ;;  %v6714_v0 = vld [vmem:[%s6422_s7 + $0x148] sm:$0xff] }
  0x89   : > { %5635 = vmatprep.mubr.msk.f32.mxu0 %vm481_vm1, %v4551_v3  ;;  %5735 = vmatprep.mubr.msk.f32.mxu1 %vm481_vm1, %v4549_v1 }
  0x8c   : > { %5636 = vmatmul.mubr.msk.f32.gmra.mxu0 %vm481_vm1, %v4552_v4  ;;  %5736 = vmatmul.mubr.msk.f32.gmra.mxu1 %vm481_vm1, %v4550_v2 }
  0x8d   : > { %5638 = vmatprep.mubr.msk.f32.mxu0 %vm481_vm1, %v4553_v5  ;;  %5738 = vmatprep.mubr.msk.f32.mxu1 %vm481_vm1, %v4551_v3  ;;  %v6717_v3 = vld [vmem:[%s6422_s7 + $0x150] sm:$0xff] }
  0x90   : > { %5639 = vmatmul.mubr.msk.f32.gmra.mxu0 %vm481_vm1, %v4554_v6  ;;  %5739 = vmatmul.mubr.msk.f32.gmra.mxu1 %vm481_vm1, %v4552_v4 }
  0x91   : > { %5745 = vmatprep.mubr.msk.f32.mxu0 %vm481_vm1, %v4555_v7  ;;  %5845 = vmatprep.mubr.msk.f32.mxu1 %vm481_vm1, %v282_v8  ;;  %v6732_v8 = vld [vmem:[%s6422_s7 + $0x158] sm:$0xff] }
  0x94   : > { %5746 = vmatmul.mubr.msk.f32.vlgmr.msra.gmra.mxu0 %vm481_vm1, %v4556_v9  ;;  %5846 = vmatmul.mubr.msk.f32.vlgmr.msra.gmra.mxu1 %vm481_vm1, %v283_v10 }
  0x95   : > { %5942 = vmatpush3.msk.msra.mxu0 %vm674_vm0, %v6239_v11  ;;  %6042 = vmatpush3.msk.msra.mxu1 %vm674_vm0, %v6239_v11  ;;  %v6466_v11 = vld [vmem:[%s6422_s7 + $0x38] sm:$0xff] }
  0x96   : > { %5748 = vmatprep.mubr.msk.f32.mxu0 %vm481_vm1, %v6438_v12  ;;  %5848 = vmatprep.mubr.msk.f32.mxu1 %vm481_vm1, %v4555_v7 }
  0x97   : > { %5943 = vmatprep.subr.mxu0 %v5009_v13  ;;  %6043 = vmatprep.subr.mxu1 %v5009_v13 }
  0x98   : > { %5749 = vmatmul.mubr.msk.f32.gmra.mxu0 %vm481_vm1, %v6450_v14  ;;  %5849 = vmatmul.mubr.msk.f32.gmra.mxu1 %vm481_vm1, %v4556_v9 }
  0x99   : > { %5751 = vmatprep.mubr.msk.f32.mxu0 %vm481_vm1, %v6456_v15  ;;  %5851 = vmatprep.mubr.msk.f32.mxu1 %vm481_vm1, %v6438_v12 }
  0x9a   : > { %5944 = vmatpush3.msra.mxu0 %v5009_v13  ;;  %6044 = vmatpush3.msra.mxu1 %v5009_v13  ;;  %v6735_v13 = vld [vmem:[%s6422_s7 + $0x160] sm:$0xff] }
  0x9c   : > { %5752 = vmatmul.mubr.msk.f32.gmra.mxu0 %vm481_vm1, %v6466_v11  ;;  %5852 = vmatmul.mubr.msk.f32.gmra.mxu1 %vm481_vm1, %v6450_v14 }
  0x9d   : > { %5754 = vmatprep.mubr.msk.f32.mxu0 %vm481_vm1, %v6469_v16  ;;  %5854 = vmatprep.mubr.msk.f32.mxu1 %vm481_vm1, %v6456_v15 }
  0xa0   : > { %5755 = vmatmul.mubr.msk.f32.gmra.mxu0 %vm481_vm1, %v6480_v17  ;;  %5855 = vmatmul.mubr.msk.f32.gmra.mxu1 %vm481_vm1, %v6466_v11 }
  0xa1   : > { %5757 = vmatprep.mubr.msk.f32.mxu0 %vm481_vm1, %v6483_v18  ;;  %5857 = vmatprep.mubr.msk.f32.mxu1 %vm481_vm1, %v6469_v16 }
  0xa4   : > { %5758 = vmatmul.mubr.msk.f32.gmra.mxu0 %vm481_vm1, %v6494_v19  ;;  %5858 = vmatmul.mubr.msk.f32.gmra.mxu1 %vm481_vm1, %v6480_v17 }
  0xa5   : > { %5760 = vmatprep.mubr.msk.f32.mxu0 %vm481_vm1, %v6497_v20  ;;  %5860 = vmatprep.mubr.msk.f32.mxu1 %vm481_vm1, %v6483_v18 }
  0xa8   : > { %5761 = vmatmul.mubr.msk.f32.gmra.mxu0 %vm481_vm1, %v6508_v21  ;;  %5861 = vmatmul.mubr.msk.f32.gmra.mxu1 %vm481_vm1, %v6494_v19 }
  0xa9   : > { %5763 = vmatprep.mubr.msk.f32.mxu0 %vm481_vm1, %v6511_v22  ;;  %5863 = vmatprep.mubr.msk.f32.mxu1 %vm481_vm1, %v6497_v20 }
  0xac   : > { %5764 = vmatmul.mubr.msk.f32.gmra.mxu0 %vm481_vm1, %v6522_v23  ;;  %5864 = vmatmul.mubr.msk.f32.gmra.mxu1 %vm481_vm1, %v6508_v21 }
  0xad   : > { %5766 = vmatprep.mubr.msk.f32.mxu0 %vm481_vm1, %v6525_v24  ;;  %5866 = vmatprep.mubr.msk.f32.mxu1 %vm481_vm1, %v6511_v22 }
  0xb0   : > { %5767 = vmatmul.mubr.msk.f32.gmra.mxu0 %vm481_vm1, %v6536_v25  ;;  %5867 = vmatmul.mubr.msk.f32.gmra.mxu1 %vm481_vm1, %v6522_v23 }
  0xb1   : > { %5769 = vmatprep.mubr.msk.f32.mxu0 %vm481_vm1, %v6539_v26  ;;  %5869 = vmatprep.mubr.msk.f32.mxu1 %vm481_vm1, %v6525_v24 }
  0xb4   : > { %5770 = vmatmul.mubr.msk.f32.gmra.mxu0 %vm481_vm1, %v6550_v27  ;;  %5870 = vmatmul.mubr.msk.f32.gmra.mxu1 %vm481_vm1, %v6536_v25 }
  0xb5   : > { %5772 = vmatprep.mubr.msk.f32.mxu0 %vm481_vm1, %v6553_v28  ;;  %5872 = vmatprep.mubr.msk.f32.mxu1 %vm481_vm1, %v6539_v26 }
  0xb8   : > { %5773 = vmatmul.mubr.msk.f32.gmra.mxu0 %vm481_vm1, %v6564_v29  ;;  %5873 = vmatmul.mubr.msk.f32.gmra.mxu1 %vm481_vm1, %v6550_v27 }
  0xb9   : > { %5775 = vmatprep.mubr.msk.f32.mxu0 %vm481_vm1, %v6567_v30  ;;  %5875 = vmatprep.mubr.msk.f32.mxu1 %vm481_vm1, %v6553_v28 }
  0xbc   : > { %5776 = vmatmul.mubr.msk.f32.gmra.mxu0 %vm481_vm1, %v6578_v31  ;;  %5876 = vmatmul.mubr.msk.f32.gmra.mxu1 %vm481_vm1, %v6564_v29 }
  0xbd   : > { %5778 = vmatprep.mubr.msk.f32.mxu0 %vm481_vm1, %v6581_v32  ;;  %5878 = vmatprep.mubr.msk.f32.mxu1 %vm481_vm1, %v6567_v30 }
  0xc0   : > { %5779 = vmatmul.mubr.msk.f32.gmra.mxu0 %vm481_vm1, %v6592_v33  ;;  %5879 = vmatmul.mubr.msk.f32.gmra.mxu1 %vm481_vm1, %v6578_v31 }
  0xc1   : > { %5781 = vmatprep.mubr.msk.f32.mxu0 %vm481_vm1, %v6595_v34  ;;  %5881 = vmatprep.mubr.msk.f32.mxu1 %vm481_vm1, %v6581_v32 }
  0xc4   : > { %5782 = vmatmul.mubr.msk.f32.gmra.mxu0 %vm481_vm1, %v6606_v35  ;;  %5882 = vmatmul.mubr.msk.f32.gmra.mxu1 %vm481_vm1, %v6592_v33 }
  0xc5   : > { %5784 = vmatprep.mubr.msk.f32.mxu0 %vm481_vm1, %v6609_v36  ;;  %5884 = vmatprep.mubr.msk.f32.mxu1 %vm481_vm1, %v6595_v34 }
  0xc8   : > { %5785 = vmatmul.mubr.msk.f32.gmra.mxu0 %vm481_vm1, %v6620_v37  ;;  %5885 = vmatmul.mubr.msk.f32.gmra.mxu1 %vm481_vm1, %v6606_v35 }
  0xc9   : > { %5787 = vmatprep.mubr.msk.f32.mxu0 %vm481_vm1, %v6623_v38  ;;  %5887 = vmatprep.mubr.msk.f32.mxu1 %vm481_vm1, %v6609_v36 }
  0xcc   : > { %5788 = vmatmul.mubr.msk.f32.gmra.mxu0 %vm481_vm1, %v6634_v39  ;;  %5888 = vmatmul.mubr.msk.f32.gmra.mxu1 %vm481_vm1, %v6620_v37 }
  0xcd   : > { %5790 = vmatprep.mubr.msk.f32.mxu0 %vm481_vm1, %v6637_v40  ;;  %5890 = vmatprep.mubr.msk.f32.mxu1 %vm481_vm1, %v6623_v38 }
  0xd0   : > { %5791 = vmatmul.mubr.msk.f32.gmra.mxu0 %vm481_vm1, %v6648_v41  ;;  %5891 = vmatmul.mubr.msk.f32.gmra.mxu1 %vm481_vm1, %v6634_v39 }
  0xd1   : > { %5793 = vmatprep.mubr.msk.f32.mxu0 %vm481_vm1, %v6651_v42  ;;  %5893 = vmatprep.mubr.msk.f32.mxu1 %vm481_vm1, %v6637_v40 }
  0xd4   : > { %v5547_v45 = vpop.f32.mrf.mxu0  ;;  %v5647_v46 = vpop.f32.mrf.mxu1  ;;  %5794 = vmatmul.mubr.msk.f32.gmra.mxu0 %vm481_vm1, %v6662_v43  ;;  %5894 = vmatmul.mubr.msk.f32.gmra.mxu1 %vm481_vm1, %v6648_v41 }
  0xd5   : > { %v6671_v47 = vadd.f32 %v5647_v46, %v5547_v45  ;;  %5796 = vmatprep.mubr.msk.f32.mxu0 %vm481_vm1, %v6665_v44  ;;  %5896 = vmatprep.mubr.msk.f32.mxu1 %vm481_vm1, %v6651_v42 }
  0xd6   : > { %v744_v49 = vpop.f32.mrf.mxu0  ;;  %v1324_v50 = vpop.f32.mrf.mxu1 }
  0xd7   : > { %7642 = vst [vmem:[#allocation2_spill] sm:$0xff] %v6671_v47  ;;  %v6683_v52 = vadd.f32 %v1324_v50, %v744_v49 }
  0xd8   : > { %v5550_v53 = vpop.f32.mrf.mxu0  ;;  %v5650_v54 = vpop.f32.mrf.mxu1  ;;  %5797 = vmatmul.mubr.msk.f32.gmra.mxu0 %vm481_vm1, %v6678_v48  ;;  %5897 = vmatmul.mubr.msk.f32.gmra.mxu1 %vm481_vm1, %v6662_v43 }
  0xd9   : > { %7643 = vst [vmem:[#allocation3_spill] sm:$0xff] %v6683_v52  ;;  %v6689_v55 = vadd.f32 %v5650_v54, %v5550_v53  ;;  %5799 = vmatprep.mubr.msk.f32.mxu0 %vm481_vm1, %v6681_v51  ;;  %5899 = vmatprep.mubr.msk.f32.mxu1 %vm481_vm1, %v6665_v44  ;;  %v6750_v53 = vld [vmem:[%s6422_s7 + $0x168] sm:$0xff] }
  0xda   : > { %v754_v57 = vpop.f32.mrf.mxu0  ;;  %v1334_v58 = vpop.f32.mrf.mxu1 }
  0xdb   : > { %7644 = vst [vmem:[#allocation4_spill] sm:$0xff] %v6689_v55  ;;  %v6701_v60 = vadd.f32 %v1334_v58, %v754_v57  ;;  %v6753_v58 = vld [vmem:[%s6422_s7 + $0x170] sm:$0xff] }
  0xdc   : > { %v5553_v61 = vpop.f32.mrf.mxu0  ;;  %v5653_v62 = vpop.f32.mrf.mxu1  ;;  %5800 = vmatmul.mubr.msk.f32.gmra.mxu0 %vm481_vm1, %v6696_v56  ;;  %5900 = vmatmul.mubr.msk.f32.gmra.mxu1 %vm481_vm1, %v6678_v48 }
  0xdd   : > { %7645 = vst [vmem:[#allocation5_spill] sm:$0xff] %v6701_v60  ;;  %v6707_v63 = vadd.f32 %v5653_v62, %v5553_v61  ;;  %5802 = vmatprep.mubr.msk.f32.mxu0 %vm481_vm1, %v6699_v59  ;;  %5902 = vmatprep.mubr.msk.f32.mxu1 %vm481_vm1, %v6681_v51 }
  0xde   : > { %v764_v1 = vpop.f32.mrf.mxu0  ;;  %v1344_v2 = vpop.f32.mrf.mxu1 }
  0xdf   : > { %7646 = vst [vmem:[#allocation6_spill] sm:$0xff] %v6707_v63  ;;  %v6719_v4 = vadd.f32 %v1344_v2, %v764_v1 }
  0xe0   : > { %v5556_v5 = vpop.f32.mrf.mxu0  ;;  %v5656_v6 = vpop.f32.mrf.mxu1  ;;  %5803 = vmatmul.mubr.msk.f32.gmra.mxu0 %vm481_vm1, %v6714_v0  ;;  %5903 = vmatmul.mubr.msk.f32.gmra.mxu1 %vm481_vm1, %v6696_v56 }
  0xe1   : > { %7647 = vst [vmem:[#allocation7_spill] sm:$0xff] %v6719_v4  ;;  %v6725_v7 = vadd.f32 %v5656_v6, %v5556_v5  ;;  %5805 = vmatprep.mubr.msk.f32.mxu0 %vm481_vm1, %v6717_v3  ;;  %5905 = vmatprep.mubr.msk.f32.mxu1 %vm481_vm1, %v6699_v59  ;;  %v6768_v5 = vld [vmem:[%s6422_s7 + $0x178] sm:$0xff] }
  0xe2   : > { %v774_v9 = vpop.f32.mrf.mxu0  ;;  %v1354_v10 = vpop.f32.mrf.mxu1 }
  0xe3   : > { %7648 = vst [vmem:[#allocation8_spill] sm:$0xff] %v6725_v7  ;;  %v6737_v45 = vadd.f32 %v1354_v10, %v774_v9  ;;  %v6771_v10 = vld [vmem:[%s6422_s7 + $0x180] sm:$0xff] }
  0xe4   : > { %v5559_v46 = vpop.f32.mrf.mxu0  ;;  %v5659_v49 = vpop.f32.mrf.mxu1  ;;  %5806 = vmatmul.mubr.msk.f32.gmra.mxu0 %vm481_vm1, %v6732_v8  ;;  %5906 = vmatmul.mubr.msk.f32.gmra.mxu1 %vm481_vm1, %v6714_v0 }
  0xe5   : > { %7649 = vst [vmem:[#allocation9_spill] sm:$0xff] %v6737_v45  ;;  %v6743_v50 = vadd.f32 %v5659_v49, %v5559_v46  ;;  %5808 = vmatprep.mubr.msk.f32.mxu0 %vm481_vm1, %v6735_v13  ;;  %5908 = vmatprep.mubr.msk.f32.mxu1 %vm481_vm1, %v6717_v3 }
  0xe6   : > { %v784_v54 = vpop.f32.mrf.mxu0  ;;  %v1364_v57 = vpop.f32.mrf.mxu1 }
  0xe7   : > { %7650 = vst [vmem:[#allocation10_spill] sm:$0xff] %v6743_v50  ;;  %v6755_v61 = vadd.f32 %v1364_v57, %v784_v54 }
  0xe8   : > { %v5562_v62 = vpop.f32.mrf.mxu0  ;;  %v5662_v1 = vpop.f32.mrf.mxu1  ;;  %5809 = vmatmul.mubr.msk.f32.gmra.mxu0 %vm481_vm1, %v6750_v53  ;;  %5909 = vmatmul.mubr.msk.f32.gmra.mxu1 %vm481_vm1, %v6732_v8 }
  0xe9   : > { %7651 = vst [vmem:[#allocation11_spill] sm:$0xff] %v6755_v61  ;;  %v6761_v2 = vadd.f32 %v5662_v1, %v5562_v62  ;;  %5811 = vmatprep.mubr.msk.f32.mxu0 %vm481_vm1, %v6753_v58  ;;  %5911 = vmatprep.mubr.msk.f32.mxu1 %vm481_vm1, %v6735_v13  ;;  %v6786_v62 = vld [vmem:[%s6422_s7 + $0x188] sm:$0xff] }
  0xea   : > { %v794_v6 = vpop.f32.mrf.mxu0  ;;  %v1374_v9 = vpop.f32.mrf.mxu1 }
  0xeb   : > { %7652 = vst [vmem:[#allocation12_spill] sm:$0xff] %v6761_v2  ;;  %v6773_v46 = vadd.f32 %v1374_v9, %v794_v6  ;;  %v6789_v9 = vld [vmem:[%s6422_s7 + $0x190] sm:$0xff] }
  0xec   : > { %v5565_v49 = vpop.f32.mrf.mxu0  ;;  %v5665_v54 = vpop.f32.mrf.mxu1  ;;  %5812 = vmatmul.mubr.msk.f32.gmra.mxu0 %vm481_vm1, %v6768_v5  ;;  %5912 = vmatmul.mubr.msk.f32.gmra.mxu1 %vm481_vm1, %v6750_v53 }
  0xed   : > { %7653 = vst [vmem:[#allocation13_spill] sm:$0xff] %v6773_v46  ;;  %v6779_v57 = vadd.f32 %v5665_v54, %v5565_v49  ;;  %5814 = vmatprep.mubr.msk.f32.mxu0 %vm481_vm1, %v6771_v10  ;;  %5914 = vmatprep.mubr.msk.f32.mxu1 %vm481_vm1, %v6753_v58  ;;  %v6804_v54 = vld [vmem:[%s6422_s7 + $0x198] sm:$0xff] }
  0xee   : > { %v804_v1 = vpop.f32.mrf.mxu0  ;;  %v1384_v6 = vpop.f32.mrf.mxu1 }
  0xef   : > { %7654 = vst [vmem:[#allocation14_spill] sm:$0xff] %v6779_v57  ;;  %v6791_v46 = vadd.f32 %v1384_v6, %v804_v1 }
  0xf0   : > { %v5568_v2 = vpop.f32.mrf.mxu0  ;;  %v5668_v61 = vpop.f32.mrf.mxu1  ;;  %5815 = vmatmul.mubr.msk.f32.gmra.mxu0 %vm481_vm1, %v6786_v62  ;;  %5915 = vmatmul.mubr.msk.f32.gmra.mxu1 %vm481_vm1, %v6768_v5 }
  0xf1   : > { %7655 = vst [vmem:[#allocation15_spill] sm:$0xff] %v6791_v46  ;;  %v6797_v49 = vadd.f32 %v5668_v61, %v5568_v2  ;;  %5817 = vmatprep.mubr.msk.f32.mxu0 %vm481_vm1, %v6789_v9  ;;  %5917 = vmatprep.mubr.msk.f32.mxu1 %vm481_vm1, %v6771_v10  ;;  %v6807_v46 = vld [vmem:[%s6422_s7 + $0x1a0] sm:$0xff]  ;;  %v6822_v2 = vld [vmem:[%s6422_s7 + $0x1a8] sm:$0xff] }
  0xf2   : > { %v814_v1 = vpop.f32.mrf.mxu0  ;;  %v1394_v6 = vpop.f32.mrf.mxu1 }
  0xf3   : > { %7656 = vst [vmem:[#allocation16_spill] sm:$0xff] %v6797_v49  ;;  %v6809_v57 = vadd.f32 %v1394_v6, %v814_v1 }
  0xf4   : > { %v5571_v50 = vpop.f32.mrf.mxu0  ;;  %v5671_v45 = vpop.f32.mrf.mxu1  ;;  %5818 = vmatmul.mubr.msk.f32.gmra.mxu0 %vm481_vm1, %v6804_v54  ;;  %5918 = vmatmul.mubr.msk.f32.gmra.mxu1 %vm481_vm1, %v6786_v62 }
  0xf5   : > { %7657 = vst [vmem:[#allocation17_spill] sm:$0xff] %v6809_v57  ;;  %v6815_v61 = vadd.f32 %v5671_v45, %v5571_v50  ;;  %5820 = vmatprep.mubr.msk.f32.mxu0 %vm481_vm1, %v6807_v46  ;;  %5920 = vmatprep.mubr.msk.f32.mxu1 %vm481_vm1, %v6789_v9  ;;  %v6825_v57 = vld [vmem:[%s6422_s7 + $0x1b0] sm:$0xff]  ;;  %v6840_v50 = vld [vmem:[%s6422_s7 + $0x1b8] sm:$0xff] }
  0xf6   : > { %v824_v1 = vpop.f32.mrf.mxu0  ;;  %v1404_v6 = vpop.f32.mrf.mxu1  ;;  %7659 = vst [vmem:[#allocation19_spill] sm:$0xff] %v6825_v57  ;;  %7662 = vst [vmem:[#allocation22_spill] sm:$0xff] %v6840_v50 }
  0xf7   : > { %7658 = vst [vmem:[#allocation18_spill] sm:$0xff] %v6815_v61  ;;  %v6827_v49 = vadd.f32 %v1404_v6, %v824_v1 }
  0xf8   : > { %v5574_v7 = vpop.f32.mrf.mxu0  ;;  %v5674_v4 = vpop.f32.mrf.mxu1  ;;  %5821 = vmatmul.mubr.msk.f32.gmra.mxu0 %vm481_vm1, %v6822_v2  ;;  %5921 = vmatmul.mubr.msk.f32.gmra.mxu1 %vm481_vm1, %v6804_v54 }
  0xf9   : > { %7660 = vst [vmem:[#allocation20_spill] sm:$0xff] %v6827_v49  ;;  %v6833_v45 = vadd.f32 %v5674_v4, %v5574_v7  ;;  %5823 = vmatprep.mubr.msk.f32.mxu0 %vm481_vm1, %v6825_v57  ;;  %5923 = vmatprep.mubr.msk.f32.mxu1 %vm481_vm1, %v6807_v46  ;;  %v6843_v49 = vld [vmem:[%s6422_s7 + $0x1c0] sm:$0xff]  ;;  %v6858_v7 = vld [vmem:[%s6422_s7 + $0x1c8] sm:$0xff] }
  0xfa   : > { %v834_v1 = vpop.f32.mrf.mxu0  ;;  %v1414_v6 = vpop.f32.mrf.mxu1  ;;  %7663 = vst [vmem:[#allocation23_spill] sm:$0xff] %v6843_v49  ;;  %7666 = vst [vmem:[#allocation26_spill] sm:$0xff] %v6858_v7 }
  0xfb   : > { %7661 = vst [vmem:[#allocation21_spill] sm:$0xff] %v6833_v45  ;;  %v6845_v61 = vadd.f32 %v1414_v6, %v834_v1 }
  0xfc   : > { %v5577_v63 = vpop.f32.mrf.mxu0  ;;  %v5677_v60 = vpop.f32.mrf.mxu1  ;;  %5824 = vmatmul.mubr.msk.f32.gmra.mxu0 %vm481_vm1, %v6840_v50  ;;  %5924 = vmatmul.mubr.msk.f32.gmra.mxu1 %vm481_vm1, %v6822_v2 }
  0xfd   : > { %7664 = vst [vmem:[#allocation24_spill] sm:$0xff] %v6845_v61  ;;  %v6851_v4 = vadd.f32 %v5677_v60, %v5577_v63  ;;  %5826 = vmatprep.mubr.msk.f32.mxu0 %vm481_vm1, %v6843_v49  ;;  %5926 = vmatprep.mubr.msk.f32.mxu1 %vm481_vm1, %v6825_v57  ;;  %v6861_v61 = vld [vmem:[%s6422_s7 + $0x1d0] sm:$0xff]  ;;  %v6876_v63 = vld [vmem:[%s6422_s7 + $0x1d8] sm:$0xff] }
  0xfe   : > { %v844_v1 = vpop.f32.mrf.mxu0  ;;  %v1424_v6 = vpop.f32.mrf.mxu1  ;;  %7667 = vst [vmem:[#allocation27_spill] sm:$0xff] %v6861_v61  ;;  %7670 = vst [vmem:[#allocation30_spill] sm:$0xff] %v6876_v63 }
  0xff   : > { %7665 = vst [vmem:[#allocation25_spill] sm:$0xff] %v6851_v4  ;;  %v6863_v45 = vadd.f32 %v1424_v6, %v844_v1 }
 0x100   : > { %v5580_v55 = vpop.f32.mrf.mxu0  ;;  %v5680_v52 = vpop.f32.mrf.mxu1  ;;  %5827 = vmatmul.mubr.msk.f32.gmra.mxu0 %vm481_vm1, %v6858_v7  ;;  %5927 = vmatmul.mubr.msk.f32.gmra.mxu1 %vm481_vm1, %v6840_v50 }
 0x101   : > { %7668 = vst [vmem:[#allocation28_spill] sm:$0xff] %v6863_v45  ;;  %v6869_v60 = vadd.f32 %v5680_v52, %v5580_v55  ;;  %5829 = vmatprep.mubr.msk.f32.mxu0 %vm481_vm1, %v6861_v61  ;;  %5929 = vmatprep.mubr.msk.f32.mxu1 %vm481_vm1, %v6843_v49  ;;  %v6879_v45 = vld [vmem:[%s6422_s7 + $0x1e0] sm:$0xff]  ;;  %v6894_v55 = vld [vmem:[%s6422_s7 + $0x1e8] sm:$0xff] }
 0x102   : > { %v854_v1 = vpop.f32.mrf.mxu0  ;;  %v1434_v6 = vpop.f32.mrf.mxu1  ;;  %7671 = vst [vmem:[#allocation31_spill] sm:$0xff] %v6879_v45 }
 0x103   : > { %7669 = vst [vmem:[#allocation29_spill] sm:$0xff] %v6869_v60  ;;  %v6881_v4 = vadd.f32 %v1434_v6, %v854_v1 }
 0x104   : > { %v5583_v47 = vpop.f32.mrf.mxu0  ;;  %v5683_v50 = vpop.f32.mrf.mxu1  ;;  %5830 = vmatmul.mubr.msk.f32.gmra.mxu0 %vm481_vm1, %v6876_v63  ;;  %5930 = vmatmul.mubr.msk.f32.gmra.mxu1 %vm481_vm1, %v6858_v7 }
 0x105   : > { %7672 = vst [vmem:[#allocation32_spill] sm:$0xff] %v6881_v4  ;;  %v6887_v52 = vadd.f32 %v5683_v50, %v5583_v47  ;;  %5832 = vmatprep.mubr.msk.f32.mxu0 %vm481_vm1, %v6879_v45  ;;  %5932 = vmatprep.mubr.msk.f32.mxu1 %vm481_vm1, %v6861_v61  ;;  %v6897_v4 = vld [vmem:[%s6422_s7 + $0x1f0] sm:$0xff]  ;;  %v6912_v50 = vld [vmem:[%s6422_s7 + $0x1f8] sm:$0xff] }
 0x106   : > { %v864_v1 = vpop.f32.mrf.mxu0  ;;  %v1444_v6 = vpop.f32.mrf.mxu1 }
 0x107   : > { %7673 = vst [vmem:[#allocation33_spill] sm:$0xff] %v6887_v52  ;;  %v6899_v60 = vadd.f32 %v1444_v6, %v864_v1 }
 0x108   : > { %v5586_v49 = vpop.f32.mrf.mxu0  ;;  %v5686_v7 = vpop.f32.mrf.mxu1  ;;  %5833 = vmatmul.mubr.msk.f32.gmra.mxu0 %vm481_vm1, %v6894_v55  ;;  %5933 = vmatmul.mubr.msk.f32.gmra.mxu1 %vm481_vm1, %v6876_v63 }
 0x109   : > { %7674 = vst [vmem:[#allocation34_spill] sm:$0xff] %v6899_v60  ;;  %v6905_v47 = vadd.f32 %v5686_v7, %v5586_v49  ;;  %5835 = vmatprep.mubr.msk.f32.mxu0 %vm481_vm1, %v6897_v4  ;;  %5935 = vmatprep.mubr.msk.f32.mxu1 %vm481_vm1, %v6879_v45  ;;  %v6915_v60 = vld [vmem:[%s6422_s7 + $0x200] sm:$0xff]  ;;  %v6930_v7 = vld [vmem:[%s6422_s7 + $0x208] sm:$0xff] }
 0x10a   : > { %v874_v1 = vpop.f32.mrf.mxu0  ;;  %v1454_v6 = vpop.f32.mrf.mxu1  ;;  %7676 = vst [vmem:[#allocation36_spill] sm:$0xff] %v6915_v60  ;;  %7679 = vst [vmem:[#allocation39_spill] sm:$0xff] %v6930_v7 }
 0x10b   : > { %7675 = vst [vmem:[#allocation35_spill] sm:$0xff] %v6905_v47  ;;  %v6917_v52 = vadd.f32 %v1454_v6, %v874_v1 }
 0x10c   : > { %v5589_v61 = vpop.f32.mrf.mxu0  ;;  %v5689_v63 = vpop.f32.mrf.mxu1  ;;  %5836 = vmatmul.mubr.msk.f32.gmra.mxu0 %vm481_vm1, %v6912_v50  ;;  %5936 = vmatmul.mubr.msk.f32.gmra.mxu1 %vm481_vm1, %v6894_v55 }
 0x10d   : > { %7677 = vst [vmem:[#allocation37_spill] sm:$0xff] %v6917_v52  ;;  %v6923_v49 = vadd.f32 %v5689_v63, %v5589_v61  ;;  %5838 = vmatprep.mubr.msk.f32.mxu0 %vm481_vm1, %v6915_v60  ;;  %5938 = vmatprep.mubr.msk.f32.mxu1 %vm481_vm1, %v6897_v4  ;;  %v4881_v52 = vld [vmem:[%s6217_s28 + $0x20] sm:$0xff]  ;;  %v4882_v63 = vld [vmem:[%s6217_s28 + $0x28] sm:$0xff] }
 0x10e   : > { %v884_v1 = vpop.f32.mrf.mxu0  ;;  %v1464_v6 = vpop.f32.mrf.mxu1 }
 0x10f   : > { %7678 = vst [vmem:[#allocation38_spill] sm:$0xff] %v6923_v49  ;;  %v6933_v47 = vadd.f32 %v1464_v6, %v884_v1 }
 0x110   : > { %v5592_v45 = vpop.f32.mrf.mxu0  ;;  %v5692_v57 = vpop.f32.mrf.mxu1  ;;  %5839 = vmatmul.mubr.msk.f32.gmra.mxu0 %vm481_vm1, %v6930_v7  ;;  %5939 = vmatmul.mubr.msk.f32.gmra.mxu1 %vm481_vm1, %v6912_v50 }
 0x111   : > { %7680 = vst [vmem:[#allocation40_spill] sm:$0xff] %v6933_v47  ;;  %v6939_v61 = vadd.f32 %v5692_v57, %v5592_v45  ;;  %5945 = vmatprep.mubr.msk.f32.mxu0 %vm481_vm1, %v4881_v52  ;;  %6045 = vmatprep.mubr.msk.f32.mxu1 %vm481_vm1, %v6438_v12  ;;  %v4883_v47 = vld [vmem:[%s6217_s28 + $0x30] sm:$0xff]  ;;  %v4884_v12 = vld [vmem:[%s6217_s28 + $0x38] sm:$0xff] }
 0x112   : > { %v894_v1 = vpop.f32.mrf.mxu0  ;;  %v1474_v6 = vpop.f32.mrf.mxu1 }
 0x113   : > { %v6946_v49 = vadd.f32 %v1474_v6, %v894_v1  ;;  %v4885_v1 = vld [vmem:[%s6217_s28 + $0x40] sm:$0xff] }
 0x114   : > { %v5595_v60 = vpop.f32.mrf.mxu0  ;;  %v5695_v7 = vpop.f32.mrf.mxu1  ;;  %5946 = vmatmul.mubr.msk.f32.vlgmr.msra.gmra.mxu0 %vm481_vm1, %v4882_v63  ;;  %6046 = vmatmul.mubr.msk.f32.vlgmr.msra.gmra.mxu1 %vm481_vm1, %v6450_v14 }
 0x115   : > { %7681 = vst [vmem:[#allocation41_spill] sm:$0xff] %v6946_v49  ;;  %v6951_v57 = vadd.f32 %v5695_v7, %v5595_v60  ;;  %5948 = vmatprep.mubr.msk.f32.mxu0 %vm481_vm1, %v4883_v47  ;;  %6048 = vmatprep.mubr.msk.f32.mxu1 %vm481_vm1, %v6456_v15  ;;  %v4886_v15 = vld [vmem:[%s6217_s28 + $0x48] sm:$0xff]  ;;  %v4887_v7 = vld [vmem:[%s6217_s28 + $0x50] sm:$0xff] }
 0x116   : > { %v904_v45 = vpop.f32.mrf.mxu0  ;;  %v1484_v52 = vpop.f32.mrf.mxu1 }
 0x117   : > { %v6958_v6 = vadd.f32 %v1484_v52, %v904_v45 }
 0x118   : > { %v5598_v49 = vpop.f32.mrf.mxu0  ;;  %v5698_v63 = vpop.f32.mrf.mxu1  ;;  %5949 = vmatmul.mubr.msk.f32.gmra.mxu0 %vm481_vm1, %v4884_v12  ;;  %6049 = vmatmul.mubr.msk.f32.gmra.mxu1 %vm481_vm1, %v6466_v11 }
 0x119   : > { %v6963_v14 = vadd.f32 %v5698_v63, %v5598_v49  ;;  %5951 = vmatprep.mubr.msk.f32.mxu0 %vm481_vm1, %v4885_v1  ;;  %6051 = vmatprep.mubr.msk.f32.mxu1 %vm481_vm1, %v6469_v16  ;;  %v4888_v16 = vld [vmem:[%s6217_s28 + $0x58] sm:$0xff]  ;;  %v4889_v63 = vld [vmem:[%s6217_s28 + $0x60] sm:$0xff] }
 0x11a   : > { %v914_v60 = vpop.f32.mrf.mxu0  ;;  %v1494_v47 = vpop.f32.mrf.mxu1 }
 0x11b   : > { %v6970_v45 = vadd.f32 %v1494_v47, %v914_v60 }
 0x11c   : > { %v5601_v52 = vpop.f32.mrf.mxu0  ;;  %v5701_v12 = vpop.f32.mrf.mxu1  ;;  %5952 = vmatmul.mubr.msk.f32.gmra.mxu0 %vm481_vm1, %v4886_v15  ;;  %6052 = vmatmul.mubr.msk.f32.gmra.mxu1 %vm481_vm1, %v6480_v17 }
 0x11d   : > { %v6975_v11 = vadd.f32 %v5701_v12, %v5601_v52  ;;  %5954 = vmatprep.mubr.msk.f32.mxu0 %vm481_vm1, %v4887_v7  ;;  %6054 = vmatprep.mubr.msk.f32.mxu1 %vm481_vm1, %v6483_v18  ;;  %v4890_v18 = vld [vmem:[%s6217_s28 + $0x68] sm:$0xff]  ;;  %v4891_v12 = vld [vmem:[%s6217_s28 + $0x70] sm:$0xff] }
 0x11e   : > { %v924_v49 = vpop.f32.mrf.mxu0  ;;  %v1504_v1 = vpop.f32.mrf.mxu1 }
 0x11f   : > { %v6982_v60 = vadd.f32 %v1504_v1, %v924_v49 }
 0x120   : > { %v5604_v47 = vpop.f32.mrf.mxu0  ;;  %v5704_v15 = vpop.f32.mrf.mxu1  ;;  %5955 = vmatmul.mubr.msk.f32.gmra.mxu0 %vm481_vm1, %v4888_v16  ;;  %6055 = vmatmul.mubr.msk.f32.gmra.mxu1 %vm481_vm1, %v6494_v19 }
 0x121   : > { %v6987_v17 = vadd.f32 %v5704_v15, %v5604_v47  ;;  %5957 = vmatprep.mubr.msk.f32.mxu0 %vm481_vm1, %v4889_v63  ;;  %6057 = vmatprep.mubr.msk.f32.mxu1 %vm481_vm1, %v6497_v20  ;;  %v4892_v20 = vld [vmem:[%s6217_s28 + $0x78] sm:$0xff]  ;;  %v4893_v15 = vld [vmem:[%s6217_s28 + $0x80] sm:$0xff] }
 0x122   : > { %v934_v7 = vpop.f32.mrf.mxu0  ;;  %v1514_v52 = vpop.f32.mrf.mxu1 }
 0x123   : > { %7682 = vst [vmem:[#allocation42_spill] sm:$0xff] %v6987_v17  ;;  %v6994_v49 = vadd.f32 %v1514_v52, %v934_v7 }
 0x124   : > { %v5607_v1 = vpop.f32.mrf.mxu0  ;;  %v5707_v16 = vpop.f32.mrf.mxu1  ;;  %5958 = vmatmul.mubr.msk.f32.gmra.mxu0 %vm481_vm1, %v4890_v18  ;;  %6058 = vmatmul.mubr.msk.f32.gmra.mxu1 %vm481_vm1, %v6508_v21 }
 0x125   : > { %7683 = vst [vmem:[#allocation43_spill] sm:$0xff] %v6994_v49  ;;  %v6999_v19 = vadd.f32 %v5707_v16, %v5607_v1  ;;  %5960 = vmatprep.mubr.msk.f32.mxu0 %vm481_vm1, %v4891_v12  ;;  %6060 = vmatprep.mubr.msk.f32.mxu1 %vm481_vm1, %v6511_v22  ;;  %v4894_v22 = vld [vmem:[%s6217_s28 + $0x88] sm:$0xff]  ;;  %v4895_v16 = vld [vmem:[%s6217_s28 + $0x90] sm:$0xff] }
 0x126   : > { %v944_v63 = vpop.f32.mrf.mxu0  ;;  %v1524_v47 = vpop.f32.mrf.mxu1 }
 0x127   : > { %7684 = vst [vmem:[#allocation44_spill] sm:$0xff] %v6999_v19  ;;  %v7006_v7 = vadd.f32 %v1524_v47, %v944_v63 }
 0x128   : > { %v5610_v52 = vpop.f32.mrf.mxu0  ;;  %v5710_v18 = vpop.f32.mrf.mxu1  ;;  %5961 = vmatmul.mubr.msk.f32.gmra.mxu0 %vm481_vm1, %v4892_v20  ;;  %6061 = vmatmul.mubr.msk.f32.gmra.mxu1 %vm481_vm1, %v6522_v23 }
 0x129   : > { %7685 = vst [vmem:[#allocation45_spill] sm:$0xff] %v7006_v7  ;;  %v7011_v21 = vadd.f32 %v5710_v18, %v5610_v52  ;;  %5963 = vmatprep.mubr.msk.f32.mxu0 %vm481_vm1, %v4893_v15  ;;  %6063 = vmatprep.mubr.msk.f32.mxu1 %vm481_vm1, %v6525_v24  ;;  %v4896_v24 = vld [vmem:[%s6217_s28 + $0x98] sm:$0xff]  ;;  %v4897_v18 = vld [vmem:[%s6217_s28 + $0xa0] sm:$0xff] }
 0x12a   : > { %v954_v12 = vpop.f32.mrf.mxu0  ;;  %v1534_v1 = vpop.f32.mrf.mxu1 }
 0x12b   : > { %7686 = vst [vmem:[#allocation46_spill] sm:$0xff] %v7011_v21  ;;  %v7018_v63 = vadd.f32 %v1534_v1, %v954_v12 }
 0x12c   : > { %v5613_v47 = vpop.f32.mrf.mxu0  ;;  %v5713_v20 = vpop.f32.mrf.mxu1  ;;  %5964 = vmatmul.mubr.msk.f32.gmra.mxu0 %vm481_vm1, %v4894_v22  ;;  %6064 = vmatmul.mubr.msk.f32.gmra.mxu1 %vm481_vm1, %v6536_v25 }
 0x12d   : > { %7687 = vst [vmem:[#allocation47_spill] sm:$0xff] %v7018_v63  ;;  %v7023_v23 = vadd.f32 %v5713_v20, %v5613_v47  ;;  %5966 = vmatprep.mubr.msk.f32.mxu0 %vm481_vm1, %v4895_v16  ;;  %6066 = vmatprep.mubr.msk.f32.mxu1 %vm481_vm1, %v6539_v26  ;;  %v4898_v26 = vld [vmem:[%s6217_s28 + $0xa8] sm:$0xff]  ;;  %v4899_v20 = vld [vmem:[%s6217_s28 + $0xb0] sm:$0xff] }
 0x12e   : > { %v964_v15 = vpop.f32.mrf.mxu0  ;;  %v1544_v52 = vpop.f32.mrf.mxu1 }
 0x12f   : > { %7688 = vst [vmem:[#allocation48_spill] sm:$0xff] %v7023_v23  ;;  %v7030_v12 = vadd.f32 %v1544_v52, %v964_v15 }
 0x130   : > { %v5616_v1 = vpop.f32.mrf.mxu0  ;;  %v5716_v22 = vpop.f32.mrf.mxu1  ;;  %5967 = vmatmul.mubr.msk.f32.gmra.mxu0 %vm481_vm1, %v4896_v24  ;;  %6067 = vmatmul.mubr.msk.f32.gmra.mxu1 %vm481_vm1, %v6550_v27 }
 0x131   : > { %7689 = vst [vmem:[#allocation49_spill] sm:$0xff] %v7030_v12  ;;  %v7035_v25 = vadd.f32 %v5716_v22, %v5616_v1  ;;  %5969 = vmatprep.mubr.msk.f32.mxu0 %vm481_vm1, %v4897_v18  ;;  %6069 = vmatprep.mubr.msk.f32.mxu1 %vm481_vm1, %v6553_v28  ;;  %v4900_v28 = vld [vmem:[%s6217_s28 + $0xb8] sm:$0xff]  ;;  %v4901_v22 = vld [vmem:[%s6217_s28 + $0xc0] sm:$0xff] }
 0x132   : > { %v974_v16 = vpop.f32.mrf.mxu0  ;;  %v1554_v47 = vpop.f32.mrf.mxu1 }
 0x133   : > { %7690 = vst [vmem:[#allocation50_spill] sm:$0xff] %v7035_v25  ;;  %v7042_v15 = vadd.f32 %v1554_v47, %v974_v16 }
 0x134   : > { %v5619_v52 = vpop.f32.mrf.mxu0  ;;  %v5719_v24 = vpop.f32.mrf.mxu1  ;;  %5970 = vmatmul.mubr.msk.f32.gmra.mxu0 %vm481_vm1, %v4898_v26  ;;  %6070 = vmatmul.mubr.msk.f32.gmra.mxu1 %vm481_vm1, %v6564_v29 }
 0x135   : > { %7691 = vst [vmem:[#allocation51_spill] sm:$0xff] %v7042_v15  ;;  %v7047_v27 = vadd.f32 %v5719_v24, %v5619_v52  ;;  %5972 = vmatprep.mubr.msk.f32.mxu0 %vm481_vm1, %v4899_v20  ;;  %6072 = vmatprep.mubr.msk.f32.mxu1 %vm481_vm1, %v6567_v30  ;;  %v4902_v30 = vld [vmem:[%s6217_s28 + $0xc8] sm:$0xff]  ;;  %v4903_v24 = vld [vmem:[%s6217_s28 + $0xd0] sm:$0xff] }
 0x136   : > { %v984_v18 = vpop.f32.mrf.mxu0  ;;  %v1564_v1 = vpop.f32.mrf.mxu1 }
 0x137   : > { %7692 = vst [vmem:[#allocation52_spill] sm:$0xff] %v7047_v27  ;;  %v7054_v16 = vadd.f32 %v1564_v1, %v984_v18 }
 0x138   : > { %v5622_v47 = vpop.f32.mrf.mxu0  ;;  %v5722_v26 = vpop.f32.mrf.mxu1  ;;  %5973 = vmatmul.mubr.msk.f32.gmra.mxu0 %vm481_vm1, %v4900_v28  ;;  %6073 = vmatmul.mubr.msk.f32.gmra.mxu1 %vm481_vm1, %v6578_v31 }
 0x139   : > { %7693 = vst [vmem:[#allocation53_spill] sm:$0xff] %v7054_v16  ;;  %v7059_v29 = vadd.f32 %v5722_v26, %v5622_v47  ;;  %5975 = vmatprep.mubr.msk.f32.mxu0 %vm481_vm1, %v4901_v22  ;;  %6075 = vmatprep.mubr.msk.f32.mxu1 %vm481_vm1, %v6581_v32  ;;  %v4904_v32 = vld [vmem:[%s6217_s28 + $0xd8] sm:$0xff]  ;;  %v4905_v26 = vld [vmem:[%s6217_s28 + $0xe0] sm:$0xff] }
 0x13a   : > { %v994_v20 = vpop.f32.mrf.mxu0  ;;  %v1574_v52 = vpop.f32.mrf.mxu1 }
 0x13b   : > { %7694 = vst [vmem:[#allocation54_spill] sm:$0xff] %v7059_v29  ;;  %v7066_v18 = vadd.f32 %v1574_v52, %v994_v20 }
 0x13c   : > { %v5625_v1 = vpop.f32.mrf.mxu0  ;;  %v5725_v28 = vpop.f32.mrf.mxu1  ;;  %5976 = vmatmul.mubr.msk.f32.gmra.mxu0 %vm481_vm1, %v4902_v30  ;;  %6076 = vmatmul.mubr.msk.f32.gmra.mxu1 %vm481_vm1, %v6592_v33 }
 0x13d   : > { %7695 = vst [vmem:[#allocation55_spill] sm:$0xff] %v7066_v18  ;;  %v7071_v31 = vadd.f32 %v5725_v28, %v5625_v1  ;;  %5978 = vmatprep.mubr.msk.f32.mxu0 %vm481_vm1, %v4903_v24  ;;  %6078 = vmatprep.mubr.msk.f32.mxu1 %vm481_vm1, %v6595_v34  ;;  %v4906_v34 = vld [vmem:[%s6217_s28 + $0xe8] sm:$0xff]  ;;  %v4907_v28 = vld [vmem:[%s6217_s28 + $0xf0] sm:$0xff] }
 0x13e   : > { %v1004_v22 = vpop.f32.mrf.mxu0  ;;  %v1584_v47 = vpop.f32.mrf.mxu1 }
 0x13f   : > { %7696 = vst [vmem:[#allocation56_spill] sm:$0xff] %v7071_v31  ;;  %v7078_v20 = vadd.f32 %v1584_v47, %v1004_v22 }
 0x140   : > { %v5628_v52 = vpop.f32.mrf.mxu0  ;;  %v5728_v30 = vpop.f32.mrf.mxu1  ;;  %5979 = vmatmul.mubr.msk.f32.gmra.mxu0 %vm481_vm1, %v4904_v32  ;;  %6079 = vmatmul.mubr.msk.f32.gmra.mxu1 %vm481_vm1, %v6606_v35 }
 0x141   : > { %7697 = vst [vmem:[#allocation57_spill] sm:$0xff] %v7078_v20  ;;  %v7083_v33 = vadd.f32 %v5728_v30, %v5628_v52  ;;  %5981 = vmatprep.mubr.msk.f32.mxu0 %vm481_vm1, %v4905_v26  ;;  %6081 = vmatprep.mubr.msk.f32.mxu1 %vm481_vm1, %v6609_v36  ;;  %v4908_v36 = vld [vmem:[%s6217_s28 + $0xf8] sm:$0xff]  ;;  %v4909_v30 = vld [vmem:[%s6217_s28 + $0x100] sm:$0xff] }
 0x142   : > { %v1014_v24 = vpop.f32.mrf.mxu0  ;;  %v1594_v1 = vpop.f32.mrf.mxu1 }
 0x143   : > { %7698 = vst [vmem:[#allocation58_spill] sm:$0xff] %v7083_v33  ;;  %v7090_v22 = vadd.f32 %v1594_v1, %v1014_v24 }
 0x144   : > { %v5631_v47 = vpop.f32.mrf.mxu0  ;;  %v5731_v32 = vpop.f32.mrf.mxu1  ;;  %5982 = vmatmul.mubr.msk.f32.gmra.mxu0 %vm481_vm1, %v4906_v34  ;;  %6082 = vmatmul.mubr.msk.f32.gmra.mxu1 %vm481_vm1, %v6620_v37 }
 0x145   : > { %7699 = vst [vmem:[#allocation59_spill] sm:$0xff] %v7090_v22  ;;  %v7095_v35 = vadd.f32 %v5731_v32, %v5631_v47  ;;  %5984 = vmatprep.mubr.msk.f32.mxu0 %vm481_vm1, %v4907_v28  ;;  %6084 = vmatprep.mubr.msk.f32.mxu1 %vm481_vm1, %v6623_v38  ;;  %v4910_v38 = vld [vmem:[%s6217_s28 + $0x108] sm:$0xff]  ;;  %v4911_v32 = vld [vmem:[%s6217_s28 + $0x110] sm:$0xff] }
 0x146   : > { %v1024_v26 = vpop.f32.mrf.mxu0  ;;  %v1604_v52 = vpop.f32.mrf.mxu1 }
 0x147   : > { %7700 = vst [vmem:[#allocation60_spill] sm:$0xff] %v7095_v35  ;;  %v7102_v24 = vadd.f32 %v1604_v52, %v1024_v26 }
 0x148   : > { %v5634_v1 = vpop.f32.mrf.mxu0  ;;  %v5734_v34 = vpop.f32.mrf.mxu1  ;;  %5985 = vmatmul.mubr.msk.f32.gmra.mxu0 %vm481_vm1, %v4908_v36  ;;  %6085 = vmatmul.mubr.msk.f32.gmra.mxu1 %vm481_vm1, %v6634_v39 }
 0x149   : > { %7701 = vst [vmem:[#allocation61_spill] sm:$0xff] %v7102_v24  ;;  %v7107_v37 = vadd.f32 %v5734_v34, %v5634_v1  ;;  %5987 = vmatprep.mubr.msk.f32.mxu0 %vm481_vm1, %v4909_v30  ;;  %6087 = vmatprep.mubr.msk.f32.mxu1 %vm481_vm1, %v6637_v40  ;;  %v4912_v40 = vld [vmem:[%s6217_s28 + $0x118] sm:$0xff]  ;;  %v4913_v34 = vld [vmem:[%s6217_s28 + $0x120] sm:$0xff] }
 0x14a   : > { %v1034_v28 = vpop.f32.mrf.mxu0  ;;  %v1614_v47 = vpop.f32.mrf.mxu1 }
 0x14b   : > { %7702 = vst [vmem:[#allocation62_spill] sm:$0xff] %v7107_v37  ;;  %v7114_v26 = vadd.f32 %v1614_v47, %v1034_v28 }
 0x14c   : > { %v5637_v52 = vpop.f32.mrf.mxu0  ;;  %v5737_v36 = vpop.f32.mrf.mxu1  ;;  %5988 = vmatmul.mubr.msk.f32.gmra.mxu0 %vm481_vm1, %v4910_v38  ;;  %6088 = vmatmul.mubr.msk.f32.gmra.mxu1 %vm481_vm1, %v6648_v41 }
 0x14d   : > { %7703 = vst [vmem:[#allocation63_spill] sm:$0xff] %v7114_v26  ;;  %v7119_v39 = vadd.f32 %v5737_v36, %v5637_v52  ;;  %5990 = vmatprep.mubr.msk.f32.mxu0 %vm481_vm1, %v4911_v32  ;;  %6090 = vmatprep.mubr.msk.f32.mxu1 %vm481_vm1, %v6651_v42  ;;  %v4914_v42 = vld [vmem:[%s6217_s28 + $0x128] sm:$0xff]  ;;  %v4915_v36 = vld [vmem:[%s6217_s28 + $0x130] sm:$0xff] }
 0x14e   : > { %v1044_v30 = vpop.f32.mrf.mxu0  ;;  %v1624_v1 = vpop.f32.mrf.mxu1 }
 0x14f   : > { %7704 = vst [vmem:[#allocation64_spill] sm:$0xff] %v7119_v39  ;;  %v7126_v28 = vadd.f32 %v1624_v1, %v1044_v30 }
 0x150   : > { %v5640_v47 = vpop.f32.mrf.mxu0  ;;  %v5740_v38 = vpop.f32.mrf.mxu1  ;;  %5991 = vmatmul.mubr.msk.f32.gmra.mxu0 %vm481_vm1, %v4912_v40  ;;  %6091 = vmatmul.mubr.msk.f32.gmra.mxu1 %vm481_vm1, %v6662_v43 }
 0x151   : > { %7705 = vst [vmem:[#allocation65_spill] sm:$0xff] %v7126_v28  ;;  %v7131_v41 = vadd.f32 %v5740_v38, %v5640_v47  ;;  %5993 = vmatprep.mubr.msk.f32.mxu0 %vm481_vm1, %v4913_v34  ;;  %6093 = vmatprep.mubr.msk.f32.mxu1 %vm481_vm1, %v6665_v44  ;;  %v4916_v44 = vld [vmem:[%s6217_s28 + $0x138] sm:$0xff]  ;;  %v4917_v38 = vld [vmem:[%s6217_s28 + $0x140] sm:$0xff] }
 0x152   : > { %v1054_v32 = vpop.f32.mrf.mxu0  ;;  %v1634_v52 = vpop.f32.mrf.mxu1 }
 0x153   : > { %7706 = vst [vmem:[#allocation66_spill] sm:$0xff] %v7131_v41  ;;  %v7138_v30 = vadd.f32 %v1634_v52, %v1054_v32 }
 0x154   : > { %v5747_v1 = vpop.f32.mrf.mxu0  ;;  %v5847_v40 = vpop.f32.mrf.mxu1  ;;  %5994 = vmatmul.mubr.msk.f32.gmra.mxu0 %vm481_vm1, %v4914_v42  ;;  %6094 = vmatmul.mubr.msk.f32.gmra.mxu1 %vm481_vm1, %v6678_v48 }
 0x155   : > { %7707 = vst [vmem:[#allocation67_spill] sm:$0xff] %v7138_v30  ;;  %v7143_v43 = vadd.f32 %v5847_v40, %v5747_v1  ;;  %5996 = vmatprep.mubr.msk.f32.mxu0 %vm481_vm1, %v4915_v36  ;;  %6096 = vmatprep.mubr.msk.f32.mxu1 %vm481_vm1, %v6681_v51  ;;  %v4918_v51 = vld [vmem:[%s6217_s28 + $0x148] sm:$0xff]  ;;  %v4919_v40 = vld [vmem:[%s6217_s28 + $0x150] sm:$0xff] }
 0x156   : > { %v1901_v34 = vpop.f32.mrf.mxu0  ;;  %v2478_v47 = vpop.f32.mrf.mxu1 }
 0x157   : > { %v7150_v32 = vadd.f32 %v2478_v47, %v1901_v34 }
 0x158   : > { %v5750_v52 = vpop.f32.mrf.mxu0  ;;  %v5850_v42 = vpop.f32.mrf.mxu1  ;;  %5997 = vmatmul.mubr.msk.f32.gmra.mxu0 %vm481_vm1, %v4916_v44  ;;  %6097 = vmatmul.mubr.msk.f32.gmra.mxu1 %vm481_vm1, %v6696_v56 }
 0x159   : > { %v7155_v48 = vadd.f32 %v5850_v42, %v5750_v52  ;;  %5999 = vmatprep.mubr.msk.f32.mxu0 %vm481_vm1, %v4917_v38  ;;  %6099 = vmatprep.mubr.msk.f32.mxu1 %vm481_vm1, %v6699_v59  ;;  %v4920_v59 = vld [vmem:[%s6217_s28 + $0x158] sm:$0xff]  ;;  %v4921_v42 = vld [vmem:[%s6217_s28 + $0x160] sm:$0xff] }
 0x15a   : > { %v1911_v36 = vpop.f32.mrf.mxu0  ;;  %v2488_v1 = vpop.f32.mrf.mxu1 }
 0x15b   : > { %v7162_v34 = vadd.f32 %v2488_v1, %v1911_v36 }
 0x15c   : > { %v5753_v47 = vpop.f32.mrf.mxu0  ;;  %v5853_v44 = vpop.f32.mrf.mxu1  ;;  %6000 = vmatmul.mubr.msk.f32.gmra.mxu0 %vm481_vm1, %v4918_v51  ;;  %6100 = vmatmul.mubr.msk.f32.gmra.mxu1 %vm481_vm1, %v6714_v0 }
 0x15d   : > { %v7167_v56 = vadd.f32 %v5853_v44, %v5753_v47  ;;  %6002 = vmatprep.mubr.msk.f32.mxu0 %vm481_vm1, %v4919_v40  ;;  %6102 = vmatprep.mubr.msk.f32.mxu1 %vm481_vm1, %v6717_v3  ;;  %v4922_v3 = vld [vmem:[%s6217_s28 + $0x168] sm:$0xff]  ;;  %v4923_v44 = vld [vmem:[%s6217_s28 + $0x170] sm:$0xff] }
 0x15e   : > { %v1921_v38 = vpop.f32.mrf.mxu0  ;;  %v2498_v52 = vpop.f32.mrf.mxu1 }
 0x15f   : > { %v7174_v36 = vadd.f32 %v2498_v52, %v1921_v38 }
 0x160   : > { %v5756_v1 = vpop.f32.mrf.mxu0  ;;  %v5856_v51 = vpop.f32.mrf.mxu1  ;;  %6003 = vmatmul.mubr.msk.f32.gmra.mxu0 %vm481_vm1, %v4920_v59  ;;  %6103 = vmatmul.mubr.msk.f32.gmra.mxu1 %vm481_vm1, %v6732_v8 }
 0x161   : > { %v7179_v0 = vadd.f32 %v5856_v51, %v5756_v1  ;;  %6005 = vmatprep.mubr.msk.f32.mxu0 %vm481_vm1, %v4921_v42  ;;  %6105 = vmatprep.mubr.msk.f32.mxu1 %vm481_vm1, %v6735_v13  ;;  %v4924_v13 = vld [vmem:[%s6217_s28 + $0x178] sm:$0xff]  ;;  %v4925_v51 = vld [vmem:[%s6217_s28 + $0x180] sm:$0xff] }
 0x162   : > { %v1931_v40 = vpop.f32.mrf.mxu0  ;;  %v2508_v47 = vpop.f32.mrf.mxu1 }
 0x163   : > { %v7186_v38 = vadd.f32 %v2508_v47, %v1931_v40 }
 0x164   : > { %v5759_v52 = vpop.f32.mrf.mxu0  ;;  %v5859_v59 = vpop.f32.mrf.mxu1  ;;  %6006 = vmatmul.mubr.msk.f32.gmra.mxu0 %vm481_vm1, %v4922_v3  ;;  %6106 = vmatmul.mubr.msk.f32.gmra.mxu1 %vm481_vm1, %v6750_v53 }
 0x165   : > { %v7191_v8 = vadd.f32 %v5859_v59, %v5759_v52  ;;  %6008 = vmatprep.mubr.msk.f32.mxu0 %vm481_vm1, %v4923_v44  ;;  %6108 = vmatprep.mubr.msk.f32.mxu1 %vm481_vm1, %v6753_v58  ;;  %v4926_v58 = vld [vmem:[%s6217_s28 + $0x188] sm:$0xff]  ;;  %v4927_v59 = vld [vmem:[%s6217_s28 + $0x190] sm:$0xff] }
 0x166   : > { %v1941_v42 = vpop.f32.mrf.mxu0  ;;  %v2518_v1 = vpop.f32.mrf.mxu1 }
 0x167   : > { %v7198_v40 = vadd.f32 %v2518_v1, %v1941_v42 }
 0x168   : > { %v5762_v47 = vpop.f32.mrf.mxu0  ;;  %v5862_v3 = vpop.f32.mrf.mxu1  ;;  %6009 = vmatmul.mubr.msk.f32.gmra.mxu0 %vm481_vm1, %v4924_v13  ;;  %6109 = vmatmul.mubr.msk.f32.gmra.mxu1 %vm481_vm1, %v6768_v5 }
 0x169   : > { %v7203_v53 = vadd.f32 %v5862_v3, %v5762_v47  ;;  %6011 = vmatprep.mubr.msk.f32.mxu0 %vm481_vm1, %v4925_v51  ;;  %6111 = vmatprep.mubr.msk.f32.mxu1 %vm481_vm1, %v6771_v10  ;;  %v4928_v10 = vld [vmem:[%s6217_s28 + $0x198] sm:$0xff]  ;;  %v4929_v3 = vld [vmem:[%s6217_s28 + $0x1a0] sm:$0xff] }
 0x16a   : > { %v1951_v44 = vpop.f32.mrf.mxu0  ;;  %v2528_v52 = vpop.f32.mrf.mxu1 }
 0x16b   : > { %v7210_v42 = vadd.f32 %v2528_v52, %v1951_v44 }
 0x16c   : > { %v5765_v1 = vpop.f32.mrf.mxu0  ;;  %v5865_v13 = vpop.f32.mrf.mxu1  ;;  %6012 = vmatmul.mubr.msk.f32.gmra.mxu0 %vm481_vm1, %v4926_v58  ;;  %6112 = vmatmul.mubr.msk.f32.gmra.mxu1 %vm481_vm1, %v6786_v62 }
 0x16d   : > { %v7215_v5 = vadd.f32 %v5865_v13, %v5765_v1  ;;  %6014 = vmatprep.mubr.msk.f32.mxu0 %vm481_vm1, %v4927_v59  ;;  %6114 = vmatprep.mubr.msk.f32.mxu1 %vm481_vm1, %v6789_v9  ;;  %v4930_v9 = vld [vmem:[%s6217_s28 + $0x1a8] sm:$0xff]  ;;  %v4931_v13 = vld [vmem:[%s6217_s28 + $0x1b0] sm:$0xff] }
 0x16e   : > { %v1961_v51 = vpop.f32.mrf.mxu0  ;;  %v2538_v47 = vpop.f32.mrf.mxu1 }
 0x16f   : > { %v7222_v44 = vadd.f32 %v2538_v47, %v1961_v51 }
 0x170   : > { %v5768_v52 = vpop.f32.mrf.mxu0  ;;  %v5868_v58 = vpop.f32.mrf.mxu1  ;;  %6015 = vmatmul.mubr.msk.f32.gmra.mxu0 %vm481_vm1, %v4928_v10  ;;  %6115 = vmatmul.mubr.msk.f32.gmra.mxu1 %vm481_vm1, %v6804_v54 }
 0x171   : > { %v7227_v62 = vadd.f32 %v5868_v58, %v5768_v52  ;;  %6017 = vmatprep.mubr.msk.f32.mxu0 %vm481_vm1, %v4929_v3  ;;  %6117 = vmatprep.mubr.msk.f32.mxu1 %vm481_vm1, %v6807_v46  ;;  %v7708_v46 = vld [vmem:[#allocation19_spill] sm:$0xff]  ;;  %v4932_v3 = vld [vmem:[%s6217_s28 + $0x1b8] sm:$0xff] }
 0x172   : > { %v1971_v59 = vpop.f32.mrf.mxu0  ;;  %v2548_v1 = vpop.f32.mrf.mxu1 }
 0x173   : > { %v7234_v51 = vadd.f32 %v2548_v1, %v1971_v59  ;;  %v4933_v59 = vld [vmem:[%s6217_s28 + $0x1c0] sm:$0xff] }
 0x174   : > { %v5771_v47 = vpop.f32.mrf.mxu0  ;;  %v5871_v10 = vpop.f32.mrf.mxu1  ;;  %6018 = vmatmul.mubr.msk.f32.gmra.mxu0 %vm481_vm1, %v4930_v9  ;;  %6118 = vmatmul.mubr.msk.f32.gmra.mxu1 %vm481_vm1, %v6822_v2  ;;  %v7709_v2 = vld [vmem:[#allocation22_spill] sm:$0xff] }
 0x175   : > { %v7239_v54 = vadd.f32 %v5871_v10, %v5771_v47  ;;  %6020 = vmatprep.mubr.msk.f32.mxu0 %vm481_vm1, %v4931_v13  ;;  %6120 = vmatprep.mubr.msk.f32.mxu1 %vm481_vm1, %v7708_v46  ;;  %v7710_v13 = vld [vmem:[#allocation23_spill] sm:$0xff] }
 0x176   : > { %v1981_v52 = vpop.f32.mrf.mxu0  ;;  %v2558_v58 = vpop.f32.mrf.mxu1  ;;  %v4934_v10 = vld [vmem:[%s6217_s28 + $0x1c8] sm:$0xff] }
 0x177   : > { %v7246_v1 = vadd.f32 %v2558_v58, %v1981_v52  ;;  %v4935_v58 = vld [vmem:[%s6217_s28 + $0x1d0] sm:$0xff] }
 0x178   : > { %v5774_v30 = vpop.f32.mrf.mxu0  ;;  %v5874_v9 = vpop.f32.mrf.mxu1  ;;  %6021 = vmatmul.mubr.msk.f32.gmra.mxu0 %vm481_vm1, %v4932_v3  ;;  %6121 = vmatmul.mubr.msk.f32.gmra.mxu1 %vm481_vm1, %v7709_v2  ;;  %v7711_v2 = vld [vmem:[#allocation26_spill] sm:$0xff] }
 0x179   : > { %v7251_v47 = vadd.f32 %v5874_v9, %v5774_v30  ;;  %6023 = vmatprep.mubr.msk.f32.mxu0 %vm481_vm1, %v4933_v59  ;;  %6123 = vmatprep.mubr.msk.f32.mxu1 %vm481_vm1, %v7710_v13  ;;  %v7712_v59 = vld [vmem:[#allocation27_spill] sm:$0xff]  ;;  %v4936_v9 = vld [vmem:[%s6217_s28 + $0x1d8] sm:$0xff] }
 0x17a   : > { %v1991_v46 = vpop.f32.mrf.mxu0  ;;  %v2568_v52 = vpop.f32.mrf.mxu1 }
 0x17b   : > { %v7258_v41 = vadd.f32 %v2568_v52, %v1991_v46  ;;  %v4937_v52 = vld [vmem:[%s6217_s28 + $0x1e0] sm:$0xff] }
 0x17c   : > { %v5777_v28 = vpop.f32.mrf.mxu0  ;;  %v5877_v3 = vpop.f32.mrf.mxu1  ;;  %6024 = vmatmul.mubr.msk.f32.gmra.mxu0 %vm481_vm1, %v4934_v10  ;;  %6124 = vmatmul.mubr.msk.f32.gmra.mxu1 %vm481_vm1, %v7711_v2  ;;  %v7713_v2 = vld [vmem:[#allocation30_spill] sm:$0xff] }
 0x17d   : > { %v7263_v30 = vadd.f32 %v5877_v3, %v5777_v28  ;;  %6026 = vmatprep.mubr.msk.f32.mxu0 %vm481_vm1, %v4935_v58  ;;  %6126 = vmatprep.mubr.msk.f32.mxu1 %vm481_vm1, %v7712_v59  ;;  %v7714_v58 = vld [vmem:[#allocation31_spill] sm:$0xff] }
 0x17e   : > { %v2001_v13 = vpop.f32.mrf.mxu0  ;;  %v2578_v46 = vpop.f32.mrf.mxu1  ;;  %v4938_v3 = vld [vmem:[%s6217_s28 + $0x1e8] sm:$0xff] }
 0x17f   : > { %v7270_v39 = vadd.f32 %v2578_v46, %v2001_v13  ;;  %v4939_v46 = vld [vmem:[%s6217_s28 + $0x1f0] sm:$0xff] }
 0x180   : > { %v5780_v26 = vpop.f32.mrf.mxu0  ;;  %v5880_v10 = vpop.f32.mrf.mxu1  ;;  %6027 = vmatmul.mubr.msk.f32.gmra.mxu0 %vm481_vm1, %v4936_v9  ;;  %6127 = vmatmul.mubr.msk.f32.gmra.mxu1 %vm481_vm1, %v7713_v2 }
 0x181   : > { %v7275_v28 = vadd.f32 %v5880_v10, %v5780_v26  ;;  %6029 = vmatprep.mubr.msk.f32.mxu0 %vm481_vm1, %v4937_v52  ;;  %6129 = vmatprep.mubr.msk.f32.mxu1 %vm481_vm1, %v7714_v58  ;;  %v4940_v52 = vld [vmem:[%s6217_s28 + $0x1f8] sm:$0xff]  ;;  %v4941_v58 = vld [vmem:[%s6217_s28 + $0x200] sm:$0xff] }
 0x182   : > { %v2011_v59 = vpop.f32.mrf.mxu0  ;;  %v2588_v13 = vpop.f32.mrf.mxu1 }
 0x183   : > { %v7282_v37 = vadd.f32 %v2588_v13, %v2011_v59 }
 0x184   : > { %v5783_v24 = vpop.f32.mrf.mxu0  ;;  %v5883_v9 = vpop.f32.mrf.mxu1  ;;  %6030 = vmatmul.mubr.msk.f32.gmra.mxu0 %vm481_vm1, %v4938_v3  ;;  %6130 = vmatmul.mubr.msk.f32.gmra.mxu1 %vm481_vm1, %v6894_v55 }
 0x185   : > { %v7287_v26 = vadd.f32 %v5883_v9, %v5783_v24  ;;  %6032 = vmatprep.mubr.msk.f32.mxu0 %vm481_vm1, %v4939_v46  ;;  %6132 = vmatprep.mubr.msk.f32.mxu1 %vm481_vm1, %v6897_v4  ;;  %v7715_v4 = vld [vmem:[#allocation36_spill] sm:$0xff]  ;;  %v4942_v24 = vld [vmem:[%s6217_s28 + $0x208] sm:$0xff] }
 0x186   : > { %v2021_v10 = vpop.f32.mrf.mxu0  ;;  %v2598_v2 = vpop.f32.mrf.mxu1 }
 0x187   : > { %v7294_v59 = vadd.f32 %v2598_v2, %v2021_v10  ;;  %v4943_v10 = vld [vmem:[%s6217_s28 + $0x210] sm:$0xff] }
 0x188   : > { %v5786_v3 = vpop.f32.mrf.mxu0  ;;  %v5886_v13 = vpop.f32.mrf.mxu1  ;;  %6033 = vmatmul.mubr.msk.f32.gmra.mxu0 %vm481_vm1, %v4940_v52  ;;  %6133 = vmatmul.mubr.msk.f32.gmra.mxu1 %vm481_vm1, %v6912_v50  ;;  %v5007_v2 = vld [vmem:[%s6422_s7 + $0x210] sm:$0xff]  ;;  %v7716_v50 = vld [vmem:[#allocation39_spill] sm:$0xff] }
 0x189   : > { %v7299_v55 = vadd.f32 %v5886_v13, %v5786_v3  ;;  %6035 = vmatprep.mubr.msk.f32.mxu0 %vm481_vm1, %v4941_v58  ;;  %6135 = vmatprep.mubr.msk.f32.mxu1 %vm481_vm1, %v7715_v4  ;;  %v4944_v58 = vld [vmem:[%s6217_s28 + $0x218] sm:$0xff] }
 0x18a   : > { %v2031_v46 = vpop.f32.mrf.mxu0  ;;  %v2608_v9 = vpop.f32.mrf.mxu1  ;;  %v5008_v13 = vld [vmem:[%s6422_s7 + $0x218] sm:$0xff] }
 0x18b   : > { %v7307_v35 = vadd.f32 %v2608_v9, %v2031_v46 }
 0x18c   : > { %v5789_v52 = vpop.f32.mrf.mxu0  ;;  %v5889_v22 = vpop.f32.mrf.mxu1  ;;  %6036 = vmatmul.mubr.msk.f32.gmra.mxu0 %vm481_vm1, %v4942_v24  ;;  %6136 = vmatmul.mubr.msk.f32.gmra.mxu1 %vm481_vm1, %v7716_v50 }
 0x18d   : > { %v7312_v3 = vadd.f32 %v5889_v22, %v5789_v52  ;;  %6038 = vmatprep.mubr.msk.f32.mxu0 %vm481_vm1, %v4943_v10  ;;  %6138 = vmatprep.mubr.msk.f32.mxu1 %vm481_vm1, %v5007_v2 }
 0x18e   : > { %v2041_v4 = vpop.f32.mrf.mxu0  ;;  %v2618_v33 = vpop.f32.mrf.mxu1 }
 0x18f   : > { %v7318_v20 = vadd.f32 %v2618_v33, %v2041_v4 }
 0x190   : > { %v5792_v46 = vpop.f32.mrf.mxu0  ;;  %v5892_v9 = vpop.f32.mrf.mxu1  ;;  %6039 = vmatmul.mubr.msk.f32.gmra.mxu0 %vm481_vm1, %v4944_v58  ;;  %6139 = vmatmul.mubr.msk.f32.gmra.mxu1 %vm481_vm1, %v5008_v13 }
 0x191   : > { %v7322_v24 = vadd.f32 %v5892_v9, %v5792_v46 }
 0x192   : > { %v2051_v22 = vpop.f32.mrf.mxu0  ;;  %v2628_v52 = vpop.f32.mrf.mxu1 }
 0x193   : > { %v7324_v50 = vadd.f32 %v2628_v52, %v2051_v22 }
 0x194   : > { %v5795_v10 = vpop.f32.mrf.mxu0  ;;  %v5895_v2 = vpop.f32.mrf.mxu1 }
 0x195   : > { %v7326_v31 = vadd.f32 %v5895_v2, %v5795_v10 }
 0x196   : > { %v2061_v18 = vpop.f32.mrf.mxu0  ;;  %v2638_v29 = vpop.f32.mrf.mxu1 }
 0x197   : > { %v7328_v33 = vadd.f32 %v2638_v29, %v2061_v18 }
 0x198   : > { %v5798_v4 = vpop.f32.mrf.mxu0  ;;  %v5898_v16 = vpop.f32.mrf.mxu1 }
 0x199   : > { %v7330_v27 = vadd.f32 %v5898_v16, %v5798_v4 }
 0x19a   : > { %v2071_v58 = vpop.f32.mrf.mxu0  ;;  %v2648_v13 = vpop.f32.mrf.mxu1 }
 0x19b   : > { %v7332_v46 = vadd.f32 %v2648_v13, %v2071_v58 }
 0x19c   : > { %v5801_v9 = vpop.f32.mrf.mxu0  ;;  %v5901_v15 = vpop.f32.mrf.mxu1 }
 0x19d   : > { %v7334_v22 = vadd.f32 %v5901_v15, %v5801_v9 }
 0x19e   : > { %v2081_v52 = vpop.f32.mrf.mxu0  ;;  %v2658_v25 = vpop.f32.mrf.mxu1 }
 0x19f   : > { %v7336_v10 = vadd.f32 %v2658_v25, %v2081_v52 }
 0x1a0   : > { %v5804_v2 = vpop.f32.mrf.mxu0  ;;  %v5904_v12 = vpop.f32.mrf.mxu1 }
 0x1a1   : > { %v7338_v29 = vadd.f32 %v5904_v12, %v5804_v2 }
 0x1a2   : > { %v2091_v18 = vpop.f32.mrf.mxu0  ;;  %v2668_v23 = vpop.f32.mrf.mxu1 }
 0x1a3   : > { %7717 = vst [vmem:[#allocation19_spill] sm:$0xff] %v7338_v29  ;;  %v7340_v16 = vadd.f32 %v2668_v23, %v2091_v18  ;;  %v7744_v29 = vld [vmem:[#allocation3_spill] sm:$0xff] }
 0x1a4   : > { %v5807_v4 = vpop.f32.mrf.mxu0  ;;  %v5907_v63 = vpop.f32.mrf.mxu1 }
 0x1a5   : > { %7718 = vst [vmem:[#allocation22_spill] sm:$0xff] %v7340_v16  ;;  %v7342_v58 = vadd.f32 %v5907_v63, %v5807_v4 }
 0x1a6   : > { %v2101_v13 = vpop.f32.mrf.mxu0  ;;  %v2678_v21 = vpop.f32.mrf.mxu1 }
 0x1a7   : > { %7719 = vst [vmem:[#allocation23_spill] sm:$0xff] %v7342_v58  ;;  %v7344_v15 = vadd.f32 %v2678_v21, %v2101_v13 }
 0x1a8   : > { %v5810_v9 = vpop.f32.mrf.mxu0  ;;  %v5910_v7 = vpop.f32.mrf.mxu1 }
 0x1a9   : > { %7720 = vst [vmem:[#allocation26_spill] sm:$0xff] %v7344_v15  ;;  %v7346_v25 = vadd.f32 %v5910_v7, %v5810_v9 }
 0x1aa   : > { %v2111_v52 = vpop.f32.mrf.mxu0  ;;  %v2688_v19 = vpop.f32.mrf.mxu1 }
 0x1ab   : > { %7721 = vst [vmem:[#allocation27_spill] sm:$0xff] %v7346_v25  ;;  %v7348_v12 = vadd.f32 %v2688_v19, %v2111_v52 }
 0x1ac   : > { %v5813_v2 = vpop.f32.mrf.mxu0  ;;  %v5913_v49 = vpop.f32.mrf.mxu1 }
 0x1ad   : > { %7722 = vst [vmem:[#allocation30_spill] sm:$0xff] %v7348_v12  ;;  %v7350_v23 = vadd.f32 %v5913_v49, %v5813_v2 }
 0x1ae   : > { %v2121_v18 = vpop.f32.mrf.mxu0  ;;  %v2698_v16 = vpop.f32.mrf.mxu1 }
 0x1af   : > { %7723 = vst [vmem:[#allocation31_spill] sm:$0xff] %v7350_v23  ;;  %v7352_v63 = vadd.f32 %v2698_v16, %v2121_v18 }
 0x1b0   : > { %v5816_v4 = vpop.f32.mrf.mxu0  ;;  %v5916_v58 = vpop.f32.mrf.mxu1 }
 0x1b1   : > { %7724 = vst [vmem:[#allocation36_spill] sm:$0xff] %v7352_v63  ;;  %v7354_v21 = vadd.f32 %v5916_v58, %v5816_v4 }
 0x1b2   : > { %v2131_v13 = vpop.f32.mrf.mxu0  ;;  %v2708_v15 = vpop.f32.mrf.mxu1 }
 0x1b3   : > { %7725 = vst [vmem:[#allocation39_spill] sm:$0xff] %v7354_v21  ;;  %v7356_v7 = vadd.f32 %v2708_v15, %v2131_v13 }
 0x1b4   : > { %v5819_v9 = vpop.f32.mrf.mxu0  ;;  %v5919_v25 = vpop.f32.mrf.mxu1 }
 0x1b5   : > { %7726 = vst [vmem:[#allocation68_spill] sm:$0xff] %v7356_v7  ;;  %v7358_v19 = vadd.f32 %v5919_v25, %v5819_v9 }
 0x1b6   : > { %v2141_v52 = vpop.f32.mrf.mxu0  ;;  %v2718_v12 = vpop.f32.mrf.mxu1 }
 0x1b7   : > { %7727 = vst [vmem:[#allocation69_spill] sm:$0xff] %v7358_v19  ;;  %v7360_v49 = vadd.f32 %v2718_v12, %v2141_v52 }
 0x1b8   : > { %v5822_v2 = vpop.f32.mrf.mxu0  ;;  %v5922_v23 = vpop.f32.mrf.mxu1 }
 0x1b9   : > { %7728 = vst [vmem:[#allocation70_spill] sm:$0xff] %v7360_v49  ;;  %v7362_v16 = vadd.f32 %v5922_v23, %v5822_v2 }
 0x1ba   : > { %v2151_v18 = vpop.f32.mrf.mxu0  ;;  %v2728_v63 = vpop.f32.mrf.mxu1 }
 0x1bb   : > { %7729 = vst [vmem:[#allocation71_spill] sm:$0xff] %v7362_v16  ;;  %v7364_v58 = vadd.f32 %v2728_v63, %v2151_v18 }
 0x1bc   : > { %v5825_v4 = vpop.f32.mrf.mxu0  ;;  %v5925_v21 = vpop.f32.mrf.mxu1 }
 0x1bd   : > { %7730 = vst [vmem:[#allocation72_spill] sm:$0xff] %v7364_v58  ;;  %v7366_v15 = vadd.f32 %v5925_v21, %v5825_v4 }
 0x1be   : > { %v2161_v13 = vpop.f32.mrf.mxu0  ;;  %v2738_v7 = vpop.f32.mrf.mxu1 }
 0x1bf   : > { %7731 = vst [vmem:[#allocation73_spill] sm:$0xff] %v7366_v15  ;;  %v7368_v25 = vadd.f32 %v2738_v7, %v2161_v13 }
 0x1c0   : > { %v5828_v9 = vpop.f32.mrf.mxu0  ;;  %v5928_v19 = vpop.f32.mrf.mxu1 }
 0x1c1   : > { %7732 = vst [vmem:[#allocation74_spill] sm:$0xff] %v7368_v25  ;;  %v7370_v12 = vadd.f32 %v5928_v19, %v5828_v9 }
 0x1c2   : > { %v2171_v52 = vpop.f32.mrf.mxu0  ;;  %v2748_v49 = vpop.f32.mrf.mxu1 }
 0x1c3   : > { %7733 = vst [vmem:[#allocation75_spill] sm:$0xff] %v7370_v12  ;;  %v7372_v23 = vadd.f32 %v2748_v49, %v2171_v52 }
 0x1c4   : > { %v5831_v2 = vpop.f32.mrf.mxu0  ;;  %v5931_v16 = vpop.f32.mrf.mxu1 }
 0x1c5   : > { %7734 = vst [vmem:[#allocation76_spill] sm:$0xff] %v7372_v23  ;;  %v7374_v63 = vadd.f32 %v5931_v16, %v5831_v2 }
 0x1c6   : > { %v2181_v18 = vpop.f32.mrf.mxu0  ;;  %v2758_v58 = vpop.f32.mrf.mxu1 }
 0x1c7   : > { %7735 = vst [vmem:[#allocation77_spill] sm:$0xff] %v7374_v63  ;;  %v7376_v21 = vadd.f32 %v2758_v58, %v2181_v18 }
 0x1c8   : > { %v5834_v4 = vpop.f32.mrf.mxu0  ;;  %v5934_v15 = vpop.f32.mrf.mxu1 }
 0x1c9   : > { %7736 = vst [vmem:[#allocation78_spill] sm:$0xff] %v7376_v21  ;;  %v7378_v7 = vadd.f32 %v5934_v15, %v5834_v4 }
 0x1ca   : > { %v2191_v13 = vpop.f32.mrf.mxu0  ;;  %v2768_v25 = vpop.f32.mrf.mxu1 }
 0x1cb   : > { %7737 = vst [vmem:[#allocation79_spill] sm:$0xff] %v7378_v7  ;;  %v7380_v19 = vadd.f32 %v2768_v25, %v2191_v13  ;;  %v7743_v25 = vld [vmem:[#allocation2_spill] sm:$0xff] }
 0x1cc   : > { %v5837_v9 = vpop.f32.mrf.mxu0  ;;  %v5937_v12 = vpop.f32.mrf.mxu1 }
 0x1cd   : > { %7738 = vst [vmem:[#allocation80_spill] sm:$0xff] %v7380_v19  ;;  %v7382_v49 = vadd.f32 %v5937_v12, %v5837_v9 }
 0x1ce   : > { %v2201_v52 = vpop.f32.mrf.mxu0  ;;  %v2778_v23 = vpop.f32.mrf.mxu1 }
 0x1cf   : > { %7739 = vst [vmem:[#allocation81_spill] sm:$0xff] %v7382_v49  ;;  %v7384_v16 = vadd.f32 %v2778_v23, %v2201_v52 }
 0x1d0   : > { %v5840_v2 = vpop.f32.mrf.mxu0  ;;  %v5940_v63 = vpop.f32.mrf.mxu1 }
 0x1d1   : > { %7740 = vst [vmem:[#allocation82_spill] sm:$0xff] %v7384_v16  ;;  %v7386_v58 = vadd.f32 %v5940_v63, %v5840_v2  ;;  %v7745_v16 = vld [vmem:[#allocation4_spill] sm:$0xff] }
 0x1d2   : > { %v2211_v18 = vpop.f32.mrf.mxu0  ;;  %v2788_v21 = vpop.f32.mrf.mxu1 }
 0x1d3   : > { %7741 = vst [vmem:[#allocation83_spill] sm:$0xff] %v7386_v58  ;;  %v7388_v15 = vadd.f32 %v2788_v21, %v2211_v18 }
 0x1d4   : > { %v5947_v4 = vpop.f32.mrf.mxu0  ;;  %v6047_v7 = vpop.f32.mrf.mxu1 }
 0x1d5   : > { %7742 = vst [vmem:[#allocation84_spill] sm:$0xff] %v7388_v15  ;;  %v3511_v13 = vadd.f32 %v5947_v4, %v7743_v25  ;;  %v4152_v19 = vadd.f32 %v6047_v7, %v7143_v43  ;;  %v7746_v25 = vld [vmem:[#allocation5_spill] sm:$0xff] }
 0x1d6   : > { %v3191_v12 = vpop.f32.mrf.mxu0  ;;  %v3832_v9 = vpop.f32.mrf.mxu1 }
 0x1d7   : > { %v4216_v49 = vmax.f32 %v3511_v13, %v4152_v19  ;;  %v3510_v23 = vadd.f32 %v3191_v12, %v7744_v29  ;;  %v4151_v52 = vadd.f32 %v3832_v9, %v7150_v32  ;;  %v7401_v29 = vld [vmem:[%s7631_s3] ss:$0 sm:$0xff] }
 0x1d8   : > { %v5950_v63 = vpop.f32.mrf.mxu0  ;;  %v6050_v2 = vpop.f32.mrf.mxu1 }
 0x1d9   : > { %v4215_v58 = vmax.f32 %v3510_v23, %v4151_v52  ;;  %v3513_v21 = vadd.f32 %v5950_v63, %v7745_v16  ;;  %v4154_v18 = vadd.f32 %v6050_v2, %v7155_v48  ;;  %v7747_v16 = vld [vmem:[#allocation6_spill] sm:$0xff] }
 0x1da   : > { %v3201_v15 = vpop.f32.mrf.mxu0  ;;  %v3842_v17 = vpop.f32.mrf.mxu1 }
 0x1db   : > { %v4218_v4 = vmax.f32 %v3513_v21, %v4154_v18  ;;  %v3512_v43 = vadd.f32 %v3201_v15, %v7746_v25  ;;  %v4153_v7 = vadd.f32 %v3842_v17, %v7162_v34  ;;  %v7748_v34 = vld [vmem:[#allocation7_spill] sm:$0xff]  ;;  %v7749_v25 = vld [vmem:[#allocation8_spill] sm:$0xff] }
 0x1dc   : > { %v5953_v32 = vpop.f32.mrf.mxu0  ;;  %v6053_v19 = vpop.f32.mrf.mxu1 }
 0x1dd   : > { %v4280_v13 = vmax.f32 %v4216_v49, %v4218_v4  ;;  %v4217_v12 = vmax.f32 %v3512_v43, %v4153_v7  ;;  %v3515_v9 = vadd.f32 %v5953_v32, %v7747_v16  ;;  %v4156_v48 = vadd.f32 %v6053_v19, %v7167_v56  ;;  %v7750_v16 = vld [vmem:[#allocation9_spill] sm:$0xff] }
 0x1de   : > { %v3211_v23 = vpop.f32.mrf.mxu0  ;;  %v3852_v52 = vpop.f32.mrf.mxu1 }
 0x1df   : > { %v4319_v15 = vadd.f32 %v7401_v29, %v4280_v13  ;;  %v4279_v63 = vmax.f32 %v4215_v58, %v4217_v12  ;;  %v4220_v17 = vmax.f32 %v3515_v9, %v4156_v48  ;;  %v3514_v2 = vadd.f32 %v3211_v23, %v7748_v34 }
 0x1e0   : > { %v4155_v49 = vadd.f32 %v3852_v52, %v7174_v36  ;;  %v5956_v21 = vpop.f32.mrf.mxu0  ;;  %v6056_v56 = vpop.f32.mrf.mxu1 }
 0x1e1   : > { %v4351_v18 = vmax.f32 %v4319_v15, 0.0  ;;  %v4318_v4 = vadd.f32 %v7401_v29, %v4279_v63  ;;  %v3517_v58 = vadd.f32 %v5956_v21, %v7749_v25  ;;  %v4158_v43 = vadd.f32 %v6056_v56, %v7179_v0  ;;  %v7751_v63 = vld [vmem:[#allocation10_spill] sm:$0xff] }
 0x1e2   : > { %v4219_v7 = vmax.f32 %v3514_v2, %v4155_v49  ;;  %v3221_v32 = vpop.f32.mrf.mxu0  ;;  %v3862_v19 = vpop.f32.mrf.mxu1 }
 0x1e3   : > { %4384 = vst.msk [vmem:[%s7411_s17 + $0x8] sm:$0xff] %vm4382_vm2, %v4351_v18  ;;  %v4350_v13 = vmax.f32 %v4318_v4, 0.0  ;;  %v4222_v12 = vmax.f32 %v3517_v58, %v4158_v43  ;;  %v3516_v9 = vadd.f32 %v3221_v32, %v7750_v16  ;;  %v4157_v36 = vadd.f32 %v3862_v19, %v7186_v38  ;;  %v7752_v4 = vld [vmem:[#allocation11_spill] sm:$0xff]  ;;  %v7753_v19 = vld [vmem:[#allocation12_spill] sm:$0xff] }
 0x1e4   : > { %v5959_v48 = vpop.f32.mrf.mxu0  ;;  %v6059_v23 = vpop.f32.mrf.mxu1 }
 0x1e5   : > { %4383 = vst.msk [vmem:[%s7411_s17] sm:$0xff] %vm4382_vm2, %v4350_v13  ;;  %v4282_v52 = vmax.f32 %v4220_v17, %v4222_v12  ;;  %v4221_v15 = vmax.f32 %v3516_v9, %v4157_v36  ;;  %v3519_v34 = vadd.f32 %v5959_v48, %v7751_v63  ;;  %v4160_v0 = vadd.f32 %v6059_v23, %v7191_v8  ;;  %v7754_v48 = vld [vmem:[#allocation13_spill] sm:$0xff] }
 0x1e6   : > { %v3231_v2 = vpop.f32.mrf.mxu0  ;;  %v3872_v49 = vpop.f32.mrf.mxu1 }
 0x1e7   : > { %v4321_v21 = vadd.f32 %v7401_v29, %v4282_v52  ;;  %v4281_v56 = vmax.f32 %v4219_v7, %v4221_v15  ;;  %v4224_v18 = vmax.f32 %v3519_v34, %v4160_v0  ;;  %v3518_v25 = vadd.f32 %v3231_v2, %v7752_v4  ;;  %v7755_v0 = vld [vmem:[#allocation14_spill] sm:$0xff] }
 0x1e8   : > { %v4159_v38 = vadd.f32 %v3872_v49, %v7198_v40  ;;  %v5962_v58 = vpop.f32.mrf.mxu0  ;;  %v6062_v43 = vpop.f32.mrf.mxu1 }
 0x1e9   : > { %v4353_v17 = vmax.f32 %v4321_v21, 0.0  ;;  %v4320_v32 = vadd.f32 %v7401_v29, %v4281_v56  ;;  %v3521_v13 = vadd.f32 %v5962_v58, %v7753_v19  ;;  %v4162_v8 = vadd.f32 %v6062_v43, %v7203_v53  ;;  %v7757_v19 = vld [vmem:[#allocation16_spill] sm:$0xff] }
 0x1ea   : > { %v4223_v12 = vmax.f32 %v3518_v25, %v4159_v38  ;;  %v3241_v16 = vpop.f32.mrf.mxu0  ;;  %v3882_v9 = vpop.f32.mrf.mxu1  ;;  %v7756_v38 = vld [vmem:[#allocation15_spill] sm:$0xff] }
 0x1eb   : > { %4386 = vst.msk [vmem:[%s7411_s17 + $0x18] sm:$0xff] %vm4382_vm2, %v4353_v17  ;;  %v4352_v7 = vmax.f32 %v4320_v32, 0.0  ;;  %v4226_v36 = vmax.f32 %v3521_v13, %v4162_v8  ;;  %v3520_v23 = vadd.f32 %v3241_v16, %v7754_v48  ;;  %v4161_v40 = vadd.f32 %v3882_v9, %v7210_v42 }
 0x1ec   : > { %v5965_v52 = vpop.f32.mrf.mxu0  ;;  %v6065_v15 = vpop.f32.mrf.mxu1 }
 0x1ed   : > { %4385 = vst.msk [vmem:[%s7411_s17 + $0x10] sm:$0xff] %vm4382_vm2, %v4352_v7  ;;  %v4284_v63 = vmax.f32 %v4224_v18, %v4226_v36  ;;  %v4225_v34 = vmax.f32 %v3520_v23, %v4161_v40  ;;  %v3523_v2 = vadd.f32 %v5965_v52, %v7755_v0  ;;  %v4164_v53 = vadd.f32 %v6065_v15, %v7215_v5  ;;  %v7758_v36 = vld [vmem:[#allocation17_spill] sm:$0xff] }
 0x1ee   : > { %v3251_v49 = vpop.f32.mrf.mxu0  ;;  %v3892_v21 = vpop.f32.mrf.mxu1 }
 0x1ef   : > { %v4323_v56 = vadd.f32 %v7401_v29, %v4284_v63  ;;  %v4283_v4 = vmax.f32 %v4223_v12, %v4225_v34  ;;  %v4228_v25 = vmax.f32 %v3523_v2, %v4164_v53  ;;  %v3522_v58 = vadd.f32 %v3251_v49, %v7756_v38  ;;  %v7759_v63 = vld [vmem:[#allocation18_spill] sm:$0xff] }
 0x1f0   : > { %v4163_v42 = vadd.f32 %v3892_v21, %v7222_v44  ;;  %v5968_v43 = vpop.f32.mrf.mxu0  ;;  %v6068_v17 = vpop.f32.mrf.mxu1 }
 0x1f1   : > { %v4355_v18 = vmax.f32 %v4323_v56, 0.0  ;;  %v4322_v32 = vadd.f32 %v7401_v29, %v4283_v4  ;;  %v3525_v13 = vadd.f32 %v5968_v43, %v7757_v19  ;;  %v4166_v5 = vadd.f32 %v6068_v17, %v7227_v62  ;;  %v7760_v56 = vld [vmem:[#allocation20_spill] sm:$0xff]  ;;  %v7761_v43 = vld [vmem:[#allocation21_spill] sm:$0xff] }
 0x1f2   : > { %v4227_v8 = vmax.f32 %v3522_v58, %v4163_v42  ;;  %v3261_v16 = vpop.f32.mrf.mxu0  ;;  %v3902_v9 = vpop.f32.mrf.mxu1 }
 0x1f3   : > { %4388 = vst.msk [vmem:[%s7411_s17 + $0x28] sm:$0xff] %vm4382_vm2, %v4355_v18  ;;  %v4354_v12 = vmax.f32 %v4322_v32, 0.0  ;;  %v4230_v7 = vmax.f32 %v3525_v13, %v4166_v5  ;;  %v3524_v48 = vadd.f32 %v3261_v16, %v7758_v36  ;;  %v4165_v44 = vadd.f32 %v3902_v9, %v7234_v51 }
 0x1f4   : > { %v5971_v23 = vpop.f32.mrf.mxu0  ;;  %v6071_v40 = vpop.f32.mrf.mxu1 }
 0x1f5   : > { %4387 = vst.msk [vmem:[%s7411_s17 + $0x20] sm:$0xff] %vm4382_vm2, %v4354_v12  ;;  %v4286_v52 = vmax.f32 %v4228_v25, %v4230_v7  ;;  %v4229_v15 = vmax.f32 %v3524_v48, %v4165_v44  ;;  %v3527_v34 = vadd.f32 %v5971_v23, %v7759_v63  ;;  %v4168_v62 = vadd.f32 %v6071_v40, %v7239_v54  ;;  %v7763_v48 = vld [vmem:[#allocation25_spill] sm:$0xff] }
 0x1f6   : > { %v3271_v0 = vpop.f32.mrf.mxu0  ;;  %v3912_v2 = vpop.f32.mrf.mxu1 }
 0x1f7   : > { %v4325_v53 = vadd.f32 %v7401_v29, %v4286_v52  ;;  %v4285_v49 = vmax.f32 %v4227_v8, %v4229_v15  ;;  %v4232_v21 = vmax.f32 %v3527_v34, %v4168_v62  ;;  %v3526_v4 = vadd.f32 %v3271_v0, %v7760_v56  ;;  %v7762_v8 = vld [vmem:[#allocation24_spill] sm:$0xff] }
 0x1f8   : > { %v4167_v51 = vadd.f32 %v3912_v2, %v7246_v1  ;;  %v5974_v38 = vpop.f32.mrf.mxu0  ;;  %v6074_v58 = vpop.f32.mrf.mxu1  ;;  %v7764_v34 = vld [vmem:[#allocation28_spill] sm:$0xff] }
 0x1f9   : > { %v4357_v25 = vmax.f32 %v4325_v53, 0.0  ;;  %v4324_v42 = vadd.f32 %v7401_v29, %v4285_v49  ;;  %v3529_v17 = vadd.f32 %v5974_v38, %v7761_v43  ;;  %v4170_v54 = vadd.f32 %v6074_v58, %v7251_v47 }
 0x1fa   : > { %v4231_v18 = vmax.f32 %v3526_v4, %v4167_v51  ;;  %v3281_v32 = vpop.f32.mrf.mxu0  ;;  %v3922_v19 = vpop.f32.mrf.mxu1 }
 0x1fb   : > { %4390 = vst.msk [vmem:[%s7411_s17 + $0x38] sm:$0xff] %vm4382_vm2, %v4357_v25  ;;  %v4356_v13 = vmax.f32 %v4324_v42, 0.0  ;;  %v4234_v5 = vmax.f32 %v3529_v17, %v4170_v54  ;;  %v3528_v16 = vadd.f32 %v3281_v32, %v7762_v8  ;;  %v4169_v1 = vadd.f32 %v3922_v19, %v7258_v41  ;;  %v7766_v42 = vld [vmem:[#allocation32_spill] sm:$0xff]  ;;  %v7767_v19 = vld [vmem:[#allocation33_spill] sm:$0xff] }
 0x1fc   : > { %v5977_v9 = vpop.f32.mrf.mxu0  ;;  %v6077_v12 = vpop.f32.mrf.mxu1 }
 0x1fd   : > { %4389 = vst.msk [vmem:[%s7411_s17 + $0x30] sm:$0xff] %vm4382_vm2, %v4356_v13  ;;  %v4288_v7 = vmax.f32 %v4232_v21, %v4234_v5  ;;  %v4233_v36 = vmax.f32 %v3528_v16, %v4169_v1  ;;  %v3531_v44 = vadd.f32 %v5977_v9, %v7763_v48  ;;  %v4172_v47 = vadd.f32 %v6077_v12, %v7263_v30  ;;  %v7765_v21 = vld [vmem:[#allocation29_spill] sm:$0xff]  ;;  %v7768_v12 = vld [vmem:[#allocation34_spill] sm:$0xff] }
 0x1fe   : > { %v3291_v23 = vpop.f32.mrf.mxu0  ;;  %v3932_v40 = vpop.f32.mrf.mxu1 }
 0x1ff   : > { %v4327_v52 = vadd.f32 %v7401_v29, %v4288_v7  ;;  %v4287_v15 = vmax.f32 %v4231_v18, %v4233_v36  ;;  %v4236_v63 = vmax.f32 %v3531_v44, %v4172_v47  ;;  %v3530_v62 = vadd.f32 %v3291_v23, %v7764_v34  ;;  %v7769_v23 = vld [vmem:[#allocation35_spill] sm:$0xff] }
 0x200   : > { %v4171_v41 = vadd.f32 %v3932_v40, %v7270_v39  ;;  %v5980_v0 = vpop.f32.mrf.mxu0  ;;  %v6080_v2 = vpop.f32.mrf.mxu1 }
 0x201   : > { %v4359_v53 = vmax.f32 %v4327_v52, 0.0  ;;  %v4326_v49 = vadd.f32 %v7401_v29, %v4287_v15  ;;  %v3533_v56 = vadd.f32 %v5980_v0, %v7765_v21  ;;  %v4174_v30 = vadd.f32 %v6080_v2, %v7275_v28 }
 0x202   : > { %v4235_v4 = vmax.f32 %v3530_v62, %v4171_v41  ;;  %v3301_v51 = vpop.f32.mrf.mxu0  ;;  %v3942_v38 = vpop.f32.mrf.mxu1  ;;  %v7770_v41 = vld [vmem:[#allocation37_spill] sm:$0xff] }
 0x203   : > { %4392 = vst.msk [vmem:[%s7411_s17 + $0x48] sm:$0xff] %vm4382_vm2, %v4359_v53  ;;  %v4358_v58 = vmax.f32 %v4326_v49, 0.0  ;;  %v4238_v25 = vmax.f32 %v3533_v56, %v4174_v30  ;;  %v3532_v43 = vadd.f32 %v3301_v51, %v7766_v42  ;;  %v4173_v39 = vadd.f32 %v3942_v38, %v7282_v37  ;;  %v7771_v56 = vld [vmem:[#allocation38_spill] sm:$0xff]  ;;  %v7772_v42 = vld [vmem:[#allocation40_spill] sm:$0xff] }
 0x204   : > { %v5983_v17 = vpop.f32.mrf.mxu0  ;;  %v6083_v54 = vpop.f32.mrf.mxu1 }
 0x205   : > { %4391 = vst.msk [vmem:[%s7411_s17 + $0x40] sm:$0xff] %vm4382_vm2, %v4358_v58  ;;  %v4290_v18 = vmax.f32 %v4236_v63, %v4238_v25  ;;  %v4237_v32 = vmax.f32 %v3532_v43, %v4173_v39  ;;  %v3535_v13 = vadd.f32 %v5983_v17, %v7767_v19  ;;  %v4176_v28 = vadd.f32 %v6083_v54, %v7287_v26 }
 0x206   : > { %v3311_v5 = vpop.f32.mrf.mxu0  ;;  %v3952_v8 = vpop.f32.mrf.mxu1 }
 0x207   : > { %v4329_v16 = vadd.f32 %v7401_v29, %v4290_v18  ;;  %v4289_v1 = vmax.f32 %v4235_v4, %v4237_v32  ;;  %v4240_v9 = vmax.f32 %v3535_v13, %v4176_v28  ;;  %v3534_v7 = vadd.f32 %v3311_v5, %v7768_v12 }
 0x208   : > { %v4175_v37 = vadd.f32 %v3952_v8, %v7294_v59  ;;  %v5986_v36 = vpop.f32.mrf.mxu0  ;;  %v6086_v48 = vpop.f32.mrf.mxu1 }
 0x209   : > { %v4361_v44 = vmax.f32 %v4329_v16, 0.0  ;;  %v4328_v47 = vadd.f32 %v7401_v29, %v4289_v1  ;;  %v3537_v40 = vadd.f32 %v5986_v36, %v7769_v23  ;;  %v4178_v26 = vadd.f32 %v6086_v48, %v7299_v55  ;;  %v7773_v16 = vld [vmem:[#allocation41_spill] sm:$0xff] }
 0x20a   : > { %v4239_v52 = vmax.f32 %v3534_v7, %v4175_v37  ;;  %v3321_v15 = vpop.f32.mrf.mxu0  ;;  %v3962_v63 = vpop.f32.mrf.mxu1 }
 0x20b   : > { %4394 = vst.msk [vmem:[%s7411_s17 + $0x58] sm:$0xff] %vm4382_vm2, %v4361_v44  ;;  %v4360_v34 = vmax.f32 %v4328_v47, 0.0  ;;  %v4242_v62 = vmax.f32 %v3537_v40, %v4178_v26  ;;  %v3536_v0 = vadd.f32 %v3321_v15, %v7770_v41  ;;  %v4177_v59 = vadd.f32 %v3962_v63, %v7307_v35 }
 0x20c   : > { %v5989_v2 = vpop.f32.mrf.mxu0  ;;  %v6089_v53 = vpop.f32.mrf.mxu1 }
 0x20d   : > { %4393 = vst.msk [vmem:[%s7411_s17 + $0x50] sm:$0xff] %vm4382_vm2, %v4360_v34  ;;  %v4292_v49 = vmax.f32 %v4240_v9, %v4242_v62  ;;  %v4241_v21 = vmax.f32 %v3536_v0, %v4177_v59  ;;  %v3539_v30 = vadd.f32 %v5989_v2, %v7771_v56  ;;  %v4180_v55 = vadd.f32 %v6089_v53, %v7312_v3 }
 0x20e   : > { %v3331_v4 = vpop.f32.mrf.mxu0  ;;  %v3972_v51 = vpop.f32.mrf.mxu1 }
 0x20f   : > { %v4331_v38 = vadd.f32 %v7401_v29, %v4292_v49  ;;  %v4291_v58 = vmax.f32 %v4239_v52, %v4241_v21  ;;  %v4244_v25 = vmax.f32 %v3539_v30, %v4180_v55  ;;  %v3538_v43 = vadd.f32 %v3331_v4, %v7772_v42 }
 0x210   : > { %v4179_v35 = vadd.f32 %v3972_v51, %v7318_v20  ;;  %v5992_v39 = vpop.f32.mrf.mxu0  ;;  %v6092_v17 = vpop.f32.mrf.mxu1 }
 0x211   : > { %v4363_v54 = vmax.f32 %v4331_v38, 0.0  ;;  %v4330_v18 = vadd.f32 %v7401_v29, %v4291_v58  ;;  %v3541_v32 = vadd.f32 %v5992_v39, %v6939_v61  ;;  %v4182_v3 = vadd.f32 %v6092_v17, %v7322_v24 }
 0x212   : > { %v4243_v19 = vmax.f32 %v3538_v43, %v4179_v35  ;;  %v3341_v13 = vpop.f32.mrf.mxu0  ;;  %v3982_v28 = vpop.f32.mrf.mxu1 }
 0x213   : > { %4396 = vst.msk [vmem:[%s7411_s17 + $0x68] sm:$0xff] %vm4382_vm2, %v4363_v54  ;;  %v4362_v5 = vmax.f32 %v4330_v18, 0.0  ;;  %v4246_v8 = vmax.f32 %v3541_v32, %v4182_v3  ;;  %v3540_v1 = vadd.f32 %v3341_v13, %v7773_v16  ;;  %v4181_v20 = vadd.f32 %v3982_v28, %v7324_v50  ;;  %v7778_v16 = vld [vmem:[#allocation44_spill] sm:$0xff] }
 0x214   : > { %v5995_v9 = vpop.f32.mrf.mxu0  ;;  %v6095_v12 = vpop.f32.mrf.mxu1 }
 0x215   : > { %4395 = vst.msk [vmem:[%s7411_s17 + $0x60] sm:$0xff] %vm4382_vm2, %v4362_v5  ;;  %v4294_v7 = vmax.f32 %v4244_v25, %v4246_v8  ;;  %v4245_v37 = vmax.f32 %v3540_v1, %v4181_v20  ;;  %v3543_v61 = vadd.f32 %v5995_v9, %v6951_v57  ;;  %v4184_v24 = vadd.f32 %v6095_v12, %v7326_v31  ;;  %v7779_v20 = vld [vmem:[#allocation23_spill] sm:$0xff] }
 0x216   : > { %v3351_v36 = vpop.f32.mrf.mxu0  ;;  %v3992_v48 = vpop.f32.mrf.mxu1 }
 0x217   : > { %v4333_v44 = vadd.f32 %v7401_v29, %v4294_v7  ;;  %v4293_v47 = vmax.f32 %v4243_v19, %v4245_v37  ;;  %v4248_v23 = vmax.f32 %v3543_v61, %v4184_v24  ;;  %v3542_v40 = vadd.f32 %v3351_v36, %v6958_v6  ;;  %v7780_v36 = vld [vmem:[#allocation45_spill] sm:$0xff] }
 0x218   : > { %v4183_v50 = vadd.f32 %v3992_v48, %v7328_v33  ;;  %v5998_v26 = vpop.f32.mrf.mxu0  ;;  %v6098_v52 = vpop.f32.mrf.mxu1 }
 0x219   : > { %v4365_v15 = vmax.f32 %v4333_v44, 0.0  ;;  %v4332_v63 = vadd.f32 %v7401_v29, %v4293_v47  ;;  %v3545_v57 = vadd.f32 %v5998_v26, %v6963_v14  ;;  %v4186_v31 = vadd.f32 %v6098_v52, %v7330_v27  ;;  %v7781_v44 = vld [vmem:[#allocation26_spill] sm:$0xff] }
 0x21a   : > { %v4247_v34 = vmax.f32 %v3542_v40, %v4183_v50  ;;  %v3361_v62 = vpop.f32.mrf.mxu0  ;;  %v4002_v41 = vpop.f32.mrf.mxu1  ;;  %v7782_v52 = vld [vmem:[#allocation46_spill] sm:$0xff] }
 0x21b   : > { %4398 = vst.msk [vmem:[%s7411_s17 + $0x78] sm:$0xff] %vm4382_vm2, %v4365_v15  ;;  %v4364_v0 = vmax.f32 %v4332_v63, 0.0  ;;  %v4250_v59 = vmax.f32 %v3545_v57, %v4186_v31  ;;  %v3544_v6 = vadd.f32 %v3361_v62, %v6970_v45  ;;  %v4185_v33 = vadd.f32 %v4002_v41, %v7332_v46  ;;  %v7783_v63 = vld [vmem:[#allocation27_spill] sm:$0xff] }
 0x21c   : > { %v6001_v2 = vpop.f32.mrf.mxu0  ;;  %v6101_v53 = vpop.f32.mrf.mxu1 }
 0x21d   : > { %4397 = vst.msk [vmem:[%s7411_s17 + $0x70] sm:$0xff] %vm4382_vm2, %v4364_v0  ;;  %v4296_v49 = vmax.f32 %v4248_v23, %v4250_v59  ;;  %v4249_v21 = vmax.f32 %v3544_v6, %v4185_v33  ;;  %v3547_v14 = vadd.f32 %v6001_v2, %v6975_v11  ;;  %v4188_v27 = vadd.f32 %v6101_v53, %v7334_v22  ;;  %v7774_v11 = vld [vmem:[#allocation42_spill] sm:$0xff]  ;;  %v7775_v22 = vld [vmem:[#allocation19_spill] sm:$0xff] }
 0x21e   : > { %v3371_v56 = vpop.f32.mrf.mxu0  ;;  %v4012_v30 = vpop.f32.mrf.mxu1  ;;  %v7784_v59 = vld [vmem:[#allocation47_spill] sm:$0xff]  ;;  %v7785_v33 = vld [vmem:[#allocation30_spill] sm:$0xff] }
 0x21f   : > { %v4335_v55 = vadd.f32 %v7401_v29, %v4296_v49  ;;  %v4295_v4 = vmax.f32 %v4247_v34, %v4249_v21  ;;  %v4252_v51 = vmax.f32 %v3547_v14, %v4188_v27  ;;  %v3546_v45 = vadd.f32 %v3371_v56, %v6982_v60  ;;  %v7776_v60 = vld [vmem:[#allocation43_spill] sm:$0xff]  ;;  %v7786_v27 = vld [vmem:[#allocation48_spill] sm:$0xff] }
 0x220   : > { %v4187_v46 = vadd.f32 %v4012_v30, %v7336_v10  ;;  %v6004_v38 = vpop.f32.mrf.mxu0  ;;  %v6104_v58 = vpop.f32.mrf.mxu1  ;;  %v7777_v10 = vld [vmem:[#allocation22_spill] sm:$0xff]  ;;  %v7787_v30 = vld [vmem:[#allocation31_spill] sm:$0xff] }
 0x221   : > { %v4367_v25 = vmax.f32 %v4335_v55, 0.0  ;;  %v4334_v42 = vadd.f32 %v7401_v29, %v4295_v4  ;;  %v3549_v43 = vadd.f32 %v6004_v38, %v7774_v11  ;;  %v4190_v35 = vadd.f32 %v6104_v58, %v7775_v22  ;;  %v7788_v58 = vld [vmem:[#allocation49_spill] sm:$0xff] }
 0x222   : > { %v4251_v39 = vmax.f32 %v3546_v45, %v4187_v46  ;;  %v3381_v17 = vpop.f32.mrf.mxu0  ;;  %v4022_v54 = vpop.f32.mrf.mxu1 }
 0x223   : > { %4400 = vst.msk [vmem:[%s7411_s17 + $0x88] sm:$0xff] %vm4382_vm2, %v4367_v25  ;;  %v4366_v18 = vmax.f32 %v4334_v42, 0.0  ;;  %v4254_v32 = vmax.f32 %v3549_v43, %v4190_v35  ;;  %v3548_v3 = vadd.f32 %v3381_v17, %v7776_v60  ;;  %v4189_v19 = vadd.f32 %v4022_v54, %v7777_v10  ;;  %v7789_v42 = vld [vmem:[#allocation36_spill] sm:$0xff]  ;;  %v7790_v17 = vld [vmem:[#allocation50_spill] sm:$0xff] }
 0x224   : > { %v6007_v13 = vpop.f32.mrf.mxu0  ;;  %v6107_v28 = vpop.f32.mrf.mxu1 }
 0x225   : > { %4399 = vst.msk [vmem:[%s7411_s17 + $0x80] sm:$0xff] %vm4382_vm2, %v4366_v18  ;;  %v4298_v5 = vmax.f32 %v4252_v51, %v4254_v32  ;;  %v4253_v8 = vmax.f32 %v3548_v3, %v4189_v19  ;;  %v3551_v1 = vadd.f32 %v6007_v13, %v7778_v16  ;;  %v4192_v9 = vadd.f32 %v6107_v28, %v7779_v20  ;;  %v7791_v18 = vld [vmem:[#allocation39_spill] sm:$0xff] }
 0x226   : > { %v3391_v12 = vpop.f32.mrf.mxu0  ;;  %v4032_v7 = vpop.f32.mrf.mxu1  ;;  %v7792_v28 = vld [vmem:[#allocation51_spill] sm:$0xff] }
 0x227   : > { %v4337_v37 = vadd.f32 %v7401_v29, %v4298_v5  ;;  %v4297_v61 = vmax.f32 %v4251_v39, %v4253_v8  ;;  %v4256_v24 = vmax.f32 %v3551_v1, %v4192_v9  ;;  %v3550_v48 = vadd.f32 %v3391_v12, %v7780_v36  ;;  %v7793_v8 = vld [vmem:[#allocation68_spill] sm:$0xff] }
 0x228   : > { %v4191_v47 = vadd.f32 %v4032_v7, %v7781_v44  ;;  %v6010_v23 = vpop.f32.mrf.mxu0  ;;  %v6110_v40 = vpop.f32.mrf.mxu1  ;;  %v7794_v7 = vld [vmem:[#allocation52_spill] sm:$0xff] }
 0x229   : > { %v4369_v50 = vmax.f32 %v4337_v37, 0.0  ;;  %v4336_v26 = vadd.f32 %v7401_v29, %v4297_v61  ;;  %v3553_v15 = vadd.f32 %v6010_v23, %v7782_v52  ;;  %v4194_v57 = vadd.f32 %v6110_v40, %v7783_v63  ;;  %v7795_v61 = vld [vmem:[#allocation69_spill] sm:$0xff] }
 0x22a   : > { %v4255_v31 = vmax.f32 %v3550_v48, %v4191_v47  ;;  %v3401_v34 = vpop.f32.mrf.mxu0  ;;  %v4042_v62 = vpop.f32.mrf.mxu1  ;;  %v7796_v40 = vld [vmem:[#allocation53_spill] sm:$0xff] }
 0x22b   : > { %4402 = vst.msk [vmem:[%s7411_s17 + $0x98] sm:$0xff] %vm4382_vm2, %v4369_v50  ;;  %v4368_v41 = vmax.f32 %v4336_v26, 0.0  ;;  %v4258_v0 = vmax.f32 %v3553_v15, %v4194_v57  ;;  %v3552_v6 = vadd.f32 %v3401_v34, %v7784_v59  ;;  %v4193_v2 = vadd.f32 %v4042_v62, %v7785_v33  ;;  %v7797_v26 = vld [vmem:[#allocation70_spill] sm:$0xff] }
 0x22c   : > { %v6013_v53 = vpop.f32.mrf.mxu0  ;;  %v6113_v49 = vpop.f32.mrf.mxu1  ;;  %v7798_v34 = vld [vmem:[#allocation54_spill] sm:$0xff] }
 0x22d   : > { %4401 = vst.msk [vmem:[%s7411_s17 + $0x90] sm:$0xff] %vm4382_vm2, %v4368_v41  ;;  %v4300_v21 = vmax.f32 %v4256_v24, %v4258_v0  ;;  %v4257_v14 = vmax.f32 %v3552_v6, %v4193_v2  ;;  %v3555_v56 = vadd.f32 %v6013_v53, %v7786_v27  ;;  %v4196_v55 = vadd.f32 %v6113_v49, %v7787_v30  ;;  %v7799_v41 = vld [vmem:[#allocation71_spill] sm:$0xff] }
 0x22e   : > { %v3411_v4 = vpop.f32.mrf.mxu0  ;;  %v4052_v51 = vpop.f32.mrf.mxu1  ;;  %v7800_v49 = vld [vmem:[#allocation55_spill] sm:$0xff] }
 0x22f   : > { %v4339_v45 = vadd.f32 %v7401_v29, %v4300_v21  ;;  %v4299_v46 = vmax.f32 %v4255_v31, %v4257_v14  ;;  %v4260_v38 = vmax.f32 %v3555_v56, %v4196_v55  ;;  %v3554_v25 = vadd.f32 %v3411_v4, %v7788_v58  ;;  %v7801_v14 = vld [vmem:[#allocation72_spill] sm:$0xff] }
 0x230   : > { %v4195_v11 = vadd.f32 %v4052_v51, %v7789_v42  ;;  %v6016_v43 = vpop.f32.mrf.mxu0  ;;  %v6116_v22 = vpop.f32.mrf.mxu1  ;;  %v7802_v51 = vld [vmem:[#allocation56_spill] sm:$0xff] }
 0x231   : > { %v4371_v35 = vmax.f32 %v4339_v45, 0.0  ;;  %v4338_v39 = vadd.f32 %v7401_v29, %v4299_v46  ;;  %v3557_v54 = vadd.f32 %v6016_v43, %v7790_v17  ;;  %v4198_v32 = vadd.f32 %v6116_v22, %v7791_v18  ;;  %v7803_v46 = vld [vmem:[#allocation73_spill] sm:$0xff] }
 0x232   : > { %v4259_v60 = vmax.f32 %v3554_v25, %v4195_v11  ;;  %v3421_v3 = vpop.f32.mrf.mxu0  ;;  %v4062_v10 = vpop.f32.mrf.mxu1  ;;  %v7804_v22 = vld [vmem:[#allocation57_spill] sm:$0xff] }
 0x233   : > { %4404 = vst.msk [vmem:[%s7411_s17 + $0xa8] sm:$0xff] %vm4382_vm2, %v4371_v35  ;;  %v4370_v19 = vmax.f32 %v4338_v39, 0.0  ;;  %v4262_v13 = vmax.f32 %v3557_v54, %v4198_v32  ;;  %v3556_v5 = vadd.f32 %v3421_v3, %v7792_v28  ;;  %v4197_v16 = vadd.f32 %v4062_v10, %v7793_v8  ;;  %v7805_v39 = vld [vmem:[#allocation74_spill] sm:$0xff] }
 0x234   : > { %v6019_v1 = vpop.f32.mrf.mxu0  ;;  %v6119_v20 = vpop.f32.mrf.mxu1  ;;  %v7806_v3 = vld [vmem:[#allocation58_spill] sm:$0xff] }
 0x235   : > { %4403 = vst.msk [vmem:[%s7411_s17 + $0xa0] sm:$0xff] %vm4382_vm2, %v4370_v19  ;;  %v4302_v9 = vmax.f32 %v4260_v38, %v4262_v13  ;;  %v4261_v12 = vmax.f32 %v3556_v5, %v4197_v16  ;;  %v3559_v37 = vadd.f32 %v6019_v1, %v7794_v7  ;;  %v4200_v24 = vadd.f32 %v6119_v20, %v7795_v61  ;;  %v7807_v19 = vld [vmem:[#allocation75_spill] sm:$0xff] }
 0x236   : > { %v3431_v36 = vpop.f32.mrf.mxu0  ;;  %v4072_v48 = vpop.f32.mrf.mxu1  ;;  %v7808_v20 = vld [vmem:[#allocation59_spill] sm:$0xff] }
 0x237   : > { %v4341_v44 = vadd.f32 %v7401_v29, %v4302_v9  ;;  %v4301_v47 = vmax.f32 %v4259_v60, %v4261_v12  ;;  %v4264_v23 = vmax.f32 %v3559_v37, %v4200_v24  ;;  %v3558_v50 = vadd.f32 %v3431_v36, %v7796_v40  ;;  %v7809_v12 = vld [vmem:[#allocation76_spill] sm:$0xff] }
 0x238   : > { %v4199_v52 = vadd.f32 %v4072_v48, %v7797_v26  ;;  %v6022_v15 = vpop.f32.mrf.mxu0  ;;  %v6122_v63 = vpop.f32.mrf.mxu1  ;;  %v7810_v48 = vld [vmem:[#allocation60_spill] sm:$0xff] }
 0x239   : > { %v4373_v57 = vmax.f32 %v4341_v44, 0.0  ;;  %v4340_v31 = vadd.f32 %v7401_v29, %v4301_v47  ;;  %v3561_v62 = vadd.f32 %v6022_v15, %v7798_v34  ;;  %v4202_v0 = vadd.f32 %v6122_v63, %v7799_v41  ;;  %v7811_v47 = vld [vmem:[#allocation77_spill] sm:$0xff] }
 0x23a   : > { %v4263_v59 = vmax.f32 %v3558_v50, %v4199_v52  ;;  %v3441_v6 = vpop.f32.mrf.mxu0  ;;  %v4082_v33 = vpop.f32.mrf.mxu1  ;;  %v7812_v63 = vld [vmem:[#allocation61_spill] sm:$0xff] }
 0x23b   : > { %4406 = vst.msk [vmem:[%s7411_s17 + $0xb8] sm:$0xff] %vm4382_vm2, %v4373_v57  ;;  %v4372_v2 = vmax.f32 %v4340_v31, 0.0  ;;  %v4266_v53 = vmax.f32 %v3561_v62, %v4202_v0  ;;  %v3560_v21 = vadd.f32 %v3441_v6, %v7800_v49  ;;  %v4201_v27 = vadd.f32 %v4082_v33, %v7801_v14  ;;  %v7813_v31 = vld [vmem:[#allocation78_spill] sm:$0xff] }
 0x23c   : > { %v6025_v56 = vpop.f32.mrf.mxu0  ;;  %v6125_v30 = vpop.f32.mrf.mxu1  ;;  %v7814_v6 = vld [vmem:[#allocation62_spill] sm:$0xff] }
 0x23d   : > { %4405 = vst.msk [vmem:[%s7411_s17 + $0xb0] sm:$0xff] %vm4382_vm2, %v4372_v2  ;;  %v4304_v55 = vmax.f32 %v4264_v23, %v4266_v53  ;;  %v4265_v4 = vmax.f32 %v3560_v21, %v4201_v27  ;;  %v3563_v45 = vadd.f32 %v6025_v56, %v7802_v51  ;;  %v4204_v38 = vadd.f32 %v6125_v30, %v7803_v46  ;;  %v7815_v2 = vld [vmem:[#allocation79_spill] sm:$0xff] }
 0x23e   : > { %v3451_v58 = vpop.f32.mrf.mxu0  ;;  %v4092_v25 = vpop.f32.mrf.mxu1  ;;  %v7816_v30 = vld [vmem:[#allocation63_spill] sm:$0xff] }
 0x23f   : > { %v4343_v42 = vadd.f32 %v7401_v29, %v4304_v55  ;;  %v4303_v11 = vmax.f32 %v4263_v59, %v4265_v4  ;;  %v4268_v43 = vmax.f32 %v3563_v45, %v4204_v38  ;;  %v3562_v35 = vadd.f32 %v3451_v58, %v7804_v22  ;;  %v7817_v4 = vld [vmem:[#allocation80_spill] sm:$0xff] }
 0x240   : > { %v4203_v17 = vadd.f32 %v4092_v25, %v7805_v39  ;;  %v6028_v54 = vpop.f32.mrf.mxu0  ;;  %v6128_v18 = vpop.f32.mrf.mxu1  ;;  %v7818_v25 = vld [vmem:[#allocation64_spill] sm:$0xff] }
 0x241   : > { %v4375_v32 = vmax.f32 %v4343_v42, 0.0  ;;  %v4342_v60 = vadd.f32 %v7401_v29, %v4303_v11  ;;  %v3565_v10 = vadd.f32 %v6028_v54, %v7806_v3  ;;  %v4206_v13 = vadd.f32 %v6128_v18, %v7807_v19  ;;  %v7819_v11 = vld [vmem:[#allocation81_spill] sm:$0xff] }
 0x242   : > { %v4267_v28 = vmax.f32 %v3562_v35, %v4203_v17  ;;  %v3461_v5 = vpop.f32.mrf.mxu0  ;;  %v4102_v8 = vpop.f32.mrf.mxu1  ;;  %v7820_v18 = vld [vmem:[#allocation65_spill] sm:$0xff] }
 0x243   : > { %4408 = vst.msk [vmem:[%s7411_s17 + $0xc8] sm:$0xff] %vm4382_vm2, %v4375_v32  ;;  %v4374_v16 = vmax.f32 %v4342_v60, 0.0  ;;  %v4270_v1 = vmax.f32 %v3565_v10, %v4206_v13  ;;  %v3564_v9 = vadd.f32 %v3461_v5, %v7808_v20  ;;  %v4205_v7 = vadd.f32 %v4102_v8, %v7809_v12  ;;  %v7821_v60 = vld [vmem:[#allocation82_spill] sm:$0xff] }
 0x244   : > { %v6031_v37 = vpop.f32.mrf.mxu0  ;;  %v6131_v61 = vpop.f32.mrf.mxu1  ;;  %v7822_v5 = vld [vmem:[#allocation66_spill] sm:$0xff] }
 0x245   : > { %4407 = vst.msk [vmem:[%s7411_s17 + $0xc0] sm:$0xff] %vm4382_vm2, %v4374_v16  ;;  %v4306_v24 = vmax.f32 %v4268_v43, %v4270_v1  ;;  %v4269_v36 = vmax.f32 %v3564_v9, %v4205_v7  ;;  %v3567_v44 = vadd.f32 %v6031_v37, %v7810_v48  ;;  %v4208_v23 = vadd.f32 %v6131_v61, %v7811_v47  ;;  %v7823_v16 = vld [vmem:[#allocation83_spill] sm:$0xff] }
 0x246   : > { %v3471_v40 = vpop.f32.mrf.mxu0  ;;  %v4112_v50 = vpop.f32.mrf.mxu1  ;;  %v7824_v61 = vld [vmem:[#allocation67_spill] sm:$0xff] }
 0x247   : > { %v4345_v26 = vadd.f32 %v7401_v29, %v4306_v24  ;;  %v4305_v52 = vmax.f32 %v4267_v28, %v4269_v36  ;;  %v4272_v15 = vmax.f32 %v3567_v44, %v4208_v23  ;;  %v3566_v57 = vadd.f32 %v3471_v40, %v7812_v63  ;;  %v7825_v36 = vld [vmem:[#allocation84_spill] sm:$0xff] }
 0x248   : > { %v4207_v34 = vadd.f32 %v4112_v50, %v7813_v31  ;;  %v6034_v62 = vpop.f32.mrf.mxu0  ;;  %v6134_v41 = vpop.f32.mrf.mxu1 }
 0x249   : > { %v4377_v0 = vmax.f32 %v4345_v26, 0.0  ;;  %v4344_v59 = vadd.f32 %v7401_v29, %v4305_v52  ;;  %v3569_v33 = vadd.f32 %v6034_v62, %v7814_v6  ;;  %v4210_v53 = vadd.f32 %v6134_v41, %v7815_v2 }
 0x24a   : > { %v4271_v49 = vmax.f32 %v3566_v57, %v4207_v34  ;;  %v3481_v21 = vpop.f32.mrf.mxu0  ;;  %v4122_v14 = vpop.f32.mrf.mxu1 }
 0x24b   : > { %4410 = vst.msk [vmem:[%s7411_s17 + $0xd8] sm:$0xff] %vm4382_vm2, %v4377_v0  ;;  %v4376_v27 = vmax.f32 %v4344_v59, 0.0  ;;  %v4274_v56 = vmax.f32 %v3569_v33, %v4210_v53  ;;  %v3568_v55 = vadd.f32 %v3481_v21, %v7816_v30  ;;  %v4209_v51 = vadd.f32 %v4122_v14, %v7817_v4 }
 0x24c   : > { %v6037_v45 = vpop.f32.mrf.mxu0  ;;  %v6137_v46 = vpop.f32.mrf.mxu1 }
 0x24d   : > { %4409 = vst.msk [vmem:[%s7411_s17 + $0xd0] sm:$0xff] %vm4382_vm2, %v4376_v27  ;;  %v4308_v38 = vmax.f32 %v4272_v15, %v4274_v56  ;;  %v4273_v58 = vmax.f32 %v3568_v55, %v4209_v51  ;;  %v3571_v42 = vadd.f32 %v6037_v45, %v7818_v25  ;;  %v4212_v43 = vadd.f32 %v6137_v46, %v7819_v11 }
 0x24e   : > { %v3491_v22 = vpop.f32.mrf.mxu0  ;;  %v4132_v35 = vpop.f32.mrf.mxu1 }
 0x24f   : > { %v4347_v39 = vadd.f32 %v7401_v29, %v4308_v38  ;;  %v4307_v17 = vmax.f32 %v4271_v49, %v4273_v58  ;;  %v4276_v54 = vmax.f32 %v3571_v42, %v4212_v43  ;;  %v3570_v32 = vadd.f32 %v3491_v22, %v7820_v18 }
 0x250   : > { %v4211_v3 = vadd.f32 %v4132_v35, %v7821_v60  ;;  %v6040_v10 = vpop.f32.mrf.mxu0  ;;  %v6140_v19 = vpop.f32.mrf.mxu1 }
 0x251   : > { %v4379_v13 = vmax.f32 %v4347_v39, 0.0  ;;  %v4346_v28 = vadd.f32 %v7401_v29, %v4307_v17  ;;  %v3573_v8 = vadd.f32 %v6040_v10, %v7822_v5  ;;  %v4214_v1 = vadd.f32 %v6140_v19, %v7823_v16 }
 0x252   : > { %v4275_v20 = vmax.f32 %v3570_v32, %v4211_v3  ;;  %v3501_v9 = vpop.f32.mrf.mxu0  ;;  %v4142_v12 = vpop.f32.mrf.mxu1 }
 0x253   : > { %4412 = vst.msk [vmem:[%s7411_s17 + $0xe8] sm:$0xff] %vm4382_vm2, %v4379_v13  ;;  %v4378_v7 = vmax.f32 %v4346_v28, 0.0  ;;  %v4278_v37 = vmax.f32 %v3573_v8, %v4214_v1  ;;  %v3572_v24 = vadd.f32 %v3501_v9, %v7824_v61  ;;  %v4213_v48 = vadd.f32 %v4142_v12, %v7825_v36 }
 0x255   : > { %4411 = vst.msk [vmem:[%s7411_s17 + $0xe0] sm:$0xff] %vm4382_vm2, %v4378_v7  ;;  %v4310_v44 = vmax.f32 %v4276_v54, %v4278_v37  ;;  %v4277_v47 = vmax.f32 %v3572_v24, %v4213_v48 }
 0x257   : > { %v4349_v23 = vadd.f32 %v7401_v29, %v4310_v44  ;;  %v4309_v40 = vmax.f32 %v4275_v20, %v4277_v47 }
 0x259   : > { %v4381_v50 = vmax.f32 %v4349_v23, 0.0  ;;  %v4348_v26 = vadd.f32 %v7401_v29, %v4309_v40 }
 0x25b   : > { %4414 = vst.msk [vmem:[%s7411_s17 + $0xf8] sm:$0xff] %vm4382_vm2, %v4381_v50  ;;  %v4380_v52 = vmax.f32 %v4348_v26, 0.0 }
 0x25d   : > { %4413 = vst.msk [vmem:[%s7411_s17 + $0xf0] sm:$0xff] %vm4382_vm2, %v4380_v52 }
 0x25e PF: > { %s14_s15 = sadd.s32 1, %s6156_s15  }
 0x25f   : > { %p11_p4 = scmp.ge.s32.totalorder %s14_s15, 4  }
 0x261   :  { %13 = sbr.rel (!%p11_p4) target bundleno = 1 (0x1), region = 75 }

// kernel: firstmodel_forward.4
= control target key start
LH: loop header
LB: loop body
LE: loop exit
PB: predicated region body
PF: predicated region fallthrough
CT: control target
= control target key end

     0   :  { %s2130_s15 = smov 0   ;;  %s3312_s0 = inlined_call_operand.vmem [shape: f32[2,18,8,192], index: 0, kind: input, shape index: {}]   ;;  %s3313_s1 = inlined_call_operand.vmem [shape: f32[2,18,8,192], index: 1, kind: input, shape index: {}]   ;;  %s3314_s2 = inlined_call_operand.vmem [shape: f32[3,192,64], index: 2, kind: input, shape index: {}]   ;;  %s3315_s3 = inlined_call_operand.vmem [shape: f32[1,64], index: 3, kind: input, shape index: {}]   ;;  %s3316_s4 = inlined_call_operand.vmem [shape: f32[2,8,8,64], index: 4, kind: output, shape index: {}]  }
   0x1 LB: > { %s1801_s16 = sadd.s32 4294967295, %s2102_s15   ;;  %p1805_p0 = scmp.ge.s32.totalorder %s2102_s15, 1  ;;  %s2102_s15 = sphi %s2130_s15, %s14_s15  }
   0x2   : > { %p172_p1 = scmp.lt.s32.totalorder %s2102_s15, 3 }
   0x4   : > { %p173_p2 = pnand %p1805_p0, %p172_p1 }
   0x5   : > { %p203_p3 = scmp.lt.s32.totalorder (!%p173_p2), %s1801_s16, 1 }
   0x6   : > { %176 = sbr.rel (%p173_p2) target bundleno = 485 (0x1e5), region = 36 }
   0xb   : > { %v2141_v0 = vld [vmem:[%s3314_s2 + $0x138] sm:$0xff]  ;;  %v2104_v2 = vmov 0.0   ;;  %v2153_v3 = vld [vmem:[%s3314_s2 + $0x130] sm:$0xff]  ;;  %v2167_v5 = vld [vmem:[%s3314_s2 + $0x128] sm:$0xff]  ;;  %s3318_s16 = smov (!%p203_p3, %s1801_s16), 1  ;;  %vm397_vm0 = vcmask 523264  }
   0xc   : > { %v2146_v1 = vld [vmem:[%s3314_s2 + $0x78] sm:$0xff]  ;;  %446 = vmatprep.subr.mxu0 %v2104_v2  ;;  %639 = vmatprep.subr.mxu1 %v2104_v2  ;;  %v2158_v4 = vld [vmem:[%s3314_s2 + $0x70] sm:$0xff]  ;;  %v2172_v6 = vld [vmem:[%s3314_s2 + $0x68] sm:$0xff]  ;;  %s2086_s25 = smul.u32 288, %s3318_s16  ;;  %s2085_s28 = sshll.u32 %s3318_s16, 6 }
   0xd   : > { %447 = vmatpush1.msra.mxu0 %v2141_v0  ;;  %640 = vmatpush1.msra.mxu1 %v2146_v1  ;;  %v2181_v7 = vld [vmem:[%s3314_s2 + $0x120] sm:$0xff]  ;;  %v2195_v9 = vld [vmem:[%s3314_s2 + $0x118] sm:$0xff]  ;;  %v2209_v11 = vld [vmem:[%s3314_s2 + $0x110] sm:$0xff]  ;;  %s3257_s5 = scalar_lea.vmem %s3316_s4, %s2085_s28 }
   0xe   : > { %448 = vmatprep.subr.mxu0 %v2104_v2  ;;  %641 = vmatprep.subr.mxu1 %v2104_v2  ;;  %v2186_v8 = vld [vmem:[%s3314_s2 + $0x60] sm:$0xff]  ;;  %v2200_v10 = vld [vmem:[%s3314_s2 + $0x58] sm:$0xff]  ;;  %v2214_v12 = vld [vmem:[%s3314_s2 + $0x50] sm:$0xff]  ;;  %s2454_s10 = scalar_lea.vmem %s3312_s0, %s2086_s25  ;;  %s2759_s23 = scalar_lea.vmem %s3313_s1, %s2086_s25 }
   0xf   : > { %449 = vmatpush1.msra.mxu0 %v2153_v3  ;;  %642 = vmatpush1.msra.mxu1 %v2158_v4  ;;  %v2223_v13 = vld [vmem:[%s3314_s2 + $0x108] sm:$0xff]  ;;  %v2237_v15 = vld [vmem:[%s3314_s2 + $0x100] sm:$0xff]  ;;  %v2251_v17 = vld [vmem:[%s3314_s2 + $0xf8] sm:$0xff] }
  0x10   : > { %450 = vmatprep.subr.mxu0 %v2104_v2  ;;  %643 = vmatprep.subr.mxu1 %v2104_v2  ;;  %v2228_v14 = vld [vmem:[%s3314_s2 + $0x48] sm:$0xff]  ;;  %v2242_v16 = vld [vmem:[%s3314_s2 + $0x40] sm:$0xff]  ;;  %v2256_v18 = vld [vmem:[%s3314_s2 + $0x38] sm:$0xff] }
  0x11   : > { %451 = vmatpush1.msra.mxu0 %v2167_v5  ;;  %644 = vmatpush1.msra.mxu1 %v2172_v6  ;;  %v2265_v19 = vld [vmem:[%s3314_s2 + $0xf0] sm:$0xff]  ;;  %v2279_v21 = vld [vmem:[%s3314_s2 + $0xe8] sm:$0xff]  ;;  %v2293_v23 = vld [vmem:[%s3314_s2 + $0xe0] sm:$0xff] }
  0x12   : > { %452 = vmatprep.subr.mxu0 %v2104_v2  ;;  %645 = vmatprep.subr.mxu1 %v2104_v2  ;;  %v2270_v20 = vld [vmem:[%s3314_s2 + $0x30] sm:$0xff]  ;;  %v2284_v22 = vld [vmem:[%s3314_s2 + $0x28] sm:$0xff]  ;;  %v2298_v24 = vld [vmem:[%s3314_s2 + $0x20] sm:$0xff] }
  0x13   : > { %453 = vmatpush1.msra.mxu0 %v2181_v7  ;;  %646 = vmatpush1.msra.mxu1 %v2186_v8  ;;  %v2307_v25 = vld [vmem:[%s3314_s2 + $0xd8] sm:$0xff]  ;;  %v2321_v27 = vld [vmem:[%s3314_s2 + $0xd0] sm:$0xff]  ;;  %v2335_v29 = vld [vmem:[%s3314_s2 + $0xc8] sm:$0xff] }
  0x14   : > { %454 = vmatprep.subr.mxu0 %v2104_v2  ;;  %647 = vmatprep.subr.mxu1 %v2104_v2  ;;  %v2312_v26 = vld [vmem:[%s3314_s2 + $0x18] sm:$0xff]  ;;  %v2326_v28 = vld [vmem:[%s3314_s2 + $0x10] sm:$0xff]  ;;  %v2340_v30 = vld [vmem:[%s3314_s2 + $0x8] sm:$0xff] }
  0x15   : > { %455 = vmatpush1.msra.mxu0 %v2195_v9  ;;  %648 = vmatpush1.msra.mxu1 %v2200_v10  ;;  %v2349_v31 = vld [vmem:[%s3314_s2 + $0xc0] sm:$0xff]  ;;  %v2365_v33 = vld [vmem:[%s3314_s2 + $0x178] sm:$0xff]  ;;  %v2379_v35 = vld [vmem:[%s3314_s2 + $0x170] sm:$0xff] }
  0x16   : > { %456 = vmatprep.subr.mxu0 %v2104_v2  ;;  %649 = vmatprep.subr.mxu1 %v2104_v2  ;;  %v2354_v32 = vld [vmem:[%s3314_s2] sm:$0xff]  ;;  %v2370_v34 = vld [vmem:[%s3314_s2 + $0xb8] sm:$0xff]  ;;  %v2384_v36 = vld [vmem:[%s3314_s2 + $0xb0] sm:$0xff] }
  0x17   : > { %457 = vmatpush1.msra.mxu0 %v2209_v11  ;;  %650 = vmatpush1.msra.mxu1 %v2214_v12  ;;  %v2397_v37 = vld [vmem:[%s3314_s2 + $0x168] sm:$0xff]  ;;  %v2411_v39 = vld [vmem:[%s3314_s2 + $0x160] sm:$0xff]  ;;  %v2426_v41 = vld [vmem:[%s3314_s2 + $0x158] sm:$0xff] }
  0x18   : > { %458 = vmatprep.subr.mxu0 %v2104_v2  ;;  %651 = vmatprep.subr.mxu1 %v2104_v2  ;;  %v2402_v38 = vld [vmem:[%s3314_s2 + $0xa8] sm:$0xff]  ;;  %v2416_v40 = vld [vmem:[%s3314_s2 + $0xa0] sm:$0xff]  ;;  %v2431_v42 = vld [vmem:[%s3314_s2 + $0x98] sm:$0xff] }
  0x19   : > { %459 = vmatpush1.msra.mxu0 %v2223_v13  ;;  %652 = vmatpush1.msra.mxu1 %v2228_v14  ;;  %v2440_v43 = vld [vmem:[%s3314_s2 + $0x150] sm:$0xff]  ;;  %v2461_v45 = vld [vmem:[%s3314_s2 + $0x148] sm:$0xff]  ;;  %v2475_v47 = vld [vmem:[%s3314_s2 + $0x140] sm:$0xff] }
  0x1a   : > { %460 = vmatprep.subr.mxu0 %v2104_v2  ;;  %653 = vmatprep.subr.mxu1 %v2104_v2  ;;  %v2445_v44 = vld [vmem:[%s3314_s2 + $0x90] sm:$0xff]  ;;  %v2466_v46 = vld [vmem:[%s3314_s2 + $0x88] sm:$0xff]  ;;  %v1811_v48 = vld [vmem:[%s2454_s10 + $0x18] sm:$0xff] }
  0x1b   : > { %461 = vmatpush1.msra.mxu0 %v2237_v15  ;;  %654 = vmatpush1.msra.mxu1 %v2242_v16  ;;  %v2483_v49 = vld [vmem:[%s3314_s2 + $0x80] sm:$0xff]  ;;  %v219_v50 = vld [vmem:[%s2454_s10 + $0x8] sm:$0xff]  ;;  %v1810_v51 = vld [vmem:[%s2454_s10 + $0x10] sm:$0xff] }
  0x1c   : > { %462 = vmatprep.subr.mxu0 %v2104_v2  ;;  %655 = vmatprep.subr.mxu1 %v2104_v2  ;;  %v218_v52 = vld [vmem:[%s2454_s10] sm:$0xff]  ;;  %v2495_v53 = vld [vmem:[%s2454_s10 + $0x28] sm:$0xff]  ;;  %v2511_v55 = vld [vmem:[%s2454_s10 + $0x38] sm:$0xff] }
  0x1d   : > { %463 = vmatpush1.msra.mxu0 %v2251_v17  ;;  %656 = vmatpush1.msra.mxu1 %v2256_v18  ;;  %v2502_v54 = vld [vmem:[%s2454_s10 + $0x20] sm:$0xff]  ;;  %v2518_v56 = vld [vmem:[%s2454_s10 + $0x30] sm:$0xff]  ;;  %v2529_v57 = vld [vmem:[%s2454_s10 + $0x48] sm:$0xff] }
  0x1e   : > { %464 = vmatprep.subr.mxu0 %v2104_v2  ;;  %657 = vmatprep.subr.mxu1 %v2104_v2  ;;  %v2536_v58 = vld [vmem:[%s2454_s10 + $0x40] sm:$0xff]  ;;  %v2547_v59 = vld [vmem:[%s2454_s10 + $0x58] sm:$0xff]  ;;  %v2554_v60 = vld [vmem:[%s2454_s10 + $0x50] sm:$0xff] }
  0x1f   : > { %465 = vmatpush1.msra.mxu0 %v2265_v19  ;;  %658 = vmatpush1.msra.mxu1 %v2270_v20  ;;  %v2565_v61 = vld [vmem:[%s2454_s10 + $0x68] sm:$0xff]  ;;  %v2572_v62 = vld [vmem:[%s2454_s10 + $0x60] sm:$0xff]  ;;  %v2583_v63 = vld [vmem:[%s2454_s10 + $0x78] sm:$0xff] }
  0x20   : > { %466 = vmatprep.subr.mxu0 %v2104_v2  ;;  %659 = vmatprep.subr.mxu1 %v2104_v2 }
  0x21   : > { %467 = vmatpush1.msra.mxu0 %v2279_v21  ;;  %660 = vmatpush1.msra.mxu1 %v2284_v22 }
  0x22   : > { %468 = vmatprep.subr.mxu0 %v2104_v2  ;;  %661 = vmatprep.subr.mxu1 %v2104_v2 }
  0x23   : > { %469 = vmatpush1.msra.mxu0 %v2293_v23  ;;  %662 = vmatpush1.msra.mxu1 %v2298_v24 }
  0x24   : > { %470 = vmatprep.subr.mxu0 %v2104_v2  ;;  %663 = vmatprep.subr.mxu1 %v2104_v2 }
  0x25   : > { %471 = vmatpush1.msra.mxu0 %v2307_v25  ;;  %664 = vmatpush1.msra.mxu1 %v2312_v26 }
  0x26   : > { %472 = vmatprep.subr.mxu0 %v2104_v2  ;;  %665 = vmatprep.subr.mxu1 %v2104_v2 }
  0x27   : > { %473 = vmatpush1.msra.mxu0 %v2321_v27  ;;  %666 = vmatpush1.msra.mxu1 %v2326_v28 }
  0x28   : > { %474 = vmatprep.subr.mxu0 %v2104_v2  ;;  %667 = vmatprep.subr.mxu1 %v2104_v2 }
  0x29   : > { %475 = vmatpush1.msra.mxu0 %v2335_v29  ;;  %668 = vmatpush1.msra.mxu1 %v2340_v30 }
  0x2a   : > { %476 = vmatprep.subr.mxu0 %v2104_v2  ;;  %669 = vmatprep.subr.mxu1 %v2104_v2 }
  0x2b   : > { %477 = vmatpush1.msra.mxu0 %v2349_v31  ;;  %670 = vmatpush1.msra.mxu1 %v2354_v32 }
  0x2c   : > { %494 = vmatprep.subr.mxu0 %v2104_v2  ;;  %687 = vmatprep.subr.mxu1 %v2104_v2 }
  0x2d   : > { %495 = vmatpush2.msra.mxu0 %v2365_v33  ;;  %688 = vmatpush2.msra.mxu1 %v2370_v34 }
  0x2e   : > { %496 = vmatprep.subr.mxu0 %v2104_v2  ;;  %689 = vmatprep.subr.mxu1 %v2104_v2 }
  0x2f   : > { %497 = vmatpush2.msra.mxu0 %v2379_v35  ;;  %690 = vmatpush2.msra.mxu1 %v2384_v36 }
  0x30   : > { %498 = vmatprep.subr.mxu0 %v2104_v2  ;;  %691 = vmatprep.subr.mxu1 %v2104_v2 }
  0x31   : > { %499 = vmatpush2.msra.mxu0 %v2397_v37  ;;  %692 = vmatpush2.msra.mxu1 %v2402_v38 }
  0x32   : > { %500 = vmatprep.subr.mxu0 %v2104_v2  ;;  %693 = vmatprep.subr.mxu1 %v2104_v2 }
  0x33   : > { %501 = vmatpush2.msra.mxu0 %v2411_v39  ;;  %694 = vmatpush2.msra.mxu1 %v2416_v40 }
  0x34   : > { %502 = vmatprep.subr.mxu0 %v2104_v2  ;;  %695 = vmatprep.subr.mxu1 %v2104_v2 }
  0x35   : > { %503 = vmatpush2.msra.mxu0 %v2426_v41  ;;  %696 = vmatpush2.msra.mxu1 %v2431_v42 }
  0x36   : > { %504 = vmatprep.subr.mxu0 %v2104_v2  ;;  %697 = vmatprep.subr.mxu1 %v2104_v2 }
  0x37   : > { %505 = vmatpush2.msra.mxu0 %v2440_v43  ;;  %698 = vmatpush2.msra.mxu1 %v2445_v44 }
  0x38   : > { %506 = vmatprep.subr.mxu0 %v2104_v2  ;;  %699 = vmatprep.subr.mxu1 %v2104_v2 }
  0x39   : > { %507 = vmatpush2.msra.mxu0 %v2461_v45  ;;  %700 = vmatpush2.msra.mxu1 %v2466_v46 }
  0x3a   : > { %508 = vmatprep.subr.mxu0 %v2104_v2  ;;  %701 = vmatprep.subr.mxu1 %v2104_v2 }
  0x3b   : > { %509 = vmatpush2.msra.mxu0 %v2475_v47  ;;  %1898 = vmatprep.mubr.msk.f32.mxu0 %vm397_vm0, %v1811_v48 }
  0x3c   : > { %702 = vmatpush2.msra.mxu1 %v2483_v49  ;;  %1914 = vmatprep.mubr.msk.f32.mxu1 %vm397_vm0, %v219_v50  ;;  %v2030_v50 = vld [vmem:[%s3314_s2 + $0x1a0] sm:$0xff] }
  0x3d   : > { %511 = vmatmul.mubr.f32.vlgmr.msra.gmra.mxu0 %v1810_v51  ;;  %704 = vmatmul.mubr.f32.vlgmr.msra.gmra.mxu1 %v218_v52  ;;  %v2029_v52 = vld [vmem:[%s3314_s2 + $0x198] sm:$0xff] }
  0x3e   : > { %832 = vmatprep.subr.mxu0 %v2104_v2  ;;  %1025 = vmatprep.subr.mxu1 %v2104_v2 }
  0x3f   : > { %833 = vmatpush1.msra.mxu0 %v2141_v0  ;;  %1026 = vmatpush1.msra.mxu1 %v2146_v1  ;;  %v2590_v0 = vld [vmem:[%s2454_s10 + $0x70] sm:$0xff]  ;;  %v2601_v1 = vld [vmem:[%s2454_s10 + $0x88] sm:$0xff] }
  0x40   : > { %1899 = vmatprep.mubr.msk.f32.mxu0 %vm397_vm0, %v2495_v53  ;;  %1915 = vmatprep.mubr.msk.f32.mxu1 %vm397_vm0, %v1811_v48  ;;  %v2031_v48 = vld [vmem:[%s3314_s2 + $0x1a8] sm:$0xff] }
  0x41   : > { %834 = vmatprep.subr.mxu0 %v2104_v2  ;;  %1027 = vmatprep.subr.mxu1 %v2104_v2 }
  0x42   : > { %516 = vmatmul.mubr.f32.gmra.mxu0 %v2502_v54  ;;  %709 = vmatmul.mubr.f32.gmra.mxu1 %v1810_v51  ;;  %v2927_v51 = vld [vmem:[%s2759_s23 + $0x90] sm:$0xff] }
  0x43   : > { %835 = vmatpush1.msra.mxu0 %v2153_v3  ;;  %1028 = vmatpush1.msra.mxu1 %v2158_v4  ;;  %v2608_v3 = vld [vmem:[%s2454_s10 + $0x80] sm:$0xff]  ;;  %v2619_v4 = vld [vmem:[%s2454_s10 + $0x98] sm:$0xff] }
  0x44   : > { %836 = vmatprep.subr.mxu0 %v2104_v2  ;;  %1029 = vmatprep.subr.mxu1 %v2104_v2 }
  0x45   : > { %1900 = vmatprep.mubr.msk.f32.mxu0 %vm397_vm0, %v2511_v55  ;;  %1916 = vmatprep.mubr.msk.f32.mxu1 %vm397_vm0, %v2495_v53 }
  0x46   : > { %837 = vmatpush1.msra.mxu0 %v2167_v5  ;;  %1030 = vmatpush1.msra.mxu1 %v2172_v6  ;;  %v2626_v5 = vld [vmem:[%s2454_s10 + $0x90] sm:$0xff]  ;;  %v2637_v6 = vld [vmem:[%s2454_s10 + $0xa8] sm:$0xff] }
  0x47   : > { %521 = vmatmul.mubr.f32.gmra.mxu0 %v2518_v56  ;;  %714 = vmatmul.mubr.f32.gmra.mxu1 %v2502_v54 }
  0x48   : > { %838 = vmatprep.subr.mxu0 %v2104_v2  ;;  %1031 = vmatprep.subr.mxu1 %v2104_v2 }
  0x49   : > { %839 = vmatpush1.msra.mxu0 %v2181_v7  ;;  %1032 = vmatpush1.msra.mxu1 %v2186_v8  ;;  %v2644_v7 = vld [vmem:[%s2454_s10 + $0xa0] sm:$0xff]  ;;  %v2655_v8 = vld [vmem:[%s2454_s10 + $0xb8] sm:$0xff] }
  0x4a   : > { %1901 = vmatprep.mubr.msk.f32.mxu0 %vm397_vm0, %v2529_v57  ;;  %1917 = vmatprep.mubr.msk.f32.mxu1 %vm397_vm0, %v2511_v55 }
  0x4b   : > { %840 = vmatprep.subr.mxu0 %v2104_v2  ;;  %1033 = vmatprep.subr.mxu1 %v2104_v2 }
  0x4c   : > { %526 = vmatmul.mubr.f32.gmra.mxu0 %v2536_v58  ;;  %719 = vmatmul.mubr.f32.gmra.mxu1 %v2518_v56 }
  0x4d   : > { %841 = vmatpush1.msra.mxu0 %v2195_v9  ;;  %1034 = vmatpush1.msra.mxu1 %v2200_v10  ;;  %v2662_v9 = vld [vmem:[%s2454_s10 + $0xb0] sm:$0xff]  ;;  %v2673_v10 = vld [vmem:[%s2454_s10 + $0xc8] sm:$0xff] }
  0x4e   : > { %842 = vmatprep.subr.mxu0 %v2104_v2  ;;  %1035 = vmatprep.subr.mxu1 %v2104_v2 }
  0x4f   : > { %1902 = vmatprep.mubr.msk.f32.mxu0 %vm397_vm0, %v2547_v59  ;;  %1918 = vmatprep.mubr.msk.f32.mxu1 %vm397_vm0, %v2529_v57 }
  0x50   : > { %843 = vmatpush1.msra.mxu0 %v2209_v11  ;;  %1036 = vmatpush1.msra.mxu1 %v2214_v12  ;;  %v2680_v11 = vld [vmem:[%s2454_s10 + $0xc0] sm:$0xff]  ;;  %v2691_v12 = vld [vmem:[%s2454_s10 + $0xd8] sm:$0xff] }
  0x51   : > { %531 = vmatmul.mubr.f32.gmra.mxu0 %v2554_v60  ;;  %724 = vmatmul.mubr.f32.gmra.mxu1 %v2536_v58 }
  0x52   : > { %844 = vmatprep.subr.mxu0 %v2104_v2  ;;  %1037 = vmatprep.subr.mxu1 %v2104_v2 }
  0x53   : > { %845 = vmatpush1.msra.mxu0 %v2223_v13  ;;  %1038 = vmatpush1.msra.mxu1 %v2228_v14  ;;  %v2698_v13 = vld [vmem:[%s2454_s10 + $0xd0] sm:$0xff]  ;;  %v2709_v14 = vld [vmem:[%s2454_s10 + $0xe8] sm:$0xff] }
  0x54   : > { %1903 = vmatprep.mubr.msk.f32.mxu0 %vm397_vm0, %v2565_v61  ;;  %1919 = vmatprep.mubr.msk.f32.mxu1 %vm397_vm0, %v2547_v59 }
  0x55   : > { %846 = vmatprep.subr.mxu0 %v2104_v2  ;;  %1039 = vmatprep.subr.mxu1 %v2104_v2 }
  0x56   : > { %536 = vmatmul.mubr.f32.gmra.mxu0 %v2572_v62  ;;  %729 = vmatmul.mubr.f32.gmra.mxu1 %v2554_v60 }
  0x57   : > { %847 = vmatpush1.msra.mxu0 %v2237_v15  ;;  %1040 = vmatpush1.msra.mxu1 %v2242_v16  ;;  %v2716_v15 = vld [vmem:[%s2454_s10 + $0xe0] sm:$0xff]  ;;  %v2727_v16 = vld [vmem:[%s2454_s10 + $0xf8] sm:$0xff] }
  0x58   : > { %848 = vmatprep.subr.mxu0 %v2104_v2  ;;  %1041 = vmatprep.subr.mxu1 %v2104_v2 }
  0x59   : > { %1904 = vmatprep.mubr.msk.f32.mxu0 %vm397_vm0, %v2583_v63  ;;  %1920 = vmatprep.mubr.msk.f32.mxu1 %vm397_vm0, %v2565_v61 }
  0x5a   : > { %849 = vmatpush1.msra.mxu0 %v2251_v17  ;;  %1042 = vmatpush1.msra.mxu1 %v2256_v18  ;;  %v2734_v17 = vld [vmem:[%s2454_s10 + $0xf0] sm:$0xff]  ;;  %v2745_v18 = vld [vmem:[%s2454_s10 + $0x108] sm:$0xff] }
  0x5b   : > { %541 = vmatmul.mubr.f32.gmra.mxu0 %v2590_v0  ;;  %734 = vmatmul.mubr.f32.gmra.mxu1 %v2572_v62 }
  0x5c   : > { %850 = vmatprep.subr.mxu0 %v2104_v2  ;;  %1043 = vmatprep.subr.mxu1 %v2104_v2 }
  0x5d   : > { %851 = vmatpush1.msra.mxu0 %v2265_v19  ;;  %1044 = vmatpush1.msra.mxu1 %v2270_v20  ;;  %v2752_v19 = vld [vmem:[%s2454_s10 + $0x100] sm:$0xff]  ;;  %v1843_v20 = vld [vmem:[%s2759_s23 + $0x18] sm:$0xff] }
  0x5e   : > { %1905 = vmatprep.mubr.msk.f32.mxu0 %vm397_vm0, %v2601_v1  ;;  %1921 = vmatprep.mubr.msk.f32.mxu1 %vm397_vm0, %v2583_v63 }
  0x5f   : > { %852 = vmatprep.subr.mxu0 %v2104_v2  ;;  %1045 = vmatprep.subr.mxu1 %v2104_v2 }
  0x60   : > { %546 = vmatmul.mubr.f32.gmra.mxu0 %v2608_v3  ;;  %739 = vmatmul.mubr.f32.gmra.mxu1 %v2590_v0 }
  0x61   : > { %853 = vmatpush1.msra.mxu0 %v2279_v21  ;;  %1046 = vmatpush1.msra.mxu1 %v2284_v22  ;;  %v251_v21 = vld [vmem:[%s2759_s23 + $0x8] sm:$0xff]  ;;  %v1842_v22 = vld [vmem:[%s2759_s23 + $0x10] sm:$0xff] }
  0x62   : > { %854 = vmatprep.subr.mxu0 %v2104_v2  ;;  %1047 = vmatprep.subr.mxu1 %v2104_v2 }
  0x63   : > { %1906 = vmatprep.mubr.msk.f32.mxu0 %vm397_vm0, %v2619_v4  ;;  %1922 = vmatprep.mubr.msk.f32.mxu1 %vm397_vm0, %v2601_v1 }
  0x64   : > { %855 = vmatpush1.msra.mxu0 %v2293_v23  ;;  %1048 = vmatpush1.msra.mxu1 %v2298_v24  ;;  %v250_v23 = vld [vmem:[%s2759_s23] sm:$0xff]  ;;  %v2041_v24 = vld [vmem:[%s3314_s2 + $0x1f8] sm:$0xff] }
  0x65   : > { %551 = vmatmul.mubr.f32.gmra.mxu0 %v2626_v5  ;;  %744 = vmatmul.mubr.f32.gmra.mxu1 %v2608_v3 }
  0x66   : > { %856 = vmatprep.subr.mxu0 %v2104_v2  ;;  %1049 = vmatprep.subr.mxu1 %v2104_v2 }
  0x67   : > { %857 = vmatpush1.msra.mxu0 %v2307_v25  ;;  %1050 = vmatpush1.msra.mxu1 %v2312_v26  ;;  %v2785_v25 = vld [vmem:[%s2759_s23 + $0x28] sm:$0xff]  ;;  %v2790_v26 = vld [vmem:[%s2759_s23 + $0x20] sm:$0xff] }
  0x68   : > { %1907 = vmatprep.mubr.msk.f32.mxu0 %vm397_vm0, %v2637_v6  ;;  %1923 = vmatprep.mubr.msk.f32.mxu1 %vm397_vm0, %v2619_v4 }
  0x69   : > { %858 = vmatprep.subr.mxu0 %v2104_v2  ;;  %1051 = vmatprep.subr.mxu1 %v2104_v2 }
  0x6a   : > { %556 = vmatmul.mubr.f32.gmra.mxu0 %v2644_v7  ;;  %749 = vmatmul.mubr.f32.gmra.mxu1 %v2626_v5 }
  0x6b   : > { %859 = vmatpush1.msra.mxu0 %v2321_v27  ;;  %1052 = vmatpush1.msra.mxu1 %v2326_v28  ;;  %v2040_v27 = vld [vmem:[%s3314_s2 + $0x1f0] sm:$0xff]  ;;  %v2802_v28 = vld [vmem:[%s2759_s23 + $0x38] sm:$0xff] }
  0x6c   : > { %860 = vmatprep.subr.mxu0 %v2104_v2  ;;  %1053 = vmatprep.subr.mxu1 %v2104_v2 }
  0x6d   : > { %1908 = vmatprep.mubr.msk.f32.mxu0 %vm397_vm0, %v2655_v8  ;;  %1924 = vmatprep.mubr.msk.f32.mxu1 %vm397_vm0, %v2637_v6 }
  0x6e   : > { %861 = vmatpush1.msra.mxu0 %v2335_v29  ;;  %1054 = vmatpush1.msra.mxu1 %v2340_v30  ;;  %v2039_v29 = vld [vmem:[%s3314_s2 + $0x1e8] sm:$0xff]  ;;  %v2810_v30 = vld [vmem:[%s2759_s23 + $0x30] sm:$0xff] }
  0x6f   : > { %561 = vmatmul.mubr.f32.gmra.mxu0 %v2662_v9  ;;  %754 = vmatmul.mubr.f32.gmra.mxu1 %v2644_v7 }
  0x70   : > { %862 = vmatprep.subr.mxu0 %v2104_v2  ;;  %1055 = vmatprep.subr.mxu1 %v2104_v2 }
  0x71   : > { %863 = vmatpush1.msra.mxu0 %v2349_v31  ;;  %1056 = vmatpush1.msra.mxu1 %v2354_v32  ;;  %v2038_v31 = vld [vmem:[%s3314_s2 + $0x1e0] sm:$0xff]  ;;  %v2822_v32 = vld [vmem:[%s2759_s23 + $0x48] sm:$0xff] }
  0x72   : > { %1909 = vmatprep.mubr.msk.f32.mxu0 %vm397_vm0, %v2673_v10  ;;  %1925 = vmatprep.mubr.msk.f32.mxu1 %vm397_vm0, %v2655_v8 }
  0x73   : > { %880 = vmatprep.subr.mxu0 %v2104_v2  ;;  %1073 = vmatprep.subr.mxu1 %v2104_v2 }
  0x74   : > { %566 = vmatmul.mubr.f32.gmra.mxu0 %v2680_v11  ;;  %759 = vmatmul.mubr.f32.gmra.mxu1 %v2662_v9 }
  0x75   : > { %881 = vmatpush2.msra.mxu0 %v2365_v33  ;;  %1074 = vmatpush2.msra.mxu1 %v2370_v34  ;;  %v2827_v33 = vld [vmem:[%s2759_s23 + $0x40] sm:$0xff]  ;;  %v2037_v34 = vld [vmem:[%s3314_s2 + $0x1d8] sm:$0xff] }
  0x76   : > { %882 = vmatprep.subr.mxu0 %v2104_v2  ;;  %1075 = vmatprep.subr.mxu1 %v2104_v2 }
  0x77   : > { %1910 = vmatprep.mubr.msk.f32.mxu0 %vm397_vm0, %v2691_v12  ;;  %1926 = vmatprep.mubr.msk.f32.mxu1 %vm397_vm0, %v2673_v10 }
  0x78   : > { %883 = vmatpush2.msra.mxu0 %v2379_v35  ;;  %1076 = vmatpush2.msra.mxu1 %v2384_v36  ;;  %v2841_v35 = vld [vmem:[%s2759_s23 + $0x58] sm:$0xff]  ;;  %v2036_v36 = vld [vmem:[%s3314_s2 + $0x1d0] sm:$0xff] }
  0x79   : > { %571 = vmatmul.mubr.f32.gmra.mxu0 %v2698_v13  ;;  %764 = vmatmul.mubr.f32.gmra.mxu1 %v2680_v11 }
  0x7a   : > { %884 = vmatprep.subr.mxu0 %v2104_v2  ;;  %1077 = vmatprep.subr.mxu1 %v2104_v2 }
  0x7b   : > { %885 = vmatpush2.msra.mxu0 %v2397_v37  ;;  %1078 = vmatpush2.msra.mxu1 %v2402_v38  ;;  %v2849_v37 = vld [vmem:[%s2759_s23 + $0x50] sm:$0xff]  ;;  %v2035_v38 = vld [vmem:[%s3314_s2 + $0x1c8] sm:$0xff] }
  0x7c   : > { %1911 = vmatprep.mubr.msk.f32.mxu0 %vm397_vm0, %v2709_v14  ;;  %1927 = vmatprep.mubr.msk.f32.mxu1 %vm397_vm0, %v2691_v12 }
  0x7d   : > { %886 = vmatprep.subr.mxu0 %v2104_v2  ;;  %1079 = vmatprep.subr.mxu1 %v2104_v2 }
  0x7e   : > { %576 = vmatmul.mubr.f32.gmra.mxu0 %v2716_v15  ;;  %769 = vmatmul.mubr.f32.gmra.mxu1 %v2698_v13 }
  0x7f   : > { %887 = vmatpush2.msra.mxu0 %v2411_v39  ;;  %1080 = vmatpush2.msra.mxu1 %v2416_v40  ;;  %v2861_v39 = vld [vmem:[%s2759_s23 + $0x68] sm:$0xff]  ;;  %v2866_v40 = vld [vmem:[%s2759_s23 + $0x60] sm:$0xff] }
  0x80   : > { %888 = vmatprep.subr.mxu0 %v2104_v2  ;;  %1081 = vmatprep.subr.mxu1 %v2104_v2 }
  0x81   : > { %1912 = vmatprep.mubr.msk.f32.mxu0 %vm397_vm0, %v2727_v16  ;;  %1928 = vmatprep.mubr.msk.f32.mxu1 %vm397_vm0, %v2709_v14 }
  0x82   : > { %889 = vmatpush2.msra.mxu0 %v2426_v41  ;;  %1082 = vmatpush2.msra.mxu1 %v2431_v42  ;;  %v2034_v41 = vld [vmem:[%s3314_s2 + $0x1c0] sm:$0xff]  ;;  %v2880_v42 = vld [vmem:[%s2759_s23 + $0x78] sm:$0xff] }
  0x83   : > { %581 = vmatmul.mubr.f32.gmra.mxu0 %v2734_v17  ;;  %774 = vmatmul.mubr.f32.gmra.mxu1 %v2716_v15 }
  0x84   : > { %890 = vmatprep.subr.mxu0 %v2104_v2  ;;  %1083 = vmatprep.subr.mxu1 %v2104_v2 }
  0x85   : > { %891 = vmatpush2.msra.mxu0 %v2440_v43  ;;  %1084 = vmatpush2.msra.mxu1 %v2445_v44  ;;  %v2033_v43 = vld [vmem:[%s3314_s2 + $0x1b8] sm:$0xff]  ;;  %v2888_v44 = vld [vmem:[%s2759_s23 + $0x70] sm:$0xff] }
  0x86   : > { %1913 = vmatprep.mubr.msk.f32.mxu0 %vm397_vm0, %v2745_v18  ;;  %1929 = vmatprep.mubr.msk.f32.mxu1 %vm397_vm0, %v2727_v16 }
  0x87   : > { %892 = vmatprep.subr.mxu0 %v2104_v2  ;;  %1085 = vmatprep.subr.mxu1 %v2104_v2 }
  0x88   : > { %586 = vmatmul.mubr.f32.gmra.mxu0 %v2752_v19  ;;  %779 = vmatmul.mubr.f32.gmra.mxu1 %v2734_v17 }
  0x89   : > { %893 = vmatpush2.msra.mxu0 %v2461_v45  ;;  %1086 = vmatpush2.msra.mxu1 %v2466_v46  ;;  %v2032_v45 = vld [vmem:[%s3314_s2 + $0x1b0] sm:$0xff]  ;;  %v2900_v46 = vld [vmem:[%s2759_s23 + $0x88] sm:$0xff] }
  0x8a   : > { %894 = vmatprep.subr.mxu0 %v2104_v2  ;;  %1087 = vmatprep.subr.mxu1 %v2104_v2 }
  0x8b   : > { %895 = vmatpush2.msra.mxu0 %v2475_v47  ;;  %1930 = vmatprep.mubr.msk.f32.mxu0 %vm397_vm0, %v1843_v20  ;;  %v2905_v47 = vld [vmem:[%s2759_s23 + $0x80] sm:$0xff] }
  0x8c   : > { %1088 = vmatpush2.msra.mxu1 %v2483_v49  ;;  %1946 = vmatprep.mubr.msk.f32.mxu1 %vm397_vm0, %v251_v21  ;;  %v2919_v49 = vld [vmem:[%s2759_s23 + $0x98] sm:$0xff]  ;;  %v2944_v21 = vld [vmem:[%s2759_s23 + $0xa0] sm:$0xff] }
  0x8d   : > { %897 = vmatmul.mubr.f32.vlgmr.msra.gmra.mxu0 %v1842_v22  ;;  %1090 = vmatmul.mubr.f32.vlgmr.msra.gmra.mxu1 %v250_v23  ;;  %v2958_v23 = vld [vmem:[%s2759_s23 + $0xb8] sm:$0xff] }
  0x8e   : > { %1309 = vmatprep.subr.mxu0 %v2104_v2  ;;  %1518 = vmatprep.subr.mxu1 %v2104_v2 }
  0x8f   : > { %1310 = vmatpush1.msra.mxu0 %v2041_v24  ;;  %1519 = vmatpush1.msra.mxu1 %v2041_v24  ;;  %v2027_v24 = vld [vmem:[%s3314_s2 + $0x188] sm:$0xff] }
  0x90   : > { %1931 = vmatprep.mubr.msk.f32.mxu0 %vm397_vm0, %v2785_v25  ;;  %1947 = vmatprep.mubr.msk.f32.mxu1 %vm397_vm0, %v1843_v20  ;;  %v2939_v20 = vld [vmem:[%s2759_s23 + $0xa8] sm:$0xff] }
  0x91   : > { %1311 = vmatprep.subr.mxu0 %v2104_v2  ;;  %1520 = vmatprep.subr.mxu1 %v2104_v2 }
  0x92   : > { %902 = vmatmul.mubr.f32.gmra.mxu0 %v2790_v26  ;;  %1095 = vmatmul.mubr.f32.gmra.mxu1 %v1842_v22  ;;  %v2028_v22 = vld [vmem:[%s3314_s2 + $0x190] sm:$0xff] }
  0x93   : > { %1312 = vmatpush1.msra.mxu0 %v2040_v27  ;;  %1521 = vmatpush1.msra.mxu1 %v2040_v27  ;;  %v2966_v27 = vld [vmem:[%s2759_s23 + $0xb0] sm:$0xff] }
  0x94   : > { %1313 = vmatprep.subr.mxu0 %v2104_v2  ;;  %1522 = vmatprep.subr.mxu1 %v2104_v2 }
  0x95   : > { %1932 = vmatprep.mubr.msk.f32.mxu0 %vm397_vm0, %v2802_v28  ;;  %1948 = vmatprep.mubr.msk.f32.mxu1 %vm397_vm0, %v2785_v25 }
  0x96   : > { %1314 = vmatpush1.msra.mxu0 %v2039_v29  ;;  %1523 = vmatpush1.msra.mxu1 %v2039_v29  ;;  %v2026_v29 = vld [vmem:[%s3314_s2 + $0x180] sm:$0xff] }
  0x97   : > { %907 = vmatmul.mubr.f32.gmra.mxu0 %v2810_v30  ;;  %1100 = vmatmul.mubr.f32.gmra.mxu1 %v2790_v26 }
  0x98   : > { %1315 = vmatprep.subr.mxu0 %v2104_v2  ;;  %1524 = vmatprep.subr.mxu1 %v2104_v2 }
  0x99   : > { %1316 = vmatpush1.msra.mxu0 %v2038_v31  ;;  %1525 = vmatpush1.msra.mxu1 %v2038_v31  ;;  %v2978_v31 = vld [vmem:[%s2759_s23 + $0xc8] sm:$0xff] }
  0x9a   : > { %1933 = vmatprep.mubr.msk.f32.mxu0 %vm397_vm0, %v2822_v32  ;;  %1949 = vmatprep.mubr.msk.f32.mxu1 %vm397_vm0, %v2802_v28 }
  0x9b   : > { %1317 = vmatprep.subr.mxu0 %v2104_v2  ;;  %1526 = vmatprep.subr.mxu1 %v2104_v2 }
  0x9c   : > { %912 = vmatmul.mubr.f32.gmra.mxu0 %v2827_v33  ;;  %1105 = vmatmul.mubr.f32.gmra.mxu1 %v2810_v30 }
  0x9d   : > { %1318 = vmatpush1.msra.mxu0 %v2037_v34  ;;  %1527 = vmatpush1.msra.mxu1 %v2037_v34  ;;  %v2983_v34 = vld [vmem:[%s2759_s23 + $0xc0] sm:$0xff] }
  0x9e   : > { %1319 = vmatprep.subr.mxu0 %v2104_v2  ;;  %1528 = vmatprep.subr.mxu1 %v2104_v2 }
  0x9f   : > { %1934 = vmatprep.mubr.msk.f32.mxu0 %vm397_vm0, %v2841_v35  ;;  %1950 = vmatprep.mubr.msk.f32.mxu1 %vm397_vm0, %v2822_v32 }
  0xa0   : > { %1320 = vmatpush1.msra.mxu0 %v2036_v36  ;;  %1529 = vmatpush1.msra.mxu1 %v2036_v36  ;;  %v2049_v36 = vld [vmem:[%s3314_s2 + $0x238] sm:$0xff] }
  0xa1   : > { %917 = vmatmul.mubr.f32.gmra.mxu0 %v2849_v37  ;;  %1110 = vmatmul.mubr.f32.gmra.mxu1 %v2827_v33 }
  0xa2   : > { %1321 = vmatprep.subr.mxu0 %v2104_v2  ;;  %1530 = vmatprep.subr.mxu1 %v2104_v2 }
  0xa3   : > { %1322 = vmatpush1.msra.mxu0 %v2035_v38  ;;  %1531 = vmatpush1.msra.mxu1 %v2035_v38  ;;  %v2997_v38 = vld [vmem:[%s2759_s23 + $0xd8] sm:$0xff] }
  0xa4   : > { %1935 = vmatprep.mubr.msk.f32.mxu0 %vm397_vm0, %v2861_v39  ;;  %1951 = vmatprep.mubr.msk.f32.mxu1 %vm397_vm0, %v2841_v35 }
  0xa5   : > { %1323 = vmatprep.subr.mxu0 %v2104_v2  ;;  %1532 = vmatprep.subr.mxu1 %v2104_v2 }
  0xa6   : > { %922 = vmatmul.mubr.f32.gmra.mxu0 %v2866_v40  ;;  %1115 = vmatmul.mubr.f32.gmra.mxu1 %v2849_v37 }
  0xa7   : > { %1324 = vmatpush1.msra.mxu0 %v2034_v41  ;;  %1533 = vmatpush1.msra.mxu1 %v2034_v41  ;;  %v2048_v41 = vld [vmem:[%s3314_s2 + $0x230] sm:$0xff] }
  0xa8   : > { %1325 = vmatprep.subr.mxu0 %v2104_v2  ;;  %1534 = vmatprep.subr.mxu1 %v2104_v2 }
  0xa9   : > { %1936 = vmatprep.mubr.msk.f32.mxu0 %vm397_vm0, %v2880_v42  ;;  %1952 = vmatprep.mubr.msk.f32.mxu1 %vm397_vm0, %v2861_v39 }
  0xaa   : > { %1326 = vmatpush1.msra.mxu0 %v2033_v43  ;;  %1535 = vmatpush1.msra.mxu1 %v2033_v43  ;;  %v3005_v43 = vld [vmem:[%s2759_s23 + $0xd0] sm:$0xff] }
  0xab   : > { %927 = vmatmul.mubr.f32.gmra.mxu0 %v2888_v44  ;;  %1120 = vmatmul.mubr.f32.gmra.mxu1 %v2866_v40 }
  0xac   : > { %1327 = vmatprep.subr.mxu0 %v2104_v2  ;;  %1536 = vmatprep.subr.mxu1 %v2104_v2 }
  0xad   : > { %1328 = vmatpush1.msra.mxu0 %v2032_v45  ;;  %1537 = vmatpush1.msra.mxu1 %v2032_v45  ;;  %v2047_v45 = vld [vmem:[%s3314_s2 + $0x228] sm:$0xff] }
  0xae   : > { %1937 = vmatprep.mubr.msk.f32.mxu0 %vm397_vm0, %v2900_v46  ;;  %1953 = vmatprep.mubr.msk.f32.mxu1 %vm397_vm0, %v2880_v42 }
  0xaf   : > { %1329 = vmatprep.subr.mxu0 %v2104_v2  ;;  %1538 = vmatprep.subr.mxu1 %v2104_v2 }
  0xb0   : > { %932 = vmatmul.mubr.f32.gmra.mxu0 %v2905_v47  ;;  %1125 = vmatmul.mubr.f32.gmra.mxu1 %v2888_v44 }
  0xb1   : > { %1330 = vmatpush1.msra.mxu0 %v2031_v48  ;;  %1539 = vmatpush1.msra.mxu1 %v2031_v48  ;;  %v3017_v48 = vld [vmem:[%s2759_s23 + $0xe8] sm:$0xff] }
  0xb2   : > { %1331 = vmatprep.subr.mxu0 %v2104_v2  ;;  %1540 = vmatprep.subr.mxu1 %v2104_v2 }
  0xb3   : > { %1938 = vmatprep.mubr.msk.f32.mxu0 %vm397_vm0, %v2919_v49  ;;  %1954 = vmatprep.mubr.msk.f32.mxu1 %vm397_vm0, %v2900_v46 }
  0xb4   : > { %1332 = vmatpush1.msra.mxu0 %v2030_v50  ;;  %1541 = vmatpush1.msra.mxu1 %v2030_v50  ;;  %v3022_v50 = vld [vmem:[%s2759_s23 + $0xe0] sm:$0xff] }
  0xb5   : > { %937 = vmatmul.mubr.f32.gmra.mxu0 %v2927_v51  ;;  %1130 = vmatmul.mubr.f32.gmra.mxu1 %v2905_v47 }
  0xb6   : > { %1333 = vmatprep.subr.mxu0 %v2104_v2  ;;  %1542 = vmatprep.subr.mxu1 %v2104_v2 }
  0xb7   : > { %1334 = vmatpush1.msra.mxu0 %v2029_v52  ;;  %1543 = vmatpush1.msra.mxu1 %v2029_v52  ;;  %v2046_v52 = vld [vmem:[%s3314_s2 + $0x220] sm:$0xff] }
  0xb8   : > { %1939 = vmatprep.mubr.msk.f32.mxu0 %vm397_vm0, %v2939_v20  ;;  %1955 = vmatprep.mubr.msk.f32.mxu1 %vm397_vm0, %v2919_v49 }
  0xb9   : > { %1335 = vmatprep.subr.mxu0 %v2104_v2  ;;  %1544 = vmatprep.subr.mxu1 %v2104_v2 }
  0xba   : > { %942 = vmatmul.mubr.f32.gmra.mxu0 %v2944_v21  ;;  %1135 = vmatmul.mubr.f32.gmra.mxu1 %v2927_v51 }
  0xbb   : > { %1336 = vmatpush1.msra.mxu0 %v2028_v22  ;;  %1545 = vmatpush1.msra.mxu1 %v2028_v22  ;;  %v3036_v22 = vld [vmem:[%s2759_s23 + $0xf8] sm:$0xff] }
  0xbc   : > { %1337 = vmatprep.subr.mxu0 %v2104_v2  ;;  %1546 = vmatprep.subr.mxu1 %v2104_v2 }
  0xbd   : > { %1940 = vmatprep.mubr.msk.f32.mxu0 %vm397_vm0, %v2958_v23  ;;  %1956 = vmatprep.mubr.msk.f32.mxu1 %vm397_vm0, %v2939_v20 }
  0xbe   : > { %1338 = vmatpush1.msra.mxu0 %v2027_v24  ;;  %1547 = vmatpush1.msra.mxu1 %v2027_v24  ;;  %v2045_v24 = vld [vmem:[%s3314_s2 + $0x218] sm:$0xff] }
  0xbf   : > { %947 = vmatmul.mubr.f32.gmra.mxu0 %v2966_v27  ;;  %1140 = vmatmul.mubr.f32.gmra.mxu1 %v2944_v21 }
  0xc0   : > { %1339 = vmatprep.subr.mxu0 %v2104_v2  ;;  %1548 = vmatprep.subr.mxu1 %v2104_v2 }
  0xc1   : > { %1340 = vmatpush1.msra.mxu0 %v2026_v29  ;;  %1549 = vmatpush1.msra.mxu1 %v2026_v29  ;;  %v3044_v29 = vld [vmem:[%s2759_s23 + $0xf0] sm:$0xff] }
  0xc2   : > { %1941 = vmatprep.mubr.msk.f32.mxu0 %vm397_vm0, %v2978_v31  ;;  %1957 = vmatprep.mubr.msk.f32.mxu1 %vm397_vm0, %v2958_v23 }
  0xc3   : > { %1357 = vmatprep.subr.mxu0 %v2104_v2  ;;  %1566 = vmatprep.subr.mxu1 %v2104_v2 }
  0xc4   : > { %952 = vmatmul.mubr.f32.gmra.mxu0 %v2983_v34  ;;  %1145 = vmatmul.mubr.f32.gmra.mxu1 %v2966_v27 }
  0xc5   : > { %1358 = vmatpush2.msra.mxu0 %v2049_v36  ;;  %1567 = vmatpush2.msra.mxu1 %v2049_v36  ;;  %v2044_v36 = vld [vmem:[%s3314_s2 + $0x210] sm:$0xff] }
  0xc6   : > { %1359 = vmatprep.subr.mxu0 %v2104_v2  ;;  %1568 = vmatprep.subr.mxu1 %v2104_v2 }
  0xc7   : > { %1942 = vmatprep.mubr.msk.f32.mxu0 %vm397_vm0, %v2997_v38  ;;  %1958 = vmatprep.mubr.msk.f32.mxu1 %vm397_vm0, %v2978_v31 }
  0xc8   : > { %1360 = vmatpush2.msra.mxu0 %v2048_v41  ;;  %1569 = vmatpush2.msra.mxu1 %v2048_v41  ;;  %v3056_v41 = vld [vmem:[%s2759_s23 + $0x108] sm:$0xff] }
  0xc9   : > { %957 = vmatmul.mubr.f32.gmra.mxu0 %v3005_v43  ;;  %1150 = vmatmul.mubr.f32.gmra.mxu1 %v2983_v34 }
  0xca   : > { %1361 = vmatprep.subr.mxu0 %v2104_v2  ;;  %1570 = vmatprep.subr.mxu1 %v2104_v2 }
  0xcb   : > { %1362 = vmatpush2.msra.mxu0 %v2047_v45  ;;  %1571 = vmatpush2.msra.mxu1 %v2047_v45  ;;  %v3061_v45 = vld [vmem:[%s2759_s23 + $0x100] sm:$0xff] }
  0xcc   : > { %1943 = vmatprep.mubr.msk.f32.mxu0 %vm397_vm0, %v3017_v48  ;;  %1959 = vmatprep.mubr.msk.f32.mxu1 %vm397_vm0, %v2997_v38 }
  0xcd   : > { %1363 = vmatprep.subr.mxu0 %v2104_v2  ;;  %1572 = vmatprep.subr.mxu1 %v2104_v2 }
  0xce   : > { %962 = vmatmul.mubr.f32.gmra.mxu0 %v3022_v50  ;;  %1155 = vmatmul.mubr.f32.gmra.mxu1 %v3005_v43 }
  0xcf   : > { %1364 = vmatpush2.msra.mxu0 %v2046_v52  ;;  %1573 = vmatpush2.msra.mxu1 %v2046_v52  ;;  %v2043_v52 = vld [vmem:[%s3314_s2 + $0x208] sm:$0xff] }
  0xd0   : > { %1365 = vmatprep.subr.mxu0 %v2104_v2  ;;  %1574 = vmatprep.subr.mxu1 %v2104_v2 }
  0xd1   : > { %1944 = vmatprep.mubr.msk.f32.mxu0 %vm397_vm0, %v3036_v22  ;;  %1960 = vmatprep.mubr.msk.f32.mxu1 %vm397_vm0, %v3017_v48 }
  0xd2   : > { %1366 = vmatpush2.msra.mxu0 %v2045_v24  ;;  %1575 = vmatpush2.msra.mxu1 %v2045_v24  ;;  %v2042_v24 = vld [vmem:[%s3314_s2 + $0x200] sm:$0xff] }
  0xd3   : > { %967 = vmatmul.mubr.f32.gmra.mxu0 %v3044_v29  ;;  %1160 = vmatmul.mubr.f32.gmra.mxu1 %v3022_v50 }
  0xd4   : > { %1367 = vmatprep.subr.mxu0 %v2104_v2  ;;  %1576 = vmatprep.subr.mxu1 %v2104_v2 }
  0xd5   : > { %1368 = vmatpush2.msra.mxu0 %v2044_v36  ;;  %1577 = vmatpush2.msra.mxu1 %v2044_v36 }
  0xd6   : > { %1945 = vmatprep.mubr.msk.f32.mxu0 %vm397_vm0, %v3056_v41  ;;  %1961 = vmatprep.mubr.msk.f32.mxu1 %vm397_vm0, %v3036_v22 }
  0xd7   : > { %1369 = vmatprep.subr.mxu0 %v2104_v2  ;;  %1578 = vmatprep.subr.mxu1 %v2104_v2 }
  0xd8   : > { %972 = vmatmul.mubr.f32.gmra.mxu0 %v3061_v45  ;;  %1165 = vmatmul.mubr.f32.gmra.mxu1 %v3044_v29 }
  0xd9   : > { %1370 = vmatpush2.msra.mxu0 %v2043_v52  ;;  %1579 = vmatpush2.msra.mxu1 %v2043_v52 }
  0xda   : > { %1371 = vmatprep.subr.mxu0 %v2104_v2  ;;  %1580 = vmatprep.subr.mxu1 %v2104_v2 }
  0xdb   : > { %1372 = vmatpush2.msra.mxu0 %v2042_v24  ;;  %2050 = vmatprep.mubr.msk.f32.mxu0 %vm397_vm0, %v2495_v53 }
  0xdc   : > { %1581 = vmatpush2.msra.mxu1 %v2042_v24  ;;  %2066 = vmatprep.mubr.msk.f32.mxu1 %vm397_vm0, %v2785_v25 }
  0xdd   : > { %1374 = vmatmul.mubr.f32.vlgmr.msra.gmra.mxu0 %v2502_v54  ;;  %1583 = vmatmul.mubr.f32.vlgmr.msra.gmra.mxu1 %v2790_v26 }
  0xde   : > { %2051 = vmatprep.mubr.msk.f32.mxu0 %vm397_vm0, %v2511_v55  ;;  %2067 = vmatprep.mubr.msk.f32.mxu1 %vm397_vm0, %v2802_v28 }
  0xe1   : > { %1379 = vmatmul.mubr.f32.gmra.mxu0 %v2518_v56  ;;  %1588 = vmatmul.mubr.f32.gmra.mxu1 %v2810_v30 }
  0xe2   : > { %2052 = vmatprep.mubr.msk.f32.mxu0 %vm397_vm0, %v2529_v57  ;;  %2068 = vmatprep.mubr.msk.f32.mxu1 %vm397_vm0, %v2822_v32 }
  0xe5   : > { %1384 = vmatmul.mubr.f32.gmra.mxu0 %v2536_v58  ;;  %1593 = vmatmul.mubr.f32.gmra.mxu1 %v2827_v33 }
  0xe6   : > { %2053 = vmatprep.mubr.msk.f32.mxu0 %vm397_vm0, %v2547_v59  ;;  %2069 = vmatprep.mubr.msk.f32.mxu1 %vm397_vm0, %v2841_v35 }
  0xe9   : > { %1389 = vmatmul.mubr.f32.gmra.mxu0 %v2554_v60  ;;  %1598 = vmatmul.mubr.f32.gmra.mxu1 %v2849_v37 }
  0xea   : > { %2054 = vmatprep.mubr.msk.f32.mxu0 %vm397_vm0, %v2565_v61  ;;  %2070 = vmatprep.mubr.msk.f32.mxu1 %vm397_vm0, %v2861_v39 }
  0xed   : > { %1394 = vmatmul.mubr.f32.gmra.mxu0 %v2572_v62  ;;  %1603 = vmatmul.mubr.f32.gmra.mxu1 %v2866_v40 }
  0xee   : > { %2055 = vmatprep.mubr.msk.f32.mxu0 %vm397_vm0, %v2583_v63  ;;  %2071 = vmatprep.mubr.msk.f32.mxu1 %vm397_vm0, %v2880_v42 }
  0xf1   : > { %1399 = vmatmul.mubr.f32.gmra.mxu0 %v2590_v0  ;;  %1608 = vmatmul.mubr.f32.gmra.mxu1 %v2888_v44 }
  0xf2   : > { %2056 = vmatprep.mubr.msk.f32.mxu0 %vm397_vm0, %v2601_v1  ;;  %2072 = vmatprep.mubr.msk.f32.mxu1 %vm397_vm0, %v2900_v46 }
  0xf5   : > { %1404 = vmatmul.mubr.f32.gmra.mxu0 %v2608_v3  ;;  %1613 = vmatmul.mubr.f32.gmra.mxu1 %v2905_v47 }
  0xf6   : > { %2057 = vmatprep.mubr.msk.f32.mxu0 %vm397_vm0, %v2619_v4  ;;  %2073 = vmatprep.mubr.msk.f32.mxu1 %vm397_vm0, %v2919_v49 }
  0xf9   : > { %1409 = vmatmul.mubr.f32.gmra.mxu0 %v2626_v5  ;;  %1618 = vmatmul.mubr.f32.gmra.mxu1 %v2927_v51 }
  0xfa   : > { %2058 = vmatprep.mubr.msk.f32.mxu0 %vm397_vm0, %v2637_v6  ;;  %2074 = vmatprep.mubr.msk.f32.mxu1 %vm397_vm0, %v2939_v20 }
  0xfd   : > { %1414 = vmatmul.mubr.f32.gmra.mxu0 %v2644_v7  ;;  %1623 = vmatmul.mubr.f32.gmra.mxu1 %v2944_v21  ;;  %v512_v2 = vpop.f32.mrf.mxu0  ;;  %v705_v53 = vpop.f32.mrf.mxu1 }
  0xfe   : > { %2059 = vmatprep.mubr.msk.f32.mxu0 %vm397_vm0, %v2655_v8  ;;  %2075 = vmatprep.mubr.msk.f32.mxu1 %vm397_vm0, %v2958_v23  ;;  %v3137_v54 = vadd.f32 %v705_v53, %v512_v2 }
  0xff   : > { %v514_v55 = vpop.f32.mrf.mxu0  ;;  %v707_v56 = vpop.f32.mrf.mxu1 }
 0x101   : > { %1419 = vmatmul.mubr.f32.gmra.mxu0 %v2662_v9  ;;  %1628 = vmatmul.mubr.f32.gmra.mxu1 %v2966_v27 }
 0x102   : > { %2060 = vmatprep.mubr.msk.f32.mxu0 %vm397_vm0, %v2673_v10  ;;  %2076 = vmatprep.mubr.msk.f32.mxu1 %vm397_vm0, %v2978_v31  ;;  %v517_v57 = vpop.f32.mrf.mxu0  ;;  %v710_v58 = vpop.f32.mrf.mxu1 }
 0x103   : > { %v3145_v59 = vadd.f32 %v710_v58, %v517_v57 }
 0x104   : > { %v519_v60 = vpop.f32.mrf.mxu0  ;;  %v712_v61 = vpop.f32.mrf.mxu1 }
 0x105   : > { %1424 = vmatmul.mubr.f32.gmra.mxu0 %v2680_v11  ;;  %1633 = vmatmul.mubr.f32.gmra.mxu1 %v2983_v34 }
 0x106   : > { %2061 = vmatprep.mubr.msk.f32.mxu0 %vm397_vm0, %v2691_v12  ;;  %2077 = vmatprep.mubr.msk.f32.mxu1 %vm397_vm0, %v2997_v38  ;;  %v1993_v12 = vld [vmem:[%s2454_s10 + $0x118] sm:$0xff] }
 0x107   : > { %v522_v62 = vpop.f32.mrf.mxu0  ;;  %v715_v63 = vpop.f32.mrf.mxu1 }
 0x108   : > { %v3153_v0 = vadd.f32 %v715_v63, %v522_v62 }
 0x109   : > { %1429 = vmatmul.mubr.f32.gmra.mxu0 %v2698_v13  ;;  %1638 = vmatmul.mubr.f32.gmra.mxu1 %v3005_v43  ;;  %v524_v1 = vpop.f32.mrf.mxu0  ;;  %v717_v3 = vpop.f32.mrf.mxu1  ;;  %v2025_v13 = vld [vmem:[%s2759_s23 + $0x118] sm:$0xff] }
 0x10a   : > { %2062 = vmatprep.mubr.msk.f32.mxu0 %vm397_vm0, %v2709_v14  ;;  %2078 = vmatprep.mubr.msk.f32.mxu1 %vm397_vm0, %v3017_v48 }
 0x10c   : > { %v527_v4 = vpop.f32.mrf.mxu0  ;;  %v720_v5 = vpop.f32.mrf.mxu1 }
 0x10d   : > { %1434 = vmatmul.mubr.f32.gmra.mxu0 %v2716_v15  ;;  %1643 = vmatmul.mubr.f32.gmra.mxu1 %v3022_v50  ;;  %v3163_v6 = vadd.f32 %v720_v5, %v527_v4 }
 0x10e   : > { %2063 = vmatprep.mubr.msk.f32.mxu0 %vm397_vm0, %v2727_v16  ;;  %2079 = vmatprep.mubr.msk.f32.mxu1 %vm397_vm0, %v3036_v22  ;;  %v529_v7 = vpop.f32.mrf.mxu0  ;;  %v722_v8 = vpop.f32.mrf.mxu1  ;;  %v1992_v16 = vld [vmem:[%s2454_s10 + $0x110] sm:$0xff] }
 0x111   : > { %1439 = vmatmul.mubr.f32.gmra.mxu0 %v2734_v17  ;;  %1648 = vmatmul.mubr.f32.gmra.mxu1 %v3044_v29  ;;  %v532_v9 = vpop.f32.mrf.mxu0  ;;  %v725_v10 = vpop.f32.mrf.mxu1  ;;  %v2024_v17 = vld [vmem:[%s2759_s23 + $0x110] sm:$0xff] }
 0x112   : > { %2064 = vmatprep.mubr.msk.f32.mxu0 %vm397_vm0, %v2745_v18  ;;  %2080 = vmatprep.mubr.msk.f32.mxu1 %vm397_vm0, %v3056_v41  ;;  %v3175_v11 = vadd.f32 %v725_v10, %v532_v9 }
 0x113   : > { %v534_v14 = vpop.f32.mrf.mxu0  ;;  %v727_v15 = vpop.f32.mrf.mxu1 }
 0x115   : > { %1444 = vmatmul.mubr.f32.gmra.mxu0 %v2752_v19  ;;  %1653 = vmatmul.mubr.f32.gmra.mxu1 %v3061_v45 }
 0x116   : > { %2065 = vmatprep.mubr.msk.f32.mxu0 %vm397_vm0, %v1993_v12  ;;  %2081 = vmatprep.mubr.msk.f32.mxu1 %vm397_vm0, %v2025_v13  ;;  %v537_v18 = vpop.f32.mrf.mxu0  ;;  %v730_v25 = vpop.f32.mrf.mxu1 }
 0x117   : > { %v3185_v26 = vadd.f32 %v730_v25, %v537_v18 }
 0x118   : > { %v539_v28 = vpop.f32.mrf.mxu0  ;;  %v732_v30 = vpop.f32.mrf.mxu1 }
 0x119   : > { %1449 = vmatmul.mubr.f32.gmra.mxu0 %v1992_v16  ;;  %1658 = vmatmul.mubr.f32.gmra.mxu1 %v2024_v17 }
 0x11b   : > { %v542_v32 = vpop.f32.mrf.mxu0  ;;  %v735_v33 = vpop.f32.mrf.mxu1 }
 0x11c   : > { %v3187_v35 = vadd.f32 %v735_v33, %v542_v32 }
 0x11d   : > { %v544_v19 = vpop.f32.mrf.mxu0  ;;  %v737_v37 = vpop.f32.mrf.mxu1 }
 0x120   : > { %v547_v39 = vpop.f32.mrf.mxu0  ;;  %v740_v40 = vpop.f32.mrf.mxu1 }
 0x121   : > { %v3189_v42 = vadd.f32 %v740_v40, %v547_v39 }
 0x122   : > { %v549_v44 = vpop.f32.mrf.mxu0  ;;  %v742_v46 = vpop.f32.mrf.mxu1 }
 0x125   : > { %v552_v47 = vpop.f32.mrf.mxu0  ;;  %v745_v49 = vpop.f32.mrf.mxu1 }
 0x126   : > { %v3191_v51 = vadd.f32 %v745_v49, %v552_v47 }
 0x127   : > { %v554_v20 = vpop.f32.mrf.mxu0  ;;  %v747_v21 = vpop.f32.mrf.mxu1 }
 0x12a   : > { %v557_v23 = vpop.f32.mrf.mxu0  ;;  %v750_v27 = vpop.f32.mrf.mxu1 }
 0x12b   : > { %v3193_v31 = vadd.f32 %v750_v27, %v557_v23 }
 0x12c   : > { %v559_v34 = vpop.f32.mrf.mxu0  ;;  %v752_v38 = vpop.f32.mrf.mxu1 }
 0x12f   : > { %v562_v43 = vpop.f32.mrf.mxu0  ;;  %v755_v48 = vpop.f32.mrf.mxu1 }
 0x130   : > { %v3195_v50 = vadd.f32 %v755_v48, %v562_v43 }
 0x131   : > { %v564_v22 = vpop.f32.mrf.mxu0  ;;  %v757_v29 = vpop.f32.mrf.mxu1 }
 0x134   : > { %v567_v36 = vpop.f32.mrf.mxu0  ;;  %v760_v41 = vpop.f32.mrf.mxu1 }
 0x135   : > { %v3197_v45 = vadd.f32 %v760_v41, %v567_v36 }
 0x136   : > { %v569_v52 = vpop.f32.mrf.mxu0  ;;  %v762_v24 = vpop.f32.mrf.mxu1 }
 0x139   : > { %v572_v2 = vpop.f32.mrf.mxu0  ;;  %v765_v53 = vpop.f32.mrf.mxu1 }
 0x13a   : > { %v3199_v55 = vadd.f32 %v765_v53, %v572_v2 }
 0x13b   : > { %v574_v56 = vpop.f32.mrf.mxu0  ;;  %v767_v57 = vpop.f32.mrf.mxu1 }
 0x13e   : > { %v577_v58 = vpop.f32.mrf.mxu0  ;;  %v770_v60 = vpop.f32.mrf.mxu1 }
 0x13f   : > { %v3201_v61 = vadd.f32 %v770_v60, %v577_v58 }
 0x140   : > { %v579_v62 = vpop.f32.mrf.mxu0  ;;  %v772_v63 = vpop.f32.mrf.mxu1 }
 0x143   : > { %v582_v1 = vpop.f32.mrf.mxu0  ;;  %v775_v3 = vpop.f32.mrf.mxu1 }
 0x144   : > { %v3203_v4 = vadd.f32 %v775_v3, %v582_v1 }
 0x145   : > { %v584_v5 = vpop.f32.mrf.mxu0  ;;  %v777_v7 = vpop.f32.mrf.mxu1 }
 0x148   : > { %v587_v8 = vpop.f32.mrf.mxu0  ;;  %v780_v9 = vpop.f32.mrf.mxu1 }
 0x149   : > { %v3205_v10 = vadd.f32 %v780_v9, %v587_v8 }
 0x14a   : > { %v589_v12 = vpop.f32.mrf.mxu0  ;;  %v782_v13 = vpop.f32.mrf.mxu1 }
 0x14d   : > { %v898_v14 = vpop.f32.mrf.mxu0  ;;  %v1091_v15 = vpop.f32.mrf.mxu1 }
 0x14e   : > { %v3207_v16 = vadd.f32 %v1091_v15, %v898_v14 }
 0x14f   : > { %v900_v17 = vpop.f32.mrf.mxu0  ;;  %v1093_v18 = vpop.f32.mrf.mxu1 }
 0x152   : > { %v903_v25 = vpop.f32.mrf.mxu0  ;;  %v1096_v28 = vpop.f32.mrf.mxu1 }
 0x153   : > { %v3209_v30 = vadd.f32 %v1096_v28, %v903_v25 }
 0x154   : > { %v905_v32 = vpop.f32.mrf.mxu0  ;;  %v1098_v33 = vpop.f32.mrf.mxu1 }
 0x157   : > { %v908_v19 = vpop.f32.mrf.mxu0  ;;  %v1101_v37 = vpop.f32.mrf.mxu1 }
 0x158   : > { %v3211_v39 = vadd.f32 %v1101_v37, %v908_v19 }
 0x159   : > { %v910_v40 = vpop.f32.mrf.mxu0  ;;  %v1103_v44 = vpop.f32.mrf.mxu1 }
 0x15c   : > { %v913_v46 = vpop.f32.mrf.mxu0  ;;  %v1106_v47 = vpop.f32.mrf.mxu1 }
 0x15d   : > { %v3213_v49 = vadd.f32 %v1106_v47, %v913_v46 }
 0x15e   : > { %v915_v20 = vpop.f32.mrf.mxu0  ;;  %v1108_v21 = vpop.f32.mrf.mxu1 }
 0x161   : > { %v918_v23 = vpop.f32.mrf.mxu0  ;;  %v1111_v27 = vpop.f32.mrf.mxu1 }
 0x162   : > { %v3215_v34 = vadd.f32 %v1111_v27, %v918_v23 }
 0x163   : > { %v920_v38 = vpop.f32.mrf.mxu0  ;;  %v1113_v43 = vpop.f32.mrf.mxu1 }
 0x166   : > { %v923_v48 = vpop.f32.mrf.mxu0  ;;  %v1116_v22 = vpop.f32.mrf.mxu1 }
 0x167   : > { %v3217_v29 = vadd.f32 %v1116_v22, %v923_v48 }
 0x168   : > { %v925_v36 = vpop.f32.mrf.mxu0  ;;  %v1118_v41 = vpop.f32.mrf.mxu1 }
 0x16b   : > { %v928_v52 = vpop.f32.mrf.mxu0  ;;  %v1121_v24 = vpop.f32.mrf.mxu1 }
 0x16c   : > { %v3219_v2 = vadd.f32 %v1121_v24, %v928_v52 }
 0x16d   : > { %v930_v53 = vpop.f32.mrf.mxu0  ;;  %v1123_v56 = vpop.f32.mrf.mxu1 }
 0x170   : > { %v933_v57 = vpop.f32.mrf.mxu0  ;;  %v1126_v58 = vpop.f32.mrf.mxu1 }
 0x171   : > { %v3221_v60 = vadd.f32 %v1126_v58, %v933_v57 }
 0x172   : > { %v935_v62 = vpop.f32.mrf.mxu0  ;;  %v1128_v63 = vpop.f32.mrf.mxu1 }
 0x175   : > { %v938_v1 = vpop.f32.mrf.mxu0  ;;  %v1131_v3 = vpop.f32.mrf.mxu1 }
 0x176   : > { %v3223_v5 = vadd.f32 %v1131_v3, %v938_v1 }
 0x177   : > { %v940_v7 = vpop.f32.mrf.mxu0  ;;  %v1133_v8 = vpop.f32.mrf.mxu1 }
 0x17a   : > { %v943_v9 = vpop.f32.mrf.mxu0  ;;  %v1136_v12 = vpop.f32.mrf.mxu1 }
 0x17b   : > { %v3225_v13 = vadd.f32 %v1136_v12, %v943_v9 }
 0x17c   : > { %v945_v14 = vpop.f32.mrf.mxu0  ;;  %v1138_v15 = vpop.f32.mrf.mxu1 }
 0x17f   : > { %v948_v17 = vpop.f32.mrf.mxu0  ;;  %v1141_v18 = vpop.f32.mrf.mxu1 }
 0x180   : > { %v3227_v25 = vadd.f32 %v1141_v18, %v948_v17 }
 0x181   : > { %v950_v28 = vpop.f32.mrf.mxu0  ;;  %v1143_v32 = vpop.f32.mrf.mxu1 }
 0x184   : > { %v953_v33 = vpop.f32.mrf.mxu0  ;;  %v1146_v19 = vpop.f32.mrf.mxu1 }
 0x185   : > { %v3229_v37 = vadd.f32 %v1146_v19, %v953_v33  ;;  %v3248_v19 = vld [vmem:[%s3315_s3] ss:$0 sm:$0xff] }
 0x186   : > { %v955_v40 = vpop.f32.mrf.mxu0  ;;  %v1148_v44 = vpop.f32.mrf.mxu1 }
 0x189   : > { %v958_v46 = vpop.f32.mrf.mxu0  ;;  %v1151_v47 = vpop.f32.mrf.mxu1 }
 0x18a   : > { %v3231_v20 = vadd.f32 %v1151_v47, %v958_v46 }
 0x18b   : > { %v960_v21 = vpop.f32.mrf.mxu0  ;;  %v1153_v23 = vpop.f32.mrf.mxu1 }
 0x18e   : > { %v963_v27 = vpop.f32.mrf.mxu0  ;;  %v1156_v38 = vpop.f32.mrf.mxu1 }
 0x18f   : > { %v3233_v43 = vadd.f32 %v1156_v38, %v963_v27 }
 0x190   : > { %v965_v48 = vpop.f32.mrf.mxu0  ;;  %v1158_v22 = vpop.f32.mrf.mxu1 }
 0x193   : > { %v968_v36 = vpop.f32.mrf.mxu0  ;;  %v1161_v41 = vpop.f32.mrf.mxu1 }
 0x194   : > { %v3235_v52 = vadd.f32 %v1161_v41, %v968_v36 }
 0x195   : > { %v970_v24 = vpop.f32.mrf.mxu0  ;;  %v1163_v53 = vpop.f32.mrf.mxu1 }
 0x198   : > { %v3237_v56 = vpop.f32.mrf.mxu0  ;;  %v3239_v57 = vpop.f32.mrf.mxu1 }
 0x19a   : > { %v975_v58 = vpop.f32.mrf.mxu0  ;;  %v1168_v62 = vpop.f32.mrf.mxu1 }
 0x19d   : > { %v1375_v63 = vpop.f32.mrf.mxu0  ;;  %v1584_v1 = vpop.f32.mrf.mxu1 }
 0x19e   : > { %v1454_v3 = vadd.f32 %v1375_v63, %v3137_v54  ;;  %v1663_v7 = vadd.f32 %v1584_v1, %v3207_v16 }
 0x19f   : > { %v1377_v8 = vpop.f32.mrf.mxu0  ;;  %v1586_v9 = vpop.f32.mrf.mxu1 }
 0x1a0   : > { %v1679_v12 = vmax.f32 %v1454_v3, %v1663_v7 }
 0x1a1   : > { %v1380_v14 = vpop.f32.mrf.mxu0  ;;  %v1589_v15 = vpop.f32.mrf.mxu1 }
 0x1a2   : > { %v1455_v17 = vadd.f32 %v1380_v14, %v3145_v59  ;;  %v1664_v18 = vadd.f32 %v1589_v15, %v3209_v30 }
 0x1a3   : > { %v1382_v28 = vpop.f32.mrf.mxu0  ;;  %v1591_v32 = vpop.f32.mrf.mxu1 }
 0x1a4   : > { %v1680_v33 = vmax.f32 %v1455_v17, %v1664_v18 }
 0x1a5   : > { %v1385_v54 = vpop.f32.mrf.mxu0  ;;  %v1594_v40 = vpop.f32.mrf.mxu1 }
 0x1a6   : > { %v1695_v16 = vmax.f32 %v1679_v12, %v1680_v33  ;;  %v1456_v44 = vadd.f32 %v1385_v54, %v3153_v0  ;;  %v1665_v46 = vadd.f32 %v1594_v40, %v3211_v39 }
 0x1a7   : > { %v1387_v47 = vpop.f32.mrf.mxu0  ;;  %v1596_v59 = vpop.f32.mrf.mxu1 }
 0x1a8   : > { %v1710_v30 = vadd.f32 %v3248_v19, %v1695_v16  ;;  %v1681_v21 = vmax.f32 %v1456_v44, %v1665_v46 }
 0x1a9   : > { %v1390_v23 = vpop.f32.mrf.mxu0  ;;  %v1599_v27 = vpop.f32.mrf.mxu1 }
 0x1aa   : > { %v1718_v38 = vmax.f32 %v1710_v30, 0.0  ;;  %v1457_v48 = vadd.f32 %v1390_v23, %v3163_v6  ;;  %v1666_v0 = vadd.f32 %v1599_v27, %v3213_v49 }
 0x1ab   : > { %v1392_v22 = vpop.f32.mrf.mxu0  ;;  %v1601_v39 = vpop.f32.mrf.mxu1 }
 0x1ac   : > { %1726 = vst.msk [vmem:[%s3257_s5] sm:$0xff] %vm397_vm0, %v1718_v38  ;;  %v1682_v36 = vmax.f32 %v1457_v48, %v1666_v0 }
 0x1ad   : > { %v1395_v41 = vpop.f32.mrf.mxu0  ;;  %v1604_v24 = vpop.f32.mrf.mxu1 }
 0x1ae   : > { %v1696_v53 = vmax.f32 %v1681_v21, %v1682_v36  ;;  %v1458_v58 = vadd.f32 %v1395_v41, %v3175_v11  ;;  %v1667_v62 = vadd.f32 %v1604_v24, %v3215_v34 }
 0x1af   : > { %v1397_v63 = vpop.f32.mrf.mxu0  ;;  %v1606_v1 = vpop.f32.mrf.mxu1 }
 0x1b0   : > { %v1711_v3 = vadd.f32 %v3248_v19, %v1696_v53  ;;  %v1683_v6 = vmax.f32 %v1458_v58, %v1667_v62 }
 0x1b1   : > { %v1400_v7 = vpop.f32.mrf.mxu0  ;;  %v1609_v49 = vpop.f32.mrf.mxu1 }
 0x1b2   : > { %v1719_v8 = vmax.f32 %v1711_v3, 0.0  ;;  %v1459_v9 = vadd.f32 %v1400_v7, %v3185_v26  ;;  %v1668_v12 = vadd.f32 %v1609_v49, %v3217_v29 }
 0x1b3   : > { %v1402_v14 = vpop.f32.mrf.mxu0  ;;  %v1611_v15 = vpop.f32.mrf.mxu1 }
 0x1b4   : > { %1727 = vst.msk [vmem:[%s3257_s5 + $0x8] sm:$0xff] %vm397_vm0, %v1719_v8  ;;  %v1684_v17 = vmax.f32 %v1459_v9, %v1668_v12 }
 0x1b5   : > { %v1405_v11 = vpop.f32.mrf.mxu0  ;;  %v1614_v34 = vpop.f32.mrf.mxu1 }
 0x1b6   : > { %v1697_v18 = vmax.f32 %v1683_v6, %v1684_v17  ;;  %v1460_v28 = vadd.f32 %v1405_v11, %v3187_v35  ;;  %v1669_v32 = vadd.f32 %v1614_v34, %v3219_v2 }
 0x1b7   : > { %v1407_v33 = vpop.f32.mrf.mxu0  ;;  %v1616_v54 = vpop.f32.mrf.mxu1 }
 0x1b8   : > { %v1712_v40 = vadd.f32 %v3248_v19, %v1697_v18  ;;  %v1685_v26 = vmax.f32 %v1460_v28, %v1669_v32 }
 0x1b9   : > { %v1410_v16 = vpop.f32.mrf.mxu0  ;;  %v1619_v29 = vpop.f32.mrf.mxu1 }
 0x1ba   : > { %v1720_v44 = vmax.f32 %v1712_v40, 0.0  ;;  %v1461_v46 = vadd.f32 %v1410_v16, %v3189_v42  ;;  %v1670_v47 = vadd.f32 %v1619_v29, %v3221_v60 }
 0x1bb   : > { %v1412_v59 = vpop.f32.mrf.mxu0  ;;  %v1621_v30 = vpop.f32.mrf.mxu1 }
 0x1bc   : > { %1728 = vst.msk [vmem:[%s3257_s5 + $0x10] sm:$0xff] %vm397_vm0, %v1720_v44  ;;  %v1686_v21 = vmax.f32 %v1461_v46, %v1670_v47 }
 0x1bd   : > { %v1415_v35 = vpop.f32.mrf.mxu0  ;;  %v1624_v2 = vpop.f32.mrf.mxu1 }
 0x1be   : > { %v1698_v23 = vmax.f32 %v1685_v26, %v1686_v21  ;;  %v1462_v27 = vadd.f32 %v1415_v35, %v3191_v51  ;;  %v1671_v38 = vadd.f32 %v1624_v2, %v3223_v5 }
 0x1bf   : > { %v1417_v48 = vpop.f32.mrf.mxu0  ;;  %v1626_v0 = vpop.f32.mrf.mxu1 }
 0x1c0   : > { %v1713_v22 = vadd.f32 %v3248_v19, %v1698_v23  ;;  %v1687_v42 = vmax.f32 %v1462_v27, %v1671_v38 }
 0x1c1   : > { %v1420_v39 = vpop.f32.mrf.mxu0  ;;  %v1629_v60 = vpop.f32.mrf.mxu1 }
 0x1c2   : > { %v1721_v36 = vmax.f32 %v1713_v22, 0.0  ;;  %v1463_v41 = vadd.f32 %v1420_v39, %v3193_v31  ;;  %v1672_v24 = vadd.f32 %v1629_v60, %v3225_v13 }
 0x1c3   : > { %v1422_v53 = vpop.f32.mrf.mxu0  ;;  %v1631_v58 = vpop.f32.mrf.mxu1 }
 0x1c4   : > { %1729 = vst.msk [vmem:[%s3257_s5 + $0x18] sm:$0xff] %vm397_vm0, %v1721_v36  ;;  %v1688_v62 = vmax.f32 %v1463_v41, %v1672_v24 }
 0x1c5   : > { %v1425_v51 = vpop.f32.mrf.mxu0  ;;  %v1634_v5 = vpop.f32.mrf.mxu1 }
 0x1c6   : > { %v1699_v63 = vmax.f32 %v1687_v42, %v1688_v62  ;;  %v1464_v1 = vadd.f32 %v1425_v51, %v3195_v50  ;;  %v1673_v3 = vadd.f32 %v1634_v5, %v3227_v25 }
 0x1c7   : > { %v1427_v6 = vpop.f32.mrf.mxu0  ;;  %v1636_v7 = vpop.f32.mrf.mxu1 }
 0x1c8   : > { %v1714_v49 = vadd.f32 %v3248_v19, %v1699_v63  ;;  %v1689_v31 = vmax.f32 %v1464_v1, %v1673_v3 }
 0x1c9   : > { %v1430_v8 = vpop.f32.mrf.mxu0  ;;  %v1639_v13 = vpop.f32.mrf.mxu1 }
 0x1ca   : > { %v1722_v9 = vmax.f32 %v1714_v49, 0.0  ;;  %v1465_v12 = vadd.f32 %v1430_v8, %v3197_v45  ;;  %v1674_v14 = vadd.f32 %v1639_v13, %v3229_v37 }
 0x1cb   : > { %v1432_v15 = vpop.f32.mrf.mxu0  ;;  %v1641_v17 = vpop.f32.mrf.mxu1 }
 0x1cc   : > { %1730 = vst.msk [vmem:[%s3257_s5 + $0x20] sm:$0xff] %vm397_vm0, %v1722_v9  ;;  %v1690_v11 = vmax.f32 %v1465_v12, %v1674_v14 }
 0x1cd   : > { %v1435_v50 = vpop.f32.mrf.mxu0  ;;  %v1644_v25 = vpop.f32.mrf.mxu1 }
 0x1ce   : > { %v1700_v34 = vmax.f32 %v1689_v31, %v1690_v11  ;;  %v1466_v18 = vadd.f32 %v1435_v50, %v3199_v55  ;;  %v1675_v28 = vadd.f32 %v1644_v25, %v3231_v20 }
 0x1cf   : > { %v1437_v32 = vpop.f32.mrf.mxu0  ;;  %v1646_v33 = vpop.f32.mrf.mxu1 }
 0x1d0   : > { %v1715_v54 = vadd.f32 %v3248_v19, %v1700_v34  ;;  %v1691_v45 = vmax.f32 %v1466_v18, %v1675_v28 }
 0x1d1   : > { %v1440_v40 = vpop.f32.mrf.mxu0  ;;  %v1649_v37 = vpop.f32.mrf.mxu1 }
 0x1d2   : > { %v1723_v26 = vmax.f32 %v1715_v54, 0.0  ;;  %v1467_v16 = vadd.f32 %v1440_v40, %v3201_v61  ;;  %v1676_v29 = vadd.f32 %v1649_v37, %v3233_v43  ;;  %v1167_v61 = vadd.f32 %v3239_v57, %v3237_v56 }
 0x1d3   : > { %v1442_v44 = vpop.f32.mrf.mxu0  ;;  %v1651_v46 = vpop.f32.mrf.mxu1 }
 0x1d4   : > { %1731 = vst.msk [vmem:[%s3257_s5 + $0x28] sm:$0xff] %vm397_vm0, %v1723_v26  ;;  %v1692_v47 = vmax.f32 %v1467_v16, %v1676_v29 }
 0x1d5   : > { %v1445_v55 = vpop.f32.mrf.mxu0  ;;  %v1654_v59 = vpop.f32.mrf.mxu1 }
 0x1d6   : > { %v1701_v20 = vmax.f32 %v1691_v45, %v1692_v47  ;;  %v1468_v30 = vadd.f32 %v1445_v55, %v3203_v4  ;;  %v1677_v21 = vadd.f32 %v1654_v59, %v3235_v52 }
 0x1d7   : > { %v1447_v35 = vpop.f32.mrf.mxu0  ;;  %v1656_v2 = vpop.f32.mrf.mxu1 }
 0x1d8   : > { %v1716_v43 = vadd.f32 %v3248_v19, %v1701_v20  ;;  %v1693_v23 = vmax.f32 %v1468_v30, %v1677_v21 }
 0x1d9   : > { %v1450_v27 = vpop.f32.mrf.mxu0  ;;  %v1659_v38 = vpop.f32.mrf.mxu1 }
 0x1da   : > { %v1724_v48 = vmax.f32 %v1716_v43, 0.0  ;;  %v1469_v0 = vadd.f32 %v1450_v27, %v3205_v10  ;;  %v1678_v22 = vadd.f32 %v1659_v38, %v1167_v61 }
 0x1db   : > { %v1452_v42 = vpop.f32.mrf.mxu0  ;;  %v1661_v39 = vpop.f32.mrf.mxu1 }
 0x1dc   : > { %1732 = vst.msk [vmem:[%s3257_s5 + $0x30] sm:$0xff] %vm397_vm0, %v1724_v48  ;;  %v1694_v4 = vmax.f32 %v1469_v0, %v1678_v22 }
 0x1de   : > { %v1702_v52 = vmax.f32 %v1693_v23, %v1694_v4 }
 0x1e0   : > { %v1717_v60 = vadd.f32 %v3248_v19, %v1702_v52 }
 0x1e2   : > { %v1725_v36 = vmax.f32 %v1717_v60, 0.0 }
 0x1e4   : > { %1733 = vst.msk [vmem:[%s3257_s5 + $0x38] sm:$0xff] %vm397_vm0, %v1725_v36 }
 0x1e5 PF: > { %s14_s15 = sadd.s32 1, %s2102_s15  }
 0x1e6   : > { %p11_p4 = scmp.ge.s32.totalorder %s14_s15, 4  }
 0x1e8   :  { %13 = sbr.rel (!%p11_p4) target bundleno = 1 (0x1), region = 75 }

// kernel: firstmodel_forward.5
= control target key start
LH: loop header
LB: loop body
LE: loop exit
PB: predicated region body
PF: predicated region fallthrough
CT: control target
= control target key end

     0   :  { %s1402_s15 = smov 0   ;;  %s2534_s0 = inlined_call_operand.vmem [shape: f32[144,8], index: 0, kind: input, shape index: {}]   ;;  %s2535_s1 = inlined_call_operand.vmem [shape: f32[512,432], index: 1, kind: input, shape index: {}]   ;;  %s2536_s2 = inlined_call_operand.vmem [shape: f32[1,432], index: 2, kind: input, shape index: {}]   ;;  %s2537_s3 = inlined_call_operand.vmem [shape: f32[2,8,512], index: 3, kind: input, shape index: {}]   ;;  %s2538_s4 = inlined_call_operand.vmem [shape: f32[2,144,432], index: 4, kind: output, shape index: {}]  }
   0x1 LB: > { %s1311_s16 = sadd.s32 4294967295, %s1374_s15   ;;  %p1315_p0 = scmp.ge.s32.totalorder %s1374_s15, 1  ;;  %s1374_s15 = sphi %s1402_s15, %s14_s15  }
   0x2   : > { %p162_p1 = scmp.lt.s32.totalorder %s1374_s15, 3 }
   0x4   : > { %p163_p2 = pnand %p1315_p0, %p162_p1 }
   0x5   : > { %p1712_p3 = scmp.lt.s32.totalorder (!%p163_p2), %s1311_s16, 1 }
   0x6   : > { %166 = sbr.rel (%p163_p2) target bundleno = 609 (0x261), region = 36 }
   0xb   : > { %v263_v0 = vld [vmem:[%s2535_s1 + $0x1e8] sm:$0xff]  ;;  %v262_v2 = vld [vmem:[%s2535_s1 + $0x1e0] sm:$0xff]  ;;  %s2541_s16 = smov (!%p1712_p3, %s1311_s16), 1  ;;  %vm782_vm0 = vcmask 64512   ;;  %vm1186_vm1 = vcmask 392192  }
   0xc   : > { %v391_v1 = vld [vmem:[%s2535_s1 + $0x5e8] sm:$0xff]  ;;  %458 = vmatprep.subr.mxu0 %v263_v0  ;;  %v390_v3 = vld [vmem:[%s2535_s1 + $0x5e0] sm:$0xff]  ;;  %s1357_s8 = sshll.u32 %s2541_s16, 5  ;;  %s1358_s20 = smul.u32 576, %s2541_s16 }
   0xd   : > { %529 = vmatprep.subr.mxu1 %v391_v1  ;;  %v259_v4 = vld [vmem:[%s2535_s1 + $0x1c8] sm:$0xff]  ;;  %459 = vmatpush1.msra.mxu0 %v262_v2  ;;  %v258_v6 = vld [vmem:[%s2535_s1 + $0x1c0] sm:$0xff]  ;;  %s192_s25 = scalar_lea.vmem %s2537_s3, %s1357_s8 }
   0xe   : > { %v387_v5 = vld [vmem:[%s2535_s1 + $0x5c8] sm:$0xff]  ;;  %530 = vmatpush1.msra.mxu1 %v390_v3  ;;  %v386_v7 = vld [vmem:[%s2535_s1 + $0x5c0] sm:$0xff]  ;;  %460 = vmatprep.subr.mxu0 %v259_v4  ;;  %s2359_s23 = scalar_lea.vmem %s2538_s4, %s1358_s20 }
   0xf   : > { %v255_v8 = vld [vmem:[%s2535_s1 + $0x1a8] sm:$0xff]  ;;  %531 = vmatprep.subr.mxu1 %v387_v5  ;;  %v254_v10 = vld [vmem:[%s2535_s1 + $0x1a0] sm:$0xff]  ;;  %461 = vmatpush1.msra.mxu0 %v258_v6 }
  0x10   : > { %v383_v9 = vld [vmem:[%s2535_s1 + $0x5a8] sm:$0xff]  ;;  %v382_v11 = vld [vmem:[%s2535_s1 + $0x5a0] sm:$0xff]  ;;  %532 = vmatpush1.msra.mxu1 %v386_v7  ;;  %462 = vmatprep.subr.mxu0 %v255_v8 }
  0x11   : > { %v251_v12 = vld [vmem:[%s2535_s1 + $0x188] sm:$0xff]  ;;  %533 = vmatprep.subr.mxu1 %v383_v9  ;;  %v250_v14 = vld [vmem:[%s2535_s1 + $0x180] sm:$0xff]  ;;  %463 = vmatpush1.msra.mxu0 %v254_v10 }
  0x12   : > { %v379_v13 = vld [vmem:[%s2535_s1 + $0x588] sm:$0xff]  ;;  %v378_v15 = vld [vmem:[%s2535_s1 + $0x580] sm:$0xff]  ;;  %534 = vmatpush1.msra.mxu1 %v382_v11  ;;  %464 = vmatprep.subr.mxu0 %v251_v12 }
  0x13   : > { %v247_v16 = vld [vmem:[%s2535_s1 + $0x168] sm:$0xff]  ;;  %535 = vmatprep.subr.mxu1 %v379_v13  ;;  %v246_v18 = vld [vmem:[%s2535_s1 + $0x160] sm:$0xff]  ;;  %465 = vmatpush1.msra.mxu0 %v250_v14 }
  0x14   : > { %v375_v17 = vld [vmem:[%s2535_s1 + $0x568] sm:$0xff]  ;;  %v374_v19 = vld [vmem:[%s2535_s1 + $0x560] sm:$0xff]  ;;  %536 = vmatpush1.msra.mxu1 %v378_v15  ;;  %466 = vmatprep.subr.mxu0 %v247_v16 }
  0x15   : > { %v243_v20 = vld [vmem:[%s2535_s1 + $0x148] sm:$0xff]  ;;  %537 = vmatprep.subr.mxu1 %v375_v17  ;;  %v242_v22 = vld [vmem:[%s2535_s1 + $0x140] sm:$0xff]  ;;  %467 = vmatpush1.msra.mxu0 %v246_v18 }
  0x16   : > { %v371_v21 = vld [vmem:[%s2535_s1 + $0x548] sm:$0xff]  ;;  %v370_v23 = vld [vmem:[%s2535_s1 + $0x540] sm:$0xff]  ;;  %538 = vmatpush1.msra.mxu1 %v374_v19  ;;  %468 = vmatprep.subr.mxu0 %v243_v20 }
  0x17   : > { %v239_v24 = vld [vmem:[%s2535_s1 + $0x128] sm:$0xff]  ;;  %539 = vmatprep.subr.mxu1 %v371_v21  ;;  %v238_v26 = vld [vmem:[%s2535_s1 + $0x120] sm:$0xff]  ;;  %469 = vmatpush1.msra.mxu0 %v242_v22 }
  0x18   : > { %v367_v25 = vld [vmem:[%s2535_s1 + $0x528] sm:$0xff]  ;;  %v366_v27 = vld [vmem:[%s2535_s1 + $0x520] sm:$0xff]  ;;  %540 = vmatpush1.msra.mxu1 %v370_v23  ;;  %470 = vmatprep.subr.mxu0 %v239_v24 }
  0x19   : > { %v235_v28 = vld [vmem:[%s2535_s1 + $0x108] sm:$0xff]  ;;  %541 = vmatprep.subr.mxu1 %v367_v25  ;;  %v234_v30 = vld [vmem:[%s2535_s1 + $0x100] sm:$0xff]  ;;  %471 = vmatpush1.msra.mxu0 %v238_v26 }
  0x1a   : > { %v363_v29 = vld [vmem:[%s2535_s1 + $0x508] sm:$0xff]  ;;  %v362_v31 = vld [vmem:[%s2535_s1 + $0x500] sm:$0xff]  ;;  %542 = vmatpush1.msra.mxu1 %v366_v27  ;;  %472 = vmatprep.subr.mxu0 %v235_v28 }
  0x1b   : > { %v231_v32 = vld [vmem:[%s2535_s1 + $0xe8] sm:$0xff]  ;;  %543 = vmatprep.subr.mxu1 %v363_v29  ;;  %v230_v34 = vld [vmem:[%s2535_s1 + $0xe0] sm:$0xff]  ;;  %473 = vmatpush1.msra.mxu0 %v234_v30 }
  0x1c   : > { %v359_v33 = vld [vmem:[%s2535_s1 + $0x4e8] sm:$0xff]  ;;  %v358_v35 = vld [vmem:[%s2535_s1 + $0x4e0] sm:$0xff]  ;;  %544 = vmatpush1.msra.mxu1 %v362_v31  ;;  %474 = vmatprep.subr.mxu0 %v231_v32 }
  0x1d   : > { %v227_v36 = vld [vmem:[%s2535_s1 + $0xc8] sm:$0xff]  ;;  %545 = vmatprep.subr.mxu1 %v359_v33  ;;  %v226_v38 = vld [vmem:[%s2535_s1 + $0xc0] sm:$0xff]  ;;  %475 = vmatpush1.msra.mxu0 %v230_v34 }
  0x1e   : > { %v355_v37 = vld [vmem:[%s2535_s1 + $0x4c8] sm:$0xff]  ;;  %v354_v39 = vld [vmem:[%s2535_s1 + $0x4c0] sm:$0xff]  ;;  %546 = vmatpush1.msra.mxu1 %v358_v35  ;;  %476 = vmatprep.subr.mxu0 %v227_v36 }
  0x1f   : > { %v223_v40 = vld [vmem:[%s2535_s1 + $0xa8] sm:$0xff]  ;;  %547 = vmatprep.subr.mxu1 %v355_v37  ;;  %v222_v42 = vld [vmem:[%s2535_s1 + $0xa0] sm:$0xff]  ;;  %477 = vmatpush1.msra.mxu0 %v226_v38 }
  0x20   : > { %v351_v41 = vld [vmem:[%s2535_s1 + $0x4a8] sm:$0xff]  ;;  %v350_v43 = vld [vmem:[%s2535_s1 + $0x4a0] sm:$0xff]  ;;  %548 = vmatpush1.msra.mxu1 %v354_v39  ;;  %478 = vmatprep.subr.mxu0 %v223_v40 }
  0x21   : > { %v219_v44 = vld [vmem:[%s2535_s1 + $0x88] sm:$0xff]  ;;  %549 = vmatprep.subr.mxu1 %v351_v41  ;;  %v218_v46 = vld [vmem:[%s2535_s1 + $0x80] sm:$0xff]  ;;  %479 = vmatpush1.msra.mxu0 %v222_v42 }
  0x22   : > { %v347_v45 = vld [vmem:[%s2535_s1 + $0x488] sm:$0xff]  ;;  %v346_v47 = vld [vmem:[%s2535_s1 + $0x480] sm:$0xff]  ;;  %550 = vmatpush1.msra.mxu1 %v350_v43  ;;  %480 = vmatprep.subr.mxu0 %v219_v44 }
  0x23   : > { %v215_v48 = vld [vmem:[%s2535_s1 + $0x68] sm:$0xff]  ;;  %551 = vmatprep.subr.mxu1 %v347_v45  ;;  %v214_v50 = vld [vmem:[%s2535_s1 + $0x60] sm:$0xff]  ;;  %481 = vmatpush1.msra.mxu0 %v218_v46 }
  0x24   : > { %v343_v49 = vld [vmem:[%s2535_s1 + $0x468] sm:$0xff]  ;;  %v342_v51 = vld [vmem:[%s2535_s1 + $0x460] sm:$0xff]  ;;  %552 = vmatpush1.msra.mxu1 %v346_v47  ;;  %482 = vmatprep.subr.mxu0 %v215_v48 }
  0x25   : > { %v211_v52 = vld [vmem:[%s2535_s1 + $0x48] sm:$0xff]  ;;  %553 = vmatprep.subr.mxu1 %v343_v49  ;;  %v210_v54 = vld [vmem:[%s2535_s1 + $0x40] sm:$0xff]  ;;  %483 = vmatpush1.msra.mxu0 %v214_v50 }
  0x26   : > { %v339_v53 = vld [vmem:[%s2535_s1 + $0x448] sm:$0xff]  ;;  %v338_v55 = vld [vmem:[%s2535_s1 + $0x440] sm:$0xff]  ;;  %554 = vmatpush1.msra.mxu1 %v342_v51  ;;  %484 = vmatprep.subr.mxu0 %v211_v52 }
  0x27   : > { %v207_v56 = vld [vmem:[%s2535_s1 + $0x28] sm:$0xff]  ;;  %555 = vmatprep.subr.mxu1 %v339_v53  ;;  %v206_v58 = vld [vmem:[%s2535_s1 + $0x20] sm:$0xff]  ;;  %485 = vmatpush1.msra.mxu0 %v210_v54 }
  0x28   : > { %v335_v57 = vld [vmem:[%s2535_s1 + $0x428] sm:$0xff]  ;;  %v334_v59 = vld [vmem:[%s2535_s1 + $0x420] sm:$0xff]  ;;  %556 = vmatpush1.msra.mxu1 %v338_v55  ;;  %486 = vmatprep.subr.mxu0 %v207_v56 }
  0x29   : > { %v203_v60 = vld [vmem:[%s2535_s1 + $0x8] sm:$0xff]  ;;  %557 = vmatprep.subr.mxu1 %v335_v57  ;;  %v202_v62 = vld [vmem:[%s2535_s1] sm:$0xff]  ;;  %487 = vmatpush1.msra.mxu0 %v206_v58 }
  0x2a   : > { %v331_v61 = vld [vmem:[%s2535_s1 + $0x408] sm:$0xff]  ;;  %v330_v63 = vld [vmem:[%s2535_s1 + $0x400] sm:$0xff]  ;;  %558 = vmatpush1.msra.mxu1 %v334_v59  ;;  %488 = vmatprep.subr.mxu0 %v203_v60 }
  0x2b   : > { %v327_v0 = vld [vmem:[%s2535_s1 + $0x3e8] sm:$0xff]  ;;  %559 = vmatprep.subr.mxu1 %v331_v61  ;;  %v326_v2 = vld [vmem:[%s2535_s1 + $0x3e0] sm:$0xff]  ;;  %489 = vmatpush1.msra.mxu0 %v202_v62 }
  0x2c   : > { %v455_v1 = vld [vmem:[%s2535_s1 + $0x7e8] sm:$0xff]  ;;  %v454_v3 = vld [vmem:[%s2535_s1 + $0x7e0] sm:$0xff]  ;;  %560 = vmatpush1.msra.mxu1 %v330_v63  ;;  %490 = vmatprep.subr.mxu0 %v327_v0 }
  0x2d   : > { %v323_v4 = vld [vmem:[%s2535_s1 + $0x3c8] sm:$0xff]  ;;  %561 = vmatprep.subr.mxu1 %v455_v1  ;;  %v322_v6 = vld [vmem:[%s2535_s1 + $0x3c0] sm:$0xff]  ;;  %491 = vmatpush2.msra.mxu0 %v326_v2  ;;  %v1812_v1 = vld [vmem:[%s192_s25 + $0x18] sm:$0xff] }
  0x2e   : > { %v451_v5 = vld [vmem:[%s2535_s1 + $0x7c8] sm:$0xff]  ;;  %v450_v7 = vld [vmem:[%s2535_s1 + $0x7c0] sm:$0xff]  ;;  %562 = vmatpush2.msra.mxu1 %v454_v3  ;;  %492 = vmatprep.subr.mxu0 %v323_v4  ;;  %v1816_v3 = vld [vmem:[%s192_s25 + $0x10] sm:$0xff] }
  0x2f   : > { %v319_v8 = vld [vmem:[%s2535_s1 + $0x3a8] sm:$0xff]  ;;  %563 = vmatprep.subr.mxu1 %v451_v5  ;;  %v318_v10 = vld [vmem:[%s2535_s1 + $0x3a0] sm:$0xff]  ;;  %493 = vmatpush2.msra.mxu0 %v322_v6  ;;  %v265_v4 = vld [vmem:[%s2535_s1 + $0x1f8] sm:$0xff] }
  0x30   : > { %v447_v9 = vld [vmem:[%s2535_s1 + $0x7a8] sm:$0xff]  ;;  %v446_v11 = vld [vmem:[%s2535_s1 + $0x7a0] sm:$0xff]  ;;  %564 = vmatpush2.msra.mxu1 %v450_v7  ;;  %494 = vmatprep.subr.mxu0 %v319_v8  ;;  %v393_v5 = vld [vmem:[%s2535_s1 + $0x5f8] sm:$0xff] }
  0x31   : > { %v315_v12 = vld [vmem:[%s2535_s1 + $0x388] sm:$0xff]  ;;  %565 = vmatprep.subr.mxu1 %v447_v9  ;;  %v314_v14 = vld [vmem:[%s2535_s1 + $0x380] sm:$0xff]  ;;  %495 = vmatpush2.msra.mxu0 %v318_v10  ;;  %v264_v6 = vld [vmem:[%s2535_s1 + $0x1f0] sm:$0xff] }
  0x32   : > { %v443_v13 = vld [vmem:[%s2535_s1 + $0x788] sm:$0xff]  ;;  %v442_v15 = vld [vmem:[%s2535_s1 + $0x780] sm:$0xff]  ;;  %566 = vmatpush2.msra.mxu1 %v446_v11  ;;  %496 = vmatprep.subr.mxu0 %v315_v12  ;;  %v392_v7 = vld [vmem:[%s2535_s1 + $0x5f0] sm:$0xff] }
  0x33   : > { %v311_v16 = vld [vmem:[%s2535_s1 + $0x368] sm:$0xff]  ;;  %567 = vmatprep.subr.mxu1 %v443_v13  ;;  %v310_v18 = vld [vmem:[%s2535_s1 + $0x360] sm:$0xff]  ;;  %497 = vmatpush2.msra.mxu0 %v314_v14  ;;  %v261_v8 = vld [vmem:[%s2535_s1 + $0x1d8] sm:$0xff] }
  0x34   : > { %v439_v17 = vld [vmem:[%s2535_s1 + $0x768] sm:$0xff]  ;;  %v438_v19 = vld [vmem:[%s2535_s1 + $0x760] sm:$0xff]  ;;  %568 = vmatpush2.msra.mxu1 %v442_v15  ;;  %498 = vmatprep.subr.mxu0 %v311_v16  ;;  %v389_v9 = vld [vmem:[%s2535_s1 + $0x5d8] sm:$0xff] }
  0x35   : > { %v307_v20 = vld [vmem:[%s2535_s1 + $0x348] sm:$0xff]  ;;  %569 = vmatprep.subr.mxu1 %v439_v17  ;;  %v306_v22 = vld [vmem:[%s2535_s1 + $0x340] sm:$0xff]  ;;  %499 = vmatpush2.msra.mxu0 %v310_v18  ;;  %v260_v10 = vld [vmem:[%s2535_s1 + $0x1d0] sm:$0xff] }
  0x36   : > { %v435_v21 = vld [vmem:[%s2535_s1 + $0x748] sm:$0xff]  ;;  %v434_v23 = vld [vmem:[%s2535_s1 + $0x740] sm:$0xff]  ;;  %570 = vmatpush2.msra.mxu1 %v438_v19  ;;  %500 = vmatprep.subr.mxu0 %v307_v20  ;;  %v388_v11 = vld [vmem:[%s2535_s1 + $0x5d0] sm:$0xff] }
  0x37   : > { %v303_v24 = vld [vmem:[%s2535_s1 + $0x328] sm:$0xff]  ;;  %571 = vmatprep.subr.mxu1 %v435_v21  ;;  %v302_v26 = vld [vmem:[%s2535_s1 + $0x320] sm:$0xff]  ;;  %501 = vmatpush2.msra.mxu0 %v306_v22  ;;  %v257_v12 = vld [vmem:[%s2535_s1 + $0x1b8] sm:$0xff] }
  0x38   : > { %v431_v25 = vld [vmem:[%s2535_s1 + $0x728] sm:$0xff]  ;;  %v430_v27 = vld [vmem:[%s2535_s1 + $0x720] sm:$0xff]  ;;  %572 = vmatpush2.msra.mxu1 %v434_v23  ;;  %502 = vmatprep.subr.mxu0 %v303_v24  ;;  %v385_v13 = vld [vmem:[%s2535_s1 + $0x5b8] sm:$0xff] }
  0x39   : > { %v299_v28 = vld [vmem:[%s2535_s1 + $0x308] sm:$0xff]  ;;  %573 = vmatprep.subr.mxu1 %v431_v25  ;;  %v298_v30 = vld [vmem:[%s2535_s1 + $0x300] sm:$0xff]  ;;  %503 = vmatpush2.msra.mxu0 %v302_v26  ;;  %v256_v14 = vld [vmem:[%s2535_s1 + $0x1b0] sm:$0xff] }
  0x3a   : > { %v427_v29 = vld [vmem:[%s2535_s1 + $0x708] sm:$0xff]  ;;  %v426_v31 = vld [vmem:[%s2535_s1 + $0x700] sm:$0xff]  ;;  %574 = vmatpush2.msra.mxu1 %v430_v27  ;;  %504 = vmatprep.subr.mxu0 %v299_v28  ;;  %v384_v15 = vld [vmem:[%s2535_s1 + $0x5b0] sm:$0xff] }
  0x3b   : > { %v295_v32 = vld [vmem:[%s2535_s1 + $0x2e8] sm:$0xff]  ;;  %575 = vmatprep.subr.mxu1 %v427_v29  ;;  %v294_v34 = vld [vmem:[%s2535_s1 + $0x2e0] sm:$0xff]  ;;  %505 = vmatpush2.msra.mxu0 %v298_v30  ;;  %v253_v16 = vld [vmem:[%s2535_s1 + $0x198] sm:$0xff] }
  0x3c   : > { %v423_v33 = vld [vmem:[%s2535_s1 + $0x6e8] sm:$0xff]  ;;  %v422_v35 = vld [vmem:[%s2535_s1 + $0x6e0] sm:$0xff]  ;;  %576 = vmatpush2.msra.mxu1 %v426_v31  ;;  %506 = vmatprep.subr.mxu0 %v295_v32  ;;  %v381_v17 = vld [vmem:[%s2535_s1 + $0x598] sm:$0xff] }
  0x3d   : > { %v291_v36 = vld [vmem:[%s2535_s1 + $0x2c8] sm:$0xff]  ;;  %577 = vmatprep.subr.mxu1 %v423_v33  ;;  %v290_v38 = vld [vmem:[%s2535_s1 + $0x2c0] sm:$0xff]  ;;  %507 = vmatpush2.msra.mxu0 %v294_v34  ;;  %v252_v18 = vld [vmem:[%s2535_s1 + $0x190] sm:$0xff] }
  0x3e   : > { %v419_v37 = vld [vmem:[%s2535_s1 + $0x6c8] sm:$0xff]  ;;  %v418_v39 = vld [vmem:[%s2535_s1 + $0x6c0] sm:$0xff]  ;;  %578 = vmatpush2.msra.mxu1 %v422_v35  ;;  %508 = vmatprep.subr.mxu0 %v291_v36  ;;  %v380_v19 = vld [vmem:[%s2535_s1 + $0x590] sm:$0xff] }
  0x3f   : > { %v287_v40 = vld [vmem:[%s2535_s1 + $0x2a8] sm:$0xff]  ;;  %579 = vmatprep.subr.mxu1 %v419_v37  ;;  %v286_v42 = vld [vmem:[%s2535_s1 + $0x2a0] sm:$0xff]  ;;  %509 = vmatpush2.msra.mxu0 %v290_v38  ;;  %v249_v20 = vld [vmem:[%s2535_s1 + $0x178] sm:$0xff] }
  0x40   : > { %v415_v41 = vld [vmem:[%s2535_s1 + $0x6a8] sm:$0xff]  ;;  %v414_v43 = vld [vmem:[%s2535_s1 + $0x6a0] sm:$0xff]  ;;  %580 = vmatpush2.msra.mxu1 %v418_v39  ;;  %510 = vmatprep.subr.mxu0 %v287_v40  ;;  %v377_v21 = vld [vmem:[%s2535_s1 + $0x578] sm:$0xff] }
  0x41   : > { %v283_v44 = vld [vmem:[%s2535_s1 + $0x288] sm:$0xff]  ;;  %581 = vmatprep.subr.mxu1 %v415_v41  ;;  %v282_v46 = vld [vmem:[%s2535_s1 + $0x280] sm:$0xff]  ;;  %511 = vmatpush2.msra.mxu0 %v286_v42  ;;  %v248_v22 = vld [vmem:[%s2535_s1 + $0x170] sm:$0xff] }
  0x42   : > { %v411_v45 = vld [vmem:[%s2535_s1 + $0x688] sm:$0xff]  ;;  %v410_v47 = vld [vmem:[%s2535_s1 + $0x680] sm:$0xff]  ;;  %582 = vmatpush2.msra.mxu1 %v414_v43  ;;  %512 = vmatprep.subr.mxu0 %v283_v44  ;;  %v376_v23 = vld [vmem:[%s2535_s1 + $0x570] sm:$0xff] }
  0x43   : > { %v279_v48 = vld [vmem:[%s2535_s1 + $0x268] sm:$0xff]  ;;  %583 = vmatprep.subr.mxu1 %v411_v45  ;;  %v278_v50 = vld [vmem:[%s2535_s1 + $0x260] sm:$0xff]  ;;  %513 = vmatpush2.msra.mxu0 %v282_v46  ;;  %v245_v24 = vld [vmem:[%s2535_s1 + $0x158] sm:$0xff] }
  0x44   : > { %v407_v49 = vld [vmem:[%s2535_s1 + $0x668] sm:$0xff]  ;;  %v406_v51 = vld [vmem:[%s2535_s1 + $0x660] sm:$0xff]  ;;  %584 = vmatpush2.msra.mxu1 %v410_v47  ;;  %514 = vmatprep.subr.mxu0 %v279_v48  ;;  %v373_v25 = vld [vmem:[%s2535_s1 + $0x558] sm:$0xff] }
  0x45   : > { %v275_v52 = vld [vmem:[%s2535_s1 + $0x248] sm:$0xff]  ;;  %585 = vmatprep.subr.mxu1 %v407_v49  ;;  %v274_v54 = vld [vmem:[%s2535_s1 + $0x240] sm:$0xff]  ;;  %515 = vmatpush2.msra.mxu0 %v278_v50  ;;  %v244_v26 = vld [vmem:[%s2535_s1 + $0x150] sm:$0xff] }
  0x46   : > { %v403_v53 = vld [vmem:[%s2535_s1 + $0x648] sm:$0xff]  ;;  %v402_v55 = vld [vmem:[%s2535_s1 + $0x640] sm:$0xff]  ;;  %586 = vmatpush2.msra.mxu1 %v406_v51  ;;  %516 = vmatprep.subr.mxu0 %v275_v52  ;;  %v372_v27 = vld [vmem:[%s2535_s1 + $0x550] sm:$0xff] }
  0x47   : > { %v271_v56 = vld [vmem:[%s2535_s1 + $0x228] sm:$0xff]  ;;  %587 = vmatprep.subr.mxu1 %v403_v53  ;;  %v270_v58 = vld [vmem:[%s2535_s1 + $0x220] sm:$0xff]  ;;  %517 = vmatpush2.msra.mxu0 %v274_v54  ;;  %v241_v28 = vld [vmem:[%s2535_s1 + $0x138] sm:$0xff] }
  0x48   : > { %v399_v57 = vld [vmem:[%s2535_s1 + $0x628] sm:$0xff]  ;;  %v398_v59 = vld [vmem:[%s2535_s1 + $0x620] sm:$0xff]  ;;  %588 = vmatpush2.msra.mxu1 %v402_v55  ;;  %518 = vmatprep.subr.mxu0 %v271_v56  ;;  %v369_v29 = vld [vmem:[%s2535_s1 + $0x538] sm:$0xff] }
  0x49   : > { %v267_v60 = vld [vmem:[%s2535_s1 + $0x208] sm:$0xff]  ;;  %589 = vmatprep.subr.mxu1 %v399_v57  ;;  %v266_v62 = vld [vmem:[%s2535_s1 + $0x200] sm:$0xff]  ;;  %519 = vmatpush2.msra.mxu0 %v270_v58  ;;  %v240_v30 = vld [vmem:[%s2535_s1 + $0x130] sm:$0xff] }
  0x4a   : > { %v395_v61 = vld [vmem:[%s2535_s1 + $0x608] sm:$0xff]  ;;  %590 = vmatpush2.msra.mxu1 %v398_v59  ;;  %v394_v0 = vld [vmem:[%s2535_s1 + $0x600] sm:$0xff]  ;;  %520 = vmatprep.subr.mxu0 %v267_v60  ;;  %v368_v31 = vld [vmem:[%s2535_s1 + $0x530] sm:$0xff] }
  0x4b   : > { %v1807_v63 = vld [vmem:[%s192_s25 + $0x8] sm:$0xff]  ;;  %591 = vmatprep.subr.mxu1 %v395_v61  ;;  %v1814_v2 = vld [vmem:[%s192_s25] sm:$0xff]  ;;  %521 = vmatpush2.msra.mxu0 %v266_v62  ;;  %v237_v32 = vld [vmem:[%s2535_s1 + $0x118] sm:$0xff] }
  0x4c   : > { %522 = vmatprep.mubr.f32.mxu0 %v1807_v63  ;;  %592 = vmatpush2.msra.mxu1 %v394_v0  ;;  %v365_v33 = vld [vmem:[%s2535_s1 + $0x518] sm:$0xff]  ;;  %v236_v34 = vld [vmem:[%s2535_s1 + $0x110] sm:$0xff] }
  0x4d   : > { %593 = vmatprep.mubr.f32.mxu1 %v1812_v1  ;;  %523 = vmatmul.mubr.f32.vlgmr.msra.gmra.mxu0 %v1814_v2  ;;  %v364_v35 = vld [vmem:[%s2535_s1 + $0x510] sm:$0xff]  ;;  %v233_v36 = vld [vmem:[%s2535_s1 + $0xf8] sm:$0xff] }
  0x4e   : > { %594 = vmatmul.mubr.f32.vlgmr.msra.gmra.mxu1 %v1816_v3  ;;  %600 = vmatprep.subr.mxu0 %v265_v4  ;;  %v361_v37 = vld [vmem:[%s2535_s1 + $0x4f8] sm:$0xff]  ;;  %v232_v38 = vld [vmem:[%s2535_s1 + $0xf0] sm:$0xff] }
  0x4f   : > { %671 = vmatprep.subr.mxu1 %v393_v5  ;;  %601 = vmatpush1.msra.mxu0 %v264_v6  ;;  %v360_v39 = vld [vmem:[%s2535_s1 + $0x4f0] sm:$0xff]  ;;  %v229_v40 = vld [vmem:[%s2535_s1 + $0xd8] sm:$0xff] }
  0x50   : > { %672 = vmatpush1.msra.mxu1 %v392_v7  ;;  %602 = vmatprep.subr.mxu0 %v261_v8  ;;  %v357_v41 = vld [vmem:[%s2535_s1 + $0x4d8] sm:$0xff]  ;;  %v228_v42 = vld [vmem:[%s2535_s1 + $0xd0] sm:$0xff] }
  0x51   : > { %673 = vmatprep.subr.mxu1 %v389_v9  ;;  %603 = vmatpush1.msra.mxu0 %v260_v10  ;;  %v356_v43 = vld [vmem:[%s2535_s1 + $0x4d0] sm:$0xff]  ;;  %v225_v44 = vld [vmem:[%s2535_s1 + $0xb8] sm:$0xff] }
  0x52   : > { %674 = vmatpush1.msra.mxu1 %v388_v11  ;;  %604 = vmatprep.subr.mxu0 %v257_v12  ;;  %v353_v45 = vld [vmem:[%s2535_s1 + $0x4b8] sm:$0xff]  ;;  %v224_v46 = vld [vmem:[%s2535_s1 + $0xb0] sm:$0xff] }
  0x53   : > { %675 = vmatprep.subr.mxu1 %v385_v13  ;;  %605 = vmatpush1.msra.mxu0 %v256_v14  ;;  %v352_v47 = vld [vmem:[%s2535_s1 + $0x4b0] sm:$0xff]  ;;  %v221_v48 = vld [vmem:[%s2535_s1 + $0x98] sm:$0xff] }
  0x54   : > { %676 = vmatpush1.msra.mxu1 %v384_v15  ;;  %606 = vmatprep.subr.mxu0 %v253_v16  ;;  %v349_v49 = vld [vmem:[%s2535_s1 + $0x498] sm:$0xff]  ;;  %v220_v50 = vld [vmem:[%s2535_s1 + $0x90] sm:$0xff] }
  0x55   : > { %677 = vmatprep.subr.mxu1 %v381_v17  ;;  %607 = vmatpush1.msra.mxu0 %v252_v18  ;;  %v348_v51 = vld [vmem:[%s2535_s1 + $0x490] sm:$0xff]  ;;  %v217_v52 = vld [vmem:[%s2535_s1 + $0x78] sm:$0xff] }
  0x56   : > { %678 = vmatpush1.msra.mxu1 %v380_v19  ;;  %608 = vmatprep.subr.mxu0 %v249_v20  ;;  %v345_v53 = vld [vmem:[%s2535_s1 + $0x478] sm:$0xff]  ;;  %v216_v54 = vld [vmem:[%s2535_s1 + $0x70] sm:$0xff] }
  0x57   : > { %679 = vmatprep.subr.mxu1 %v377_v21  ;;  %609 = vmatpush1.msra.mxu0 %v248_v22  ;;  %v344_v55 = vld [vmem:[%s2535_s1 + $0x470] sm:$0xff]  ;;  %v213_v56 = vld [vmem:[%s2535_s1 + $0x58] sm:$0xff] }
  0x58   : > { %680 = vmatpush1.msra.mxu1 %v376_v23  ;;  %610 = vmatprep.subr.mxu0 %v245_v24  ;;  %v341_v57 = vld [vmem:[%s2535_s1 + $0x458] sm:$0xff]  ;;  %v212_v58 = vld [vmem:[%s2535_s1 + $0x50] sm:$0xff] }
  0x59   : > { %681 = vmatprep.subr.mxu1 %v373_v25  ;;  %611 = vmatpush1.msra.mxu0 %v244_v26  ;;  %v340_v59 = vld [vmem:[%s2535_s1 + $0x450] sm:$0xff]  ;;  %v209_v60 = vld [vmem:[%s2535_s1 + $0x38] sm:$0xff] }
  0x5a   : > { %682 = vmatpush1.msra.mxu1 %v372_v27  ;;  %612 = vmatprep.subr.mxu0 %v241_v28  ;;  %v337_v61 = vld [vmem:[%s2535_s1 + $0x438] sm:$0xff]  ;;  %v208_v62 = vld [vmem:[%s2535_s1 + $0x30] sm:$0xff] }
  0x5b   : > { %683 = vmatprep.subr.mxu1 %v369_v29  ;;  %613 = vmatpush1.msra.mxu0 %v240_v30  ;;  %v336_v0 = vld [vmem:[%s2535_s1 + $0x430] sm:$0xff]  ;;  %v205_v4 = vld [vmem:[%s2535_s1 + $0x18] sm:$0xff] }
  0x5c   : > { %684 = vmatpush1.msra.mxu1 %v368_v31  ;;  %614 = vmatprep.subr.mxu0 %v237_v32  ;;  %v333_v5 = vld [vmem:[%s2535_s1 + $0x418] sm:$0xff]  ;;  %v204_v6 = vld [vmem:[%s2535_s1 + $0x10] sm:$0xff] }
  0x5d   : > { %685 = vmatprep.subr.mxu1 %v365_v33  ;;  %615 = vmatpush1.msra.mxu0 %v236_v34  ;;  %v332_v7 = vld [vmem:[%s2535_s1 + $0x410] sm:$0xff]  ;;  %v329_v8 = vld [vmem:[%s2535_s1 + $0x3f8] sm:$0xff] }
  0x5e   : > { %686 = vmatpush1.msra.mxu1 %v364_v35  ;;  %616 = vmatprep.subr.mxu0 %v233_v36  ;;  %v457_v9 = vld [vmem:[%s2535_s1 + $0x7f8] sm:$0xff]  ;;  %v328_v10 = vld [vmem:[%s2535_s1 + $0x3f0] sm:$0xff] }
  0x5f   : > { %687 = vmatprep.subr.mxu1 %v361_v37  ;;  %617 = vmatpush1.msra.mxu0 %v232_v38  ;;  %v456_v11 = vld [vmem:[%s2535_s1 + $0x7f0] sm:$0xff]  ;;  %v325_v12 = vld [vmem:[%s2535_s1 + $0x3d8] sm:$0xff] }
  0x60   : > { %688 = vmatpush1.msra.mxu1 %v360_v39  ;;  %618 = vmatprep.subr.mxu0 %v229_v40  ;;  %v453_v13 = vld [vmem:[%s2535_s1 + $0x7d8] sm:$0xff]  ;;  %v324_v14 = vld [vmem:[%s2535_s1 + $0x3d0] sm:$0xff] }
  0x61   : > { %689 = vmatprep.subr.mxu1 %v357_v41  ;;  %619 = vmatpush1.msra.mxu0 %v228_v42  ;;  %v452_v15 = vld [vmem:[%s2535_s1 + $0x7d0] sm:$0xff]  ;;  %v321_v16 = vld [vmem:[%s2535_s1 + $0x3b8] sm:$0xff] }
  0x62   : > { %690 = vmatpush1.msra.mxu1 %v356_v43  ;;  %620 = vmatprep.subr.mxu0 %v225_v44  ;;  %v449_v17 = vld [vmem:[%s2535_s1 + $0x7b8] sm:$0xff]  ;;  %v320_v18 = vld [vmem:[%s2535_s1 + $0x3b0] sm:$0xff] }
  0x63   : > { %691 = vmatprep.subr.mxu1 %v353_v45  ;;  %621 = vmatpush1.msra.mxu0 %v224_v46  ;;  %v448_v19 = vld [vmem:[%s2535_s1 + $0x7b0] sm:$0xff]  ;;  %v317_v20 = vld [vmem:[%s2535_s1 + $0x398] sm:$0xff] }
  0x64   : > { %692 = vmatpush1.msra.mxu1 %v352_v47  ;;  %622 = vmatprep.subr.mxu0 %v221_v48  ;;  %v445_v21 = vld [vmem:[%s2535_s1 + $0x798] sm:$0xff]  ;;  %v316_v22 = vld [vmem:[%s2535_s1 + $0x390] sm:$0xff] }
  0x65   : > { %693 = vmatprep.subr.mxu1 %v349_v49  ;;  %623 = vmatpush1.msra.mxu0 %v220_v50  ;;  %v444_v23 = vld [vmem:[%s2535_s1 + $0x790] sm:$0xff]  ;;  %v313_v24 = vld [vmem:[%s2535_s1 + $0x378] sm:$0xff] }
  0x66   : > { %694 = vmatpush1.msra.mxu1 %v348_v51  ;;  %624 = vmatprep.subr.mxu0 %v217_v52  ;;  %v441_v25 = vld [vmem:[%s2535_s1 + $0x778] sm:$0xff]  ;;  %v312_v26 = vld [vmem:[%s2535_s1 + $0x370] sm:$0xff] }
  0x67   : > { %695 = vmatprep.subr.mxu1 %v345_v53  ;;  %625 = vmatpush1.msra.mxu0 %v216_v54  ;;  %v440_v27 = vld [vmem:[%s2535_s1 + $0x770] sm:$0xff]  ;;  %v309_v28 = vld [vmem:[%s2535_s1 + $0x358] sm:$0xff] }
  0x68   : > { %696 = vmatpush1.msra.mxu1 %v344_v55  ;;  %626 = vmatprep.subr.mxu0 %v213_v56  ;;  %v437_v29 = vld [vmem:[%s2535_s1 + $0x758] sm:$0xff]  ;;  %v308_v30 = vld [vmem:[%s2535_s1 + $0x350] sm:$0xff] }
  0x69   : > { %697 = vmatprep.subr.mxu1 %v341_v57  ;;  %627 = vmatpush1.msra.mxu0 %v212_v58  ;;  %v436_v31 = vld [vmem:[%s2535_s1 + $0x750] sm:$0xff]  ;;  %v305_v32 = vld [vmem:[%s2535_s1 + $0x338] sm:$0xff] }
  0x6a   : > { %698 = vmatpush1.msra.mxu1 %v340_v59  ;;  %628 = vmatprep.subr.mxu0 %v209_v60  ;;  %v433_v33 = vld [vmem:[%s2535_s1 + $0x738] sm:$0xff]  ;;  %v304_v34 = vld [vmem:[%s2535_s1 + $0x330] sm:$0xff] }
  0x6b   : > { %699 = vmatprep.subr.mxu1 %v337_v61  ;;  %629 = vmatpush1.msra.mxu0 %v208_v62  ;;  %v432_v35 = vld [vmem:[%s2535_s1 + $0x730] sm:$0xff]  ;;  %v301_v36 = vld [vmem:[%s2535_s1 + $0x318] sm:$0xff] }
  0x6c   : > { %700 = vmatpush1.msra.mxu1 %v336_v0  ;;  %630 = vmatprep.subr.mxu0 %v205_v4  ;;  %v429_v37 = vld [vmem:[%s2535_s1 + $0x718] sm:$0xff]  ;;  %v300_v38 = vld [vmem:[%s2535_s1 + $0x310] sm:$0xff] }
  0x6d   : > { %701 = vmatprep.subr.mxu1 %v333_v5  ;;  %631 = vmatpush1.msra.mxu0 %v204_v6  ;;  %v428_v39 = vld [vmem:[%s2535_s1 + $0x710] sm:$0xff]  ;;  %v297_v40 = vld [vmem:[%s2535_s1 + $0x2f8] sm:$0xff] }
  0x6e   : > { %702 = vmatpush1.msra.mxu1 %v332_v7  ;;  %632 = vmatprep.subr.mxu0 %v329_v8  ;;  %v425_v41 = vld [vmem:[%s2535_s1 + $0x6f8] sm:$0xff]  ;;  %v296_v42 = vld [vmem:[%s2535_s1 + $0x2f0] sm:$0xff] }
  0x6f   : > { %703 = vmatprep.subr.mxu1 %v457_v9  ;;  %633 = vmatpush2.msra.mxu0 %v328_v10  ;;  %v424_v43 = vld [vmem:[%s2535_s1 + $0x6f0] sm:$0xff]  ;;  %v293_v44 = vld [vmem:[%s2535_s1 + $0x2d8] sm:$0xff] }
  0x70   : > { %704 = vmatpush2.msra.mxu1 %v456_v11  ;;  %634 = vmatprep.subr.mxu0 %v325_v12  ;;  %v421_v45 = vld [vmem:[%s2535_s1 + $0x6d8] sm:$0xff]  ;;  %v292_v46 = vld [vmem:[%s2535_s1 + $0x2d0] sm:$0xff]  ;;  %v1376_v12 = vmov 0.0  }
  0x71   : > { %705 = vmatprep.subr.mxu1 %v453_v13  ;;  %635 = vmatpush2.msra.mxu0 %v324_v14  ;;  %v420_v47 = vld [vmem:[%s2535_s1 + $0x6d0] sm:$0xff]  ;;  %v289_v48 = vld [vmem:[%s2535_s1 + $0x2b8] sm:$0xff] }
  0x72   : > { %706 = vmatpush2.msra.mxu1 %v452_v15  ;;  %636 = vmatprep.subr.mxu0 %v321_v16  ;;  %v417_v49 = vld [vmem:[%s2535_s1 + $0x6b8] sm:$0xff]  ;;  %v288_v50 = vld [vmem:[%s2535_s1 + $0x2b0] sm:$0xff] }
  0x73   : > { %707 = vmatprep.subr.mxu1 %v449_v17  ;;  %637 = vmatpush2.msra.mxu0 %v320_v18  ;;  %v416_v51 = vld [vmem:[%s2535_s1 + $0x6b0] sm:$0xff]  ;;  %v285_v52 = vld [vmem:[%s2535_s1 + $0x298] sm:$0xff] }
  0x74   : > { %708 = vmatpush2.msra.mxu1 %v448_v19  ;;  %638 = vmatprep.subr.mxu0 %v317_v20  ;;  %v413_v53 = vld [vmem:[%s2535_s1 + $0x698] sm:$0xff]  ;;  %v284_v54 = vld [vmem:[%s2535_s1 + $0x290] sm:$0xff]  ;;  %v746_v19 = vld [vmem:[%s2534_s0 + $0x20] sm:$0xff] }
  0x75   : > { %709 = vmatprep.subr.mxu1 %v445_v21  ;;  %639 = vmatpush2.msra.mxu0 %v316_v22  ;;  %v412_v55 = vld [vmem:[%s2535_s1 + $0x690] sm:$0xff]  ;;  %v281_v56 = vld [vmem:[%s2535_s1 + $0x278] sm:$0xff]  ;;  %v747_v20 = vld [vmem:[%s2534_s0 + $0x28] sm:$0xff] }
  0x76   : > { %710 = vmatpush2.msra.mxu1 %v444_v23  ;;  %640 = vmatprep.subr.mxu0 %v313_v24  ;;  %v409_v57 = vld [vmem:[%s2535_s1 + $0x678] sm:$0xff]  ;;  %v280_v58 = vld [vmem:[%s2535_s1 + $0x270] sm:$0xff]  ;;  %v750_v23 = vld [vmem:[%s2534_s0 + $0x40] sm:$0xff] }
  0x77   : > { %711 = vmatprep.subr.mxu1 %v441_v25  ;;  %641 = vmatpush2.msra.mxu0 %v312_v26  ;;  %v408_v59 = vld [vmem:[%s2535_s1 + $0x670] sm:$0xff]  ;;  %v277_v60 = vld [vmem:[%s2535_s1 + $0x258] sm:$0xff]  ;;  %v751_v24 = vld [vmem:[%s2534_s0 + $0x48] sm:$0xff] }
  0x78   : > { %712 = vmatpush2.msra.mxu1 %v440_v27  ;;  %642 = vmatprep.subr.mxu0 %v309_v28  ;;  %v405_v61 = vld [vmem:[%s2535_s1 + $0x658] sm:$0xff]  ;;  %v276_v62 = vld [vmem:[%s2535_s1 + $0x250] sm:$0xff]  ;;  %v754_v27 = vld [vmem:[%s2534_s0 + $0x60] sm:$0xff] }
  0x79   : > { %713 = vmatprep.subr.mxu1 %v437_v29  ;;  %643 = vmatpush2.msra.mxu0 %v308_v30  ;;  %v404_v0 = vld [vmem:[%s2535_s1 + $0x650] sm:$0xff]  ;;  %v273_v4 = vld [vmem:[%s2535_s1 + $0x238] sm:$0xff]  ;;  %v755_v28 = vld [vmem:[%s2534_s0 + $0x68] sm:$0xff] }
  0x7a   : > { %714 = vmatpush2.msra.mxu1 %v436_v31  ;;  %644 = vmatprep.subr.mxu0 %v305_v32  ;;  %v401_v5 = vld [vmem:[%s2535_s1 + $0x638] sm:$0xff]  ;;  %v272_v6 = vld [vmem:[%s2535_s1 + $0x230] sm:$0xff] }
  0x7b   : > { %715 = vmatprep.subr.mxu1 %v433_v33  ;;  %645 = vmatpush2.msra.mxu0 %v304_v34  ;;  %v400_v7 = vld [vmem:[%s2535_s1 + $0x630] sm:$0xff]  ;;  %v269_v8 = vld [vmem:[%s2535_s1 + $0x218] sm:$0xff] }
  0x7c   : > { %716 = vmatpush2.msra.mxu1 %v432_v35  ;;  %646 = vmatprep.subr.mxu0 %v301_v36  ;;  %v397_v9 = vld [vmem:[%s2535_s1 + $0x618] sm:$0xff]  ;;  %v268_v10 = vld [vmem:[%s2535_s1 + $0x210] sm:$0xff]  ;;  %v758_v35 = vld [vmem:[%s2534_s0 + $0x80] sm:$0xff] }
  0x7d   : > { %717 = vmatprep.subr.mxu1 %v429_v37  ;;  %647 = vmatpush2.msra.mxu0 %v300_v38  ;;  %v396_v11 = vld [vmem:[%s2535_s1 + $0x610] sm:$0xff]  ;;  %v749_v22 = vld [vmem:[%s2534_s0 + $0x38] sm:$0xff]  ;;  %v759_v38 = vld [vmem:[%s2534_s0 + $0x88] sm:$0xff] }
  0x7e   : > { %718 = vmatpush2.msra.mxu1 %v428_v39  ;;  %648 = vmatprep.subr.mxu0 %v297_v40  ;;  %v748_v21 = vld [vmem:[%s2534_s0 + $0x30] sm:$0xff]  ;;  %v753_v26 = vld [vmem:[%s2534_s0 + $0x58] sm:$0xff]  ;;  %v762_v39 = vlaneseq }
  0x7f   : > { %719 = vmatprep.subr.mxu1 %v425_v41  ;;  %649 = vmatpush2.msra.mxu0 %v296_v42  ;;  %v752_v25 = vld [vmem:[%s2534_s0 + $0x50] sm:$0xff]  ;;  %v757_v30 = vld [vmem:[%s2534_s0 + $0x78] sm:$0xff]  ;;  %v2346_v42 = vld [vmem:[%s2536_s2] sm:$0xf] }
  0x80   : > { %720 = vmatpush2.msra.mxu1 %v424_v43  ;;  %650 = vmatprep.subr.mxu0 %v293_v44  ;;  %v756_v29 = vld [vmem:[%s2534_s0 + $0x70] sm:$0xff]  ;;  %v2340_v40 = vshrl.u32 %v762_v39, 7 }
  0x81   : > { %721 = vmatprep.subr.mxu1 %v421_v45  ;;  %651 = vmatpush2.msra.mxu0 %v292_v46 }
  0x82   : > { %722 = vmatpush2.msra.mxu1 %v420_v47  ;;  %652 = vmatprep.subr.mxu0 %v289_v48  ;;  %v764_v41 = vsub.s32 0, %v2340_v40  ;;  %v768_v43 = vsub.s32 1, %v2340_v40 }
  0x83   : > { %723 = vmatprep.subr.mxu1 %v417_v49  ;;  %653 = vmatpush2.msra.mxu0 %v288_v50 }
  0x84   : > { %724 = vmatpush2.msra.mxu1 %v416_v51  ;;  %654 = vmatprep.subr.mxu0 %v285_v52  ;;  %v2351_v44 = vrot.slane %v2346_v42, %v764_v41  ;;  %v2354_v45 = vrot.slane %v2346_v42, %v768_v43  ;;  %v772_v43 = vsub.s32 2, %v2340_v40 }
  0x85   : > { %725 = vmatprep.subr.mxu1 %v413_v53  ;;  %655 = vmatpush2.msra.mxu0 %v284_v54 }
  0x86   : > { %726 = vmatpush2.msra.mxu1 %v412_v55  ;;  %656 = vmatprep.subr.mxu0 %v281_v56 }
  0x87   : > { %727 = vmatprep.subr.mxu1 %v409_v57  ;;  %657 = vmatpush2.msra.mxu0 %v280_v58 }
  0x88   : > { %728 = vmatpush2.msra.mxu1 %v408_v59  ;;  %658 = vmatprep.subr.mxu0 %v277_v60 }
  0x89   : > { %729 = vmatprep.subr.mxu1 %v405_v61  ;;  %659 = vmatpush2.msra.mxu0 %v276_v62 }
  0x8a   : > { %730 = vmatpush2.msra.mxu1 %v404_v0  ;;  %660 = vmatprep.subr.mxu0 %v273_v4 }
  0x8b   : > { %731 = vmatprep.subr.mxu1 %v401_v5  ;;  %661 = vmatpush2.msra.mxu0 %v272_v6 }
  0x8c   : > { %732 = vmatpush2.msra.mxu1 %v400_v7  ;;  %662 = vmatprep.subr.mxu0 %v269_v8 }
  0x8d   : > { %733 = vmatprep.subr.mxu1 %v397_v9  ;;  %663 = vmatpush2.msra.mxu0 %v268_v10 }
  0x8e   : > { %664 = vmatprep.mubr.f32.mxu0 %v1807_v63  ;;  %734 = vmatpush2.msra.mxu1 %v396_v11  ;;  %v2215_v63 = vld [vmem:[%s2534_s0] sm:$0xff] }
  0x8f   : > { %735 = vmatprep.mubr.f32.mxu1 %v1812_v1  ;;  %665 = vmatmul.mubr.f32.vlgmr.msra.gmra.mxu0 %v1814_v2  ;;  %v743_v1 = vld [vmem:[%s2534_s0 + $0x8] sm:$0xff]  ;;  %v744_v2 = vld [vmem:[%s2534_s0 + $0x10] sm:$0xff] }
  0x90   : > { %736 = vmatmul.mubr.f32.vlgmr.msra.gmra.mxu1 %v1816_v3  ;;  %901 = vmatprep.mubr.f32.mxu0 %v1376_v12  ;;  %v745_v3 = vld [vmem:[%s2534_s0 + $0x18] sm:$0xff] }
  0x91   : > { %1074 = vmatprep.mubr.f32.mxu1 %v1376_v12 }
 0x10d   : > { %v524_v13 = vpop.f32.mrf.mxu0 }
 0x10e   : > { %v595_v14 = vpop.f32.mrf.mxu1 }
 0x10f   : > { %v526_v15 = vpop.f32.mrf.mxu0  ;;  %v596_v18 = vadd.f32 %v595_v14, %v524_v13 }
 0x110   : > { %v597_v16 = vpop.f32.mrf.mxu1 }
 0x111   : > { %v598_v17 = vadd.f32 %v597_v16, %v526_v15 }
 0x113   : > { %867 = vmatprep.subr.mxu0 %v598_v17 }
 0x114   : > { %868 = vmatpush1.msra.mxu0 %v596_v18 }
 0x115   : > { %1319 = vmatmul.mubr.msk.f32.vlgmr.msra.gmra.mxu0 %vm782_vm0, %v2215_v63 }
 0x116   : > { %907 = vmatprep.mubr.f32.mxu0 %v1376_v12 }
 0x119   : > { %1320 = vmatmul.mubr.msk.f32.gmra.mxu0 %vm782_vm0, %v743_v1 }
 0x11a   : > { %913 = vmatprep.mubr.f32.mxu0 %v1376_v12 }
 0x11d   : > { %1321 = vmatmul.mubr.msk.f32.gmra.mxu0 %vm782_vm0, %v744_v2 }
 0x11e   : > { %919 = vmatprep.mubr.f32.mxu0 %v1376_v12 }
 0x121   : > { %1322 = vmatmul.mubr.msk.f32.gmra.mxu0 %vm782_vm0, %v745_v3 }
 0x122   : > { %925 = vmatprep.mubr.f32.mxu0 %v1376_v12 }
 0x125   : > { %1323 = vmatmul.mubr.msk.f32.gmra.mxu0 %vm782_vm0, %v746_v19 }
 0x126   : > { %931 = vmatprep.mubr.f32.mxu0 %v1376_v12 }
 0x129   : > { %1324 = vmatmul.mubr.msk.f32.gmra.mxu0 %vm782_vm0, %v747_v20 }
 0x12a   : > { %937 = vmatprep.mubr.f32.mxu0 %v1376_v12 }
 0x12d   : > { %1325 = vmatmul.mubr.msk.f32.gmra.mxu0 %vm782_vm0, %v748_v21 }
 0x12e   : > { %943 = vmatprep.mubr.f32.mxu0 %v1376_v12 }
 0x131   : > { %1326 = vmatmul.mubr.msk.f32.gmra.mxu0 %vm782_vm0, %v749_v22 }
 0x132   : > { %949 = vmatprep.mubr.f32.mxu0 %v1376_v12 }
 0x135   : > { %1327 = vmatmul.mubr.msk.f32.gmra.mxu0 %vm782_vm0, %v750_v23 }
 0x136   : > { %955 = vmatprep.mubr.f32.mxu0 %v1376_v12 }
 0x139   : > { %1328 = vmatmul.mubr.msk.f32.gmra.mxu0 %vm782_vm0, %v751_v24 }
 0x13a   : > { %961 = vmatprep.mubr.f32.mxu0 %v1376_v12 }
 0x13d   : > { %1329 = vmatmul.mubr.msk.f32.gmra.mxu0 %vm782_vm0, %v752_v25 }
 0x13e   : > { %967 = vmatprep.mubr.f32.mxu0 %v1376_v12 }
 0x141   : > { %1330 = vmatmul.mubr.msk.f32.gmra.mxu0 %vm782_vm0, %v753_v26 }
 0x142   : > { %973 = vmatprep.mubr.f32.mxu0 %v1376_v12 }
 0x145   : > { %1331 = vmatmul.mubr.msk.f32.gmra.mxu0 %vm782_vm0, %v754_v27 }
 0x146   : > { %979 = vmatprep.mubr.f32.mxu0 %v1376_v12 }
 0x149   : > { %1332 = vmatmul.mubr.msk.f32.gmra.mxu0 %vm782_vm0, %v755_v28 }
 0x14a   : > { %985 = vmatprep.mubr.f32.mxu0 %v1376_v12 }
 0x14d   : > { %1333 = vmatmul.mubr.msk.f32.gmra.mxu0 %vm782_vm0, %v756_v29 }
 0x14e   : > { %991 = vmatprep.mubr.f32.mxu0 %v1376_v12 }
 0x14f   : > { %v666_v31 = vpop.f32.mrf.mxu0 }
 0x150   : > { %v737_v32 = vpop.f32.mrf.mxu1 }
 0x151   : > { %1334 = vmatmul.mubr.msk.f32.gmra.mxu0 %vm782_vm0, %v757_v30  ;;  %v668_v33 = vpop.f32.mrf.mxu0  ;;  %v738_v37 = vadd.f32 %v737_v32, %v666_v31 }
 0x152   : > { %v739_v34 = vpop.f32.mrf.mxu1  ;;  %997 = vmatprep.mubr.f32.mxu0 %v1376_v12 }
 0x153   : > { %v740_v36 = vadd.f32 %v739_v34, %v668_v33 }
 0x155   : > { %1040 = vmatprep.subr.mxu1 %v740_v36  ;;  %1335 = vmatmul.mubr.msk.f32.gmra.mxu0 %vm782_vm0, %v758_v35 }
 0x156   : > { %1041 = vmatpush1.msra.mxu1 %v738_v37  ;;  %1003 = vmatprep.mubr.f32.mxu0 %v1376_v12 }
 0x157   : > { %1337 = vmatmul.mubr.msk.f32.vlgmr.msra.gmra.mxu1 %vm782_vm0, %v2215_v63 }
 0x158   : > { %1080 = vmatprep.mubr.f32.mxu1 %v1376_v12 }
 0x159   : > { %1336 = vmatmul.mubr.msk.f32.gmra.mxu0 %vm782_vm0, %v759_v38 }
 0x15b   : > { %1338 = vmatmul.mubr.msk.f32.gmra.mxu1 %vm782_vm0, %v743_v1 }
 0x15c   : > { %1086 = vmatprep.mubr.f32.mxu1 %v1376_v12 }
 0x15f   : > { %1339 = vmatmul.mubr.msk.f32.gmra.mxu1 %vm782_vm0, %v744_v2 }
 0x160   : > { %1092 = vmatprep.mubr.f32.mxu1 %v1376_v12 }
 0x163   : > { %1340 = vmatmul.mubr.msk.f32.gmra.mxu1 %vm782_vm0, %v745_v3 }
 0x164   : > { %1098 = vmatprep.mubr.f32.mxu1 %v1376_v12 }
 0x167   : > { %1341 = vmatmul.mubr.msk.f32.gmra.mxu1 %vm782_vm0, %v746_v19 }
 0x168   : > { %1104 = vmatprep.mubr.f32.mxu1 %v1376_v12 }
 0x16b   : > { %1342 = vmatmul.mubr.msk.f32.gmra.mxu1 %vm782_vm0, %v747_v20 }
 0x16c   : > { %1110 = vmatprep.mubr.f32.mxu1 %v1376_v12 }
 0x16f   : > { %1343 = vmatmul.mubr.msk.f32.gmra.mxu1 %vm782_vm0, %v748_v21 }
 0x170   : > { %1116 = vmatprep.mubr.f32.mxu1 %v1376_v12 }
 0x173   : > { %1344 = vmatmul.mubr.msk.f32.gmra.mxu1 %vm782_vm0, %v749_v22 }
 0x174   : > { %1122 = vmatprep.mubr.f32.mxu1 %v1376_v12 }
 0x177   : > { %1345 = vmatmul.mubr.msk.f32.gmra.mxu1 %vm782_vm0, %v750_v23 }
 0x178   : > { %1128 = vmatprep.mubr.f32.mxu1 %v1376_v12 }
 0x17b   : > { %1346 = vmatmul.mubr.msk.f32.gmra.mxu1 %vm782_vm0, %v751_v24 }
 0x17c   : > { %1134 = vmatprep.mubr.f32.mxu1 %v1376_v12 }
 0x17f   : > { %1347 = vmatmul.mubr.msk.f32.gmra.mxu1 %vm782_vm0, %v752_v25 }
 0x180   : > { %1140 = vmatprep.mubr.f32.mxu1 %v1376_v12 }
 0x183   : > { %1348 = vmatmul.mubr.msk.f32.gmra.mxu1 %vm782_vm0, %v753_v26 }
 0x184   : > { %1146 = vmatprep.mubr.f32.mxu1 %v1376_v12 }
 0x187   : > { %1349 = vmatmul.mubr.msk.f32.gmra.mxu1 %vm782_vm0, %v754_v27 }
 0x188   : > { %1152 = vmatprep.mubr.f32.mxu1 %v1376_v12 }
 0x18b   : > { %1350 = vmatmul.mubr.msk.f32.gmra.mxu1 %vm782_vm0, %v755_v28 }
 0x18c   : > { %1158 = vmatprep.mubr.f32.mxu1 %v1376_v12 }
 0x18f   : > { %1351 = vmatmul.mubr.msk.f32.gmra.mxu1 %vm782_vm0, %v756_v29 }
 0x190   : > { %1164 = vmatprep.mubr.f32.mxu1 %v1376_v12 }
 0x193   : > { %1352 = vmatmul.mubr.msk.f32.gmra.mxu1 %vm782_vm0, %v757_v30 }
 0x194   : > { %1170 = vmatprep.mubr.f32.mxu1 %v1376_v12 }
 0x197   : > { %1353 = vmatmul.mubr.msk.f32.gmra.mxu1 %vm782_vm0, %v758_v35 }
 0x198   : > { %1176 = vmatprep.mubr.f32.mxu1 %v1376_v12 }
 0x19b   : > { %1354 = vmatmul.mubr.msk.f32.gmra.mxu1 %vm782_vm0, %v759_v38 }
 0x1d5   : > { %v903_v46 = vpop.f32.mrf.mxu0 }
 0x1d6   : > { %v904_v47 = vadd.f32 %v903_v46, %v2351_v44 }
 0x1d7   : > { %v905_v48 = vpop.f32.mrf.mxu0 }
 0x1d8   : > { %1183 = vst [vmem:[%s2359_s23] sm:$0xff] %v904_v47  ;;  %v906_v49 = vadd.f32 %v905_v48, %v2354_v45  ;;  %v776_v48 = vsub.s32 3, %v2340_v40 }
 0x1d9   : > { %v909_v50 = vpop.f32.mrf.mxu0 }
 0x1da   : > { %1184 = vst [vmem:[%s2359_s23 + $0x8] sm:$0xff] %v906_v49  ;;  %v910_v51 = vadd.f32 %v909_v50, %v2351_v44 }
 0x1db   : > { %v911_v52 = vpop.f32.mrf.mxu0 }
 0x1dc   : > { %1188 = vst [vmem:[%s2359_s23 + $0x20] sm:$0xff] %v910_v51  ;;  %v912_v53 = vadd.f32 %v911_v52, %v2354_v45  ;;  %v2425_v51 = vrot.slane %v2346_v42, %v772_v43 }
 0x1dd   : > { %v915_v54 = vpop.f32.mrf.mxu0 }
 0x1de   : > { %1189 = vst [vmem:[%s2359_s23 + $0x28] sm:$0xff] %v912_v53  ;;  %v916_v55 = vadd.f32 %v915_v54, %v2351_v44  ;;  %v2430_v54 = vrot.slane %v2346_v42, %v776_v48 }
 0x1df   : > { %v917_v56 = vpop.f32.mrf.mxu0 }
 0x1e0   : > { %1192 = vst [vmem:[%s2359_s23 + $0x40] sm:$0xff] %v916_v55  ;;  %v918_v57 = vadd.f32 %v917_v56, %v2354_v45 }
 0x1e1   : > { %v921_v58 = vpop.f32.mrf.mxu0 }
 0x1e2   : > { %1193 = vst [vmem:[%s2359_s23 + $0x48] sm:$0xff] %v918_v57  ;;  %v922_v59 = vadd.f32 %v921_v58, %v2351_v44 }
 0x1e3   : > { %v923_v60 = vpop.f32.mrf.mxu0 }
 0x1e4   : > { %1196 = vst [vmem:[%s2359_s23 + $0x60] sm:$0xff] %v922_v59  ;;  %v924_v61 = vadd.f32 %v923_v60, %v2354_v45 }
 0x1e5   : > { %v927_v62 = vpop.f32.mrf.mxu0 }
 0x1e6   : > { %1197 = vst [vmem:[%s2359_s23 + $0x68] sm:$0xff] %v924_v61  ;;  %v928_v0 = vadd.f32 %v927_v62, %v2351_v44 }
 0x1e7   : > { %v929_v4 = vpop.f32.mrf.mxu0 }
 0x1e8   : > { %1200 = vst [vmem:[%s2359_s23 + $0x80] sm:$0xff] %v928_v0  ;;  %v930_v5 = vadd.f32 %v929_v4, %v2354_v45 }
 0x1e9   : > { %v933_v6 = vpop.f32.mrf.mxu0 }
 0x1ea   : > { %1201 = vst [vmem:[%s2359_s23 + $0x88] sm:$0xff] %v930_v5  ;;  %v934_v7 = vadd.f32 %v933_v6, %v2351_v44 }
 0x1eb   : > { %v935_v8 = vpop.f32.mrf.mxu0 }
 0x1ec   : > { %1204 = vst [vmem:[%s2359_s23 + $0xa0] sm:$0xff] %v934_v7  ;;  %v936_v9 = vadd.f32 %v935_v8, %v2354_v45 }
 0x1ed   : > { %v939_v10 = vpop.f32.mrf.mxu0 }
 0x1ee   : > { %1205 = vst [vmem:[%s2359_s23 + $0xa8] sm:$0xff] %v936_v9  ;;  %v940_v11 = vadd.f32 %v939_v10, %v2351_v44 }
 0x1ef   : > { %v941_v12 = vpop.f32.mrf.mxu0 }
 0x1f0   : > { %1208 = vst [vmem:[%s2359_s23 + $0xc0] sm:$0xff] %v940_v11  ;;  %v942_v13 = vadd.f32 %v941_v12, %v2354_v45 }
 0x1f1   : > { %v945_v14 = vpop.f32.mrf.mxu0 }
 0x1f2   : > { %1209 = vst [vmem:[%s2359_s23 + $0xc8] sm:$0xff] %v942_v13  ;;  %v946_v15 = vadd.f32 %v945_v14, %v2351_v44 }
 0x1f3   : > { %v947_v16 = vpop.f32.mrf.mxu0 }
 0x1f4   : > { %1212 = vst [vmem:[%s2359_s23 + $0xe0] sm:$0xff] %v946_v15  ;;  %v948_v17 = vadd.f32 %v947_v16, %v2354_v45 }
 0x1f5   : > { %v951_v18 = vpop.f32.mrf.mxu0 }
 0x1f6   : > { %1213 = vst [vmem:[%s2359_s23 + $0xe8] sm:$0xff] %v948_v17  ;;  %v952_v63 = vadd.f32 %v951_v18, %v2351_v44 }
 0x1f7   : > { %v953_v1 = vpop.f32.mrf.mxu0 }
 0x1f8   : > { %1216 = vst [vmem:[%s2359_s23 + $0x100] sm:$0xff] %v952_v63  ;;  %v954_v2 = vadd.f32 %v953_v1, %v2354_v45 }
 0x1f9   : > { %v957_v3 = vpop.f32.mrf.mxu0 }
 0x1fa   : > { %1217 = vst [vmem:[%s2359_s23 + $0x108] sm:$0xff] %v954_v2  ;;  %v958_v19 = vadd.f32 %v957_v3, %v2351_v44 }
 0x1fb   : > { %v959_v20 = vpop.f32.mrf.mxu0 }
 0x1fc   : > { %1220 = vst [vmem:[%s2359_s23 + $0x120] sm:$0xff] %v958_v19  ;;  %v960_v21 = vadd.f32 %v959_v20, %v2354_v45 }
 0x1fd   : > { %v963_v22 = vpop.f32.mrf.mxu0 }
 0x1fe   : > { %1221 = vst [vmem:[%s2359_s23 + $0x128] sm:$0xff] %v960_v21  ;;  %v964_v23 = vadd.f32 %v963_v22, %v2351_v44 }
 0x1ff   : > { %v965_v24 = vpop.f32.mrf.mxu0 }
 0x200   : > { %1224 = vst [vmem:[%s2359_s23 + $0x140] sm:$0xff] %v964_v23  ;;  %v966_v25 = vadd.f32 %v965_v24, %v2354_v45 }
 0x201   : > { %v969_v26 = vpop.f32.mrf.mxu0 }
 0x202   : > { %1225 = vst [vmem:[%s2359_s23 + $0x148] sm:$0xff] %v966_v25  ;;  %v970_v27 = vadd.f32 %v969_v26, %v2351_v44 }
 0x203   : > { %v971_v28 = vpop.f32.mrf.mxu0 }
 0x204   : > { %1228 = vst [vmem:[%s2359_s23 + $0x160] sm:$0xff] %v970_v27  ;;  %v972_v29 = vadd.f32 %v971_v28, %v2354_v45 }
 0x205   : > { %v975_v30 = vpop.f32.mrf.mxu0 }
 0x206   : > { %1229 = vst [vmem:[%s2359_s23 + $0x168] sm:$0xff] %v972_v29  ;;  %v976_v31 = vadd.f32 %v975_v30, %v2351_v44 }
 0x207   : > { %v977_v32 = vpop.f32.mrf.mxu0 }
 0x208   : > { %1232 = vst [vmem:[%s2359_s23 + $0x180] sm:$0xff] %v976_v31  ;;  %v978_v33 = vadd.f32 %v977_v32, %v2354_v45 }
 0x209   : > { %v981_v34 = vpop.f32.mrf.mxu0 }
 0x20a   : > { %1233 = vst [vmem:[%s2359_s23 + $0x188] sm:$0xff] %v978_v33  ;;  %v982_v35 = vadd.f32 %v981_v34, %v2351_v44 }
 0x20b   : > { %v983_v36 = vpop.f32.mrf.mxu0 }
 0x20c   : > { %1236 = vst [vmem:[%s2359_s23 + $0x1a0] sm:$0xff] %v982_v35  ;;  %v984_v37 = vadd.f32 %v983_v36, %v2354_v45 }
 0x20d   : > { %v987_v38 = vpop.f32.mrf.mxu0 }
 0x20e   : > { %1237 = vst [vmem:[%s2359_s23 + $0x1a8] sm:$0xff] %v984_v37  ;;  %v988_v39 = vadd.f32 %v987_v38, %v2351_v44 }
 0x20f   : > { %v989_v41 = vpop.f32.mrf.mxu0 }
 0x210   : > { %1240 = vst [vmem:[%s2359_s23 + $0x1c0] sm:$0xff] %v988_v39  ;;  %v990_v46 = vadd.f32 %v989_v41, %v2354_v45 }
 0x211   : > { %v993_v47 = vpop.f32.mrf.mxu0 }
 0x212   : > { %1241 = vst [vmem:[%s2359_s23 + $0x1c8] sm:$0xff] %v990_v46  ;;  %v994_v49 = vadd.f32 %v993_v47, %v2351_v44 }
 0x213   : > { %v995_v50 = vpop.f32.mrf.mxu0 }
 0x214   : > { %1244 = vst [vmem:[%s2359_s23 + $0x1e0] sm:$0xff] %v994_v49  ;;  %v996_v52 = vadd.f32 %v995_v50, %v2354_v45 }
 0x215   : > { %v999_v53 = vpop.f32.mrf.mxu0 }
 0x216   : > { %1245 = vst [vmem:[%s2359_s23 + $0x1e8] sm:$0xff] %v996_v52  ;;  %v1000_v40 = vadd.f32 %v999_v53, %v2351_v44 }
 0x217   : > { %v1076_v55 = vpop.f32.mrf.mxu1  ;;  %v1001_v56 = vpop.f32.mrf.mxu0 }
 0x218   : > { %v1077_v57 = vadd.f32 %v1076_v55, %v2425_v51  ;;  %1248 = vst [vmem:[%s2359_s23 + $0x200] sm:$0xff] %v1000_v40  ;;  %v1002_v58 = vadd.f32 %v1001_v56, %v2354_v45 }
 0x219   : > { %v1078_v59 = vpop.f32.mrf.mxu1  ;;  %v1005_v60 = vpop.f32.mrf.mxu0 }
 0x21a   : > { %1185 = vst [vmem:[%s2359_s23 + $0x10] sm:$0xff] %v1077_v57  ;;  %v1079_v42 = vadd.f32 %v1078_v59, %v2430_v54  ;;  %1249 = vst [vmem:[%s2359_s23 + $0x208] sm:$0xff] %v1002_v58  ;;  %v1006_v61 = vadd.f32 %v1005_v60, %v2351_v44 }
 0x21b   : > { %v1082_v62 = vpop.f32.mrf.mxu1  ;;  %v1007_v0 = vpop.f32.mrf.mxu0 }
 0x21c   : > { %1187 = vst.msk [vmem:[%s2359_s23 + $0x18] sm:$0xff] %vm1186_vm1, %v1079_v42  ;;  %v1083_v4 = vadd.f32 %v1082_v62, %v2425_v51  ;;  %1252 = vst [vmem:[%s2359_s23 + $0x220] sm:$0xff] %v1006_v61  ;;  %v1008_v5 = vadd.f32 %v1007_v0, %v2354_v45 }
 0x21d   : > { %v1084_v6 = vpop.f32.mrf.mxu1 }
 0x21e   : > { %1190 = vst [vmem:[%s2359_s23 + $0x30] sm:$0xff] %v1083_v4  ;;  %v1085_v7 = vadd.f32 %v1084_v6, %v2430_v54  ;;  %1253 = vst [vmem:[%s2359_s23 + $0x228] sm:$0xff] %v1008_v5 }
 0x21f   : > { %v1088_v8 = vpop.f32.mrf.mxu1 }
 0x220   : > { %1191 = vst.msk [vmem:[%s2359_s23 + $0x38] sm:$0xff] %vm1186_vm1, %v1085_v7  ;;  %v1089_v44 = vadd.f32 %v1088_v8, %v2425_v51 }
 0x221   : > { %v1090_v9 = vpop.f32.mrf.mxu1 }
 0x222   : > { %1194 = vst [vmem:[%s2359_s23 + $0x50] sm:$0xff] %v1089_v44  ;;  %v1091_v10 = vadd.f32 %v1090_v9, %v2430_v54 }
 0x223   : > { %v1094_v11 = vpop.f32.mrf.mxu1 }
 0x224   : > { %1195 = vst.msk [vmem:[%s2359_s23 + $0x58] sm:$0xff] %vm1186_vm1, %v1091_v10  ;;  %v1095_v45 = vadd.f32 %v1094_v11, %v2425_v51 }
 0x225   : > { %v1096_v12 = vpop.f32.mrf.mxu1 }
 0x226   : > { %1198 = vst [vmem:[%s2359_s23 + $0x70] sm:$0xff] %v1095_v45  ;;  %v1097_v13 = vadd.f32 %v1096_v12, %v2430_v54 }
 0x227   : > { %v1100_v14 = vpop.f32.mrf.mxu1 }
 0x228   : > { %1199 = vst.msk [vmem:[%s2359_s23 + $0x78] sm:$0xff] %vm1186_vm1, %v1097_v13  ;;  %v1101_v15 = vadd.f32 %v1100_v14, %v2425_v51 }
 0x229   : > { %v1102_v16 = vpop.f32.mrf.mxu1 }
 0x22a   : > { %1202 = vst [vmem:[%s2359_s23 + $0x90] sm:$0xff] %v1101_v15  ;;  %v1103_v17 = vadd.f32 %v1102_v16, %v2430_v54 }
 0x22b   : > { %v1106_v18 = vpop.f32.mrf.mxu1 }
 0x22c   : > { %1203 = vst.msk [vmem:[%s2359_s23 + $0x98] sm:$0xff] %vm1186_vm1, %v1103_v17  ;;  %v1107_v63 = vadd.f32 %v1106_v18, %v2425_v51 }
 0x22d   : > { %v1108_v1 = vpop.f32.mrf.mxu1 }
 0x22e   : > { %1206 = vst [vmem:[%s2359_s23 + $0xb0] sm:$0xff] %v1107_v63  ;;  %v1109_v2 = vadd.f32 %v1108_v1, %v2430_v54 }
 0x22f   : > { %v1112_v3 = vpop.f32.mrf.mxu1 }
 0x230   : > { %1207 = vst.msk [vmem:[%s2359_s23 + $0xb8] sm:$0xff] %vm1186_vm1, %v1109_v2  ;;  %v1113_v19 = vadd.f32 %v1112_v3, %v2425_v51 }
 0x231   : > { %v1114_v20 = vpop.f32.mrf.mxu1 }
 0x232   : > { %1210 = vst [vmem:[%s2359_s23 + $0xd0] sm:$0xff] %v1113_v19  ;;  %v1115_v21 = vadd.f32 %v1114_v20, %v2430_v54 }
 0x233   : > { %v1118_v22 = vpop.f32.mrf.mxu1 }
 0x234   : > { %1211 = vst.msk [vmem:[%s2359_s23 + $0xd8] sm:$0xff] %vm1186_vm1, %v1115_v21  ;;  %v1119_v23 = vadd.f32 %v1118_v22, %v2425_v51 }
 0x235   : > { %v1120_v24 = vpop.f32.mrf.mxu1 }
 0x236   : > { %1214 = vst [vmem:[%s2359_s23 + $0xf0] sm:$0xff] %v1119_v23  ;;  %v1121_v25 = vadd.f32 %v1120_v24, %v2430_v54 }
 0x237   : > { %v1124_v26 = vpop.f32.mrf.mxu1 }
 0x238   : > { %1215 = vst.msk [vmem:[%s2359_s23 + $0xf8] sm:$0xff] %vm1186_vm1, %v1121_v25  ;;  %v1125_v27 = vadd.f32 %v1124_v26, %v2425_v51 }
 0x239   : > { %v1126_v28 = vpop.f32.mrf.mxu1 }
 0x23a   : > { %1218 = vst [vmem:[%s2359_s23 + $0x110] sm:$0xff] %v1125_v27  ;;  %v1127_v29 = vadd.f32 %v1126_v28, %v2430_v54 }
 0x23b   : > { %v1130_v30 = vpop.f32.mrf.mxu1 }
 0x23c   : > { %1219 = vst.msk [vmem:[%s2359_s23 + $0x118] sm:$0xff] %vm1186_vm1, %v1127_v29  ;;  %v1131_v31 = vadd.f32 %v1130_v30, %v2425_v51 }
 0x23d   : > { %v1132_v32 = vpop.f32.mrf.mxu1 }
 0x23e   : > { %1222 = vst [vmem:[%s2359_s23 + $0x130] sm:$0xff] %v1131_v31  ;;  %v1133_v33 = vadd.f32 %v1132_v32, %v2430_v54 }
 0x23f   : > { %v1136_v34 = vpop.f32.mrf.mxu1 }
 0x240   : > { %1223 = vst.msk [vmem:[%s2359_s23 + $0x138] sm:$0xff] %vm1186_vm1, %v1133_v33  ;;  %v1137_v35 = vadd.f32 %v1136_v34, %v2425_v51 }
 0x241   : > { %v1138_v36 = vpop.f32.mrf.mxu1 }
 0x242   : > { %1226 = vst [vmem:[%s2359_s23 + $0x150] sm:$0xff] %v1137_v35  ;;  %v1139_v37 = vadd.f32 %v1138_v36, %v2430_v54 }
 0x243   : > { %v1142_v38 = vpop.f32.mrf.mxu1 }
 0x244   : > { %1227 = vst.msk [vmem:[%s2359_s23 + $0x158] sm:$0xff] %vm1186_vm1, %v1139_v37  ;;  %v1143_v39 = vadd.f32 %v1142_v38, %v2425_v51 }
 0x245   : > { %v1144_v41 = vpop.f32.mrf.mxu1 }
 0x246   : > { %1230 = vst [vmem:[%s2359_s23 + $0x170] sm:$0xff] %v1143_v39  ;;  %v1145_v43 = vadd.f32 %v1144_v41, %v2430_v54 }
 0x247   : > { %v1148_v46 = vpop.f32.mrf.mxu1 }
 0x248   : > { %1231 = vst.msk [vmem:[%s2359_s23 + $0x178] sm:$0xff] %vm1186_vm1, %v1145_v43  ;;  %v1149_v47 = vadd.f32 %v1148_v46, %v2425_v51 }
 0x249   : > { %v1150_v48 = vpop.f32.mrf.mxu1 }
 0x24a   : > { %1234 = vst [vmem:[%s2359_s23 + $0x190] sm:$0xff] %v1149_v47  ;;  %v1151_v49 = vadd.f32 %v1150_v48, %v2430_v54 }
 0x24b   : > { %v1154_v50 = vpop.f32.mrf.mxu1 }
 0x24c   : > { %1235 = vst.msk [vmem:[%s2359_s23 + $0x198] sm:$0xff] %vm1186_vm1, %v1151_v49  ;;  %v1155_v52 = vadd.f32 %v1154_v50, %v2425_v51 }
 0x24d   : > { %v1156_v53 = vpop.f32.mrf.mxu1 }
 0x24e   : > { %1238 = vst [vmem:[%s2359_s23 + $0x1b0] sm:$0xff] %v1155_v52  ;;  %v1157_v40 = vadd.f32 %v1156_v53, %v2430_v54 }
 0x24f   : > { %v1160_v55 = vpop.f32.mrf.mxu1 }
 0x250   : > { %1239 = vst.msk [vmem:[%s2359_s23 + $0x1b8] sm:$0xff] %vm1186_vm1, %v1157_v40  ;;  %v1161_v56 = vadd.f32 %v1160_v55, %v2425_v51 }
 0x251   : > { %v1162_v57 = vpop.f32.mrf.mxu1 }
 0x252   : > { %1242 = vst [vmem:[%s2359_s23 + $0x1d0] sm:$0xff] %v1161_v56  ;;  %v1163_v58 = vadd.f32 %v1162_v57, %v2430_v54 }
 0x253   : > { %v1166_v59 = vpop.f32.mrf.mxu1 }
 0x254   : > { %1243 = vst.msk [vmem:[%s2359_s23 + $0x1d8] sm:$0xff] %vm1186_vm1, %v1163_v58  ;;  %v1167_v60 = vadd.f32 %v1166_v59, %v2425_v51 }
 0x255   : > { %v1168_v42 = vpop.f32.mrf.mxu1 }
 0x256   : > { %1246 = vst [vmem:[%s2359_s23 + $0x1f0] sm:$0xff] %v1167_v60  ;;  %v1169_v61 = vadd.f32 %v1168_v42, %v2430_v54 }
 0x257   : > { %v1172_v62 = vpop.f32.mrf.mxu1 }
 0x258   : > { %1247 = vst.msk [vmem:[%s2359_s23 + $0x1f8] sm:$0xff] %vm1186_vm1, %v1169_v61  ;;  %v1173_v0 = vadd.f32 %v1172_v62, %v2425_v51 }
 0x259   : > { %v1174_v4 = vpop.f32.mrf.mxu1 }
 0x25a   : > { %1250 = vst [vmem:[%s2359_s23 + $0x210] sm:$0xff] %v1173_v0  ;;  %v1175_v5 = vadd.f32 %v1174_v4, %v2430_v54 }
 0x25b   : > { %v1178_v6 = vpop.f32.mrf.mxu1 }
 0x25c   : > { %1251 = vst.msk [vmem:[%s2359_s23 + $0x218] sm:$0xff] %vm1186_vm1, %v1175_v5  ;;  %v1179_v7 = vadd.f32 %v1178_v6, %v2425_v51 }
 0x25d   : > { %v1180_v8 = vpop.f32.mrf.mxu1 }
 0x25e   : > { %1254 = vst [vmem:[%s2359_s23 + $0x230] sm:$0xff] %v1179_v7  ;;  %v1181_v44 = vadd.f32 %v1180_v8, %v2430_v54 }
 0x260   : > { %1255 = vst.msk [vmem:[%s2359_s23 + $0x238] sm:$0xff] %vm1186_vm1, %v1181_v44 }
 0x261 PF: > { %s14_s15 = sadd.s32 1, %s1374_s15  }
 0x262   : > { %p11_p4 = scmp.ge.s32.totalorder %s14_s15, 4  }
 0x264   :  { %13 = sbr.rel (!%p11_p4) target bundleno = 1 (0x1), region = 66 }

</bundles_post_ra>
